<compile_context>
chip_gen: v7x
topology: tpu7x:2x2x1
jax: 0.10.0
libtpu: 0.0.40
codegen_flags: <defaults>
</compile_context>

<pallas_src>
import numpy as np

import jax
import jax.numpy as jnp
from jax.experimental import pallas as pl
from jax.experimental.pallas import tpu as pltpu

SIZE = 16                    # crop/resize size (scaled stand-in for 3DDFA's 120)
HP = WP = SIZE + 2           # zero-padded spatial grid
C1, C2 = 16, 32              # scaled-down mobilenet_1 channel widths
CPAD = 128                   # lane-dense channel dim for all activations
LPAD = 128                   # lane-dense landmark slab (68 -> 128)
NUM_PARAMS = 62              # 12 pose + 40 shape + 10 expression coefficients
NUM_LMK = 68
MARGIN = 32                  # guard rows (bf16-sublane aligned) for 3x3 row shifts
ROWS_IMG = HP * WP           # 324 pixel rows per image
ROWS_PAD = ((ROWS_IMG + 7) // 8) * 8   # 328, sublane aligned
TOT = ROWS_PAD + 2 * MARGIN  # activation-scratch rows per image
OFFSETS = tuple((ky - 1) * WP + (kx - 1) for ky in range(3) for kx in range(3))


def _shared_spec(shape):
    """Full-array block, same tile every grid step (weights / constants)."""
    nd = len(shape)
    return pl.BlockSpec(shape, lambda b, _nd=nd: (0,) * _nd)


# ----------------------------------------------------------------------------
# The single fused kernel (one image per grid step; batch axis is parallel)
# ----------------------------------------------------------------------------
def _detector_kernel(x_ref, mask_ref, pool_ref,
                     w1_ref, b1_ref, dw1w_ref, dw1b_ref, pw1w_ref, pw1b_ref,
                     dw2w_ref, dw2b_ref, pw2w_ref, pw2b_ref, fcw_ref, fcb_ref,
                     basis_ref, u_ref, roi_ref,
                     params_ref, pts_ref, calib_ref,
                     acta_ref, actb_ref):
    bf16 = jnp.bfloat16
    interior = mask_ref[...] > 0.5                       # (ROWS_PAD, 1) valid pixels

    # Zero ONLY the guard rows; the interior is fully overwritten below.
    zero_guard = jnp.zeros((MARGIN, CPAD), bf16)
    acta_ref[0:MARGIN, :] = zero_guard
    acta_ref[MARGIN + ROWS_PAD:TOT, :] = zero_guard
    actb_ref[0:MARGIN, :] = zero_guard
    actb_ref[MARGIN + ROWS_PAD:TOT, :] = zero_guard

    def shifted(ref, d):
        return ref[MARGIN + d:MARGIN + d + ROWS_PAD, :]

    # ---- conv1 3x3 (3 -> C1): single im2col MXU matmul -----------------------
    acc = jnp.dot(x_ref[...], w1_ref[...], preferred_element_type=jnp.float32)
    acc = jnp.maximum(acc + b1_ref[...], 0.0)
    acta_ref[MARGIN:MARGIN + ROWS_PAD, :] = jnp.where(interior, acc, 0.0).astype(bf16)

    # ---- depthwise 3x3 + pointwise (block 1) --------------------------------
    acc = jnp.zeros((ROWS_PAD, CPAD), jnp.float32)
    for k, d in enumerate(OFFSETS):
        acc = acc + shifted(acta_ref, d) * dw1w_ref[k:k + 1, :]   # bf16 * f32 -> f32
    h = jnp.maximum(acc + dw1b_ref[...], 0.0)
    h = jnp.dot(h.astype(bf16), pw1w_ref[...], preferred_element_type=jnp.float32)
    h = jnp.maximum(h + pw1b_ref[...], 0.0)
    actb_ref[MARGIN:MARGIN + ROWS_PAD, :] = jnp.where(interior, h, 0.0).astype(bf16)

    # ---- depthwise 3x3 + pointwise (block 2) --------------------------------
    acc = jnp.zeros((ROWS_PAD, CPAD), jnp.float32)
    for k, d in enumerate(OFFSETS):
        acc = acc + shifted(actb_ref, d) * dw2w_ref[k:k + 1, :]
    h = jnp.maximum(acc + dw2b_ref[...], 0.0)
    h = jnp.dot(h.astype(bf16), pw2w_ref[...], preferred_element_type=jnp.float32)
    h = jnp.maximum(h + pw2b_ref[...], 0.0)

    # ---- global average pool (interior mask folded into pool matrix) + fc ----
    pooled = jnp.dot(pool_ref[...], h.astype(bf16),
                     preferred_element_type=jnp.float32)          # (8, 128), row 0 valid
    params = jnp.dot(pooled.astype(bf16), fcw_ref[...],
                     preferred_element_type=jnp.float32) + fcb_ref[...]
    params_ref[...] = params                                       # lane-dense (8, 128)

    # ---- predict_68pts: one MXU matmul with the packed (128, 3*128) basis ---
    vert = u_ref[...] + jnp.dot(params.astype(bf16), basis_ref[...],
                                preferred_element_type=jnp.float32)  # (8, 384)
    vx = vert[:, 0:LPAD]
    vy = vert[:, LPAD:2 * LPAD]
    vz = vert[:, 2 * LPAD:3 * LPAD]
    p = params
    # pose matrix P = params[:12].reshape(3, 4): element (i, j) lives at lane 4*i+j
    mx = p[:, 0:1] * vx + p[:, 1:2] * vy + p[:, 2:3] * vz + p[:, 3:4]
    my = p[:, 4:5] * vx + p[:, 5:6] * vy + p[:, 6:7] * vz + p[:, 7:8]
    mz = p[:, 8:9] * vx + p[:, 9:10] * vy + p[:, 10:11] * vz + p[:, 11:12]

    # rescale model-space landmarks into image coordinates via roi boxes
    sx, sy = roi_ref[:, 0:1], roi_ref[:, 1:2]
    ex, ey = roi_ref[:, 2:3], roi_ref[:, 3:4]
    scale_x = (ex - sx) / float(SIZE)
    scale_y = (ey - sy) / float(SIZE)
    # TODO(synk): confirm the reference z rescaling (scale_x used here).
    pts_ref[...] = jnp.concatenate(
        [mx * scale_x + sx, my * scale_y + sy, mz * scale_x], axis=-1)

    # ---- landmarks_calibration: remove rigid pose (R^T (pts - t3d)) ---------
    # TODO(synk): exact landmarks_calibration source unavailable; using R^T (pts - t3d).
    r1x, r1y, r1z = p[:, 0:1], p[:, 1:2], p[:, 2:3]
    r2x, r2y, r2z = p[:, 4:5], p[:, 5:6], p[:, 6:7]
    n1 = jnp.sqrt(r1x * r1x + r1y * r1y + r1z * r1z) + 1e-8
    n2 = jnp.sqrt(r2x * r2x + r2y * r2y + r2z * r2z) + 1e-8
    a1x, a1y, a1z = r1x / n1, r1y / n1, r1z / n1
    a2x, a2y, a2z = r2x / n2, r2y / n2, r2z / n2
    a3x = a1y * a2z - a1z * a2y
    a3y = a1z * a2x - a1x * a2z
    a3z = a1x * a2y - a1y * a2x
    dx = mx - p[:, 3:4]
    dy = my - p[:, 7:8]
    dz = mz - p[:, 11:12]
    calib_ref[...] = jnp.concatenate(
        [a1x * dx + a2x * dy + a3x * dz,
         a1y * dx + a2y * dy + a3y * dz,
         a1z * dx + a2z * dy + a3z * dz], axis=-1)


# ----------------------------------------------------------------------------
# Deterministic synthetic parameters (same shapes/semantics as before)
# ----------------------------------------------------------------------------
def init_params(key):
    ks = jax.random.split(key, 15)

    def n(k, shape, scale=0.1):
        return (scale * jax.random.normal(k, shape)).astype(jnp.float32)

    return dict(
        conv1_w=n(ks[0], (27, C1)), conv1_b=n(ks[1], (C1,)),        # 3x3x3 conv
        dw1_w=n(ks[2], (9, C1)), dw1_b=n(ks[3], (C1,)),
        pw1_w=n(ks[4], (C1, C2)), pw1_b=n(ks[5], (C2,)),
        dw2_w=n(ks[6], (9, C2)), dw2_b=n(ks[7], (C2,)),
        pw2_w=n(ks[8], (C2, C2)), pw2_b=n(ks[9], (C2,)),
        fc_w=n(ks[10], (C2, NUM_PARAMS)), fc_b=n(ks[11], (NUM_PARAMS,)),
        u_base=n(ks[12], (1, 3 * NUM_LMK), 1.0),                    # 3DMM mean shape
        w_shp=n(ks[13], (40, 3 * NUM_LMK)),                         # shape basis
        w_exp=n(ks[14], (10, 3 * NUM_LMK)),                         # expression basis
    )


# ----------------------------------------------------------------------------
# One-time packing of weights into lane-dense / MXU-friendly bf16 layouts
# ----------------------------------------------------------------------------
def pack_params(P):
    f32, bf16 = jnp.float32, jnp.bfloat16

    def pad2(w):                                      # bf16 MXU weight, 128x128
        out = jnp.zeros((CPAD, CPAD), f32).at[:w.shape[0], :w.shape[1]].set(w)
        return out.astype(bf16)

    def padb(b):                                      # f32 bias row, 1x128
        return jnp.zeros((1, CPAD), f32).at[0, :b.shape[0]].set(b)

    def pad_dw(w, c):                                 # f32 depthwise taps, 9x128
        return jnp.zeros((9, CPAD), f32).at[:, :c].set(w)

    # conv1 im2col weight: input lane = tap*3 + cin (tap-major), 128x128 bf16
    w1 = jnp.zeros((CPAD, CPAD), f32).at[:27, :C1].set(P["conv1_w"]).astype(bf16)

    # 3DMM basis packed so that params @ basis == u_shift; x/y/z in separate
    # 128-lane slabs (lane-aligned vx/vy/vz slices in-kernel).
    def slab(w):
        out = jnp.zeros((w.shape[0], 3 * LPAD), f32)
        for a in range(3):
            out = out.at[:, a * LPAD:a * LPAD + NUM_LMK].set(
                w[:, a * NUM_LMK:(a + 1) * NUM_LMK])
        return out

    basis = jnp.zeros((CPAD, 3 * LPAD), f32)
    basis = basis.at[12:52].set(slab(P["w_shp"]))     # shape coefficients
    basis = basis.at[52:62].set(slab(P["w_exp"]))     # expression coefficients

    return dict(
        w1=w1, b1=padb(P["conv1_b"]),
        dw1w=pad_dw(P["dw1_w"], C1), dw1b=padb(P["dw1_b"]),
        pw1w=pad2(P["pw1_w"]), pw1b=padb(P["pw1_b"]),
        dw2w=pad_dw(P["dw2_w"], C2), dw2b=padb(P["dw2_b"]),
        pw2w=pad2(P["pw2_w"]), pw2b=padb(P["pw2_b"]),
        fcw=pad2(P["fc_w"]), fcb=padb(P["fc_b"]),
        basis=basis.astype(bf16), u=slab(P["u_base"]),
    )


def _build_mask_and_pool():
    # Trace-time numpy constants: per-image interior mask and pooling matrix.
    interior = np.zeros((HP, WP), np.float32)
    interior[1:SIZE + 1, 1:SIZE + 1] = 1.0
    flat = interior.reshape(-1)
    mask = np.zeros((ROWS_PAD, 1), np.float32)
    mask[:ROWS_IMG, 0] = flat
    pool = np.zeros((8, ROWS_PAD), np.float32)
    pool[0, :ROWS_IMG] = flat / float(SIZE * SIZE)
    return jnp.asarray(mask), jnp.asarray(pool, dtype=jnp.bfloat16)


# ----------------------------------------------------------------------------
# Forward pass: glue (resize, im2col layout, parse_pose) + one fused Pallas call
# ----------------------------------------------------------------------------
@jax.jit
def _forward_core(x_nchw, packed, roi_boxes):
    B = x_nchw.shape[0]

    # preprocess: dlib hard_preprocess has no Pallas equivalent; roi boxes are
    # supplied externally and the crop is approximated by a bilinear resize.
    # TODO(synk): antialiased resize + dlib face boxes (hard_preprocess path).
    x = jnp.transpose(x_nchw, (0, 2, 3, 1)).astype(jnp.float32)     # NCHW -> NHWC
    x = jax.image.resize(x, (B, SIZE, SIZE, 3), method="bilinear")

    # im2col in glue: 9 shifted taps of the zero-padded grid -> 27 dense lanes.
    xp = jnp.pad(x, ((0, 0), (2, 2), (2, 2), (0, 0)))               # pad=1 (conv) + 1 (tap reach)
    taps = [xp[:, ky:ky + HP, kx:kx + WP, :]
            for ky in range(3) for kx in range(3)]
    col = jnp.concatenate(taps, axis=-1).reshape(B, ROWS_IMG, 27)   # tap-major lanes
    x_in = jnp.zeros((B, ROWS_PAD, CPAD), jnp.float32)
    x_in = x_in.at[:, :ROWS_IMG, :27].set(col).astype(jnp.bfloat16)

    mask, pool = _build_mask_and_pool()
    roi_pad = jnp.zeros((B, 1, CPAD), jnp.float32).at[:, 0, :4].set(
        roi_boxes.astype(jnp.float32))

    in_specs = [
        pl.BlockSpec((None, ROWS_PAD, CPAD), lambda b: (b, 0, 0)),   # x_in (per image)
        _shared_spec((ROWS_PAD, 1)),                                 # mask
        _shared_spec((8, ROWS_PAD)),                                 # pool
        _shared_spec((CPAD, CPAD)),                                  # w1
        _shared_spec((1, CPAD)),                                     # b1
        _shared_spec((9, CPAD)),                                     # dw1w
        _shared_spec((1, CPAD)),                                     # dw1b
        _shared_spec((CPAD, CPAD)),                                  # pw1w
        _shared_spec((1, CPAD)),                                     # pw1b
        _shared_spec((9, CPAD)),                                     # dw2w
        _shared_spec((1, CPAD)),                                     # dw2b
        _shared_spec((CPAD, CPAD)),                                  # pw2w
        _shared_spec((1, CPAD)),                                     # pw2b
        _shared_spec((CPAD, CPAD)),                                  # fcw
        _shared_spec((1, CPAD)),                                     # fcb
        _shared_spec((CPAD, 3 * LPAD)),                              # basis
        _shared_spec((1, 3 * LPAD)),                                 # u
        pl.BlockSpec((None, 1, CPAD), lambda b: (b, 0, 0)),          # roi (per image)
    ]
    out_specs = (
        pl.BlockSpec((None, 8, CPAD), lambda b: (b, 0, 0)),
        pl.BlockSpec((None, 8, 3 * LPAD), lambda b: (b, 0, 0)),
        pl.BlockSpec((None, 8, 3 * LPAD), lambda b: (b, 0, 0)),
    )

    params_pad, pts_flat, calib_flat = pl.pallas_call(
        _detector_kernel,
        grid=(B,),
        out_shape=(jax.ShapeDtypeStruct((B, 8, CPAD), jnp.float32),
                   jax.ShapeDtypeStruct((B, 8, 3 * LPAD), jnp.float32),
                   jax.ShapeDtypeStruct((B, 8, 3 * LPAD), jnp.float32)),
        in_specs=in_specs,
        out_specs=out_specs,
        scratch_shapes=[pltpu.VMEM((TOT, CPAD), jnp.bfloat16),
                        pltpu.VMEM((TOT, CPAD), jnp.bfloat16)],
        compiler_params=pltpu.CompilerParams(
            dimension_semantics=("parallel",)),
    )(x_in, mask, pool,
      packed["w1"], packed["b1"], packed["dw1w"], packed["dw1b"],
      packed["pw1w"], packed["pw1b"], packed["dw2w"], packed["dw2b"],
      packed["pw2w"], packed["pw2b"], packed["fcw"], packed["fcb"],
      packed["basis"], packed["u"], roi_pad)

    params62 = params_pad[:, 0, :NUM_PARAMS]                         # (B, 62)
    pts68 = pts_flat[:, 0, :].reshape(B, 3, LPAD)[:, :, :NUM_LMK]
    calib = calib_flat[:, 0, :].reshape(B, 3, LPAD)[:, :, :NUM_LMK]

    # --- parse_pose (tiny 3x3 per-batch math; plain JAX glue) ---
    Pm = params62[:, :12].reshape(B, 3, 4)
    r1_, r2_ = Pm[:, 0, :3], Pm[:, 1, :3]
    n1 = jnp.linalg.norm(r1_, axis=-1, keepdims=True) + 1e-8
    n2 = jnp.linalg.norm(r2_, axis=-1, keepdims=True) + 1e-8
    r1, r2 = r1_ / n1, r2_ / n2
    r3 = jnp.cross(r1, r2)
    R = jnp.stack([r1, r2, r3], axis=1)                              # (B,3,3)
    yaw = jnp.arctan2(R[:, 1, 0], R[:, 0, 0])
    pitch = jnp.arcsin(-jnp.clip(R[:, 2, 0], -1.0, 1.0))
    roll = jnp.arctan2(R[:, 2, 1], R[:, 2, 2])
    pose = jnp.stack([yaw, pitch, roll], axis=1)                     # (B,3)

    return pts68[:, :2, 17:], pose, calib[:, :2, 17:], pts68


def landmarks_detector_forward(x_nchw, packed, roi_boxes):
    lnds, pose, calib, pts68 = _forward_core(x_nchw, packed, roi_boxes)
    idx_sets = set(range(x_nchw.shape[0]))   # stand-in for dlib "face found" indices
    return lnds, pose, calib, idx_sets, pts68


if __name__ == "__main__":
    key = jax.random.PRNGKey(0)
    kx, kp = jax.random.split(key)
    B = 2
    x = jax.random.normal(kx, (B, 3, 24, 24), dtype=jnp.float32)    # NCHW, like PyTorch
    packed = pack_params(init_params(kp))
    roi_boxes = jnp.array([[2.0, 2.0, 14.0, 14.0],
                           [1.0, 3.0, 15.0, 17.0]], dtype=jnp.float32)

    lnds, pose, calib, idx_sets, pts68 = landmarks_detector_forward(x, packed, roi_boxes)
    jax.block_until_ready((lnds, pose, calib, pts68))

    assert lnds.shape == (B, 2, 51)
    assert calib.shape == (B, 2, 51)
    assert pose.shape == (B, 3)
    assert pts68.shape == (B, 3, 68)
    assert idx_sets == set(range(B))
    assert bool(jnp.all(jnp.isfinite(pts68))) and bool(jnp.all(jnp.isfinite(calib)))
    print("KERNEL_OK")
</pallas_src>

<mosaic_0001>
module attributes {stable_mosaic.version = 11 : i64} {
  func.func @_detector_kernel(%arg0: i32, %arg1: memref<1x328x128xbf16, #tpu.memory_space<vmem>>, %arg2: memref<328x1xf32, #tpu.memory_space<vmem>>, %arg3: memref<8x328xbf16, #tpu.memory_space<vmem>>, %arg4: memref<128x128xbf16, #tpu.memory_space<vmem>>, %arg5: memref<1x128xf32, #tpu.memory_space<vmem>>, %arg6: memref<9x128xf32, #tpu.memory_space<vmem>>, %arg7: memref<1x128xf32, #tpu.memory_space<vmem>>, %arg8: memref<128x128xbf16, #tpu.memory_space<vmem>>, %arg9: memref<1x128xf32, #tpu.memory_space<vmem>>, %arg10: memref<9x128xf32, #tpu.memory_space<vmem>>, %arg11: memref<1x128xf32, #tpu.memory_space<vmem>>, %arg12: memref<128x128xbf16, #tpu.memory_space<vmem>>, %arg13: memref<1x128xf32, #tpu.memory_space<vmem>>, %arg14: memref<128x128xbf16, #tpu.memory_space<vmem>>, %arg15: memref<1x128xf32, #tpu.memory_space<vmem>>, %arg16: memref<128x384xbf16, #tpu.memory_space<vmem>>, %arg17: memref<1x384xf32, #tpu.memory_space<vmem>>, %arg18: memref<1x1x128xf32, #tpu.memory_space<vmem>>, %arg19: memref<1x8x128xf32, #tpu.memory_space<vmem>>, %arg20: memref<1x8x384xf32, #tpu.memory_space<vmem>>, %arg21: memref<1x8x384xf32, #tpu.memory_space<vmem>>, %arg22: memref<392x128xbf16, #tpu.memory_space<vmem>>, %arg23: memref<392x128xbf16, #tpu.memory_space<vmem>>) attributes {dimension_semantics = [#tpu.dimension_semantics<parallel>], iteration_bounds = array<i64: 2>, scalar_prefetch = 0 : i64, scratch_operands = 2 : i64, tpu.core_type = #tpu.core_type<tc>, window_params = [{transform_indices = @transform_0, window_bounds = array<i64: 1, 328, 128>}, {pipeline_mode = #tpu.pipeline_mode<synchronous>, transform_indices = @transform_1, window_bounds = array<i64: 328, 1>}, {pipeline_mode = #tpu.pipeline_mode<synchronous>, transform_indices = @transform_2, window_bounds = array<i64: 8, 328>}, {pipeline_mode = #tpu.pipeline_mode<synchronous>, transform_indices = @transform_3, window_bounds = array<i64: 128, 128>}, {pipeline_mode = #tpu.pipeline_mode<synchronous>, transform_indices = @transform_4, window_bounds = array<i64: 1, 128>}, {pipeline_mode = #tpu.pipeline_mode<synchronous>, transform_indices = @transform_5, window_bounds = array<i64: 9, 128>}, {pipeline_mode = #tpu.pipeline_mode<synchronous>, transform_indices = @transform_6, window_bounds = array<i64: 1, 128>}, {pipeline_mode = #tpu.pipeline_mode<synchronous>, transform_indices = @transform_7, window_bounds = array<i64: 128, 128>}, {pipeline_mode = #tpu.pipeline_mode<synchronous>, transform_indices = @transform_8, window_bounds = array<i64: 1, 128>}, {pipeline_mode = #tpu.pipeline_mode<synchronous>, transform_indices = @transform_9, window_bounds = array<i64: 9, 128>}, {pipeline_mode = #tpu.pipeline_mode<synchronous>, transform_indices = @transform_10, window_bounds = array<i64: 1, 128>}, {pipeline_mode = #tpu.pipeline_mode<synchronous>, transform_indices = @transform_11, window_bounds = array<i64: 128, 128>}, {pipeline_mode = #tpu.pipeline_mode<synchronous>, transform_indices = @transform_12, window_bounds = array<i64: 1, 128>}, {pipeline_mode = #tpu.pipeline_mode<synchronous>, transform_indices = @transform_13, window_bounds = array<i64: 128, 128>}, {pipeline_mode = #tpu.pipeline_mode<synchronous>, transform_indices = @transform_14, window_bounds = array<i64: 1, 128>}, {pipeline_mode = #tpu.pipeline_mode<synchronous>, transform_indices = @transform_15, window_bounds = array<i64: 128, 384>}, {pipeline_mode = #tpu.pipeline_mode<synchronous>, transform_indices = @transform_16, window_bounds = array<i64: 1, 384>}, {transform_indices = @transform_17, window_bounds = array<i64: 1, 1, 128>}, {transform_indices = @transform_18, window_bounds = array<i64: 1, 8, 128>}, {transform_indices = @transform_19, window_bounds = array<i64: 1, 8, 384>}, {transform_indices = @transform_20, window_bounds = array<i64: 1, 8, 384>}]} {
    %c0 = arith.constant 0 : index
    %c0_0 = arith.constant 0 : index
    %0 = vector.load %arg2[%c0, %c0_0] : memref<328x1xf32, #tpu.memory_space<vmem>>, vector<328x1xf32>
    %cst = arith.constant 5.000000e-01 : f32
    %1 = vector.broadcast %cst : f32 to vector<328x1xf32>
    %2 = arith.cmpf ogt, %0, %1 : vector<328x1xf32>
    %cst_1 = arith.constant 0.000000e+00 : bf16
    %3 = vector.broadcast %cst_1 : bf16 to vector<32x128xbf16>
    %c0_2 = arith.constant 0 : index
    %c0_3 = arith.constant 0 : index
    %4 = vector.load %arg22[%c0_2, %c0_3] : memref<392x128xbf16, #tpu.memory_space<vmem>>, vector<32x128xbf16>
    tpu.vector_store %arg22[%c0_2, %c0_3], %3 {strides = array<i32>} : memref<392x128xbf16, #tpu.memory_space<vmem>>, vector<32x128xbf16>,
    %c360 = arith.constant 360 : index
    %c0_4 = arith.constant 0 : index
    %5 = vector.load %arg22[%c360, %c0_4] : memref<392x128xbf16, #tpu.memory_space<vmem>>, vector<32x128xbf16>
    tpu.vector_store %arg22[%c360, %c0_4], %3 {strides = array<i32>} : memref<392x128xbf16, #tpu.memory_space<vmem>>, vector<32x128xbf16>,
    %c0_5 = arith.constant 0 : index
    %c0_6 = arith.constant 0 : index
    %6 = vector.load %arg23[%c0_5, %c0_6] : memref<392x128xbf16, #tpu.memory_space<vmem>>, vector<32x128xbf16>
    tpu.vector_store %arg23[%c0_5, %c0_6], %3 {strides = array<i32>} : memref<392x128xbf16, #tpu.memory_space<vmem>>, vector<32x128xbf16>,
    %c360_7 = arith.constant 360 : index
    %c0_8 = arith.constant 0 : index
    %7 = vector.load %arg23[%c360_7, %c0_8] : memref<392x128xbf16, #tpu.memory_space<vmem>>, vector<32x128xbf16>
    tpu.vector_store %arg23[%c360_7, %c0_8], %3 {strides = array<i32>} : memref<392x128xbf16, #tpu.memory_space<vmem>>, vector<32x128xbf16>,
    %c0_9 = arith.constant 0 : index
    %c0_10 = arith.constant 0 : index
    %c0_11 = arith.constant 0 : index
    %8 = vector.load %arg1[%c0_9, %c0_10, %c0_11] : memref<1x328x128xbf16, #tpu.memory_space<vmem>>, vector<1x328x128xbf16>
    %9 = vector.shape_cast %8 : vector<1x328x128xbf16> to vector<328x128xbf16>
    %c0_12 = arith.constant 0 : index
    %c0_13 = arith.constant 0 : index
    %10 = vector.load %arg4[%c0_12, %c0_13] : memref<128x128xbf16, #tpu.memory_space<vmem>>, vector<128x128xbf16>
    %cst_14 = arith.constant dense<0.000000e+00> : vector<328x128xf32>
    %11 = tpu.matmul %9, %10, %cst_14 {dimension_numbers = #tpu.dot_dimension_numbers<[1], [0], [0], [1], [0, 0, 1, 1], [], []>} : vector<328x128xbf16>, vector<128x128xbf16>, vector<328x128xf32> -> vector<328x128xf32>
    %c0_15 = arith.constant 0 : index
    %c0_16 = arith.constant 0 : index
    %12 = vector.load %arg5[%c0_15, %c0_16] : memref<1x128xf32, #tpu.memory_space<vmem>>, vector<1x128xf32>
    %13 = vector.broadcast %12 : vector<1x128xf32> to vector<328x128xf32>
    %14 = arith.addf %11, %13 : vector<328x128xf32>
    %cst_17 = arith.constant 0.000000e+00 : f32
    %15 = vector.broadcast %cst_17 : f32 to vector<328x128xf32>
    %16 = arith.maximumf %14, %15 : vector<328x128xf32>
    %cst_18 = arith.constant 0.000000e+00 : f32
    %17 = vector.shape_cast %2 : vector<328x1xi1> to vector<328x1xi1>
    %18 = vector.broadcast %17 : vector<328x1xi1> to vector<328x128xi1>
    %19 = vector.broadcast %cst_18 : f32 to vector<328x128xf32>
    %20 = arith.select %18, %16, %19 : vector<328x128xi1>, vector<328x128xf32>
    %21 = arith.truncf %20 : vector<328x128xf32> to vector<328x128xbf16>
    %c32 = arith.constant 32 : index
    %c0_19 = arith.constant 0 : index
    %22 = vector.load %arg22[%c32, %c0_19] : memref<392x128xbf16, #tpu.memory_space<vmem>>, vector<328x128xbf16>
    tpu.vector_store %arg22[%c32, %c0_19], %21 {strides = array<i32>} : memref<392x128xbf16, #tpu.memory_space<vmem>>, vector<328x128xbf16>,
    %cst_20 = arith.constant 0.000000e+00 : f32
    %23 = vector.broadcast %cst_20 : f32 to vector<328x128xf32>
    %c13 = arith.constant 13 : index
    %c0_21 = arith.constant 0 : index
    %24 = vector.load %arg22[%c13, %c0_21] : memref<392x128xbf16, #tpu.memory_space<vmem>>, vector<328x128xbf16>
    %c0_22 = arith.constant 0 : index
    %c0_23 = arith.constant 0 : index
    %25 = vector.load %arg6[%c0_22, %c0_23] : memref<9x128xf32, #tpu.memory_space<vmem>>, vector<1x128xf32>
    %26 = arith.extf %24 : vector<328x128xbf16> to vector<328x128xf32>
    %27 = vector.broadcast %25 : vector<1x128xf32> to vector<328x128xf32>
    %28 = arith.mulf %26, %27 : vector<328x128xf32>
    %29 = arith.addf %23, %28 : vector<328x128xf32>
    %c14 = arith.constant 14 : index
    %c0_24 = arith.constant 0 : index
    %30 = vector.load %arg22[%c14, %c0_24] : memref<392x128xbf16, #tpu.memory_space<vmem>>, vector<328x128xbf16>
    %c1 = arith.constant 1 : index
    %c0_25 = arith.constant 0 : index
    %31 = vector.load %arg6[%c1, %c0_25] : memref<9x128xf32, #tpu.memory_space<vmem>>, vector<1x128xf32>
    %32 = arith.extf %30 : vector<328x128xbf16> to vector<328x128xf32>
    %33 = vector.broadcast %31 : vector<1x128xf32> to vector<328x128xf32>
    %34 = arith.mulf %32, %33 : vector<328x128xf32>
    %35 = arith.addf %29, %34 : vector<328x128xf32>
    %c15 = arith.constant 15 : index
    %c0_26 = arith.constant 0 : index
    %36 = vector.load %arg22[%c15, %c0_26] : memref<392x128xbf16, #tpu.memory_space<vmem>>, vector<328x128xbf16>
    %c2 = arith.constant 2 : index
    %c0_27 = arith.constant 0 : index
    %37 = vector.load %arg6[%c2, %c0_27] : memref<9x128xf32, #tpu.memory_space<vmem>>, vector<1x128xf32>
    %38 = arith.extf %36 : vector<328x128xbf16> to vector<328x128xf32>
    %39 = vector.broadcast %37 : vector<1x128xf32> to vector<328x128xf32>
    %40 = arith.mulf %38, %39 : vector<328x128xf32>
    %41 = arith.addf %35, %40 : vector<328x128xf32>
    %c31 = arith.constant 31 : index
    %c0_28 = arith.constant 0 : index
    %42 = vector.load %arg22[%c31, %c0_28] : memref<392x128xbf16, #tpu.memory_space<vmem>>, vector<328x128xbf16>
    %c3 = arith.constant 3 : index
    %c0_29 = arith.constant 0 : index
    %43 = vector.load %arg6[%c3, %c0_29] : memref<9x128xf32, #tpu.memory_space<vmem>>, vector<1x128xf32>
    %44 = arith.extf %42 : vector<328x128xbf16> to vector<328x128xf32>
    %45 = vector.broadcast %43 : vector<1x128xf32> to vector<328x128xf32>
    %46 = arith.mulf %44, %45 : vector<328x128xf32>
    %47 = arith.addf %41, %46 : vector<328x128xf32>
    %c32_30 = arith.constant 32 : index
    %c0_31 = arith.constant 0 : index
    %48 = vector.load %arg22[%c32_30, %c0_31] : memref<392x128xbf16, #tpu.memory_space<vmem>>, vector<328x128xbf16>
    %c4 = arith.constant 4 : index
    %c0_32 = arith.constant 0 : index
    %49 = vector.load %arg6[%c4, %c0_32] : memref<9x128xf32, #tpu.memory_space<vmem>>, vector<1x128xf32>
    %50 = arith.extf %48 : vector<328x128xbf16> to vector<328x128xf32>
    %51 = vector.broadcast %49 : vector<1x128xf32> to vector<328x128xf32>
    %52 = arith.mulf %50, %51 : vector<328x128xf32>
    %53 = arith.addf %47, %52 : vector<328x128xf32>
    %c33 = arith.constant 33 : index
    %c0_33 = arith.constant 0 : index
    %54 = vector.load %arg22[%c33, %c0_33] : memref<392x128xbf16, #tpu.memory_space<vmem>>, vector<328x128xbf16>
    %c5 = arith.constant 5 : index
    %c0_34 = arith.constant 0 : index
    %55 = vector.load %arg6[%c5, %c0_34] : memref<9x128xf32, #tpu.memory_space<vmem>>, vector<1x128xf32>
    %56 = arith.extf %54 : vector<328x128xbf16> to vector<328x128xf32>
    %57 = vector.broadcast %55 : vector<1x128xf32> to vector<328x128xf32>
    %58 = arith.mulf %56, %57 : vector<328x128xf32>
    %59 = arith.addf %53, %58 : vector<328x128xf32>
    %c49 = arith.constant 49 : index
    %c0_35 = arith.constant 0 : index
    %60 = vector.load %arg22[%c49, %c0_35] : memref<392x128xbf16, #tpu.memory_space<vmem>>, vector<328x128xbf16>
    %c6 = arith.constant 6 : index
    %c0_36 = arith.constant 0 : index
    %61 = vector.load %arg6[%c6, %c0_36] : memref<9x128xf32, #tpu.memory_space<vmem>>, vector<1x128xf32>
    %62 = arith.extf %60 : vector<328x128xbf16> to vector<328x128xf32>
    %63 = vector.broadcast %61 : vector<1x128xf32> to vector<328x128xf32>
    %64 = arith.mulf %62, %63 : vector<328x128xf32>
    %65 = arith.addf %59, %64 : vector<328x128xf32>
    %c50 = arith.constant 50 : index
    %c0_37 = arith.constant 0 : index
    %66 = vector.load %arg22[%c50, %c0_37] : memref<392x128xbf16, #tpu.memory_space<vmem>>, vector<328x128xbf16>
    %c7 = arith.constant 7 : index
    %c0_38 = arith.constant 0 : index
    %67 = vector.load %arg6[%c7, %c0_38] : memref<9x128xf32, #tpu.memory_space<vmem>>, vector<1x128xf32>
    %68 = arith.extf %66 : vector<328x128xbf16> to vector<328x128xf32>
    %69 = vector.broadcast %67 : vector<1x128xf32> to vector<328x128xf32>
    %70 = arith.mulf %68, %69 : vector<328x128xf32>
    %71 = arith.addf %65, %70 : vector<328x128xf32>
    %c51 = arith.constant 51 : index
    %c0_39 = arith.constant 0 : index
    %72 = vector.load %arg22[%c51, %c0_39] : memref<392x128xbf16, #tpu.memory_space<vmem>>, vector<328x128xbf16>
    %c8 = arith.constant 8 : index
    %c0_40 = arith.constant 0 : index
    %73 = vector.load %arg6[%c8, %c0_40] : memref<9x128xf32, #tpu.memory_space<vmem>>, vector<1x128xf32>
    %74 = arith.extf %72 : vector<328x128xbf16> to vector<328x128xf32>
    %75 = vector.broadcast %73 : vector<1x128xf32> to vector<328x128xf32>
    %76 = arith.mulf %74, %75 : vector<328x128xf32>
    %77 = arith.addf %71, %76 : vector<328x128xf32>
    %c0_41 = arith.constant 0 : index
    %c0_42 = arith.constant 0 : index
    %78 = vector.load %arg7[%c0_41, %c0_42] : memref<1x128xf32, #tpu.memory_space<vmem>>, vector<1x128xf32>
    %79 = vector.broadcast %78 : vector<1x128xf32> to vector<328x128xf32>
    %80 = arith.addf %77, %79 : vector<328x128xf32>
    %cst_43 = arith.constant 0.000000e+00 : f32
    %81 = vector.broadcast %cst_43 : f32 to vector<328x128xf32>
    %82 = arith.maximumf %80, %81 : vector<328x128xf32>
    %83 = arith.truncf %82 : vector<328x128xf32> to vector<328x128xbf16>
    %c0_44 = arith.constant 0 : index
    %c0_45 = arith.constant 0 : index
    %84 = vector.load %arg8[%c0_44, %c0_45] : memref<128x128xbf16, #tpu.memory_space<vmem>>, vector<128x128xbf16>
    %cst_46 = arith.constant dense<0.000000e+00> : vector<328x128xf32>
    %85 = tpu.matmul %83, %84, %cst_46 {dimension_numbers = #tpu.dot_dimension_numbers<[1], [0], [0], [1], [0, 0, 1, 1], [], []>} : vector<328x128xbf16>, vector<128x128xbf16>, vector<328x128xf32> -> vector<328x128xf32>
    %c0_47 = arith.constant 0 : index
    %c0_48 = arith.constant 0 : index
    %86 = vector.load %arg9[%c0_47, %c0_48] : memref<1x128xf32, #tpu.memory_space<vmem>>, vector<1x128xf32>
    %87 = vector.broadcast %86 : vector<1x128xf32> to vector<328x128xf32>
    %88 = arith.addf %85, %87 : vector<328x128xf32>
    %cst_49 = arith.constant 0.000000e+00 : f32
    %89 = vector.broadcast %cst_49 : f32 to vector<328x128xf32>
    %90 = arith.maximumf %88, %89 : vector<328x128xf32>
    %cst_50 = arith.constant 0.000000e+00 : f32
    %91 = vector.shape_cast %2 : vector<328x1xi1> to vector<328x1xi1>
    %92 = vector.broadcast %91 : vector<328x1xi1> to vector<328x128xi1>
    %93 = vector.broadcast %cst_50 : f32 to vector<328x128xf32>
    %94 = arith.select %92, %90, %93 : vector<328x128xi1>, vector<328x128xf32>
    %95 = arith.truncf %94 : vector<328x128xf32> to vector<328x128xbf16>
    %c32_51 = arith.constant 32 : index
    %c0_52 = arith.constant 0 : index
    %96 = vector.load %arg23[%c32_51, %c0_52] : memref<392x128xbf16, #tpu.memory_space<vmem>>, vector<328x128xbf16>
    tpu.vector_store %arg23[%c32_51, %c0_52], %95 {strides = array<i32>} : memref<392x128xbf16, #tpu.memory_space<vmem>>, vector<328x128xbf16>,
    %cst_53 = arith.constant 0.000000e+00 : f32
    %97 = vector.broadcast %cst_53 : f32 to vector<328x128xf32>
    %c13_54 = arith.constant 13 : index
    %c0_55 = arith.constant 0 : index
    %98 = vector.load %arg23[%c13_54, %c0_55] : memref<392x128xbf16, #tpu.memory_space<vmem>>, vector<328x128xbf16>
    %c0_56 = arith.constant 0 : index
    %c0_57 = arith.constant 0 : index
    %99 = vector.load %arg10[%c0_56, %c0_57] : memref<9x128xf32, #tpu.memory_space<vmem>>, vector<1x128xf32>
    %100 = arith.extf %98 : vector<328x128xbf16> to vector<328x128xf32>
    %101 = vector.broadcast %99 : vector<1x128xf32> to vector<328x128xf32>
    %102 = arith.mulf %100, %101 : vector<328x128xf32>
    %103 = arith.addf %97, %102 : vector<328x128xf32>
    %c14_58 = arith.constant 14 : index
    %c0_59 = arith.constant 0 : index
    %104 = vector.load %arg23[%c14_58, %c0_59] : memref<392x128xbf16, #tpu.memory_space<vmem>>, vector<328x128xbf16>
    %c1_60 = arith.constant 1 : index
    %c0_61 = arith.constant 0 : index
    %105 = vector.load %arg10[%c1_60, %c0_61] : memref<9x128xf32, #tpu.memory_space<vmem>>, vector<1x128xf32>
    %106 = arith.extf %104 : vector<328x128xbf16> to vector<328x128xf32>
    %107 = vector.broadcast %105 : vector<1x128xf32> to vector<328x128xf32>
    %108 = arith.mulf %106, %107 : vector<328x128xf32>
    %109 = arith.addf %103, %108 : vector<328x128xf32>
    %c15_62 = arith.constant 15 : index
    %c0_63 = arith.constant 0 : index
    %110 = vector.load %arg23[%c15_62, %c0_63] : memref<392x128xbf16, #tpu.memory_space<vmem>>, vector<328x128xbf16>
    %c2_64 = arith.constant 2 : index
    %c0_65 = arith.constant 0 : index
    %111 = vector.load %arg10[%c2_64, %c0_65] : memref<9x128xf32, #tpu.memory_space<vmem>>, vector<1x128xf32>
    %112 = arith.extf %110 : vector<328x128xbf16> to vector<328x128xf32>
    %113 = vector.broadcast %111 : vector<1x128xf32> to vector<328x128xf32>
    %114 = arith.mulf %112, %113 : vector<328x128xf32>
    %115 = arith.addf %109, %114 : vector<328x128xf32>
    %c31_66 = arith.constant 31 : index
    %c0_67 = arith.constant 0 : index
    %116 = vector.load %arg23[%c31_66, %c0_67] : memref<392x128xbf16, #tpu.memory_space<vmem>>, vector<328x128xbf16>
    %c3_68 = arith.constant 3 : index
    %c0_69 = arith.constant 0 : index
    %117 = vector.load %arg10[%c3_68, %c0_69] : memref<9x128xf32, #tpu.memory_space<vmem>>, vector<1x128xf32>
    %118 = arith.extf %116 : vector<328x128xbf16> to vector<328x128xf32>
    %119 = vector.broadcast %117 : vector<1x128xf32> to vector<328x128xf32>
    %120 = arith.mulf %118, %119 : vector<328x128xf32>
    %121 = arith.addf %115, %120 : vector<328x128xf32>
    %c32_70 = arith.constant 32 : index
    %c0_71 = arith.constant 0 : index
    %122 = vector.load %arg23[%c32_70, %c0_71] : memref<392x128xbf16, #tpu.memory_space<vmem>>, vector<328x128xbf16>
    %c4_72 = arith.constant 4 : index
    %c0_73 = arith.constant 0 : index
    %123 = vector.load %arg10[%c4_72, %c0_73] : memref<9x128xf32, #tpu.memory_space<vmem>>, vector<1x128xf32>
    %124 = arith.extf %122 : vector<328x128xbf16> to vector<328x128xf32>
    %125 = vector.broadcast %123 : vector<1x128xf32> to vector<328x128xf32>
    %126 = arith.mulf %124, %125 : vector<328x128xf32>
    %127 = arith.addf %121, %126 : vector<328x128xf32>
    %c33_74 = arith.constant 33 : index
    %c0_75 = arith.constant 0 : index
    %128 = vector.load %arg23[%c33_74, %c0_75] : memref<392x128xbf16, #tpu.memory_space<vmem>>, vector<328x128xbf16>
    %c5_76 = arith.constant 5 : index
    %c0_77 = arith.constant 0 : index
    %129 = vector.load %arg10[%c5_76, %c0_77] : memref<9x128xf32, #tpu.memory_space<vmem>>, vector<1x128xf32>
    %130 = arith.extf %128 : vector<328x128xbf16> to vector<328x128xf32>
    %131 = vector.broadcast %129 : vector<1x128xf32> to vector<328x128xf32>
    %132 = arith.mulf %130, %131 : vector<328x128xf32>
    %133 = arith.addf %127, %132 : vector<328x128xf32>
    %c49_78 = arith.constant 49 : index
    %c0_79 = arith.constant 0 : index
    %134 = vector.load %arg23[%c49_78, %c0_79] : memref<392x128xbf16, #tpu.memory_space<vmem>>, vector<328x128xbf16>
    %c6_80 = arith.constant 6 : index
    %c0_81 = arith.constant 0 : index
    %135 = vector.load %arg10[%c6_80, %c0_81] : memref<9x128xf32, #tpu.memory_space<vmem>>, vector<1x128xf32>
    %136 = arith.extf %134 : vector<328x128xbf16> to vector<328x128xf32>
    %137 = vector.broadcast %135 : vector<1x128xf32> to vector<328x128xf32>
    %138 = arith.mulf %136, %137 : vector<328x128xf32>
    %139 = arith.addf %133, %138 : vector<328x128xf32>
    %c50_82 = arith.constant 50 : index
    %c0_83 = arith.constant 0 : index
    %140 = vector.load %arg23[%c50_82, %c0_83] : memref<392x128xbf16, #tpu.memory_space<vmem>>, vector<328x128xbf16>
    %c7_84 = arith.constant 7 : index
    %c0_85 = arith.constant 0 : index
    %141 = vector.load %arg10[%c7_84, %c0_85] : memref<9x128xf32, #tpu.memory_space<vmem>>, vector<1x128xf32>
    %142 = arith.extf %140 : vector<328x128xbf16> to vector<328x128xf32>
    %143 = vector.broadcast %141 : vector<1x128xf32> to vector<328x128xf32>
    %144 = arith.mulf %142, %143 : vector<328x128xf32>
    %145 = arith.addf %139, %144 : vector<328x128xf32>
    %c51_86 = arith.constant 51 : index
    %c0_87 = arith.constant 0 : index
    %146 = vector.load %arg23[%c51_86, %c0_87] : memref<392x128xbf16, #tpu.memory_space<vmem>>, vector<328x128xbf16>
    %c8_88 = arith.constant 8 : index
    %c0_89 = arith.constant 0 : index
    %147 = vector.load %arg10[%c8_88, %c0_89] : memref<9x128xf32, #tpu.memory_space<vmem>>, vector<1x128xf32>
    %148 = arith.extf %146 : vector<328x128xbf16> to vector<328x128xf32>
    %149 = vector.broadcast %147 : vector<1x128xf32> to vector<328x128xf32>
    %150 = arith.mulf %148, %149 : vector<328x128xf32>
    %151 = arith.addf %145, %150 : vector<328x128xf32>
    %c0_90 = arith.constant 0 : index
    %c0_91 = arith.constant 0 : index
    %152 = vector.load %arg11[%c0_90, %c0_91] : memref<1x128xf32, #tpu.memory_space<vmem>>, vector<1x128xf32>
    %153 = vector.broadcast %152 : vector<1x128xf32> to vector<328x128xf32>
    %154 = arith.addf %151, %153 : vector<328x128xf32>
    %cst_92 = arith.constant 0.000000e+00 : f32
    %155 = vector.broadcast %cst_92 : f32 to vector<328x128xf32>
    %156 = arith.maximumf %154, %155 : vector<328x128xf32>
    %157 = arith.truncf %156 : vector<328x128xf32> to vector<328x128xbf16>
    %c0_93 = arith.constant 0 : index
    %c0_94 = arith.constant 0 : index
    %158 = vector.load %arg12[%c0_93, %c0_94] : memref<128x128xbf16, #tpu.memory_space<vmem>>, vector<128x128xbf16>
    %cst_95 = arith.constant dense<0.000000e+00> : vector<328x128xf32>
    %159 = tpu.matmul %157, %158, %cst_95 {dimension_numbers = #tpu.dot_dimension_numbers<[1], [0], [0], [1], [0, 0, 1, 1], [], []>} : vector<328x128xbf16>, vector<128x128xbf16>, vector<328x128xf32> -> vector<328x128xf32>
    %c0_96 = arith.constant 0 : index
    %c0_97 = arith.constant 0 : index
    %160 = vector.load %arg13[%c0_96, %c0_97] : memref<1x128xf32, #tpu.memory_space<vmem>>, vector<1x128xf32>
    %161 = vector.broadcast %160 : vector<1x128xf32> to vector<328x128xf32>
    %162 = arith.addf %159, %161 : vector<328x128xf32>
    %cst_98 = arith.constant 0.000000e+00 : f32
    %163 = vector.broadcast %cst_98 : f32 to vector<328x128xf32>
    %164 = arith.maximumf %162, %163 : vector<328x128xf32>
    %c0_99 = arith.constant 0 : index
    %c0_100 = arith.constant 0 : index
    %165 = vector.load %arg3[%c0_99, %c0_100] : memref<8x328xbf16, #tpu.memory_space<vmem>>, vector<8x328xbf16>
    %166 = arith.truncf %164 : vector<328x128xf32> to vector<328x128xbf16>
    %cst_101 = arith.constant dense<0.000000e+00> : vector<8x128xf32>
    %167 = tpu.matmul %165, %166, %cst_101 {dimension_numbers = #tpu.dot_dimension_numbers<[1], [0], [0], [1], [0, 0, 1, 1], [], []>} : vector<8x328xbf16>, vector<328x128xbf16>, vector<8x128xf32> -> vector<8x128xf32>
    %168 = arith.truncf %167 : vector<8x128xf32> to vector<8x128xbf16>
    %c0_102 = arith.constant 0 : index
    %c0_103 = arith.constant 0 : index
    %169 = vector.load %arg14[%c0_102, %c0_103] : memref<128x128xbf16, #tpu.memory_space<vmem>>, vector<128x128xbf16>
    %cst_104 = arith.constant dense<0.000000e+00> : vector<8x128xf32>
    %170 = tpu.matmul %168, %169, %cst_104 {dimension_numbers = #tpu.dot_dimension_numbers<[1], [0], [0], [1], [0, 0, 1, 1], [], []>} : vector<8x128xbf16>, vector<128x128xbf16>, vector<8x128xf32> -> vector<8x128xf32>
    %c0_105 = arith.constant 0 : index
    %c0_106 = arith.constant 0 : index
    %171 = vector.load %arg15[%c0_105, %c0_106] : memref<1x128xf32, #tpu.memory_space<vmem>>, vector<1x128xf32>
    %172 = vector.broadcast %171 : vector<1x128xf32> to vector<8x128xf32>
    %173 = arith.addf %170, %172 : vector<8x128xf32>
    %c0_107 = arith.constant 0 : index
    %c0_108 = arith.constant 0 : index
    %c0_109 = arith.constant 0 : index
    %174 = vector.load %arg19[%c0_107, %c0_108, %c0_109] : memref<1x8x128xf32, #tpu.memory_space<vmem>>, vector<1x8x128xf32>
    %175 = vector.shape_cast %174 : vector<1x8x128xf32> to vector<8x128xf32>
    %176 = vector.shape_cast %173 : vector<8x128xf32> to vector<1x8x128xf32>
    tpu.vector_store %arg19[%c0_107, %c0_108, %c0_109], %176 {strides = array<i32>} : memref<1x8x128xf32, #tpu.memory_space<vmem>>, vector<1x8x128xf32>,
    %c0_110 = arith.constant 0 : index
    %c0_111 = arith.constant 0 : index
    %177 = vector.load %arg17[%c0_110, %c0_111] : memref<1x384xf32, #tpu.memory_space<vmem>>, vector<1x384xf32>
    %178 = arith.truncf %173 : vector<8x128xf32> to vector<8x128xbf16>
    %c0_112 = arith.constant 0 : index
    %c0_113 = arith.constant 0 : index
    %179 = vector.load %arg16[%c0_112, %c0_113] : memref<128x384xbf16, #tpu.memory_space<vmem>>, vector<128x384xbf16>
    %cst_114 = arith.constant dense<0.000000e+00> : vector<8x384xf32>
    %180 = tpu.matmul %178, %179, %cst_114 {dimension_numbers = #tpu.dot_dimension_numbers<[1], [0], [0], [1], [0, 0, 1, 1], [], []>} : vector<8x128xbf16>, vector<128x384xbf16>, vector<8x384xf32> -> vector<8x384xf32>
    %181 = vector.broadcast %177 : vector<1x384xf32> to vector<8x384xf32>
    %182 = arith.addf %181, %180 : vector<8x384xf32>
    %183 = vector.extract_strided_slice %182 {offsets = [0, 0], sizes = [8, 128], strides = [1, 1]} : vector<8x384xf32> to vector<8x128xf32>
    %184 = vector.extract_strided_slice %182 {offsets = [0, 128], sizes = [8, 128], strides = [1, 1]} : vector<8x384xf32> to vector<8x128xf32>
    %185 = vector.extract_strided_slice %182 {offsets = [0, 256], sizes = [8, 128], strides = [1, 1]} : vector<8x384xf32> to vector<8x128xf32>
    %186 = vector.extract_strided_slice %173 {offsets = [0, 0], sizes = [8, 1], strides = [1, 1]} : vector<8x128xf32> to vector<8x1xf32>
    %187 = vector.broadcast %186 : vector<8x1xf32> to vector<8x128xf32>
    %188 = arith.mulf %187, %183 : vector<8x128xf32>
    %189 = vector.extract_strided_slice %173 {offsets = [0, 1], sizes = [8, 1], strides = [1, 1]} : vector<8x128xf32> to vector<8x1xf32>
    %190 = vector.broadcast %189 : vector<8x1xf32> to vector<8x128xf32>
    %191 = arith.mulf %190, %184 : vector<8x128xf32>
    %192 = arith.addf %188, %191 : vector<8x128xf32>
    %193 = vector.extract_strided_slice %173 {offsets = [0, 2], sizes = [8, 1], strides = [1, 1]} : vector<8x128xf32> to vector<8x1xf32>
    %194 = vector.broadcast %193 : vector<8x1xf32> to vector<8x128xf32>
    %195 = arith.mulf %194, %185 : vector<8x128xf32>
    %196 = arith.addf %192, %195 : vector<8x128xf32>
    %197 = vector.extract_strided_slice %173 {offsets = [0, 3], sizes = [8, 1], strides = [1, 1]} : vector<8x128xf32> to vector<8x1xf32>
    %198 = vector.broadcast %197 : vector<8x1xf32> to vector<8x128xf32>
    %199 = arith.addf %196, %198 : vector<8x128xf32>
    %200 = vector.extract_strided_slice %173 {offsets = [0, 4], sizes = [8, 1], strides = [1, 1]} : vector<8x128xf32> to vector<8x1xf32>
    %201 = vector.broadcast %200 : vector<8x1xf32> to vector<8x128xf32>
    %202 = arith.mulf %201, %183 : vector<8x128xf32>
    %203 = vector.extract_strided_slice %173 {offsets = [0, 5], sizes = [8, 1], strides = [1, 1]} : vector<8x128xf32> to vector<8x1xf32>
    %204 = vector.broadcast %203 : vector<8x1xf32> to vector<8x128xf32>
    %205 = arith.mulf %204, %184 : vector<8x128xf32>
    %206 = arith.addf %202, %205 : vector<8x128xf32>
    %207 = vector.extract_strided_slice %173 {offsets = [0, 6], sizes = [8, 1], strides = [1, 1]} : vector<8x128xf32> to vector<8x1xf32>
    %208 = vector.broadcast %207 : vector<8x1xf32> to vector<8x128xf32>
    %209 = arith.mulf %208, %185 : vector<8x128xf32>
    %210 = arith.addf %206, %209 : vector<8x128xf32>
    %211 = vector.extract_strided_slice %173 {offsets = [0, 7], sizes = [8, 1], strides = [1, 1]} : vector<8x128xf32> to vector<8x1xf32>
    %212 = vector.broadcast %211 : vector<8x1xf32> to vector<8x128xf32>
    %213 = arith.addf %210, %212 : vector<8x128xf32>
    %214 = vector.extract_strided_slice %173 {offsets = [0, 8], sizes = [8, 1], strides = [1, 1]} : vector<8x128xf32> to vector<8x1xf32>
    %215 = vector.broadcast %214 : vector<8x1xf32> to vector<8x128xf32>
    %216 = arith.mulf %215, %183 : vector<8x128xf32>
    %217 = vector.extract_strided_slice %173 {offsets = [0, 9], sizes = [8, 1], strides = [1, 1]} : vector<8x128xf32> to vector<8x1xf32>
    %218 = vector.broadcast %217 : vector<8x1xf32> to vector<8x128xf32>
    %219 = arith.mulf %218, %184 : vector<8x128xf32>
    %220 = arith.addf %216, %219 : vector<8x128xf32>
    %221 = vector.extract_strided_slice %173 {offsets = [0, 10], sizes = [8, 1], strides = [1, 1]} : vector<8x128xf32> to vector<8x1xf32>
    %222 = vector.broadcast %221 : vector<8x1xf32> to vector<8x128xf32>
    %223 = arith.mulf %222, %185 : vector<8x128xf32>
    %224 = arith.addf %220, %223 : vector<8x128xf32>
    %225 = vector.extract_strided_slice %173 {offsets = [0, 11], sizes = [8, 1], strides = [1, 1]} : vector<8x128xf32> to vector<8x1xf32>
    %226 = vector.broadcast %225 : vector<8x1xf32> to vector<8x128xf32>
    %227 = arith.addf %224, %226 : vector<8x128xf32>
    %c0_115 = arith.constant 0 : index
    %c0_116 = arith.constant 0 : index
    %c0_117 = arith.constant 0 : index
    %228 = vector.load %arg18[%c0_115, %c0_116, %c0_117] : memref<1x1x128xf32, #tpu.memory_space<vmem>>, vector<1x1x1xf32>
    %229 = vector.shape_cast %228 : vector<1x1x1xf32> to vector<1x1xf32>
    %c0_118 = arith.constant 0 : index
    %c0_119 = arith.constant 0 : index
    %c1_120 = arith.constant 1 : index
    %230 = vector.load %arg18[%c0_118, %c0_119, %c1_120] : memref<1x1x128xf32, #tpu.memory_space<vmem>>, vector<1x1x1xf32>
    %231 = vector.shape_cast %230 : vector<1x1x1xf32> to vector<1x1xf32>
    %c0_121 = arith.constant 0 : index
    %c0_122 = arith.constant 0 : index
    %c2_123 = arith.constant 2 : index
    %232 = vector.load %arg18[%c0_121, %c0_122, %c2_123] : memref<1x1x128xf32, #tpu.memory_space<vmem>>, vector<1x1x1xf32>
    %233 = vector.shape_cast %232 : vector<1x1x1xf32> to vector<1x1xf32>
    %c0_124 = arith.constant 0 : index
    %c0_125 = arith.constant 0 : index
    %c3_126 = arith.constant 3 : index
    %234 = vector.load %arg18[%c0_124, %c0_125, %c3_126] : memref<1x1x128xf32, #tpu.memory_space<vmem>>, vector<1x1x1xf32>
    %235 = vector.shape_cast %234 : vector<1x1x1xf32> to vector<1x1xf32>
    %236 = arith.subf %233, %229 : vector<1x1xf32>
    %cst_127 = arith.constant 1.600000e+01 : f32
    %237 = vector.broadcast %cst_127 : f32 to vector<1x1xf32>
    %238 = arith.divf %236, %237 : vector<1x1xf32>
    %239 = arith.subf %235, %231 : vector<1x1xf32>
    %cst_128 = arith.constant 1.600000e+01 : f32
    %240 = vector.broadcast %cst_128 : f32 to vector<1x1xf32>
    %241 = arith.divf %239, %240 : vector<1x1xf32>
    %242 = vector.broadcast %238 : vector<1x1xf32> to vector<8x128xf32>
    %243 = arith.mulf %199, %242 : vector<8x128xf32>
    %244 = vector.broadcast %229 : vector<1x1xf32> to vector<8x128xf32>
    %245 = arith.addf %243, %244 : vector<8x128xf32>
    %246 = vector.broadcast %241 : vector<1x1xf32> to vector<8x128xf32>
    %247 = arith.mulf %213, %246 : vector<8x128xf32>
    %248 = vector.broadcast %231 : vector<1x1xf32> to vector<8x128xf32>
    %249 = arith.addf %247, %248 : vector<8x128xf32>
    %250 = vector.broadcast %238 : vector<1x1xf32> to vector<8x128xf32>
    %251 = arith.mulf %227, %250 : vector<8x128xf32>
    %252 = tpu.concatenate %245, %249, %251 in 1 : vector<8x128xf32>, vector<8x128xf32>, vector<8x128xf32> -> vector<8x384xf32>
    %c0_129 = arith.constant 0 : index
    %c0_130 = arith.constant 0 : index
    %c0_131 = arith.constant 0 : index
    %253 = vector.load %arg20[%c0_129, %c0_130, %c0_131] : memref<1x8x384xf32, #tpu.memory_space<vmem>>, vector<1x8x384xf32>
    %254 = vector.shape_cast %253 : vector<1x8x384xf32> to vector<8x384xf32>
    %255 = vector.shape_cast %252 : vector<8x384xf32> to vector<1x8x384xf32>
    tpu.vector_store %arg20[%c0_129, %c0_130, %c0_131], %255 {strides = array<i32>} : memref<1x8x384xf32, #tpu.memory_space<vmem>>, vector<1x8x384xf32>,
    %256 = vector.extract_strided_slice %173 {offsets = [0, 0], sizes = [8, 1], strides = [1, 1]} : vector<8x128xf32> to vector<8x1xf32>
    %257 = vector.extract_strided_slice %173 {offsets = [0, 1], sizes = [8, 1], strides = [1, 1]} : vector<8x128xf32> to vector<8x1xf32>
    %258 = vector.extract_strided_slice %173 {offsets = [0, 2], sizes = [8, 1], strides = [1, 1]} : vector<8x128xf32> to vector<8x1xf32>
    %259 = vector.extract_strided_slice %173 {offsets = [0, 4], sizes = [8, 1], strides = [1, 1]} : vector<8x128xf32> to vector<8x1xf32>
    %260 = vector.extract_strided_slice %173 {offsets = [0, 5], sizes = [8, 1], strides = [1, 1]} : vector<8x128xf32> to vector<8x1xf32>
    %261 = vector.extract_strided_slice %173 {offsets = [0, 6], sizes = [8, 1], strides = [1, 1]} : vector<8x128xf32> to vector<8x1xf32>
    %262 = arith.mulf %256, %256 : vector<8x1xf32>
    %263 = arith.mulf %257, %257 : vector<8x1xf32>
    %264 = arith.addf %262, %263 : vector<8x1xf32>
    %265 = arith.mulf %258, %258 : vector<8x1xf32>
    %266 = arith.addf %264, %265 : vector<8x1xf32>
    %267 = math.sqrt %266 : vector<8x1xf32>
    %cst_132 = arith.constant 9.99999993E-9 : f32
    %268 = vector.broadcast %cst_132 : f32 to vector<8x1xf32>
    %269 = arith.addf %267, %268 : vector<8x1xf32>
    %270 = arith.mulf %259, %259 : vector<8x1xf32>
    %271 = arith.mulf %260, %260 : vector<8x1xf32>
    %272 = arith.addf %270, %271 : vector<8x1xf32>
    %273 = arith.mulf %261, %261 : vector<8x1xf32>
    %274 = arith.addf %272, %273 : vector<8x1xf32>
    %275 = math.sqrt %274 : vector<8x1xf32>
    %cst_133 = arith.constant 9.99999993E-9 : f32
    %276 = vector.broadcast %cst_133 : f32 to vector<8x1xf32>
    %277 = arith.addf %275, %276 : vector<8x1xf32>
    %278 = arith.divf %256, %269 : vector<8x1xf32>
    %279 = arith.divf %257, %269 : vector<8x1xf32>
    %280 = arith.divf %258, %269 : vector<8x1xf32>
    %281 = arith.divf %259, %277 : vector<8x1xf32>
    %282 = arith.divf %260, %277 : vector<8x1xf32>
    %283 = arith.divf %261, %277 : vector<8x1xf32>
    %284 = arith.mulf %279, %283 : vector<8x1xf32>
    %285 = arith.mulf %280, %282 : vector<8x1xf32>
    %286 = arith.subf %284, %285 : vector<8x1xf32>
    %287 = arith.mulf %280, %281 : vector<8x1xf32>
    %288 = arith.mulf %278, %283 : vector<8x1xf32>
    %289 = arith.subf %287, %288 : vector<8x1xf32>
    %290 = arith.mulf %278, %282 : vector<8x1xf32>
    %291 = arith.mulf %279, %281 : vector<8x1xf32>
    %292 = arith.subf %290, %291 : vector<8x1xf32>
    %293 = vector.extract_strided_slice %173 {offsets = [0, 3], sizes = [8, 1], strides = [1, 1]} : vector<8x128xf32> to vector<8x1xf32>
    %294 = vector.broadcast %293 : vector<8x1xf32> to vector<8x128xf32>
    %295 = arith.subf %199, %294 : vector<8x128xf32>
    %296 = vector.extract_strided_slice %173 {offsets = [0, 7], sizes = [8, 1], strides = [1, 1]} : vector<8x128xf32> to vector<8x1xf32>
    %297 = vector.broadcast %296 : vector<8x1xf32> to vector<8x128xf32>
    %298 = arith.subf %213, %297 : vector<8x128xf32>
    %299 = vector.extract_strided_slice %173 {offsets = [0, 11], sizes = [8, 1], strides = [1, 1]} : vector<8x128xf32> to vector<8x1xf32>
    %300 = vector.broadcast %299 : vector<8x1xf32> to vector<8x128xf32>
    %301 = arith.subf %227, %300 : vector<8x128xf32>
    %302 = vector.broadcast %278 : vector<8x1xf32> to vector<8x128xf32>
    %303 = arith.mulf %302, %295 : vector<8x128xf32>
    %304 = vector.broadcast %281 : vector<8x1xf32> to vector<8x128xf32>
    %305 = arith.mulf %304, %298 : vector<8x128xf32>
    %306 = arith.addf %303, %305 : vector<8x128xf32>
    %307 = vector.broadcast %286 : vector<8x1xf32> to vector<8x128xf32>
    %308 = arith.mulf %307, %301 : vector<8x128xf32>
    %309 = arith.addf %306, %308 : vector<8x128xf32>
    %310 = vector.broadcast %279 : vector<8x1xf32> to vector<8x128xf32>
    %311 = arith.mulf %310, %295 : vector<8x128xf32>
    %312 = vector.broadcast %282 : vector<8x1xf32> to vector<8x128xf32>
    %313 = arith.mulf %312, %298 : vector<8x128xf32>
    %314 = arith.addf %311, %313 : vector<8x128xf32>
    %315 = vector.broadcast %289 : vector<8x1xf32> to vector<8x128xf32>
    %316 = arith.mulf %315, %301 : vector<8x128xf32>
    %317 = arith.addf %314, %316 : vector<8x128xf32>
    %318 = vector.broadcast %280 : vector<8x1xf32> to vector<8x128xf32>
    %319 = arith.mulf %318, %295 : vector<8x128xf32>
    %320 = vector.broadcast %283 : vector<8x1xf32> to vector<8x128xf32>
    %321 = arith.mulf %320, %298 : vector<8x128xf32>
    %322 = arith.addf %319, %321 : vector<8x128xf32>
    %323 = vector.broadcast %292 : vector<8x1xf32> to vector<8x128xf32>
    %324 = arith.mulf %323, %301 : vector<8x128xf32>
    %325 = arith.addf %322, %324 : vector<8x128xf32>
    %326 = tpu.concatenate %309, %317, %325 in 1 : vector<8x128xf32>, vector<8x128xf32>, vector<8x128xf32> -> vector<8x384xf32>
    %c0_134 = arith.constant 0 : index
    %c0_135 = arith.constant 0 : index
    %c0_136 = arith.constant 0 : index
    %327 = vector.load %arg21[%c0_134, %c0_135, %c0_136] : memref<1x8x384xf32, #tpu.memory_space<vmem>>, vector<1x8x384xf32>
    %328 = vector.shape_cast %327 : vector<1x8x384xf32> to vector<8x384xf32>
    %329 = vector.shape_cast %326 : vector<8x384xf32> to vector<1x8x384xf32>
    tpu.vector_store %arg21[%c0_134, %c0_135, %c0_136], %329 {strides = array<i32>} : memref<1x8x384xf32, #tpu.memory_space<vmem>>, vector<1x8x384xf32>,
    return
  }
  func.func @transform_0(%arg0: i32) -> (i32, i32, i32) {
    %c0_i32 = arith.constant 0 : i32
    %c0_i32_0 = arith.constant 0 : i32
    %c0_i32_1 = arith.constant 0 : i32
    return %arg0, %c0_i32, %c0_i32_0 : i32, i32, i32
  }
  func.func @transform_1(%arg0: i32) -> (i32, i32) {
    %c0_i32 = arith.constant 0 : i32
    %c0_i32_0 = arith.constant 0 : i32
    %c0_i32_1 = arith.constant 0 : i32
    return %c0_i32, %c0_i32_0 : i32, i32
  }
  func.func @transform_2(%arg0: i32) -> (i32, i32) {
    %c0_i32 = arith.constant 0 : i32
    %c0_i32_0 = arith.constant 0 : i32
    %c0_i32_1 = arith.constant 0 : i32
    return %c0_i32, %c0_i32_0 : i32, i32
  }
  func.func @transform_3(%arg0: i32) -> (i32, i32) {
    %c0_i32 = arith.constant 0 : i32
    %c0_i32_0 = arith.constant 0 : i32
    %c0_i32_1 = arith.constant 0 : i32
    return %c0_i32, %c0_i32_0 : i32, i32
  }
  func.func @transform_4(%arg0: i32) -> (i32, i32) {
    %c0_i32 = arith.constant 0 : i32
    %c0_i32_0 = arith.constant 0 : i32
    %c0_i32_1 = arith.constant 0 : i32
    return %c0_i32, %c0_i32_0 : i32, i32
  }
  func.func @transform_5(%arg0: i32) -> (i32, i32) {
    %c0_i32 = arith.constant 0 : i32
    %c0_i32_0 = arith.constant 0 : i32
    %c0_i32_1 = arith.constant 0 : i32
    return %c0_i32, %c0_i32_0 : i32, i32
  }
  func.func @transform_6(%arg0: i32) -> (i32, i32) {
    %c0_i32 = arith.constant 0 : i32
    %c0_i32_0 = arith.constant 0 : i32
    %c0_i32_1 = arith.constant 0 : i32
    return %c0_i32, %c0_i32_0 : i32, i32
  }
  func.func @transform_7(%arg0: i32) -> (i32, i32) {
    %c0_i32 = arith.constant 0 : i32
    %c0_i32_0 = arith.constant 0 : i32
    %c0_i32_1 = arith.constant 0 : i32
    return %c0_i32, %c0_i32_0 : i32, i32
  }
  func.func @transform_8(%arg0: i32) -> (i32, i32) {
    %c0_i32 = arith.constant 0 : i32
    %c0_i32_0 = arith.constant 0 : i32
    %c0_i32_1 = arith.constant 0 : i32
    return %c0_i32, %c0_i32_0 : i32, i32
  }
  func.func @transform_9(%arg0: i32) -> (i32, i32) {
    %c0_i32 = arith.constant 0 : i32
    %c0_i32_0 = arith.constant 0 : i32
    %c0_i32_1 = arith.constant 0 : i32
    return %c0_i32, %c0_i32_0 : i32, i32
  }
  func.func @transform_10(%arg0: i32) -> (i32, i32) {
    %c0_i32 = arith.constant 0 : i32
    %c0_i32_0 = arith.constant 0 : i32
    %c0_i32_1 = arith.constant 0 : i32
    return %c0_i32, %c0_i32_0 : i32, i32
  }
  func.func @transform_11(%arg0: i32) -> (i32, i32) {
    %c0_i32 = arith.constant 0 : i32
    %c0_i32_0 = arith.constant 0 : i32
    %c0_i32_1 = arith.constant 0 : i32
    return %c0_i32, %c0_i32_0 : i32, i32
  }
  func.func @transform_12(%arg0: i32) -> (i32, i32) {
    %c0_i32 = arith.constant 0 : i32
    %c0_i32_0 = arith.constant 0 : i32
    %c0_i32_1 = arith.constant 0 : i32
    return %c0_i32, %c0_i32_0 : i32, i32
  }
  func.func @transform_13(%arg0: i32) -> (i32, i32) {
    %c0_i32 = arith.constant 0 : i32
    %c0_i32_0 = arith.constant 0 : i32
    %c0_i32_1 = arith.constant 0 : i32
    return %c0_i32, %c0_i32_0 : i32, i32
  }
  func.func @transform_14(%arg0: i32) -> (i32, i32) {
    %c0_i32 = arith.constant 0 : i32
    %c0_i32_0 = arith.constant 0 : i32
    %c0_i32_1 = arith.constant 0 : i32
    return %c0_i32, %c0_i32_0 : i32, i32
  }
  func.func @transform_15(%arg0: i32) -> (i32, i32) {
    %c0_i32 = arith.constant 0 : i32
    %c0_i32_0 = arith.constant 0 : i32
    %c0_i32_1 = arith.constant 0 : i32
    return %c0_i32, %c0_i32_0 : i32, i32
  }
  func.func @transform_16(%arg0: i32) -> (i32, i32) {
    %c0_i32 = arith.constant 0 : i32
    %c0_i32_0 = arith.constant 0 : i32
    %c0_i32_1 = arith.constant 0 : i32
    return %c0_i32, %c0_i32_0 : i32, i32
  }
  func.func @transform_17(%arg0: i32) -> (i32, i32, i32) {
    %c0_i32 = arith.constant 0 : i32
    %c0_i32_0 = arith.constant 0 : i32
    %c0_i32_1 = arith.constant 0 : i32
    return %arg0, %c0_i32, %c0_i32_0 : i32, i32, i32
  }
  func.func @transform_18(%arg0: i32) -> (i32, i32, i32) {
    %c0_i32 = arith.constant 0 : i32
    %c0_i32_0 = arith.constant 0 : i32
    %c0_i32_1 = arith.constant 0 : i32
    return %arg0, %c0_i32, %c0_i32_0 : i32, i32, i32
  }
  func.func @transform_19(%arg0: i32) -> (i32, i32, i32) {
    %c0_i32 = arith.constant 0 : i32
    %c0_i32_0 = arith.constant 0 : i32
    %c0_i32_1 = arith.constant 0 : i32
    return %arg0, %c0_i32, %c0_i32_0 : i32, i32, i32
  }
  func.func @transform_20(%arg0: i32) -> (i32, i32, i32) {
    %c0_i32 = arith.constant 0 : i32
    %c0_i32_0 = arith.constant 0 : i32
    %c0_i32_1 = arith.constant 0 : i32
    return %arg0, %c0_i32, %c0_i32_0 : i32, i32, i32
  }
}

</mosaic_0001>

<bundles_post_ra>
// kernel: squeeze.23
= control target key start
LH: loop header
LB: loop body
LE: loop exit
PB: predicated region body
PF: predicated region fallthrough
CT: control target
= control target key end

     0   :  { %s65_s0 = inlined_call_operand.vmem [shape: f32[2,384], index: 0, kind: input, shape index: {}]   ;;  %s66_s1 = inlined_call_operand.vmem [shape: f32[2,3,128], index: 1, kind: output, shape index: {}]  }
   0x1   :  { %v37_v0 = vld [vmem:[%s65_s0 + $0x4] sm:$0x3]  ;;  %v38_v1 = vld [vmem:[%s65_s0 + $0x2] sm:$0x3]  ;;  %v13_v2 = vld [vmem:[%s65_s0] sm:$0x3] }
   0x2   :  { %8 = vst [vmem:[#allocation1 + $0x10] sm:$0x3] %v37_v0  ;;  %12 = vst [vmem:[#allocation1 + $0x8] sm:$0x3] %v38_v1 }
   0x3   :  { %14 = vst [vmem:[#allocation1] sm:$0x3] %v13_v2 }
   0x9   :  { %v18_v4 = vld [vmem:[#allocation1 + $0x8] sm:$0x3]   ;;  %v22_v5 = vld [vmem:[#allocation1 + $0x10] sm:$0x3]  }
   0xa   :  { %v15_v3 = vld [vmem:[#allocation1] sm:$0x3]   ;;  %20 = vst [vmem:[#allocation0 + $0x1] ss:$8 sm:$0x3] %v18_v4  }
   0xb   :  { %16 = vst [vmem:[#allocation0] ss:$8 sm:$0x3] %v15_v3   ;;  %24 = vst [vmem:[#allocation0 + $0x2] ss:$8 sm:$0x3] %v22_v5  }
  0x12   :  { %v28_v6 = vld [vmem:[#allocation0] sm:$0xf]  ;;  %v32_v7 = vld [vmem:[#allocation0 + $0x8] sm:$0xf] }
  0x13   :  { %30 = vst [vmem:[%s66_s1] sm:$0xf] %v28_v6  ;;  %39 = vst [vmem:[%s66_s1 + $0x4] sm:$0xf] %v32_v7 }

// kernel: _forward_core.1
= control target key start
LH: loop header
LB: loop body
LE: loop exit
PB: predicated region body
PF: predicated region fallthrough
CT: control target
= control target key end

     0   :  { %s16605_s0 = inlined_call_operand.vmem [shape: bf16[2,328,128], index: 0, kind: input, shape index: {}]   ;;  %s16606_s1 = inlined_call_operand.vmem [shape: f32[328,1], index: 1, kind: input, shape index: {}]   ;;  %s16607_s2 = inlined_call_operand.vmem [shape: bf16[8,328], index: 2, kind: input, shape index: {}]   ;;  %s16608_s3 = inlined_call_operand.vmem [shape: bf16[128,128], index: 3, kind: input, shape index: {}]   ;;  %s16609_s4 = inlined_call_operand.vmem [shape: f32[1,128], index: 4, kind: input, shape index: {}]   ;;  %s16610_s5 = inlined_call_operand.vmem [shape: f32[9,128], index: 5, kind: input, shape index: {}]   ;;  %s16611_s6 = inlined_call_operand.vmem [shape: f32[1,128], index: 6, kind: input, shape index: {}]   ;;  %s16612_s7 = inlined_call_operand.vmem [shape: bf16[128,128], index: 7, kind: input, shape index: {}]   ;;  %s16613_s8 = inlined_call_operand.vmem [shape: f32[1,128], index: 8, kind: input, shape index: {}]   ;;  %s16614_s9 = inlined_call_operand.vmem [shape: f32[9,128], index: 9, kind: input, shape index: {}]   ;;  %s16615_s10 = inlined_call_operand.vmem [shape: f32[1,128], index: 10, kind: input, shape index: {}]   ;;  %s16616_s11 = inlined_call_operand.vmem [shape: bf16[128,128], index: 11, kind: input, shape index: {}]   ;;  %s16617_s12 = inlined_call_operand.vmem [shape: f32[1,128], index: 12, kind: input, shape index: {}]   ;;  %s16618_s13 = inlined_call_operand.vmem [shape: bf16[128,128], index: 13, kind: input, shape index: {}]   ;;  %s16619_s14 = inlined_call_operand.vmem [shape: f32[1,128], index: 14, kind: input, shape index: {}]   ;;  %s16620_s15 = inlined_call_operand.vmem [shape: bf16[128,384], index: 15, kind: input, shape index: {}]   ;;  %s16621_s16 = inlined_call_operand.vmem [shape: f32[1,384], index: 16, kind: input, shape index: {}]   ;;  %s16622_s17 = inlined_call_operand.vmem [shape: f32[2,1,128], index: 17, kind: input, shape index: {}]   ;;  %s16623_s18 = inlined_call_operand.vmem [shape: f32[2,8,128], index: 18, kind: output, shape index: {0}]   ;;  %s16624_s19 = inlined_call_operand.vmem [shape: f32[2,8,384], index: 19, kind: output, shape index: {1}]   ;;  %s16625_s20 = inlined_call_operand.vmem [shape: f32[2,8,384], index: 20, kind: output, shape index: {2}]  }
   0x1   :  { %16892 = sst [smem:[#allocation45_spill]] %s16605_s0 }
   0x2   :  { %16893 = sst [smem:[#allocation46_spill]] %s16606_s1  ;;  %s10114_s1 = smov 0  }
   0x3   :  { %16894 = sst [smem:[#allocation47_spill]] %s16607_s2 }
   0x4   :  { %16895 = sst [smem:[#allocation48_spill]] %s16608_s3 }
   0x5   :  { %16896 = sst [smem:[#allocation49_spill]] %s16609_s4 }
   0x6   :  { %16897 = sst [smem:[#allocation50_spill]] %s16625_s20 }
   0x7 LB: > { %16898 = sst [smem:[#allocation4_spill]] %s9986_s1  ;;  %s8557_s22 = sadd.s32 4294967295, %s9986_s1   ;;  %s9986_s1 = sphi %s10114_s1, %s31_s1  }
   0x8   : > { %p8561_p0 = scmp.ge.s32.totalorder %s9986_s1, 1  ;;  %p575_p1 = scmp.lt.s32.totalorder %s9986_s1, 3 }
   0xa   : > { %p576_p2 = pnand %p8561_p0, %p575_p1 }
   0xc   : > { %579 = sbr.rel (%p576_p2) target bundleno = 2549 (0x9f5), region = 92 }
  0x13   : > { %s16899_s2 = sld [smem:[#allocation48_spill]]  ;;  %v16641_v1 = vmov 0.0   ;;  %vm9989_vm0 = vmmov 0   ;;  %p645_p3 = scmp.lt.s32.totalorder %s8557_s22, 1  ;;  %v16634_v3 = vmov 0  }
  0x14   : > { %9410 = vmatprep.subr.bf16.mxu0 %v16641_v1  ;;  %9510 = vmatprep.subr.bf16.mxu1 %v16641_v1  ;;  %751 = vst [vmem:[#allocation2 + $0x4] sm:$0xf] %v16634_v3  ;;  %752 = vst [vmem:[#allocation2 + $0x8] sm:$0xf] %v16634_v3  ;;  %s16900_s30 = sld [smem:[#allocation45_spill]]  ;;  %s16901_s24 = sld [smem:[#allocation46_spill]] }
  0x15   : > { %9426 = vmatprep.mubr.msk.bf16.mxu0 %vm9989_vm0, %v16641_v1  ;;  %9526 = vmatprep.mubr.msk.bf16.mxu1 %vm9989_vm0, %v16641_v1  ;;  %s17222_s22 = smov (!%p645_p3, %s8557_s22), 1  ;;  %753 = vst [vmem:[#allocation2 + $0xc] sm:$0xf] %v16634_v3  ;;  %754 = vst [vmem:[#allocation2 + $0xb4] sm:$0xf] %v16634_v3  ;;  %s16903_s3 = sld [smem:[#allocation49_spill]] }
  0x16   : > { %9795 = vset.pattern.permute.xlu0 %v16634_v3  ;;  %755 = vst [vmem:[#allocation2 + $0xb8] sm:$0xf] %v16634_v3  ;;  %756 = vst [vmem:[#allocation2 + $0xbc] sm:$0xf] %v16634_v3  ;;  %9796 = vset.pattern.permute.xlu1 %v16634_v3  ;;  %s9764_s28 = smul.u32 164, %s17222_s22  ;;  %s17217_s20 = sld [smem:[#allocation47_spill]] }
  0x17   : > { %759 = vst [vmem:[#allocation3 + $0x4] sm:$0xf] %v16634_v3  ;;  %760 = vst [vmem:[#allocation3 + $0x8] sm:$0xf] %v16634_v3  ;;  %s8563_s27 = sshll.u32 %s17222_s22, 3  ;;  %s9991_s23 = smov 127  }
  0x18   : > { %761 = vst [vmem:[#allocation3 + $0xc] sm:$0xf] %v16634_v3  ;;  %762 = vst [vmem:[#allocation3 + $0xb4] sm:$0xf] %v16634_v3  ;;  %s9992_s25 = smov 126   ;;  %s9993_s29 = smov 2  }
  0x19   : > { %v9820_v0 = vld [vmem:[%s16899_s2] sm:$0xff]   ;;  %v9821_v2 = vld [vmem:[%s16899_s2 + $0x8] sm:$0xff]   ;;  %763 = vst [vmem:[#allocation3 + $0xb8] sm:$0xf] %v16634_v3  ;;  %764 = vst [vmem:[#allocation3 + $0xbc] sm:$0xf] %v16634_v3 }
  0x1a   : > { %9411 = vmatpush3.bf16.msra.mxu0 %v9820_v0  ;;  %v9822_v4 = vld [vmem:[%s16899_s2 + $0x10] sm:$0xff]   ;;  %s10159_s0 = scalar_lea.vmem %s16900_s30, %s9764_s28  ;;  %v668_v5 = vld [vmem:[%s16901_s24] sm:$0xff]  ;;  %v669_v6 = vld [vmem:[%s16901_s24 + $0x8] sm:$0xff]  ;;  %s656_s30 = scalar_lea.vmem %s16623_s18, %s8563_s27 }
  0x1b   : > { %9412 = vmatprep.subr.bf16.mxu0 %v16641_v1  ;;  %vm709_vm1 = vcmp.gt.f32.partialorder %v668_v5, 0.5  ;;  %v670_v7 = vld [vmem:[%s16901_s24 + $0x10] sm:$0xff]  ;;  %v9823_v8 = vld [vmem:[%s16899_s2 + $0x18] sm:$0xff]   ;;  %vm710_vm2 = vcmp.gt.f32.partialorder %v669_v6, 0.5  ;;  %v672_v11 = vld [vmem:[%s16901_s24 + $0x20] sm:$0xff]  ;;  %s652_s28 = scalar_lea.vmem %s16622_s17, %s17222_s22  ;;  %s9996_s4 = smov 122  }
  0x1c   : > { %v1243_v9 = vsel %vm709_vm1, 1, %v16634_v3  ;;  %v1244_v10 = vsel %vm710_vm2, 1, %v16634_v3  ;;  %vm711_vm3 = vcmp.gt.f32.partialorder %v670_v7, 0.5  ;;  %v671_v12 = vld [vmem:[%s16901_s24 + $0x18] sm:$0xff]  ;;  %vm713_vm4 = vcmp.gt.f32.partialorder %v672_v11, 0.5  ;;  %v9824_v14 = vld [vmem:[%s16899_s2 + $0x20] sm:$0xff]  }
  0x1d   : > { %1285 = vperm.xlu0 %9795, %v1243_v9   ;;  %v1245_v13 = vsel %vm711_vm3, 1, %v16634_v3  ;;  %vm712_vm5 = vcmp.gt.f32.partialorder %v671_v12, 0.5  ;;  %v674_v15 = vld [vmem:[%s16901_s24 + $0x30] sm:$0xff]  ;;  %v673_v17 = vld [vmem:[%s16901_s24 + $0x28] sm:$0xff]  ;;  %v1247_v18 = vsel %vm713_vm4, 1, %v16634_v3  ;;  %v675_v19 = vld [vmem:[%s16901_s24 + $0x38] sm:$0xff] }
  0x1e   : > { %9413 = vmatpush3.bf16.msra.mxu0 %v9821_v2  ;;  %1291 = vperm.xlu1 %9796, %v1245_v13   ;;  %v1246_v16 = vsel %vm712_vm5, 1, %v16634_v3  ;;  %vm714_vm6 = vcmp.gt.f32.partialorder %v673_v17, 0.5  ;;  %vm715_vm7 = vcmp.gt.f32.partialorder %v674_v15, 0.5  ;;  %v9825_v20 = vld [vmem:[%s16899_s2 + $0x28] sm:$0xff]   ;;  %v676_v21 = vld [vmem:[%s16901_s24 + $0x40] sm:$0xff]  ;;  %vm716_vm8 = vcmp.gt.f32.partialorder %v675_v19, 0.5 }
  0x1f   : > { %9414 = vmatprep.subr.bf16.mxu0 %v16641_v1  ;;  %v1248_v22 = vsel %vm714_vm6, 1, %v16634_v3  ;;  %v1249_v23 = vsel %vm715_vm7, 1, %v16634_v3  ;;  %vm717_vm9 = vcmp.gt.f32.partialorder %v676_v21, 0.5  ;;  %v677_v24 = vld [vmem:[%s16901_s24 + $0x48] sm:$0xff]  ;;  %v9826_v25 = vld [vmem:[%s16899_s2 + $0x30] sm:$0xff]   ;;  %v1250_v27 = vsel %vm716_vm8, 1, %v16634_v3 }
  0x20   : > { %v678_v26 = vld [vmem:[%s16901_s24 + $0x50] sm:$0xff]  ;;  %v1251_v28 = vsel %vm717_vm9, 1, %v16634_v3  ;;  %vm718_vm10 = vcmp.gt.f32.partialorder %v677_v24, 0.5  ;;  %v680_v29 = vld [vmem:[%s16901_s24 + $0x60] sm:$0xff]  ;;  %v679_v30 = vld [vmem:[%s16901_s24 + $0x58] sm:$0xff]  ;;  %s9997_s1 = smov 125  }
  0x21   : > { %1288 = vperm.xlu0 %9795, %v1244_v10   ;;  %vm719_vm11 = vcmp.gt.f32.partialorder %v678_v26, 0.5  ;;  %v9827_v31 = vld [vmem:[%s16899_s2 + $0x38] sm:$0xff]   ;;  %v1252_v32 = vsel %vm718_vm10, 1, %v16634_v3  ;;  %v9828_v33 = vld [vmem:[%s10159_s0] sm:$0xff]   ;;  %vm721_vm12 = vcmp.gt.f32.partialorder %v680_v29, 0.5  ;;  %vm720_vm13 = vcmp.gt.f32.partialorder %v679_v30, 0.5 }
  0x22   : > { %9415 = vmatpush3.bf16.msra.mxu0 %v9822_v4  ;;  %1294 = vperm.xlu1 %9796, %v1246_v16   ;;  %v1253_v34 = vsel %vm719_vm11, 1, %v16634_v3  ;;  %v682_v35 = vld [vmem:[%s16901_s24 + $0x70] sm:$0xff]  ;;  %v681_v36 = vld [vmem:[%s16901_s24 + $0x68] sm:$0xff]  ;;  %v1255_v37 = vsel %vm721_vm12, 1, %v16634_v3  ;;  %v1254_v38 = vsel %vm720_vm13, 1, %v16634_v3  ;;  %v684_v39 = vld [vmem:[%s16901_s24 + $0x80] sm:$0xff] }
  0x23   : > { %9416 = vmatprep.subr.bf16.mxu0 %v16641_v1  ;;  %vm723_vm14 = vcmp.gt.f32.partialorder %v682_v35, 0.5  ;;  %vm722_vm15 = vcmp.gt.f32.partialorder %v681_v36, 0.5  ;;  %v683_v40 = vld [vmem:[%s16901_s24 + $0x78] sm:$0xff]  ;;  %v686_v41 = vld [vmem:[%s16901_s24 + $0x90] sm:$0xff]  ;;  %v685_v42 = vld [vmem:[%s16901_s24 + $0x88] sm:$0xff]  ;;  %vm725_vm1 = vcmp.gt.f32.partialorder %v684_v39, 0.5 }
  0x24   : > { %v688_v43 = vld [vmem:[%s16901_s24 + $0xa0] sm:$0xff]  ;;  %v687_v44 = vld [vmem:[%s16901_s24 + $0x98] sm:$0xff]  ;;  %v690_v45 = vld [vmem:[%s16901_s24 + $0xb0] sm:$0xff]  ;;  %v1257_v46 = vsel %vm723_vm14, 1, %v16634_v3  ;;  %v1256_v47 = vsel %vm722_vm15, 1, %v16634_v3  ;;  %vm724_vm2 = vcmp.gt.f32.partialorder %v683_v40, 0.5 }
  0x25   : > { %1297 = vperm.xlu0 %9795, %v1247_v18   ;;  %v9829_v48 = vld [vmem:[%s10159_s0 + $0x8] sm:$0xff]   ;;  %vm727_vm3 = vcmp.gt.f32.partialorder %v686_v41, 0.5  ;;  %vm726_vm4 = vcmp.gt.f32.partialorder %v685_v42, 0.5  ;;  %vm729_vm5 = vcmp.gt.f32.partialorder %v688_v43, 0.5  ;;  %vm728_vm6 = vcmp.gt.f32.partialorder %v687_v44, 0.5  ;;  %v692_v50 = vld [vmem:[%s16901_s24 + $0xc0] sm:$0xff] }
  0x26   : > { %9417 = vmatpush3.bf16.msra.mxu0 %v9823_v8  ;;  %1300 = vperm.xlu1 %9796, %v1248_v22   ;;  %vm731_vm7 = vcmp.gt.f32.partialorder %v690_v45, 0.5  ;;  %v689_v49 = vld [vmem:[%s16901_s24 + $0xa8] sm:$0xff]  ;;  %v691_v51 = vld [vmem:[%s16901_s24 + $0xb8] sm:$0xff]  ;;  %v1259_v52 = vsel %vm725_vm1, 1, %v16634_v3  ;;  %v1258_v53 = vsel %vm724_vm2, 1, %v16634_v3  ;;  %v1261_v54 = vsel %vm727_vm3, 1, %v16634_v3 }
  0x27   : > { %9418 = vmatprep.subr.bf16.mxu0 %v16641_v1  ;;  %v694_v55 = vld [vmem:[%s16901_s24 + $0xd0] sm:$0xff]  ;;  %v1260_v56 = vsel %vm726_vm4, 1, %v16634_v3  ;;  %v1263_v57 = vsel %vm729_vm5, 1, %v16634_v3  ;;  %v1262_v58 = vsel %vm728_vm6, 1, %v16634_v3  ;;  %v1265_v59 = vsel %vm731_vm7, 1, %v16634_v3  ;;  %v693_v60 = vld [vmem:[%s16901_s24 + $0xc8] sm:$0xff] }
  0x28   : > { %vm730_vm8 = vcmp.gt.f32.partialorder %v689_v49, 0.5  ;;  %vm733_vm9 = vcmp.gt.f32.partialorder %v692_v50, 0.5  ;;  %vm732_vm10 = vcmp.gt.f32.partialorder %v691_v51, 0.5  ;;  %vm735_vm11 = vcmp.gt.f32.partialorder %v694_v55, 0.5  ;;  %v696_v61 = vld [vmem:[%s16901_s24 + $0xe0] sm:$0xff]  ;;  %v9830_v62 = vld [vmem:[%s10159_s0 + $0x10] sm:$0xff]  }
  0x29   : > { %1303 = vperm.xlu0 %9795, %v1249_v23   ;;  %v1264_v63 = vsel %vm730_vm8, 1, %v16634_v3  ;;  %vm734_vm12 = vcmp.gt.f32.partialorder %v693_v60, 0.5  ;;  %v1267_v0 = vsel %vm733_vm9, 1, %v16634_v3  ;;  %v1266_v2 = vsel %vm732_vm10, 1, %v16634_v3  ;;  %v695_v6 = vld [vmem:[%s16901_s24 + $0xd8] sm:$0xff]  ;;  %v697_v9 = vld [vmem:[%s16901_s24 + $0xe8] sm:$0xff] }
  0x2a   : > { %9419 = vmatpush3.bf16.msra.mxu0 %v9824_v14  ;;  %1306 = vperm.xlu1 %9796, %v1250_v27   ;;  %v1269_v4 = vsel %vm735_vm11, 1, %v16634_v3  ;;  %vm737_vm13 = vcmp.gt.f32.partialorder %v696_v61, 0.5  ;;  %v1268_v5 = vsel %vm734_vm12, 1, %v16634_v3  ;;  %vm736_vm14 = vcmp.gt.f32.partialorder %v695_v6, 0.5  ;;  %v9831_v8 = vld [vmem:[%s10159_s0 + $0x18] sm:$0xff]   ;;  %v9832_v11 = vld [vmem:[%s10159_s0 + $0x20] sm:$0xff]  }
  0x2b   : > { %9420 = vmatprep.subr.bf16.mxu0 %v16641_v1  ;;  %v1271_v7 = vsel %vm737_vm13, 1, %v16634_v3  ;;  %v1270_v10 = vsel %vm736_vm14, 1, %v16634_v3  ;;  %vm738_vm15 = vcmp.gt.f32.partialorder %v697_v9, 0.5  ;;  %v698_v12 = vld [vmem:[%s16901_s24 + $0xf0] sm:$0xff]  ;;  %v700_v13 = vld [vmem:[%s16901_s24 + $0x100] sm:$0xff]  ;;  %v699_v14 = vld [vmem:[%s16901_s24 + $0xf8] sm:$0xff] }
  0x2c   : > { %v701_v15 = vld [vmem:[%s16901_s24 + $0x108] sm:$0xff]  ;;  %vm739_vm1 = vcmp.gt.f32.partialorder %v698_v12, 0.5  ;;  %v702_v16 = vld [vmem:[%s16901_s24 + $0x110] sm:$0xff]  ;;  %vm741_vm2 = vcmp.gt.f32.partialorder %v700_v13, 0.5  ;;  %v1272_v18 = vsel %vm738_vm15, 1, %v16634_v3  ;;  %vm740_vm3 = vcmp.gt.f32.partialorder %v699_v14, 0.5 }
  0x2d   : > { %1309 = vperm.xlu0 %9795, %v1251_v28   ;;  %v9833_v17 = vld [vmem:[%s10159_s0 + $0x28] sm:$0xff]   ;;  %vm742_vm4 = vcmp.gt.f32.partialorder %v701_v15, 0.5  ;;  %v1273_v19 = vsel %vm739_vm1, 1, %v16634_v3  ;;  %v1274_v21 = vsel %vm740_vm3, 1, %v16634_v3  ;;  %vm743_vm5 = vcmp.gt.f32.partialorder %v702_v16, 0.5  ;;  %v703_v23 = vld [vmem:[%s16901_s24 + $0x118] sm:$0xff] }
  0x2e   : > { %9421 = vmatpush3.bf16.msra.mxu0 %v9825_v20  ;;  %1312 = vperm.xlu1 %9796, %v1252_v32   ;;  %v1275_v20 = vsel %vm741_vm2, 1, %v16634_v3  ;;  %v1276_v22 = vsel %vm742_vm4, 1, %v16634_v3  ;;  %v704_v24 = vld [vmem:[%s16901_s24 + $0x120] sm:$0xff]  ;;  %vm744_vm6 = vcmp.gt.f32.partialorder %v703_v23, 0.5  ;;  %v9834_v26 = vld [vmem:[%s10159_s0 + $0x30] sm:$0xff]   ;;  %v705_v27 = vld [vmem:[%s16901_s24 + $0x128] sm:$0xff] }
  0x2f   : > { %9422 = vmatprep.subr.bf16.mxu0 %v16641_v1  ;;  %vm745_vm7 = vcmp.gt.f32.partialorder %v704_v24, 0.5  ;;  %v706_v28 = vld [vmem:[%s16901_s24 + $0x130] sm:$0xff]  ;;  %v1278_v29 = vsel %vm744_vm6, 1, %v16634_v3  ;;  %vm746_vm8 = vcmp.gt.f32.partialorder %v705_v27, 0.5  ;;  %v708_v32 = vld [vmem:[%s16901_s24 + $0x140] sm:$0xff]  ;;  %v9835_v35 = vld [vmem:[%s10159_s0 + $0x38] sm:$0xff]  }
  0x30   : > { %v1279_v30 = vsel %vm745_vm7, 1, %v16634_v3  ;;  %vm747_vm9 = vcmp.gt.f32.partialorder %v706_v28, 0.5  ;;  %vm749_vm11 = vcmp.gt.f32.partialorder %v708_v32, 0.5  ;;  %v9837_v39 = vld [vmem:[%s10159_s0 + $0x48] sm:$0xff]   ;;  %v9838_v40 = vld [vmem:[%s10159_s0 + $0x50] sm:$0xff]   ;;  %v9839_v41 = vld [vmem:[%s10159_s0 + $0x58] sm:$0xff]  }
  0x31   : > { %1315 = vperm.xlu0 %9795, %v1253_v34   ;;  %v1281_v34 = vsel %vm747_vm9, 1, %v16634_v3  ;;  %v9840_v42 = vld [vmem:[%s10159_s0 + $0x60] sm:$0xff]   ;;  %v9841_v43 = vld [vmem:[%s10159_s0 + $0x68] sm:$0xff]   ;;  %v9843_v49 = vld [vmem:[%s10159_s0 + $0x78] sm:$0xff]   ;;  %vm1959_vm12 = vcmask 1046528   ;;  %vm2218_vm13 = vcmask 1045504  }
  0x32   : > { %9423 = vmatpush3.bf16.msra.mxu0 %v9826_v25  ;;  %1318 = vperm.xlu1 %9796, %v1254_v38   ;;  %v1277_v25 = vsel %vm743_vm5, 1, %v16634_v3  ;;  %v9836_v38 = vld [vmem:[%s10159_s0 + $0x40] sm:$0xff]   ;;  %v9850_v45 = vld [vmem:[%s16612_s7 + $0x8] sm:$0xff]   ;;  %vm2735_vm5 = vcmask 1044480   ;;  %vm2992_vm7 = vcmask 1043456   ;;  %s17219_s27 = sld [smem:[#allocation50_spill]] }
  0x33   : > { %9424 = vmatprep.subr.bf16.mxu0 %v16641_v1  ;;  %v9849_v44 = vld [vmem:[%s16612_s7] sm:$0xff]   ;;  %v9854_v51 = vld [vmem:[%s16612_s7 + $0x28] sm:$0xff]  }
  0x34   : > { %9511 = vmatpush3.bf16.msra.mxu1 %v9849_v44  ;;  %v9853_v50 = vld [vmem:[%s16612_s7 + $0x20] sm:$0xff]   ;;  %v9845_v55 = vld [vmem:[%s10159_s0 + $0x88] sm:$0xff]  }
  0x35   : > { %1321 = vperm.xlu0 %9795, %v1255_v37   ;;  %v1283_v37 = vsel %vm749_vm11, 1, %v16634_v3  ;;  %9512 = vmatprep.subr.bf16.mxu1 %v16641_v1  ;;  %v1868_v60 = vld [vmem:[#allocation2 + $0x4] sm:$0x8]  ;;  %v10451_v6 = vld [vmem:[%s16610_s5 + $0x2] ss:$0 sm:$0xff]  ;;  %vm3513_vm11 = vcmask 1042432  }
  0x36   : > { %9425 = vmatpush3.bf16.msra.mxu0 %v9827_v31  ;;  %1324 = vperm.xlu1 %9796, %v1256_v47   ;;  %v707_v31 = vld [vmem:[%s16901_s24 + $0x138] sm:$0xff]  ;;  %v9851_v47 = vld [vmem:[%s16612_s7 + $0x10] sm:$0xff]   ;;  %v2386_v16 = vld [vmem:[#allocation2 + $0xc] sm:$0x8] }
  0x37   : > { %9610 = vmatprep.subr.bf16.mxu0 %v16641_v1  ;;  %vm748_vm10 = vcmp.gt.f32.partialorder %v707_v31, 0.5  ;;  %v2390_v28 = vunpack.c.l.bf16 %v2386_v16 }
  0x38   : > { %v1282_v36 = vsel %vm748_vm10, 1, %v16634_v3  ;;  %9513 = vmatpush3.bf16.msra.mxu1 %v9850_v45 }
  0x39   : > { %9427 = vmatmul.mubr.bf16.vlgmr.msra.gmra.mrb[0].mxu0 %v9828_v33  ;;  %1327 = vperm.xlu0 %9795, %v1257_v46   ;;  %v1280_v33 = vsel %vm746_vm8, 1, %v16634_v3  ;;  %v9842_v46 = vld [vmem:[%s10159_s0 + $0x70] sm:$0xff]  }
  0x3a   : > { %9430 = vmatprep.mubr.msk.bf16.mxu0 %vm9989_vm0, %v16641_v1  ;;  %1330 = vperm.xlu1 %9796, %v1258_v53   ;;  %v9855_v53 = vld [vmem:[%s16612_s7 + $0x30] sm:$0xff]  }
  0x3b   : > { %9514 = vmatprep.subr.bf16.mxu1 %v16641_v1 }
  0x3c   : > { %9515 = vmatpush3.bf16.msra.mxu1 %v9851_v47 }
  0x3d   : > { %1333 = vperm.xlu0 %9795, %v1259_v52   ;;  %9516 = vmatprep.subr.bf16.mxu1 %v16641_v1  ;;  %v9844_v52 = vld [vmem:[%s10159_s0 + $0x80] sm:$0xff]  }
  0x3e   : > { %1336 = vperm.xlu1 %9796, %v1260_v56   ;;  %v9846_v56 = vld [vmem:[%s10159_s0 + $0x90] sm:$0xff]  }
  0x41   : > { %9431 = vmatmul.mubr.bf16.gmra.mrb[4].mxu0 %v9829_v48  ;;  %1339 = vperm.xlu0 %9795, %v1261_v54   ;;  %v9852_v48 = vld [vmem:[%s16612_s7 + $0x18] sm:$0xff]  }
  0x42   : > { %9434 = vmatprep.mubr.msk.bf16.mxu0 %vm9989_vm0, %v16641_v1  ;;  %1342 = vperm.xlu1 %9796, %v1262_v58   ;;  %v9856_v54 = vld [vmem:[%s16612_s7 + $0x38] sm:$0xff]   ;;  %v9848_v58 = vld [vmem:[%s10159_s0 + $0xa0] ss:$0 sps:$4 sm:$0xff]  }
  0x43   : > { %9517 = vmatpush3.bf16.msra.mxu1 %v9852_v48 }
  0x44   : > { %9518 = vmatprep.subr.bf16.mxu1 %v16641_v1 }
  0x45   : > { %1345 = vperm.xlu0 %9795, %v1263_v57   ;;  %v9847_v57 = vld [vmem:[%s10159_s0 + $0x98] sm:$0xff]  }
  0x46   : > { %1348 = vperm.xlu1 %9796, %v1264_v63   ;;  %v10444_v63 = vld [vmem:[%s16610_s5 + $0x1] ss:$0 sm:$0xff] }
  0x47   : > { %9519 = vmatpush3.bf16.msra.mxu1 %v9853_v50 }
  0x48   : > { %9520 = vmatprep.subr.bf16.mxu1 %v16641_v1 }
  0x49   : > { %9435 = vmatmul.mubr.bf16.gmra.mrb[8].mxu0 %v9830_v62  ;;  %1351 = vperm.xlu0 %9795, %v1265_v59   ;;  %v9217_v59 = vld [vmem:[#allocation2 + $0x8] sm:$0xff]   ;;  %v1870_v62 = vunpack.c.l.bf16 %v1868_v60 }
  0x4a   : > { %9438 = vmatprep.mubr.msk.bf16.mxu0 %vm9989_vm0, %v16641_v1  ;;  %1354 = vperm.xlu1 %9796, %v1266_v2   ;;  %v8939_v61 = vunpack.c.l.bf16 %v9217_v59  ;;  %v1695_v2 = vld [vmem:[#allocation2 + $0x4] sm:$0xc] }
  0x4b   : > { %9521 = vmatpush3.bf16.msra.mxu1 %v9854_v51  ;;  %v1738_v9 = vunpack.c.l.bf16 %v1695_v2  ;;  %v2134_v14 = vmul.f32 %v10451_v6, %v1870_v62 }
  0x4c   : > { %9522 = vmatprep.subr.bf16.mxu1 %v16641_v1  ;;  %v2135_v15 = vmul.f32 %v8939_v61, %v10451_v6 }
  0x4d   : > { %1357 = vperm.xlu0 %9795, %v1267_v0   ;;  %v8940_v0 = vunpack.c.h.bf16 %v9217_v59 }
  0x4e   : > { %1360 = vperm.xlu1 %9796, %v1268_v5   ;;  %v1876_v5 = vmul.f32 %v8939_v61, %v10444_v63  ;;  %v2220_v27 = vrot.slane %v2135_v15, 2 }
  0x4f   : > { %9523 = vmatpush3.bf16.msra.mxu1 %v9855_v53 }
  0x50   : > { %9524 = vmatprep.subr.bf16.mxu1 %v16641_v1  ;;  %v1961_v13 = vrot.slane %v1876_v5, 1 }
  0x51   : > { %9439 = vmatmul.mubr.bf16.gmra.mrb[12].mxu0 %v9831_v8  ;;  %1363 = vperm.xlu0 %9795, %v1269_v4   ;;  %v1875_v4 = vmul.f32 %v10444_v63, %v1870_v62 }
  0x52   : > { %9442 = vmatprep.mubr.msk.bf16.mxu0 %vm9989_vm0, %v16641_v1  ;;  %1366 = vperm.xlu1 %9796, %v1270_v10   ;;  %v10461_v10 = vld [vmem:[%s16903_s3] ss:$0 sm:$0xff] }
  0x53   : > { %9525 = vmatpush3.bf16.msra.mxu1 %v9856_v54  ;;  %v1960_v12 = vrot.slane %v1875_v4, 1  ;;  %v10528_v4 = vld [vmem:[%s16610_s5 + $0x4] ss:$0 sm:$0xff] }
  0x55   : > { %1369 = vperm.xlu0 %9795, %v1271_v7   ;;  %v10454_v7 = vmul.f32 %v8940_v0, %v10444_v63 }
  0x56   : > { %1372 = vperm.xlu1 %9796, %v1272_v18  }
  0x57   : > { %v1963_v18 = vrot.slane %v10454_v7, 1 }
  0x59   : > { %9443 = vmatmul.mubr.bf16.gmra.mrb[16].mxu0 %v9832_v11  ;;  %1375 = vperm.xlu0 %9795, %v1273_v19   ;;  %v10466_v11 = vld [vmem:[%s16610_s5] ss:$0 sm:$0xff]  ;;  %v10472_v19 = vmul.f32 %v8940_v0, %v10451_v6 }
  0x5a   : > { %9446 = vmatprep.mubr.msk.bf16.mxu0 %vm9989_vm0, %v16641_v1  ;;  %1378 = vperm.xlu1 %9796, %v1274_v21   ;;  %v1784_v23 = vmul.f32 %v10466_v11, %v1738_v9  ;;  %v1786_v50 = vmul.f32 %v8940_v0, %v10466_v11 }
  0x5d   : > { %1381 = vperm.xlu0 %9795, %v1275_v20  }
  0x5e   : > { %1384 = vperm.xlu1 %9796, %v1276_v22  }
  0x61   : > { %9447 = vmatmul.mubr.bf16.gmra.mrb[20].mxu0 %v9833_v17  ;;  %1387 = vperm.xlu0 %9795, %v1277_v25   ;;  %v1962_v25 = vsel %vm1959_vm12, %v1960_v12, %v1961_v13 }
  0x62   : > { %9450 = vmatprep.mubr.msk.bf16.mxu0 %vm9989_vm0, %v16641_v1  ;;  %1390 = vperm.xlu1 %9796, %v1278_v29  }
  0x65   : > { %1393 = vperm.xlu0 %9795, %v1279_v30  }
  0x66   : > { %1396 = vperm.xlu1 %9796, %v1280_v33   ;;  %v1785_v33 = vmul.f32 %v8939_v61, %v10466_v11 }
  0x69   : > { %9451 = vmatmul.mubr.bf16.gmra.mrb[24].mxu0 %v9834_v26  ;;  %1399 = vperm.xlu0 %9795, %v1281_v34   ;;  %v2219_v26 = vrot.slane %v2134_v14, 2  ;;  %v10486_v34 = vld [vmem:[%s16610_s5 + $0x3] ss:$0 sm:$0xff] }
  0x6a   : > { %9454 = vmatprep.mubr.msk.bf16.mxu0 %vm9989_vm0, %v16641_v1  ;;  %1402 = vperm.xlu1 %9796, %v1282_v36   ;;  %v2222_v36 = vrot.slane %v10472_v19, 2 }
  0x6c   : > { %v2223_v47 = vsel %vm2218_vm13, %v2220_v27, %v2222_v36 }
  0x6d   : > { %1405 = vperm.xlu0 %9795, %v1283_v37  }
  0x71   : > { %9455 = vmatmul.mubr.bf16.gmra.mrb[28].mxu0 %v9835_v35  ;;  %v1964_v35 = vsel %vm1959_vm12, %v1961_v13, %v1963_v18 }
  0x72   : > { %9458 = vmatprep.mubr.msk.bf16.mxu0 %vm9989_vm0, %v16641_v1  ;;  %v2086_v44 = vadd.f32 %v1964_v35, %v1785_v33 }
  0x74   : > { %v2345_v60 = vadd.f32 %v2223_v47, %v2086_v44 }
  0x79   : > { %9459 = vmatmul.mubr.bf16.gmra.mrb[32].mxu0 %v9836_v38  ;;  %v2085_v38 = vadd.f32 %v1962_v25, %v1784_v23 }
  0x7a   : > { %9462 = vmatprep.mubr.msk.bf16.mxu0 %vm9989_vm0, %v16641_v1 }
  0x81   : > { %9463 = vmatmul.mubr.bf16.gmra.mrb[36].mxu0 %v9837_v39  ;;  %v2221_v39 = vsel %vm2218_vm13, %v2219_v26, %v2220_v27 }
  0x82   : > { %9466 = vmatprep.mubr.msk.bf16.mxu0 %vm9989_vm0, %v16641_v1  ;;  %v2344_v51 = vadd.f32 %v2221_v39, %v2085_v38 }
  0x89   : > { %9467 = vmatmul.mubr.bf16.gmra.mrb[40].mxu0 %v9838_v40  ;;  %v2397_v40 = vmul.f32 %v10486_v34, %v2390_v28 }
  0x8a   : > { %9470 = vmatprep.mubr.msk.bf16.mxu0 %vm9989_vm0, %v16641_v1 }
  0x91   : > { %9471 = vmatmul.mubr.bf16.gmra.mrb[44].mxu0 %v9839_v41 }
  0x92   : > { %9474 = vmatprep.mubr.msk.bf16.mxu0 %vm9989_vm0, %v16641_v1 }
  0x99   : > { %9475 = vmatmul.mubr.bf16.gmra.mrb[48].mxu0 %v9840_v42 }
  0x9a   : > { %9478 = vmatprep.mubr.msk.bf16.mxu0 %vm9989_vm0, %v16641_v1 }
  0x9c   : > { %v10456_v8 = vpop.permute.xlu0 %1285 }
  0x9d   : > { %16902 = vst [vmem:[#allocation5_spill] sm:$0xff] %v10456_v8  ;;  %v10474_v20 = vpop.permute.xlu1 %1291  ;;  %vm1407_vm14 = vcmp.eq.s32.totalorder %v10456_v8, 1 }
  0x9e   : > { %16904 = vst [vmem:[#allocation6_spill] sm:$0xff] %v10474_v20  ;;  %vm1409_vm1 = vcmp.eq.s32.totalorder %v10474_v20, 1 }
  0xa0   : > { %v10479_v29 = vpop.permute.xlu0 %1288 }
  0xa1   : > { %9479 = vmatmul.mubr.bf16.gmra.mrb[52].mxu0 %v9841_v43  ;;  %16905 = vst [vmem:[#allocation7_spill] sm:$0xff] %v10479_v29  ;;  %vm1408_vm15 = vcmp.eq.s32.totalorder %v10479_v29, 1  ;;  %v10496_v41 = vpop.permute.xlu1 %1294 }
  0xa2   : > { %9482 = vmatprep.mubr.msk.bf16.mxu0 %vm9989_vm0, %v16641_v1  ;;  %16906 = vst [vmem:[#allocation8_spill] sm:$0xff] %v10496_v41  ;;  %vm1410_vm2 = vcmp.eq.s32.totalorder %v10496_v41, 1 }
  0xa5   : > { %v10530_v5 = vpop.permute.xlu1 %1300 }
  0xa6   : > { %16908 = vst [vmem:[#allocation10_spill] sm:$0xff] %v10530_v5  ;;  %vm16633_vm4 = vcmp.eq.s32.totalorder %v10530_v5, 1 }
  0xa9   : > { %9483 = vmatmul.mubr.bf16.gmra.mrb[56].mxu0 %v9842_v46 }
  0xaa   : > { %9486 = vmatprep.mubr.msk.bf16.mxu0 %vm9989_vm0, %v16641_v1 }
  0xb1   : > { %9487 = vmatmul.mubr.bf16.gmra.mrb[60].mxu0 %v9843_v49 }
  0xb2   : > { %9490 = vmatprep.mubr.msk.bf16.mxu0 %vm9989_vm0, %v16641_v1 }
  0xb9   : > { %9491 = vmatmul.mubr.bf16.gmra.mrb[64].mxu0 %v9844_v52 }
  0xba   : > { %9494 = vmatprep.mubr.msk.bf16.mxu0 %vm9989_vm0, %v16641_v1 }
  0xc1   : > { %9495 = vmatmul.mubr.bf16.gmra.mrb[68].mxu0 %v9845_v55  ;;  %v2481_v55 = vrot.slane %v2397_v40, 2 }
  0xc2   : > { %9498 = vmatprep.mubr.msk.bf16.mxu0 %vm9989_vm0, %v16641_v1 }
  0xc9   : > { %9499 = vmatmul.mubr.bf16.gmra.mrb[72].mxu0 %v9846_v56  ;;  %v10510_v56 = vpop.permute.xlu0 %1297 }
  0xca   : > { %9502 = vmatprep.mubr.msk.bf16.mxu0 %vm9989_vm0, %v16641_v1  ;;  %16907 = vst [vmem:[#allocation9_spill] sm:$0xff] %v10510_v56  ;;  %vm16653_vm3 = vcmp.eq.s32.totalorder %v10510_v56, 1 }
  0xd1   : > { %9503 = vmatmul.mubr.bf16.gmra.mrb[76].mxu0 %v9847_v57 }
  0xd2   : > { %9506 = vmatprep.mubr.msk.bf16.mxu0 %vm9989_vm0, %v16641_v1 }
  0xd9   : > { %9507 = vmatmul.mubr.bf16.gmra.mrb[80].mxu0 %v9848_v58 }
  0xda   : > { %9626 = vmatprep.mubr.msk.bf16.mxu0 %vm9989_vm0, %v16641_v1 }
 0x10c   : > { %v1036_v17 = vpop.f32.mrb[0].mxu0 }
 0x10d   : > { %v1037_v21 = vadd.f32 %v10461_v10, %v1036_v17  ;;  %v9428_v22 = vpop.f32.mrb[1].mxu0 }
 0x10e   : > { %v1039_v24 = vpop.f32.mrb[2].mxu0 }
 0x10f   : > { %v1202_v30 = vmax.f32 %v1037_v21, 0.0  ;;  %v1040_v31 = vadd.f32 %v10461_v10, %v1039_v24  ;;  %v9429_v32 = vpop.f32.mrb[3].mxu0 }
 0x111   : > { %v1203_v37 = vmax.f32 %v1040_v31, 0.0  ;;  %v1448_v42 = vsel %vm1407_vm14, %v1202_v30, 0.0 }
 0x113   : > { %v1449_v43 = vsel %vm1408_vm15, %v1203_v37, 0.0 }
 0x114   : > { %v8840_v45 = vpack.c.bf16 %v1449_v43, %v1448_v42  ;;  %v1044_v46 = vpop.f32.mrb[4].mxu0  ;;  %v10567_v42 = vpop.permute.xlu0 %1303 }
 0x115   : > { %v1045_v48 = vadd.f32 %v10461_v10, %v1044_v46  ;;  %v9432_v49 = vpop.f32.mrb[5].mxu0  ;;  %16909 = vst [vmem:[#allocation11_spill] sm:$0xff] %v10567_v42  ;;  %vm16632_vm6 = vcmp.eq.s32.totalorder %v10567_v42, 1 }
 0x116   : > { %v10506_v52 = vunpack.c.l.bf16 %v8840_v45  ;;  %v10508_v53 = vunpack.c.h.bf16 %v8840_v45  ;;  %v1047_v54 = vpop.f32.mrb[6].mxu0 }
 0x117   : > { %v1204_v57 = vmax.f32 %v1045_v48, 0.0  ;;  %v1048_v58 = vadd.f32 %v10461_v10, %v1047_v54  ;;  %v9433_v59 = vpop.f32.mrb[7].mxu0  ;;  %v10581_v54 = vld [vmem:[%s16610_s5 + $0x5] ss:$0 sm:$0xff] }
 0x118   : > { %v1787_v61 = vmul.f32 %v10506_v52, %v10466_v11  ;;  %v1878_v62 = vmul.f32 %v10506_v52, %v10444_v63  ;;  %v10521_v0 = vmul.f32 %v10508_v53, %v10444_v63  ;;  %v2137_v2 = vmul.f32 %v10506_v52, %v10451_v6 }
 0x119   : > { %v1450_v9 = vsel %vm1409_vm1, %v1204_v57, 0.0  ;;  %v1205_v12 = vmax.f32 %v1048_v58, 0.0  ;;  %v10536_v13 = vmul.f32 %v10508_v53, %v10451_v6  ;;  %v2398_v14 = vmul.f32 %v10506_v52, %v10486_v34 }
 0x11a   : > { %v1965_v15 = vrot.slane %v1878_v62, 1  ;;  %v16646_v16 = vrot.slane %v10521_v0, 1  ;;  %v2224_v17 = vrot.slane %v2137_v2, 2  ;;  %v2399_v19 = vmul.f32 %v10508_v53, %v10486_v34 }
 0x11b   : > { %v1451_v21 = vsel %vm1410_vm2, %v1205_v12, 0.0  ;;  %v16645_v22 = vrot.slane %v10536_v13, 2  ;;  %v2482_v23 = vrot.slane %v2398_v14, 2  ;;  %v10549_v24 = vmul.f32 %v10506_v52, %v10528_v4 }
 0x11c   : > { %v8845_v25 = vpack.c.bf16 %v1451_v21, %v1450_v9  ;;  %v1052_v26 = vpop.f32.mrb[8].mxu0  ;;  %v1966_v27 = vsel %vm1959_vm12, %v1963_v18, %v1965_v15  ;;  %v1968_v28 = vsel %vm1959_vm12, %v1965_v15, %v16646_v16  ;;  %v2225_v30 = vsel %vm2218_vm13, %v2222_v36, %v2224_v17 }
 0x11d   : > { %v1053_v31 = vadd.f32 %v10461_v10, %v1052_v26  ;;  %v9436_v32 = vpop.f32.mrb[9].mxu0  ;;  %v2087_v33 = vadd.f32 %v1966_v27, %v1786_v50  ;;  %v2088_v35 = vadd.f32 %v1968_v28, %v1787_v61  ;;  %v2227_v37 = vsel %vm2218_vm13, %v2224_v17, %v16645_v22 }
 0x11e   : > { %9198 = vst [vmem:[#allocation2 + $0x18] sm:$0xff] %v8845_v25   ;;  %v10562_v38 = vunpack.c.l.bf16 %v8845_v25  ;;  %v10564_v7 = vunpack.c.h.bf16 %v8845_v25  ;;  %v1055_v18 = vpop.f32.mrb[10].mxu0  ;;  %v2483_v39 = vsel %vm2218_vm13, %v2481_v55, %v2482_v23  ;;  %v2484_v40 = vrot.slane %v2399_v19, 2  ;;  %v10583_v55 = vpop.permute.xlu1 %1306 }
 0x11f   : > { %v1206_v36 = vmax.f32 %v1053_v31, 0.0  ;;  %v1056_v43 = vadd.f32 %v10461_v10, %v1055_v18  ;;  %v9437_v44 = vpop.f32.mrb[11].mxu0  ;;  %v2346_v45 = vadd.f32 %v2225_v30, %v2087_v33  ;;  %v2347_v46 = vadd.f32 %v2227_v37, %v2088_v35  ;;  %16910 = vst [vmem:[#allocation12_spill] sm:$0xff] %v10583_v55  ;;  %v10614_v37 = vpop.permute.xlu0 %1309 }
 0x120   : > { %v2400_v47 = vmul.f32 %v10562_v38, %v10486_v34  ;;  %v10575_v48 = vmul.f32 %v10564_v7, %v10486_v34  ;;  %v2485_v49 = vsel %vm2218_vm13, %v2482_v23, %v2484_v40  ;;  %v2606_v50 = vadd.f32 %v2483_v39, %v2344_v51  ;;  %16911 = vst [vmem:[#allocation13_spill] sm:$0xff] %v10614_v37  ;;  %v10620_v44 = vld [vmem:[%s16610_s5 + $0x6] ss:$0 sm:$0xff] }
 0x121   : > { %v1452_v57 = vsel %vm16653_vm3, %v1206_v36, 0.0  ;;  %v1207_v58 = vmax.f32 %v1056_v43, 0.0  ;;  %v2607_v59 = vadd.f32 %v2485_v49, %v2345_v60  ;;  %v2654_v61 = vmul.f32 %v10508_v53, %v10528_v4 }
 0x122   : > { %vm16631_vm8 = vcmp.eq.s32.totalorder %v10583_v55, 1  ;;  %v2486_v62 = vrot.slane %v2400_v47, 2  ;;  %v16640_v51 = vrot.slane %v10575_v48, 2  ;;  %v2655_v2 = vmul.f32 %v10562_v38, %v10528_v4 }
 0x123   : > { %v10595_v9 = vmul.f32 %v10564_v7, %v10528_v4  ;;  %v1453_v12 = vsel %vm16633_vm4, %v1207_v58, 0.0  ;;  %v2736_v60 = vrot.slane %v10549_v24, 3  ;;  %v2737_v14 = vrot.slane %v2654_v61, 3 }
 0x124   : > { %v2908_v15 = vmul.f32 %v10506_v52, %v10581_v54  ;;  %v8850_v17 = vpack.c.bf16 %v1453_v12, %v1452_v57  ;;  %v1060_v19 = vpop.f32.mrb[12].mxu0  ;;  %v2487_v21 = vsel %vm2218_vm13, %v2484_v40, %v2486_v62  ;;  %v2489_v23 = vsel %vm2218_vm13, %v2486_v62, %v16640_v51 }
 0x125   : > { %v2739_v25 = vrot.slane %v2655_v2, 3  ;;  %v1061_v26 = vadd.f32 %v10461_v10, %v1060_v19  ;;  %v9440_v27 = vpop.f32.mrb[13].mxu0  ;;  %v2608_v28 = vadd.f32 %v2487_v21, %v2346_v45  ;;  %v2609_v30 = vadd.f32 %v2489_v23, %v2347_v46 }
 0x126   : > { %v2738_v24 = vsel %vm2735_vm5, %v2736_v60, %v2737_v14  ;;  %v10608_v31 = vunpack.c.l.bf16 %v8850_v17  ;;  %v10610_v32 = vunpack.c.h.bf16 %v8850_v17  ;;  %v1063_v52 = vpop.f32.mrb[14].mxu0  ;;  %v16639_v35 = vrot.slane %v10595_v9, 3 }
 0x127   : > { %v2740_v33 = vsel %vm2735_vm5, %v2737_v14, %v2739_v25  ;;  %v1208_v18 = vmax.f32 %v1061_v26, 0.0  ;;  %v1064_v39 = vadd.f32 %v10461_v10, %v1063_v52  ;;  %v9441_v40 = vpop.f32.mrb[15].mxu0  ;;  %v2859_v36 = vadd.f32 %v2736_v60, %v2606_v50  ;;  %v10630_v50 = vpop.permute.xlu1 %1312 }
 0x128   : > { %v2860_v43 = vadd.f32 %v2738_v24, %v2607_v59  ;;  %vm16643_vm9 = vcmp.eq.s32.totalorder %v10614_v37, 1  ;;  %v2742_v45 = vsel %vm2735_vm5, %v2739_v25, %v16639_v35  ;;  %v2861_v46 = vadd.f32 %v2740_v33, %v2608_v28  ;;  %16912 = vst [vmem:[#allocation14_spill] sm:$0xff] %v10630_v50 }
 0x129   : > { %v2909_v47 = vmul.f32 %v10508_v53, %v10581_v54  ;;  %v2910_v49 = vmul.f32 %v10562_v38, %v10581_v54  ;;  %v1454_v57 = vsel %vm16632_vm6, %v1208_v18, 0.0  ;;  %v1209_v58 = vmax.f32 %v1064_v39, 0.0  ;;  %v3422_v18 = vld [vmem:[#allocation2 + $0x18] sm:$0xe]  ;;  %v10657_v39 = vld [vmem:[%s16610_s5 + $0x7] ss:$0 sm:$0xff] }
 0x12a   : > { %v2862_v59 = vadd.f32 %v2742_v45, %v2609_v30  ;;  %v10636_v61 = vmul.f32 %v10564_v7, %v10581_v54  ;;  %vm16638_vm10 = vcmp.eq.s32.totalorder %v10630_v50, 1  ;;  %v2993_v62 = vrot.slane %v2908_v15, 4 }
 0x12b   : > { %v2994_v2 = vrot.slane %v2909_v47, 4  ;;  %v2996_v12 = vrot.slane %v2910_v49, 4  ;;  %v3171_v60 = vmul.f32 %v10562_v38, %v10620_v44  ;;  %v1455_v14 = vsel %vm16631_vm8, %v1209_v58, 0.0 }
 0x12c   : > { %v16637_v17 = vrot.slane %v10636_v61, 4  ;;  %v3172_v19 = vmul.f32 %v10564_v7, %v10620_v44  ;;  %v3173_v21 = vmul.f32 %v10608_v31, %v10620_v44  ;;  %v8855_v23 = vpack.c.bf16 %v1455_v14, %v1454_v57  ;;  %v1068_v25 = vpop.f32.mrb[16].mxu0  ;;  %v10667_v57 = vpop.permute.xlu0 %1315 }
 0x12d   : > { %v2995_v15 = vsel %vm2992_vm7, %v2993_v62, %v2994_v2  ;;  %v2997_v26 = vsel %vm2992_vm7, %v2994_v2, %v2996_v12  ;;  %v3118_v27 = vadd.f32 %v2993_v62, %v2859_v36  ;;  %v1069_v28 = vadd.f32 %v10461_v10, %v1068_v25  ;;  %v9444_v30 = vpop.f32.mrb[17].mxu0  ;;  %16913 = vst [vmem:[#allocation15_spill] sm:$0xff] %v10667_v57  ;;  %v10674_v25 = vpop.permute.xlu1 %1318 }
 0x12e   : > { %v2999_v24 = vsel %vm2992_vm7, %v2996_v12, %v16637_v17  ;;  %v3119_v52 = vadd.f32 %v2995_v15, %v2860_v43  ;;  %v3120_v33 = vadd.f32 %v2997_v26, %v2861_v46  ;;  %v10659_v40 = vunpack.c.l.bf16 %v8855_v23  ;;  %v1071_v36 = vpop.f32.mrb[18].mxu0  ;;  %16914 = vst [vmem:[#allocation16_spill] sm:$0xff] %v10674_v25 }
 0x12f   : > { %v10661_v45 = vunpack.c.h.bf16 %v8855_v23  ;;  %v3121_v47 = vadd.f32 %v2999_v24, %v2862_v59  ;;  %v10665_v49 = vmul.f32 %v10610_v32, %v10620_v44  ;;  %v1210_v43 = vmax.f32 %v1069_v28, 0.0  ;;  %v9445_v58 = vpop.f32.mrb[19].mxu0 }
 0x130   : > { %v1072_v46 = vadd.f32 %v10461_v10, %v1071_v36  ;;  %v3255_v62 = vrot.slane %v3171_v60, 4  ;;  %v3256_v2 = vrot.slane %v3172_v19, 4  ;;  %vm16652_vm8 = vcmp.eq.s32.totalorder %v10667_v57, 1 }
 0x131   : > { %v3258_v12 = vrot.slane %v3173_v21, 4  ;;  %v16636_v14 = vrot.slane %v10665_v49, 4  ;;  %v3424_v23 = vunpack.c.l.bf16 %v3422_v18  ;;  %v3430_v59 = vmul.f32 %v10564_v7, %v10657_v39  ;;  %v10688_v18 = vld [vmem:[%s16610_s5 + $0x8] ss:$0 sm:$0xff]  ;;  %v10718_v1 = vpop.permute.xlu1 %1324 }
 0x132   : > { %v1456_v15 = vsel %vm16643_vm9, %v1210_v43, 0.0  ;;  %v1211_v26 = vmax.f32 %v1072_v46, 0.0  ;;  %v3257_v28 = vsel %vm2992_vm7, %v3255_v62, %v3256_v2  ;;  %v3380_v30 = vadd.f32 %v3255_v62, %v3118_v27  ;;  %16916 = vst [vmem:[#allocation18_spill] sm:$0xff] %v10718_v1 }
 0x133   : > { %vm3772_vm6 = vcmask 1041408   ;;  %vm16651_vm4 = vcmp.eq.s32.totalorder %v10674_v25, 1  ;;  %v3259_v60 = vsel %vm2992_vm7, %v3256_v2, %v3258_v12  ;;  %v3261_v19 = vsel %vm2992_vm7, %v3258_v12, %v16636_v14 }
 0x134   : > { %v3381_v21 = vadd.f32 %v3257_v28, %v3119_v52  ;;  %v3429_v24 = vmul.f32 %v10657_v39, %v3424_v23  ;;  %v1457_v27 = vsel %vm16638_vm10, %v1211_v26, 0.0  ;;  %v3382_v36 = vadd.f32 %v3259_v60, %v3120_v33  ;;  %v1076_v62 = vpop.f32.mrb[20].mxu0 }
 0x135   : > { %v3383_v43 = vadd.f32 %v3261_v19, %v3121_v47  ;;  %v3431_v46 = vmul.f32 %v10608_v31, %v10657_v39  ;;  %v8860_v58 = vpack.c.bf16 %v1457_v27, %v1456_v15  ;;  %v10696_v52 = vmul.f32 %v10610_v32, %v10657_v39  ;;  %v9448_v3 = vpop.f32.mrb[21].mxu0 }
 0x136   : > { %v3514_v2 = vrot.slane %v3429_v24, 5  ;;  %v3515_v12 = vrot.slane %v3430_v59, 5  ;;  %v1077_v28 = vadd.f32 %v10461_v10, %v1076_v62  ;;  %v3688_v17 = vmul.f32 %v10688_v18, %v3424_v23  ;;  %v1079_v15 = vpop.f32.mrb[22].mxu0  ;;  %v10708_v24 = vpop.permute.xlu0 %1321 }
 0x137   : > { %v3517_v14 = vrot.slane %v3431_v46, 5  ;;  %v3689_v33 = vmul.f32 %v10564_v7, %v10688_v18  ;;  %v10702_v47 = vunpack.c.l.bf16 %v8860_v58  ;;  %v10704_v26 = vunpack.c.h.bf16 %v8860_v58  ;;  %16915 = vst [vmem:[#allocation17_spill] sm:$0xff] %v10708_v24  ;;  %v9449_v27 = vpop.f32.mrb[23].mxu0 }
 0x138   : > { %v3516_v60 = vsel %vm3513_vm11, %v3514_v2, %v3515_v12  ;;  %v16644_v19 = vrot.slane %v10696_v52, 5  ;;  %v1212_v59 = vmax.f32 %v1077_v28, 0.0  ;;  %v1080_v3 = vadd.f32 %v10461_v10, %v1079_v15 }
 0x139   : > { %v3518_v23 = vsel %vm3513_vm11, %v3515_v12, %v3517_v14  ;;  %v3639_v46 = vadd.f32 %v3514_v2, %v3380_v30  ;;  %vm16658_vm10 = vcmp.eq.s32.totalorder %v10708_v24, 1  ;;  %v3640_v62 = vadd.f32 %v3516_v60, %v3381_v21 }
 0x13a   : > { %v3520_v58 = vsel %vm3513_vm11, %v3517_v14, %v16644_v19  ;;  %v3641_v35 = vadd.f32 %v3518_v23, %v3382_v36  ;;  %v3690_v51 = vmul.f32 %v10608_v31, %v10688_v18  ;;  %v1458_v28 = vsel %vm16652_vm8, %v1212_v59, 0.0  ;;  %v10752_v37 = vpop.permute.xlu0 %1327 }
 0x13b   : > { %v1213_v15 = vmax.f32 %v1080_v3, 0.0  ;;  %v3642_v27 = vadd.f32 %v3520_v58, %v3383_v43  ;;  %v10724_v30 = vmul.f32 %v10610_v32, %v10688_v18  ;;  %vm16657_vm9 = vcmp.eq.s32.totalorder %v10718_v1, 1  ;;  %v10735_v43 = vld [vmem:[%s16611_s6] ss:$0 sm:$0xff]  ;;  %16917 = vst [vmem:[#allocation19_spill] sm:$0xff] %v10752_v37 }
 0x13c   : > { %v3773_v2 = vrot.slane %v3688_v17, 6  ;;  %v3774_v14 = vrot.slane %v3689_v33, 6  ;;  %v3776_v21 = vrot.slane %v3690_v51, 6  ;;  %v1788_v36 = vmul.f32 %v10508_v53, %v10466_v11  ;;  %v1084_v33 = vpop.f32.mrb[24].mxu0 }
 0x13d   : > { %v1459_v12 = vsel %vm16651_vm4, %v1213_v15, 0.0  ;;  %v16654_v60 = vrot.slane %v10724_v30, 6  ;;  %v1789_v59 = vmul.f32 %v10562_v38, %v10466_v11  ;;  %v1880_v17 = vmul.f32 %v10562_v38, %v10444_v63  ;;  %v9452_v15 = vpop.f32.mrb[25].mxu0 }
 0x13e   : > { %v8865_v51 = vpack.c.bf16 %v1459_v12, %v1458_v28  ;;  %v3775_v53 = vsel %vm3772_vm6, %v3773_v2, %v3774_v14  ;;  %v3777_v3 = vsel %vm3772_vm6, %v3774_v14, %v3776_v21  ;;  %v3898_v23 = vadd.f32 %v3773_v2, %v3639_v46  ;;  %v1087_v28 = vpop.f32.mrb[26].mxu0 }
 0x13f   : > { %v1085_v58 = vadd.f32 %v10461_v10, %v1084_v33  ;;  %v3779_v19 = vsel %vm3772_vm6, %v3776_v21, %v16654_v60  ;;  %v3899_v22 = vadd.f32 %v3775_v53, %v3640_v62  ;;  %v3900_v16 = vadd.f32 %v3777_v3, %v3641_v35  ;;  %v9453_v14 = vpop.f32.mrb[27].mxu0 }
 0x140   : > { %v10747_v25 = vunpack.c.l.bf16 %v8865_v51  ;;  %v10749_v57 = vunpack.c.h.bf16 %v8865_v51  ;;  %v3901_v12 = vadd.f32 %v3779_v19, %v3642_v27  ;;  %v3947_v50 = vadd.f32 %v10735_v43, %v3898_v23  ;;  %v10763_v51 = vpop.permute.xlu1 %1330 }
 0x141   : > { %v1214_v46 = vmax.f32 %v1085_v58, 0.0  ;;  %v1088_v2 = vadd.f32 %v10461_v10, %v1087_v28  ;;  %v3948_v33 = vadd.f32 %v10735_v43, %v3899_v22  ;;  %v3949_v21 = vadd.f32 %v10735_v43, %v3900_v16  ;;  %16918 = vst [vmem:[#allocation20_spill] sm:$0xff] %v10763_v51 }
 0x142   : > { %vm1421_vm4 = vcmp.eq.s32.totalorder %v10752_v37, 1  ;;  %v3950_v35 = vadd.f32 %v10735_v43, %v3901_v12  ;;  %v3989_v62 = vmax.f32 %v3947_v50, 0.0  ;;  %v10761_v19 = vmul.f32 %v10564_v7, %v10444_v63 }
 0x143   : > { %v1969_v27 = vrot.slane %v1880_v17, 1  ;;  %v1460_v53 = vsel %vm16658_vm10, %v1214_v46, 0.0  ;;  %v1215_v3 = vmax.f32 %v1088_v2, 0.0  ;;  %v3990_v23 = vmax.f32 %v3948_v33, 0.0 }
 0x144   : > { %v3991_v22 = vmax.f32 %v3949_v21, 0.0  ;;  %vm4075_vm8 = vsmask.f32 5376  ;;  %vm16666_vm3 = vcmp.eq.s32.totalorder %v10763_v51, 1  ;;  %v3992_v16 = vmax.f32 %v3950_v35, 0.0  ;;  %v1092_v33 = vpop.f32.mrb[28].mxu0 }
 0x145   : > { %v16919_v58 = vrot.slane %v10521_v0, 1  ;;  %v16656_v15 = vrot.slane %v10761_v19, 1  ;;  %v2139_v17 = vmul.f32 %v10562_v38, %v10451_v6  ;;  %v1461_v28 = vsel %vm16657_vm9, %v1215_v3, 0.0  ;;  %v9456_v38 = vpop.f32.mrb[29].mxu0 }
 0x146   : > { %v4031_v12 = vpack.c.bf16 %v3990_v23, %v3989_v62  ;;  %v10778_v2 = vmul.f32 %v10564_v7, %v10451_v6  ;;  %v8870_v14 = vpack.c.bf16 %v1461_v28, %v1460_v53  ;;  %v4032_v21 = vpack.c.bf16 %v3992_v16, %v3991_v22  ;;  %v1095_v23 = vpop.f32.mrb[30].mxu0  ;;  %v10788_v28 = vpop.permute.xlu0 %1333 }
 0x147   : > { %v1970_v50 = vsel %vm1959_vm12, %v16919_v58, %v1969_v27  ;;  %v1972_v0 = vsel %vm1959_vm12, %v1969_v27, %v16656_v15  ;;  %v2228_v35 = vrot.slane %v2139_v17, 2  ;;  %v1093_v58 = vadd.f32 %v10461_v10, %v1092_v33  ;;  %16920 = vst [vmem:[#allocation21_spill] sm:$0xff] %v10788_v28  ;;  %v9457_v27 = vpop.f32.mrb[31].mxu0  ;;  %v10796_v38 = vpop.permute.xlu1 %1336 }
 0x148   : > { %v2089_v46 = vadd.f32 %v1970_v50, %v1788_v36  ;;  %v4077_v60 = vshrl.u32 %v4031_v12, 16  ;;  %v4080_v1 = vshll.u32 %v4031_v12, 16  ;;  %v2090_v3 = vadd.f32 %v1972_v0, %v1789_v59  ;;  %16922 = vst [vmem:[#allocation22_spill] sm:$0xff] %v10796_v38 }
 0x149   : > { %v10784_v62 = vunpack.c.l.bf16 %v8870_v14  ;;  %v10786_v36 = vunpack.c.h.bf16 %v8870_v14  ;;  %v4085_v50 = vshrl.u32 %v4032_v21, 16  ;;  %v4088_v53 = vshll.u32 %v4032_v21, 16 }
 0x14a   : > { %v1216_v22 = vmax.f32 %v1093_v58, 0.0  ;;  %v1096_v16 = vadd.f32 %v10461_v10, %v1095_v23  ;;  %v4079_v17 = vrot.slane %v4077_v60, 2  ;;  %v4082_v15 = vrot.slane %v4080_v1, 3 }
 0x14b   : > { %vm16665_vm9 = vcmp.eq.s32.totalorder %v10788_v28, 1  ;;  %v4087_v33 = vrot.slane %v4085_v50, 2  ;;  %v4090_v12 = vrot.slane %v4088_v53, 3  ;;  %v16921_v59 = vrot.slane %v10536_v13, 2 }
 0x14c   : > { %v16659_v0 = vrot.slane %v10778_v2, 2  ;;  %v1462_v21 = vsel %vm1421_vm4, %v1216_v22, 0.0  ;;  %v1217_v58 = vmax.f32 %v1096_v16, 0.0  ;;  %v4083_v23 = vor.u32 %v4082_v15, %v4079_v17  ;;  %v1100_v17 = vpop.f32.mrb[32].mxu0 }
 0x14d   : > { %v2229_v14 = vsel %vm2218_vm13, %v16921_v59, %v2228_v35  ;;  %vm1424_vm10 = vcmp.eq.s32.totalorder %v10796_v38, 1  ;;  %v10801_v1 = vor.u32 %v4090_v12, %v4087_v33  ;;  %v2402_v60 = vmul.f32 %v10608_v31, %v10486_v34 }
 0x14e   : > { %v2348_v27 = vadd.f32 %v2229_v14, %v2089_v46  ;;  %v2231_v13 = vsel %vm2218_vm13, %v2228_v35, %v16659_v0  ;;  %v10810_v50 = vmul.f32 %v10610_v32, %v10486_v34  ;;  %v1463_v53 = vsel %vm16666_vm3, %v1217_v58, 0.0  ;;  %v9460_v14 = vpop.f32.mrb[33].mxu0 }
 0x14f   : > { %v2349_v15 = vadd.f32 %v2231_v13, %v2090_v3  ;;  %v2657_v46 = vmul.f32 %v10608_v31, %v10528_v4  ;;  %v10818_v22 = vmul.f32 %v10610_v32, %v10528_v4  ;;  %v8875_v16 = vpack.c.bf16 %v1463_v53, %v1462_v21  ;;  %v1103_v53 = vpop.f32.mrb[34].mxu0 }
 0x150   : > { %v4092_v35 = vsel %vm4075_vm8, %v4083_v23, %v10801_v1  ;;  %v2490_v33 = vrot.slane %v2402_v60, 2  ;;  %v16667_v12 = vrot.slane %v10810_v50, 2  ;;  %v1101_v59 = vadd.f32 %v10461_v10, %v1100_v17  ;;  %v9461_v58 = vpop.f32.mrb[35].mxu0 }
 0x151   : > { %9527 = vmatmul.mubr.bf16.vlgmr.msra.gmra.mrb[0].mxu1 %v4092_v35  ;;  %v2743_v3 = vrot.slane %v2657_v46, 3  ;;  %v2912_v13 = vmul.f32 %v10608_v31, %v10581_v54  ;;  %v10827_v0 = vunpack.c.l.bf16 %v8875_v16  ;;  %v10829_v21 = vunpack.c.h.bf16 %v8875_v16 }
 0x152   : > { %v16923_v23 = vmov 0.0   ;;  %v16924_v60 = vrot.slane %v10575_v48, 2  ;;  %v2493_v46 = vsel %vm2218_vm13, %v2490_v33, %v16667_v12  ;;  %v1218_v17 = vmax.f32 %v1101_v59, 0.0 }
 0x153   : > { %9530 = vmatprep.mubr.msk.bf16.mxu1 %vm9989_vm0, %v16923_v23  ;;  %v1104_v14 = vadd.f32 %v10461_v10, %v1103_v53  ;;  %v2611_v37 = vadd.f32 %v2493_v46, %v2349_v15  ;;  %v16925_v16 = vrot.slane %v10595_v9, 3  ;;  %v16926_v55 = vrot.slane %v10818_v22, 3  ;;  %v10852_v15 = vpop.permute.xlu0 %1339  ;;  %v10854_v9 = vpop.permute.xlu1 %1342 }
 0x154   : > { %v2491_v35 = vsel %vm2218_vm13, %v16924_v60, %v2490_v33  ;;  %v10848_v60 = vmul.f32 %v10610_v32, %v10581_v54  ;;  %v3000_v42 = vrot.slane %v2912_v13, 4  ;;  %v1464_v33 = vsel %vm16665_vm9, %v1218_v17, 0.0  ;;  %16927 = vst [vmem:[#allocation23_spill] sm:$0xff] %v10852_v15  ;;  %16928 = vst [vmem:[#allocation24_spill] sm:$0xff] %v10854_v9 }
 0x155   : > { %v2610_v51 = vadd.f32 %v2491_v35, %v2348_v27  ;;  %v2744_v24 = vsel %vm2735_vm5, %v16925_v16, %v2743_v3  ;;  %v2746_v48 = vsel %vm2735_vm5, %v2743_v3, %v16926_v55  ;;  %v1219_v59 = vmax.f32 %v1104_v14, 0.0 }
 0x156   : > { %v2864_v27 = vadd.f32 %v2746_v48, %v2611_v37  ;;  %v16929_v53 = vrot.slane %v10636_v61, 4  ;;  %v16670_v55 = vrot.slane %v10848_v60, 4  ;;  %v3175_v3 = vmul.f32 %v10659_v40, %v10620_v44  ;;  %v1108_v48 = vpop.f32.mrb[36].mxu0 }
 0x157   : > { %v2863_v58 = vadd.f32 %v2744_v24, %v2610_v51  ;;  %v10864_v13 = vmul.f32 %v10661_v45, %v10620_v44  ;;  %vm16681_vm9 = vcmp.eq.s32.totalorder %v10852_v15, 1  ;;  %vm16680_vm3 = vcmp.eq.s32.totalorder %v10854_v9, 1 }
 0x158   : > { %v3001_v35 = vsel %vm2992_vm7, %v16929_v53, %v3000_v42  ;;  %v1465_v37 = vsel %vm1424_vm10, %v1219_v59, 0.0  ;;  %v3433_v61 = vmul.f32 %v10659_v40, %v10657_v39  ;;  %v10874_v51 = vmul.f32 %v10661_v45, %v10657_v39 }
 0x159   : > { %v3122_v24 = vadd.f32 %v3001_v35, %v2863_v58  ;;  %v8880_v46 = vpack.c.bf16 %v1465_v37, %v1464_v33  ;;  %v3003_v17 = vsel %vm2992_vm7, %v3000_v42, %v16670_v55  ;;  %v3262_v14 = vrot.slane %v3175_v3, 4  ;;  %v9464_v35 = vpop.f32.mrb[37].mxu0 }
 0x15a   : > { %v16674_v16 = vrot.slane %v10864_v13, 4  ;;  %v3123_v53 = vadd.f32 %v3003_v17, %v2864_v27  ;;  %v3521_v12 = vrot.slane %v3433_v61, 5  ;;  %v16672_v59 = vrot.slane %v10874_v51, 5  ;;  %v1111_v27 = vpop.f32.mrb[38].mxu0 }
 0x15b   : > { %v3692_v58 = vmul.f32 %v10659_v40, %v10688_v18  ;;  %v10883_v38 = vunpack.c.l.bf16 %v8880_v46  ;;  %v10885_v28 = vunpack.c.h.bf16 %v8880_v46  ;;  %v16930_v33 = vrot.slane %v10665_v49, 4  ;;  %v9465_v35 = vpop.f32.mrb[39].mxu0 }
 0x15c   : > { %v3265_v3 = vsel %vm2992_vm7, %v3262_v14, %v16674_v16  ;;  %v16931_v17 = vrot.slane %v10696_v52, 5  ;;  %v3524_v46 = vsel %vm3513_vm11, %v3521_v12, %v16672_v59  ;;  %v10901_v49 = vmul.f32 %v10661_v45, %v10688_v18 }
 0x15d   : > { %v3263_v42 = vsel %vm2992_vm7, %v16930_v33, %v3262_v14  ;;  %v3385_v61 = vadd.f32 %v3265_v3, %v3123_v53  ;;  %v3780_v33 = vrot.slane %v3692_v58, 6  ;;  %v1109_v5 = vadd.f32 %v10461_v10, %v1108_v48 }
 0x15e   : > { %v3384_v37 = vadd.f32 %v3263_v42, %v3122_v24  ;;  %v3522_v55 = vsel %vm3513_vm11, %v16931_v17, %v3521_v12  ;;  %v1112_v14 = vadd.f32 %v10461_v10, %v1111_v27  ;;  %v1790_v52 = vmul.f32 %v10564_v7, %v10466_v11 }
 0x15f   : > { %v3644_v53 = vadd.f32 %v3524_v46, %v3385_v61  ;;  %v1791_v42 = vmul.f32 %v10608_v31, %v10466_v11  ;;  %v16932_v12 = vrot.slane %v10724_v30, 6  ;;  %v16673_v17 = vrot.slane %v10901_v49, 6  ;;  %v10932_v61 = vpop.f32.mrb[40].mxu0 }
 0x160   : > { %v3643_v24 = vadd.f32 %v3522_v55, %v3384_v37  ;;  %v1220_v35 = vmax.f32 %v1109_v5, 0.0  ;;  %v1221_v58 = vmax.f32 %v1112_v14, 0.0  ;;  %v1882_v48 = vmul.f32 %v10608_v31, %v10444_v63 }
 0x161   : > { %v3781_v3 = vsel %vm3772_vm6, %v16932_v12, %v3780_v33  ;;  %v10917_v55 = vmul.f32 %v10610_v32, %v10444_v63  ;;  %v2141_v7 = vmul.f32 %v10608_v31, %v10451_v6  ;;  %v3783_v30 = vsel %vm3772_vm6, %v3780_v33, %v16673_v17 }
 0x162   : > { %v3902_v59 = vadd.f32 %v3781_v3, %v3643_v24  ;;  %v1466_v27 = vsel %vm16681_vm9, %v1220_v35, 0.0  ;;  %v1467_v5 = vsel %vm16680_vm3, %v1221_v58, 0.0  ;;  %v10930_v37 = vmul.f32 %v10610_v32, %v10451_v6  ;;  %v9468_v24 = vpop.f32.mrb[41].mxu0 }
 0x163   : > { %v3903_v63 = vadd.f32 %v3783_v30, %v3644_v53  ;;  %v8885_v31 = vpack.c.bf16 %v1467_v5, %v1466_v27  ;;  %v1973_v14 = vrot.slane %v1882_v48, 1  ;;  %v16676_v33 = vrot.slane %v10917_v55, 1  ;;  %v10939_v58 = vpop.f32.mrb[42].mxu0 }
 0x164   : > { %v3951_v46 = vadd.f32 %v10735_v43, %v3902_v59  ;;  %v2232_v12 = vrot.slane %v2141_v7, 2  ;;  %v16675_v3 = vrot.slane %v10930_v37, 2  ;;  %v2404_v35 = vmul.f32 %v10659_v40, %v10486_v34  ;;  %v9469_v59 = vpop.f32.mrb[43].mxu0 }
 0x165   : > { %v3952_v6 = vadd.f32 %v10735_v43, %v3903_v63  ;;  %v10942_v16 = vunpack.c.l.bf16 %v8885_v31  ;;  %v10944_v53 = vunpack.c.h.bf16 %v8885_v31  ;;  %v16933_v48 = vrot.slane %v10761_v19, 1 }
 0x166   : > { %v3993_v17 = vmax.f32 %v3951_v46, 0.0  ;;  %v1976_v7 = vsel %vm1959_vm12, %v1973_v14, %v16676_v33  ;;  %v16934_v27 = vrot.slane %v10778_v2, 2  ;;  %v2235_v63 = vsel %vm2218_vm13, %v2232_v12, %v16675_v3  ;;  %v10979_v33 = vpop.f32.mrb[44].mxu0 }
 0x167   : > { %v1974_v30 = vsel %vm1959_vm12, %v16933_v48, %v1973_v14  ;;  %v3994_v46 = vmax.f32 %v3952_v6, 0.0  ;;  %v2092_v24 = vadd.f32 %v1976_v7, %v1791_v42  ;;  %v10960_v19 = vmul.f32 %v10661_v45, %v10486_v34 }
 0x168   : > { %v2233_v5 = vsel %vm2218_vm13, %v16934_v27, %v2232_v12  ;;  %v2091_v31 = vadd.f32 %v1974_v30, %v1790_v52  ;;  %v2494_v59 = vrot.slane %v2404_v35, 2  ;;  %v2659_v48 = vmul.f32 %v10659_v40, %v10528_v4 }
 0x169   : > { %v10966_v2 = vmul.f32 %v10661_v45, %v10528_v4  ;;  %v2914_v14 = vmul.f32 %v10659_v40, %v10581_v54  ;;  %v4033_v27 = vpack.c.bf16 %v3994_v46, %v3993_v17  ;;  %v2351_v6 = vadd.f32 %v2235_v63, %v2092_v24  ;;  %v9472_v63 = vpop.f32.mrb[45].mxu0 }
 0x16a   : > { %v2350_v12 = vadd.f32 %v2233_v5, %v2091_v31  ;;  %v16685_v52 = vrot.slane %v10960_v19, 2  ;;  %v16935_v42 = vrot.slane %v10810_v50, 2  ;;  %v2747_v35 = vrot.slane %v2659_v48, 3  ;;  %v10984_v50 = vpop.permute.xlu0 %1345  ;;  %v10992_v56 = vpop.f32.mrb[46].mxu0 }
 0x16b   : > { %v16683_v7 = vrot.slane %v10966_v2, 3  ;;  %v10977_v3 = vmul.f32 %v10661_v45, %v10581_v54  ;;  %v4094_v9 = vshrl.u32 %v4033_v27, 16  ;;  %v4097_v15 = vshll.u32 %v4033_v27, 16  ;;  %16936 = vst [vmem:[#allocation25_spill] sm:$0xff] %v10984_v50  ;;  %v9473_v63 = vpop.f32.mrb[47].mxu0 }
 0x16c   : > { %v2495_v30 = vsel %vm2218_vm13, %v16935_v42, %v2494_v59  ;;  %v2497_v17 = vsel %vm2218_vm13, %v2494_v59, %v16685_v52  ;;  %v16937_v31 = vrot.slane %v10818_v22, 3  ;;  %v3004_v42 = vrot.slane %v2914_v14, 4 }
 0x16d   : > { %v2612_v5 = vadd.f32 %v2495_v30, %v2350_v12  ;;  %v2613_v46 = vadd.f32 %v2497_v17, %v2351_v6  ;;  %v2750_v48 = vsel %vm2735_vm5, %v2747_v35, %v16683_v7  ;;  %vm16697_vm3 = vcmp.eq.s32.totalorder %v10984_v50, 1  ;;  %v10996_v6 = vpop.permute.xlu1 %1348 }
 0x16e   : > { %v2748_v24 = vsel %vm2735_vm5, %v16937_v31, %v2747_v35  ;;  %v4096_v27 = vrot.slane %v4094_v9, 2  ;;  %v4099_v59 = vrot.slane %v4097_v15, 3  ;;  %v16682_v30 = vrot.slane %v10977_v3, 4  ;;  %16938 = vst [vmem:[#allocation26_spill] sm:$0xff] %v10996_v6 }
 0x16f   : > { %v2865_v12 = vadd.f32 %v2748_v24, %v2612_v5  ;;  %v2866_v22 = vadd.f32 %v2750_v48, %v2613_v46  ;;  %v16939_v17 = vrot.slane %v10848_v60, 4  ;;  %v3177_v14 = vmul.f32 %v10702_v47, %v10620_v44 }
 0x170   : > { %v11005_v35 = vmul.f32 %v10704_v26, %v10620_v44  ;;  %vm16696_vm9 = vcmp.eq.s32.totalorder %v10996_v6, 1  ;;  %v11008_v15 = vor.u32 %v4099_v59, %v4096_v27  ;;  %v3007_v9 = vsel %vm2992_vm7, %v3004_v42, %v16682_v30 }
 0x171   : > { %v3005_v31 = vsel %vm2992_vm7, %v16939_v17, %v3004_v42  ;;  %v3435_v60 = vmul.f32 %v10702_v47, %v10657_v39  ;;  %v3125_v46 = vadd.f32 %v3007_v9, %v2866_v22  ;;  %v3266_v24 = vrot.slane %v3177_v14, 4  ;;  %v11038_v9 = vpop.f32.mrb[48].mxu0 }
 0x172   : > { %v3124_v5 = vadd.f32 %v3005_v31, %v2865_v12  ;;  %v16684_v48 = vrot.slane %v11005_v35, 4  ;;  %v11018_v63 = vmul.f32 %v10704_v26, %v10657_v39  ;;  %v4101_v27 = vsel %vm4075_vm8, %v10801_v1, %v11008_v15  ;;  %v9476_v7 = vpop.f32.mrb[49].mxu0 }
 0x173   : > { %v3525_v59 = vrot.slane %v3435_v60, 5  ;;  %v3694_v42 = vmul.f32 %v10702_v47, %v10688_v18  ;;  %v11027_v12 = vmul.f32 %v10704_v26, %v10688_v18  ;;  %9531 = vmatmul.mubr.bf16.gmra.mrb[4].mxu1 %v4101_v27  ;;  %v16940_v22 = vrot.slane %v10864_v13, 4  ;;  %v11051_v41 = vpop.f32.mrb[50].mxu0 }
 0x174   : > { %v3269_v31 = vsel %vm2992_vm7, %v3266_v24, %v16684_v48  ;;  %v16688_v14 = vrot.slane %v11018_v63, 5  ;;  %v1117_v1 = vadd.f32 %v10461_v10, %v10932_v61  ;;  %9534 = vmatprep.mubr.msk.bf16.mxu1 %vm9989_vm0, %v16923_v23  ;;  %v16941_v13 = vrot.slane %v10874_v51, 5 }
 0x175   : > { %v3267_v17 = vsel %vm2992_vm7, %v16940_v22, %v3266_v24  ;;  %v3387_v27 = vadd.f32 %v3269_v31, %v3125_v46  ;;  %v3784_v30 = vrot.slane %v3694_v42, 6  ;;  %v16687_v48 = vrot.slane %v11027_v12, 6  ;;  %v9477_v42 = vpop.f32.mrb[51].mxu0 }
 0x176   : > { %v3386_v60 = vadd.f32 %v3267_v17, %v3124_v5  ;;  %v3526_v22 = vsel %vm3513_vm11, %v16941_v13, %v3525_v59  ;;  %v3528_v24 = vsel %vm3513_vm11, %v3525_v59, %v16688_v14  ;;  %v1222_v61 = vmax.f32 %v1117_v1, 0.0 }
 0x177   : > { %v1120_v52 = vadd.f32 %v10461_v10, %v10939_v58  ;;  %v3646_v46 = vadd.f32 %v3528_v24, %v3387_v27  ;;  %v16942_v51 = vrot.slane %v10901_v49, 6  ;;  %v1792_v7 = vmul.f32 %v10610_v32, %v10466_v11  ;;  %v11066_v58 = vld [vmem:[%s16610_s5] ss:$0 sm:$0xff]  ;;  %v11073_v11 = vld [vmem:[%s16610_s5 + $0x1] ss:$0 sm:$0xff] }
 0x178   : > { %v3645_v5 = vadd.f32 %v3526_v22, %v3386_v60  ;;  %v3787_v59 = vsel %vm3772_vm6, %v3784_v30, %v16687_v48  ;;  %v1468_v31 = vsel %vm16697_vm3, %v1222_v61, 0.0  ;;  %v1793_v49 = vmul.f32 %v11066_v58, %v10659_v40  ;;  %v11086_v27 = vld [vmem:[%s16610_s5 + $0x2] ss:$0 sm:$0xff] }
 0x179   : > { %v3785_v17 = vsel %vm3772_vm6, %v16942_v51, %v3784_v30  ;;  %v1223_v10 = vmax.f32 %v1120_v52, 0.0  ;;  %v3905_v60 = vadd.f32 %v3787_v59, %v3646_v46  ;;  %v1884_v32 = vmul.f32 %v11073_v11, %v10659_v40 }
 0x17a   : > { %v3904_v1 = vadd.f32 %v3785_v17, %v3645_v5  ;;  %v11079_v52 = vmul.f32 %v11073_v11, %v10661_v45  ;;  %v2143_v13 = vmul.f32 %v11086_v27, %v10659_v40  ;;  %v11092_v22 = vmul.f32 %v11086_v27, %v10661_v45 }
 0x17b   : > { %v1469_v30 = vsel %vm16696_vm9, %v1223_v10, 0.0  ;;  %v2406_v24 = vmul.f32 %v10702_v47, %v10486_v34  ;;  %v3954_v5 = vadd.f32 %v10735_v43, %v3905_v60  ;;  %v1977_v51 = vrot.slane %v1884_v32, 1  ;;  %v11104_v10 = vpop.f32.mrb[52].mxu0 }
 0x17c   : > { %v3953_v61 = vadd.f32 %v10735_v43, %v3904_v1  ;;  %v8890_v46 = vpack.c.bf16 %v1469_v30, %v1468_v31  ;;  %v16693_v17 = vrot.slane %v11079_v52, 1  ;;  %v2236_v42 = vrot.slane %v2143_v13, 2  ;;  %v9480_v60 = vpop.f32.mrb[53].mxu0 }
 0x17d   : > { %v16692_v59 = vrot.slane %v11092_v22, 2  ;;  %v11102_v40 = vmul.f32 %v10704_v26, %v10486_v34  ;;  %v3996_v14 = vmax.f32 %v3954_v5, 0.0  ;;  %v16945_v31 = vrot.slane %v10917_v55, 1  ;;  %v11122_v5 = vpop.f32.mrb[54].mxu0 }
 0x17e   : > { %v3995_v48 = vmax.f32 %v3953_v61, 0.0  ;;  %v11106_v6 = vunpack.c.l.bf16 %v8890_v46  ;;  %v11108_v1 = vunpack.c.h.bf16 %v8890_v46  ;;  %v1980_v30 = vsel %vm1959_vm12, %v1977_v51, %v16693_v17  ;;  %v9481_v20 = vpop.f32.mrb[55].mxu0 }
 0x17f   : > { %v1978_v32 = vsel %vm1959_vm12, %v16945_v31, %v1977_v51  ;;  %v16946_v34 = vrot.slane %v10930_v37, 2  ;;  %v2239_v61 = vsel %vm2218_vm13, %v2236_v42, %v16692_v59  ;;  %v2094_v50 = vadd.f32 %v1980_v30, %v1793_v49 }
 0x180   : > { %16943 = vst [vmem:[#allocation27_spill] sm:$0xff] %v11106_v6  ;;  %16944 = vst [vmem:[#allocation28_spill] sm:$0xff] %v11108_v1  ;;  %v4034_v46 = vpack.c.bf16 %v3996_v14, %v3995_v48  ;;  %v2093_v60 = vadd.f32 %v1978_v32, %v1792_v7  ;;  %v2498_v55 = vrot.slane %v2406_v24, 2  ;;  %v2500_v31 = vrot.slane %v11102_v40, 2 }
 0x181   : > { %v2237_v13 = vsel %vm2218_vm13, %v16946_v34, %v2236_v42  ;;  %v2661_v51 = vmul.f32 %v10702_v47, %v10528_v4  ;;  %v11129_v37 = vmul.f32 %v10704_v26, %v10528_v4  ;;  %v2916_v34 = vmul.f32 %v10702_v47, %v10581_v54 }
 0x182   : > { %v4103_v42 = vshrl.u32 %v4034_v46, 16  ;;  %v4106_v59 = vshll.u32 %v4034_v46, 16  ;;  %v2352_v17 = vadd.f32 %v2237_v13, %v2093_v60  ;;  %v2353_v48 = vadd.f32 %v2239_v61, %v2094_v50  ;;  %v11150_v46 = vpop.f32.mrb[56].mxu0  ;;  %v11152_v60 = vpop.permute.xlu0 %1351 }
 0x183   : > { %v16947_v14 = vrot.slane %v10960_v19, 2  ;;  %v2501_v7 = vsel %vm2218_vm13, %v2498_v55, %v2500_v31  ;;  %v2751_v49 = vrot.slane %v2661_v51, 3  ;;  %v16704_v24 = vrot.slane %v11129_v37, 3  ;;  %16949 = vst [vmem:[#allocation29_spill] sm:$0xff] %v11152_v60  ;;  %v11159_v51 = vpop.permute.xlu1 %1354 }
 0x184   : > { %v4105_v4 = vrot.slane %v4103_v42, 2  ;;  %v4108_v32 = vrot.slane %v4106_v59, 3  ;;  %v2615_v29 = vadd.f32 %v2501_v7, %v2353_v48  ;;  %v16948_v8 = vrot.slane %v10966_v2, 3  ;;  %v9484_v2 = vpop.f32.mrb[57].mxu0  ;;  %16950 = vst [vmem:[#allocation30_spill] sm:$0xff] %v11159_v51 }
 0x185   : > { %v2499_v20 = vsel %vm2218_vm13, %v16947_v14, %v2498_v55  ;;  %v2754_v19 = vsel %vm2735_vm5, %v2751_v49, %v16704_v24  ;;  %v11148_v50 = vmul.f32 %v10704_v26, %v10581_v54  ;;  %v3008_v61 = vrot.slane %v2916_v34, 4  ;;  %v11171_v14 = vpop.f32.mrb[58].mxu0 }
 0x186   : > { %v2614_v30 = vadd.f32 %v2499_v20, %v2352_v17  ;;  %v2752_v13 = vsel %vm2735_vm5, %v16948_v8, %v2751_v49  ;;  %v11154_v59 = vor.u32 %v4108_v32, %v4105_v4  ;;  %v2868_v55 = vadd.f32 %v2754_v19, %v2615_v29  ;;  %v9485_v4 = vpop.f32.mrb[59].mxu0 }
 0x187   : > { %v3179_v8 = vmul.f32 %v10747_v25, %v10620_v44  ;;  %vm16710_vm9 = vcmp.eq.s32.totalorder %v11152_v60, 1  ;;  %v16951_v54 = vrot.slane %v10977_v3, 4  ;;  %v16702_v42 = vrot.slane %v11148_v50, 4  ;;  %v11210_v4 = vld [vmem:[%s16903_s3] ss:$0 sm:$0xff]  ;;  %v11311_v60 = vpop.permute.xlu0 %1357 }
 0x188   : > { %v2867_v17 = vadd.f32 %v2752_v13, %v2614_v30  ;;  %v11167_v48 = vmul.f32 %v10749_v57, %v10620_v44  ;;  %v3437_v29 = vmul.f32 %v10747_v25, %v10657_v39  ;;  %vm16708_vm3 = vcmp.eq.s32.totalorder %v11159_v51, 1 }
 0x189   : > { %v3009_v34 = vsel %vm2992_vm7, %v16951_v54, %v3008_v61  ;;  %v4110_v20 = vsel %vm4075_vm8, %v11008_v15, %v11154_v59  ;;  %v3270_v7 = vrot.slane %v3179_v8, 4  ;;  %v11179_v49 = vmul.f32 %v10749_v57, %v10657_v39 }
 0x18a   : > { %v3126_v3 = vadd.f32 %v3009_v34, %v2867_v17  ;;  %9535 = vmatmul.mubr.bf16.gmra.mrb[8].mxu1 %v4110_v20  ;;  %v3011_v44 = vsel %vm2992_vm7, %v3008_v61, %v16702_v42  ;;  %v16700_v32 = vrot.slane %v11167_v48, 4  ;;  %v3529_v30 = vrot.slane %v3437_v29, 5 }
 0x18b   : > { %v3696_v13 = vmul.f32 %v10747_v25, %v10688_v18  ;;  %9538 = vmatprep.mubr.msk.bf16.mxu1 %vm9989_vm0, %v16923_v23  ;;  %v3127_v15 = vadd.f32 %v3011_v44, %v2868_v55  ;;  %v16952_v19 = vrot.slane %v11005_v35, 4  ;;  %v16699_v17 = vrot.slane %v11179_v49, 5 }
 0x18c   : > { %v11195_v8 = vmul.f32 %v10749_v57, %v10688_v18  ;;  %v3273_v61 = vsel %vm2992_vm7, %v3270_v7, %v16700_v32  ;;  %v16953_v54 = vrot.slane %v11018_v63, 5  ;;  %v16954_v63 = vrot.slane %v11027_v12, 6 }
 0x18d   : > { %v3271_v39 = vsel %vm2992_vm7, %v16952_v19, %v3270_v7  ;;  %v3788_v55 = vrot.slane %v3696_v13, 6  ;;  %v3389_v29 = vadd.f32 %v3273_v61, %v3127_v15  ;;  %v3532_v35 = vsel %vm3513_vm11, %v3529_v30, %v16699_v17  ;;  %v11221_v15 = vpop.f32.mrb[60].mxu0 }
 0x18e   : > { %v3388_v2 = vadd.f32 %v3271_v39, %v3126_v3  ;;  %v3530_v34 = vsel %vm3513_vm11, %v16953_v54, %v3529_v30  ;;  %v16698_v20 = vrot.slane %v11195_v8, 6  ;;  %v1125_v3 = vadd.f32 %v11210_v4, %v10979_v33  ;;  %v9488_v12 = vpop.f32.mrb[61].mxu0 }
 0x18f   : > { %v3789_v44 = vsel %vm3772_vm6, %v16954_v63, %v3788_v55  ;;  %v1128_v13 = vadd.f32 %v11210_v4, %v10992_v56  ;;  %v1794_v30 = vmul.f32 %v11066_v58, %v10661_v45  ;;  %v3648_v19 = vadd.f32 %v3532_v35, %v3389_v29 }
 0x190   : > { %v3647_v7 = vadd.f32 %v3530_v34, %v3388_v2  ;;  %v3791_v39 = vsel %vm3772_vm6, %v3788_v55, %v16698_v20  ;;  %v1224_v61 = vmax.f32 %v1125_v3, 0.0  ;;  %v1795_v33 = vmul.f32 %v11066_v58, %v10702_v47  ;;  %v11234_v34 = vpop.f32.mrb[62].mxu0 }
 0x191   : > { %v1225_v54 = vmax.f32 %v1128_v13, 0.0  ;;  %v1886_v56 = vmul.f32 %v11073_v11, %v10702_v47  ;;  %v11232_v45 = vmul.f32 %v11073_v11, %v10704_v26  ;;  %v3907_v29 = vadd.f32 %v3791_v39, %v3648_v19 }
 0x192   : > { %v3906_v2 = vadd.f32 %v3789_v44, %v3647_v7  ;;  %v1470_v55 = vsel %vm16710_vm9, %v1224_v61, 0.0  ;;  %v2145_v35 = vmul.f32 %v11086_v27, %v10702_v47  ;;  %v11242_v3 = vmul.f32 %v11086_v27, %v10704_v26  ;;  %v9489_v7 = vpop.f32.mrb[63].mxu0 }
 0x193   : > { %v1471_v44 = vsel %vm16708_vm3, %v1225_v54, 0.0  ;;  %v1981_v13 = vrot.slane %v1886_v56, 1  ;;  %v16701_v12 = vrot.slane %v11232_v45, 1  ;;  %v3956_v19 = vadd.f32 %v10735_v43, %v3907_v29  ;;  %v11259_v54 = vld [vmem:[%s16610_s5 + $0x3] ss:$0 sm:$0xff] }
 0x194   : > { %v3955_v63 = vadd.f32 %v10735_v43, %v3906_v2  ;;  %v8895_v39 = vpack.c.bf16 %v1471_v44, %v1470_v55  ;;  %v2240_v61 = vrot.slane %v2145_v35, 2  ;;  %v16703_v20 = vrot.slane %v11242_v3, 2 }
 0x195   : > { %v16955_v17 = vrot.slane %v11079_v52, 1  ;;  %v1984_v2 = vsel %vm1959_vm12, %v1981_v13, %v16701_v12  ;;  %v2408_v56 = vmul.f32 %v11259_v54, %v10747_v25  ;;  %v3998_v29 = vmax.f32 %v3956_v19, 0.0  ;;  %v11277_v12 = vpop.f32.mrb[64].mxu0 }
 0x196   : > { %v3997_v47 = vmax.f32 %v3955_v63, 0.0  ;;  %v11263_v55 = vunpack.c.l.bf16 %v8895_v39  ;;  %v11265_v35 = vunpack.c.h.bf16 %v8895_v39  ;;  %v2096_v7 = vadd.f32 %v1984_v2, %v1795_v33  ;;  %16959 = vst [vmem:[#allocation33_spill] sm:$0xff] %v11277_v12 }
 0x197   : > { %v1982_v32 = vsel %vm1959_vm12, %v16955_v17, %v1981_v13  ;;  %v16958_v17 = vrot.slane %v11092_v22, 2  ;;  %v2243_v44 = vsel %vm2218_vm13, %v2240_v61, %v16703_v20  ;;  %v11275_v13 = vmul.f32 %v11259_v54, %v10749_v57 }
 0x198   : > { %16956 = vst [vmem:[#allocation31_spill] sm:$0xff] %v11263_v55  ;;  %16957 = vst [vmem:[#allocation32_spill] sm:$0xff] %v11265_v35  ;;  %v2095_v52 = vadd.f32 %v1982_v32, %v1794_v30  ;;  %v4035_v19 = vpack.c.bf16 %v3998_v29, %v3997_v47  ;;  %v2502_v39 = vrot.slane %v2408_v56, 2  ;;  %v11282_v32 = vld [vmem:[%s16610_s5 + $0x4] ss:$0 sm:$0xff]  ;;  %v9492_v30 = vpop.f32.mrb[65].mxu0  ;;  %v2355_v33 = vadd.f32 %v2243_v44, %v2096_v7 }
 0x199   : > { %v2241_v63 = vsel %vm2218_vm13, %v16958_v17, %v2240_v61  ;;  %v2663_v22 = vmul.f32 %v11282_v32, %v10747_v25  ;;  %v16709_v61 = vrot.slane %v11275_v13, 2  ;;  %v11289_v2 = vmul.f32 %v11282_v32, %v10749_v57  ;;  %v11294_v47 = vld [vmem:[%s16610_s5 + $0x5] ss:$0 sm:$0xff]  ;;  %v11298_v29 = vpop.f32.mrb[66].mxu0 }
 0x19a   : > { %v2354_v42 = vadd.f32 %v2241_v63, %v2095_v52  ;;  %v2918_v56 = vmul.f32 %v11294_v47, %v10747_v25  ;;  %16960 = vst [vmem:[#allocation34_spill] sm:$0xff] %v11298_v29  ;;  %v4112_v52 = vshrl.u32 %v4035_v19, 16  ;;  %v4115_v17 = vshll.u32 %v4035_v19, 16  ;;  %v9493_v44 = vpop.f32.mrb[67].mxu0 }
 0x19b   : > { %v2503_v7 = vsel %vm2218_vm13, %v2500_v31, %v2502_v39  ;;  %v2755_v63 = vrot.slane %v2663_v22, 3  ;;  %v2505_v30 = vsel %vm2218_vm13, %v2502_v39, %v16709_v61  ;;  %v16712_v24 = vrot.slane %v11289_v2, 3  ;;  %v11317_v44 = vpop.permute.xlu1 %1360 }
 0x19c   : > { %v2616_v20 = vadd.f32 %v2503_v7, %v2354_v42  ;;  %v11309_v51 = vmul.f32 %v11294_v47, %v10749_v57  ;;  %v4114_v19 = vrot.slane %v4112_v52, 2  ;;  %v4117_v35 = vrot.slane %v4115_v17, 3  ;;  %16962 = vst [vmem:[#allocation35_spill] sm:$0xff] %v11317_v44 }
 0x19d   : > { %v2617_v40 = vadd.f32 %v2505_v30, %v2355_v33  ;;  %v16961_v31 = vrot.slane %v11129_v37, 3  ;;  %vm16719_vm3 = vcmp.eq.s32.totalorder %v11311_v60, 1  ;;  %v2758_v42 = vsel %vm2735_vm5, %v2755_v63, %v16712_v24  ;;  %v11329_v37 = vld [vmem:[%s16610_s5 + $0x6] ss:$0 sm:$0xff]  ;;  %v11346_v30 = vld [vmem:[%s16610_s5 + $0x7] ss:$0 sm:$0xff] }
 0x19e   : > { %v3012_v7 = vrot.slane %v2918_v56, 4  ;;  %v16711_v61 = vrot.slane %v11309_v51, 4  ;;  %vm16717_vm9 = vcmp.eq.s32.totalorder %v11317_v44, 1  ;;  %v11324_v52 = vor.u32 %v4117_v35, %v4114_v19 }
 0x19f   : > { %v2756_v22 = vsel %vm2735_vm5, %v16961_v31, %v2755_v63  ;;  %v2870_v33 = vadd.f32 %v2758_v42, %v2617_v40  ;;  %v3181_v17 = vmul.f32 %v11329_v37, %v10784_v62  ;;  %v11335_v63 = vmul.f32 %v11329_v37, %v10786_v36 }
 0x1a0   : > { %v2869_v39 = vadd.f32 %v2756_v22, %v2616_v20  ;;  %v16963_v20 = vrot.slane %v11148_v50, 4  ;;  %v3015_v35 = vsel %vm2992_vm7, %v3012_v7, %v16711_v61  ;;  %v3439_v19 = vmul.f32 %v11346_v30, %v10784_v62 }
 0x1a1   : > { %v11352_v40 = vmul.f32 %v11346_v30, %v10786_v36  ;;  %v4119_v50 = vsel %vm4075_vm8, %v11154_v59, %v11324_v52  ;;  %v3129_v22 = vadd.f32 %v3015_v35, %v2870_v33  ;;  %v3274_v42 = vrot.slane %v3181_v17, 4  ;;  %v11374_v17 = vpop.f32.mrb[68].mxu0 }
 0x1a2   : > { %v3013_v56 = vsel %vm2992_vm7, %v16963_v20, %v3012_v7  ;;  %9539 = vmatmul.mubr.bf16.gmra.mrb[12].mxu1 %v4119_v50  ;;  %v3276_v7 = vrot.slane %v11335_v63, 4  ;;  %v3533_v20 = vrot.slane %v3439_v19, 5  ;;  %v3698_v24 = vmul.f32 %v10784_v62, %v10688_v18  ;;  %16965 = vst [vmem:[#allocation36_spill] sm:$0xff] %v11374_v17  ;;  %v9496_v19 = vpop.f32.mrb[69].mxu0 }
 0x1a3   : > { %v3128_v31 = vadd.f32 %v3013_v56, %v2869_v39  ;;  %v3535_v61 = vrot.slane %v11352_v40, 5  ;;  %9542 = vmatprep.mubr.msk.bf16.mxu1 %vm9989_vm0, %v16923_v23  ;;  %v16964_v55 = vrot.slane %v11167_v48, 4  ;;  %v11368_v59 = vmul.f32 %v10786_v36, %v10688_v18  ;;  %v11386_v17 = vpop.f32.mrb[70].mxu0 }
 0x1a4   : > { %v1133_v39 = vadd.f32 %v11210_v4, %v11038_v9  ;;  %v1136_v33 = vadd.f32 %v11210_v4, %v11051_v41  ;;  %v3277_v56 = vsel %vm2992_vm7, %v3274_v42, %v3276_v7  ;;  %v16966_v48 = vrot.slane %v11179_v49, 5 }
 0x1a5   : > { %v3275_v29 = vsel %vm2992_vm7, %v16964_v55, %v3274_v42  ;;  %v3536_v18 = vsel %vm3513_vm11, %v3533_v20, %v3535_v61  ;;  %v3391_v9 = vadd.f32 %v3277_v56, %v3129_v22  ;;  %v3792_v50 = vrot.slane %v3698_v24, 6 }
 0x1a6   : > { %v3390_v35 = vadd.f32 %v3275_v29, %v3128_v31  ;;  %v3534_v55 = vsel %vm3513_vm11, %v16966_v48, %v3533_v20  ;;  %v3794_v41 = vrot.slane %v11368_v59, 6  ;;  %v1226_v12 = vmax.f32 %v1133_v39, 0.0  ;;  %v9497_v31 = vpop.f32.mrb[71].mxu0 }
 0x1a7   : > { %v1227_v6 = vmax.f32 %v1136_v33, 0.0  ;;  %v1796_v29 = vmul.f32 %v11066_v58, %v10704_v26  ;;  %v1797_v49 = vmul.f32 %v11066_v58, %v10747_v25  ;;  %v3650_v42 = vadd.f32 %v3536_v18, %v3391_v9 }
 0x1a8   : > { %v3649_v1 = vadd.f32 %v3534_v55, %v3390_v35  ;;  %v16967_v20 = vrot.slane %v11195_v8, 6  ;;  %v3795_v24 = vsel %vm3772_vm6, %v3792_v50, %v3794_v41  ;;  %v1472_v39 = vsel %vm16719_vm3, %v1226_v12, 0.0 }
 0x1a9   : > { %v1473_v26 = vsel %vm16717_vm9, %v1227_v6, 0.0  ;;  %v1888_v56 = vmul.f32 %v11073_v11, %v10747_v25  ;;  %v11406_v35 = vmul.f32 %v11073_v11, %v10749_v57  ;;  %v3909_v8 = vadd.f32 %v3795_v24, %v3650_v42 }
 0x1aa   : > { %v3793_v22 = vsel %vm3772_vm6, %v16967_v20, %v3792_v50  ;;  %v8900_v48 = vpack.c.bf16 %v1473_v26, %v1472_v39  ;;  %v2147_v55 = vmul.f32 %v11086_v27, %v10747_v25  ;;  %v11412_v18 = vmul.f32 %v11086_v27, %v10749_v57 }
 0x1ab   : > { %v3908_v33 = vadd.f32 %v3793_v22, %v3649_v1  ;;  %v1985_v12 = vrot.slane %v1888_v56, 1  ;;  %v16722_v6 = vrot.slane %v11406_v35, 1  ;;  %v2410_v19 = vmul.f32 %v11259_v54, %v10784_v62 }
 0x1ac   : > { %v3958_v9 = vadd.f32 %v10735_v43, %v3909_v8  ;;  %v11419_v50 = vunpack.c.l.bf16 %v8900_v48  ;;  %v11421_v31 = vunpack.c.h.bf16 %v8900_v48  ;;  %v2244_v42 = vrot.slane %v2147_v55, 2 }
 0x1ad   : > { %v3957_v1 = vadd.f32 %v10735_v43, %v3908_v33  ;;  %v16968_v20 = vrot.slane %v11232_v45, 1  ;;  %v1988_v24 = vsel %vm1959_vm12, %v1985_v12, %v16722_v6  ;;  %v16716_v39 = vrot.slane %v11412_v18, 2 }
 0x1ae   : > { %v4000_v33 = vmax.f32 %v3958_v9, 0.0  ;;  %v2098_v56 = vadd.f32 %v1988_v24, %v1797_v49  ;;  %v16969_v43 = vrot.slane %v11242_v3, 2  ;;  %v11438_v45 = vmul.f32 %v11259_v54, %v10786_v36 }
 0x1af   : > { %v3999_v25 = vmax.f32 %v3957_v1, 0.0  ;;  %v1986_v22 = vsel %vm1959_vm12, %v16968_v20, %v1985_v12  ;;  %v2247_v48 = vsel %vm2218_vm13, %v2244_v42, %v16716_v39  ;;  %v2506_v55 = vrot.slane %v2410_v19, 2 }
 0x1b0   : > { %v2097_v26 = vadd.f32 %v1986_v22, %v1796_v29  ;;  %v2245_v8 = vsel %vm2218_vm13, %v16969_v43, %v2244_v42  ;;  %v2665_v1 = vmul.f32 %v11282_v32, %v10784_v62  ;;  %v2357_v29 = vadd.f32 %v2247_v48, %v2098_v56  ;;  %v11463_v48 = vpop.permute.xlu0 %1363 }
 0x1b1   : > { %v4036_v12 = vpack.c.bf16 %v4000_v33, %v3999_v25  ;;  %v11444_v3 = vmul.f32 %v11282_v32, %v10786_v36  ;;  %v16970_v49 = vrot.slane %v11275_v13, 2  ;;  %v16718_v42 = vrot.slane %v11438_v45, 2  ;;  %16972 = vst [vmem:[#allocation37_spill] sm:$0xff] %v11463_v48 }
 0x1b2   : > { %v2356_v9 = vadd.f32 %v2245_v8, %v2097_v26  ;;  %v2759_v22 = vrot.slane %v2665_v1, 3  ;;  %v2920_v19 = vmul.f32 %v11294_v47, %v10784_v62  ;;  %v16971_v26 = vrot.slane %v11289_v2, 3 }
 0x1b3   : > { %v2507_v20 = vsel %vm2218_vm13, %v16970_v49, %v2506_v55  ;;  %v4121_v24 = vshrl.u32 %v4036_v12, 16  ;;  %v4124_v43 = vshll.u32 %v4036_v12, 16  ;;  %v16721_v25 = vrot.slane %v11444_v3, 3 }
 0x1b4   : > { %v2618_v39 = vadd.f32 %v2507_v20, %v2356_v9  ;;  %v2509_v33 = vsel %vm2218_vm13, %v2506_v55, %v16718_v42  ;;  %v2760_v13 = vsel %vm2735_vm5, %v16971_v26, %v2759_v22  ;;  %v11461_v56 = vmul.f32 %v11294_v47, %v10786_v36  ;;  %v11475_v42 = vpop.permute.xlu1 %1366 }
 0x1b5   : > { %v3016_v8 = vrot.slane %v2920_v19, 4  ;;  %v4123_v1 = vrot.slane %v4121_v24, 2  ;;  %v4126_v12 = vrot.slane %v4124_v43, 3  ;;  %v2619_v9 = vadd.f32 %v2509_v33, %v2357_v29  ;;  %16974 = vst [vmem:[#allocation38_spill] sm:$0xff] %v11475_v42 }
 0x1b6   : > { %v2762_v49 = vsel %vm2735_vm5, %v2759_v22, %v16721_v25  ;;  %vm16730_vm9 = vcmp.eq.s32.totalorder %v11463_v48, 1  ;;  %v2871_v55 = vadd.f32 %v2760_v13, %v2618_v39  ;;  %v16973_v2 = vrot.slane %v11309_v51, 4 }
 0x1b7   : > { %v16720_v26 = vrot.slane %v11461_v56, 4  ;;  %v3183_v19 = vmul.f32 %v11329_v37, %v10827_v0  ;;  %v11477_v24 = vor.u32 %v4126_v12, %v4123_v1  ;;  %v2872_v29 = vadd.f32 %v2762_v49, %v2619_v9 }
 0x1b8   : > { %v3017_v20 = vsel %vm2992_vm7, %v16973_v2, %v3016_v8  ;;  %v11481_v22 = vmul.f32 %v11329_v37, %v10829_v21  ;;  %v3441_v39 = vmul.f32 %v11346_v30, %v10827_v0  ;;  %vm16729_vm3 = vcmp.eq.s32.totalorder %v11475_v42, 1 }
 0x1b9   : > { %v3019_v51 = vsel %vm2992_vm7, %v3016_v8, %v16720_v26  ;;  %v3130_v43 = vadd.f32 %v3017_v20, %v2871_v55  ;;  %v3278_v33 = vrot.slane %v3183_v19, 4  ;;  %v11491_v13 = vmul.f32 %v11346_v30, %v10829_v21  ;;  %v11504_v55 = vld [vmem:[%s16610_s5 + $0x8] ss:$0 sm:$0xff] }
 0x1ba   : > { %v4128_v1 = vsel %vm4075_vm8, %v11324_v52, %v11477_v24  ;;  %v3131_v12 = vadd.f32 %v3019_v51, %v2872_v29  ;;  %v16725_v9 = vrot.slane %v11481_v22, 4  ;;  %v3537_v49 = vrot.slane %v3441_v39, 5  ;;  %v11522_v39 = vpop.f32.mrb[72].mxu0 }
 0x1bb   : > { %9543 = vmatmul.mubr.bf16.gmra.mrb[16].mxu1 %v4128_v1  ;;  %v3279_v2 = vsel %vm2992_vm7, %v3276_v7, %v3278_v33  ;;  %v16724_v8 = vrot.slane %v11491_v13, 5  ;;  %v3700_v20 = vmul.f32 %v11504_v55, %v10827_v0  ;;  %v11510_v52 = vmul.f32 %v11504_v55, %v10829_v21  ;;  %v9500_v6 = vpop.f32.mrb[73].mxu0 }
 0x1bc   : > { %9546 = vmatprep.mubr.msk.bf16.mxu1 %vm9989_vm0, %v16923_v23  ;;  %v3281_v63 = vsel %vm2992_vm7, %v3278_v33, %v16725_v9  ;;  %v3392_v7 = vadd.f32 %v3279_v2, %v3130_v43  ;;  %v3538_v19 = vsel %vm3513_vm11, %v3535_v61, %v3537_v49  ;;  %v1141_v29 = vadd.f32 %v11210_v4, %v11104_v10  ;;  %v11532_v10 = vpop.f32.mrb[74].mxu0 }
 0x1bd   : > { %v3393_v51 = vadd.f32 %v3281_v63, %v3131_v12  ;;  %v3540_v1 = vsel %vm3513_vm11, %v3537_v49, %v16724_v8  ;;  %v3796_v26 = vrot.slane %v3700_v20, 6  ;;  %v16723_v25 = vrot.slane %v11510_v52, 6  ;;  %v9501_v20 = vpop.f32.mrb[75].mxu0 }
 0x1be   : > { %v3651_v33 = vadd.f32 %v3538_v19, %v3392_v7  ;;  %v1228_v43 = vmax.f32 %v1141_v29, 0.0  ;;  %v1144_v40 = vadd.f32 %v11210_v4, %v11122_v5  ;;  %v1798_v61 = vmul.f32 %v11066_v58, %v10749_v57  ;;  %v11559_v29 = vld [vmem:[%s16611_s6] ss:$0 sm:$0xff] }
 0x1bf   : > { %v3652_v2 = vadd.f32 %v3540_v1, %v3393_v51  ;;  %v3797_v12 = vsel %vm3772_vm6, %v3794_v41, %v3796_v26  ;;  %v3799_v49 = vsel %vm3772_vm6, %v3796_v26, %v16723_v25  ;;  %v1799_v6 = vmul.f32 %v11066_v58, %v10784_v62 }
 0x1c0   : > { %v3910_v63 = vadd.f32 %v3797_v12, %v3651_v33  ;;  %v1474_v5 = vsel %vm16730_vm9, %v1228_v43, 0.0  ;;  %v1229_v57 = vmax.f32 %v1144_v40, 0.0  ;;  %v1890_v7 = vmul.f32 %v11073_v11, %v10784_v62 }
 0x1c1   : > { %v3911_v19 = vadd.f32 %v3799_v49, %v3652_v2  ;;  %v11548_v59 = vmul.f32 %v11073_v11, %v10786_v36  ;;  %v2149_v41 = vmul.f32 %v11086_v27, %v10784_v62  ;;  %v11554_v26 = vmul.f32 %v11086_v27, %v10786_v36 }
 0x1c2   : > { %v3959_v51 = vadd.f32 %v11559_v29, %v3910_v63  ;;  %v1475_v1 = vsel %vm16729_vm3, %v1229_v57, 0.0  ;;  %v1989_v33 = vrot.slane %v1890_v7, 1  ;;  %v2412_v43 = vmul.f32 %v11259_v54, %v10827_v0 }
 0x1c3   : > { %v3960_v62 = vadd.f32 %v11559_v29, %v3911_v19  ;;  %v8905_v40 = vpack.c.bf16 %v1475_v1, %v1474_v5  ;;  %v1991_v2 = vrot.slane %v11548_v59, 1  ;;  %v2248_v12 = vrot.slane %v2149_v41, 2 }
 0x1c4   : > { %v4001_v49 = vmax.f32 %v3959_v51, 0.0  ;;  %v16975_v20 = vrot.slane %v11406_v35, 1  ;;  %v2250_v63 = vrot.slane %v11554_v26, 2  ;;  %v11574_v57 = vmul.f32 %v11259_v54, %v10829_v21 }
 0x1c5   : > { %v4002_v7 = vmax.f32 %v3960_v62, 0.0  ;;  %v11576_v8 = vunpack.c.l.bf16 %v8905_v40  ;;  %v11578_v9 = vunpack.c.h.bf16 %v8905_v40  ;;  %v1992_v5 = vsel %vm1959_vm12, %v1989_v33, %v1991_v2 }
 0x1c6   : > { %v1990_v25 = vsel %vm1959_vm12, %v16975_v20, %v1989_v33  ;;  %v2100_v41 = vadd.f32 %v1992_v5, %v1799_v6  ;;  %v16976_v35 = vrot.slane %v11412_v18, 2  ;;  %v2251_v1 = vsel %vm2218_vm13, %v2248_v12, %v2250_v63 }
 0x1c7   : > { %v2099_v19 = vadd.f32 %v1990_v25, %v1798_v61  ;;  %v4037_v20 = vpack.c.bf16 %v4002_v7, %v4001_v49  ;;  %v2510_v62 = vrot.slane %v2412_v43, 2  ;;  %v16732_v42 = vrot.slane %v11574_v57, 2 }
 0x1c8   : > { %v2249_v51 = vsel %vm2218_vm13, %v16976_v35, %v2248_v12  ;;  %v2667_v40 = vmul.f32 %v11282_v32, %v10827_v0  ;;  %v2359_v44 = vadd.f32 %v2251_v1, %v2100_v41  ;;  %v11594_v25 = vmul.f32 %v11282_v32, %v10829_v21 }
 0x1c9   : > { %v2358_v48 = vadd.f32 %v2249_v51, %v2099_v19  ;;  %v2922_v18 = vmul.f32 %v11294_v47, %v10827_v0  ;;  %v4130_v61 = vshrl.u32 %v4037_v20, 16  ;;  %v4133_v6 = vshll.u32 %v4037_v20, 16  ;;  %v11609_v20 = vpop.permute.xlu0 %1369 }
 0x1ca   : > { %v16977_v33 = vrot.slane %v11438_v45, 2  ;;  %v2513_v12 = vsel %vm2218_vm13, %v2510_v62, %v16732_v42  ;;  %v2763_v5 = vrot.slane %v2667_v40, 3  ;;  %v16731_v19 = vrot.slane %v11594_v25, 3  ;;  %16978 = vst [vmem:[#allocation39_spill] sm:$0xff] %v11609_v20  ;;  %v11611_v45 = vpop.permute.xlu1 %1372 }
 0x1cb   : > { %v2621_v7 = vadd.f32 %v2513_v12, %v2359_v44  ;;  %v4132_v41 = vrot.slane %v4130_v61, 2  ;;  %v4135_v35 = vrot.slane %v4133_v6, 3  ;;  %v11607_v51 = vmul.f32 %v11294_v47, %v10829_v21  ;;  %16979 = vst [vmem:[#allocation40_spill] sm:$0xff] %v11611_v45 }
 0x1cc   : > { %v2511_v43 = vsel %vm2218_vm13, %v16977_v33, %v2510_v62  ;;  %v3020_v1 = vrot.slane %v2922_v18, 4  ;;  %v16980_v33 = vrot.slane %v11444_v3, 3  ;;  %v2766_v44 = vsel %vm2735_vm5, %v2763_v5, %v16731_v19 }
 0x1cd   : > { %v2620_v49 = vadd.f32 %v2511_v43, %v2358_v48  ;;  %v3185_v48 = vmul.f32 %v11329_v37, %v10883_v38  ;;  %v11623_v40 = vmul.f32 %v11329_v37, %v10885_v28  ;;  %vm16740_vm3 = vcmp.eq.s32.totalorder %v11609_v20, 1 }
 0x1ce   : > { %v2764_v62 = vsel %vm2735_vm5, %v16980_v33, %v2763_v5  ;;  %vm16739_vm9 = vcmp.eq.s32.totalorder %v11611_v45, 1  ;;  %v11627_v18 = vor.u32 %v4135_v35, %v4132_v41  ;;  %v2874_v61 = vadd.f32 %v2766_v44, %v2621_v7 }
 0x1cf   : > { %v2873_v3 = vadd.f32 %v2764_v62, %v2620_v49  ;;  %v16981_v6 = vrot.slane %v11461_v56, 4  ;;  %v16734_v12 = vrot.slane %v11607_v51, 4  ;;  %v3282_v5 = vrot.slane %v3185_v48, 4 }
 0x1d0   : > { %v16733_v33 = vrot.slane %v11623_v40, 4  ;;  %v3443_v19 = vmul.f32 %v11346_v30, %v10883_v38  ;;  %v4137_v42 = vsel %vm4075_vm8, %v11477_v24, %v11627_v18  ;;  %v11641_v49 = vmul.f32 %v11346_v30, %v10885_v28 }
 0x1d1   : > { %v3021_v43 = vsel %vm2992_vm7, %v16981_v6, %v3020_v1  ;;  %v3702_v56 = vmul.f32 %v11504_v55, %v10883_v38  ;;  %9547 = vmatmul.mubr.bf16.gmra.mrb[20].mxu1 %v4137_v42  ;;  %v3023_v7 = vsel %vm2992_vm7, %v3020_v1, %v16734_v12  ;;  %v16982_v35 = vrot.slane %v11481_v22, 4  ;;  %v11661_v1 = vpop.f32.mrb[76].mxu0 }
 0x1d2   : > { %v3132_v41 = vadd.f32 %v3021_v43, %v2873_v3  ;;  %v3285_v24 = vsel %vm2992_vm7, %v3282_v5, %v16733_v33  ;;  %v3541_v44 = vrot.slane %v3443_v19, 5  ;;  %9550 = vmatprep.mubr.msk.bf16.mxu1 %vm9989_vm0, %v16923_v23  ;;  %v3133_v48 = vadd.f32 %v3023_v7, %v2874_v61 }
 0x1d3   : > { %v3283_v62 = vsel %vm2992_vm7, %v16982_v35, %v3282_v5  ;;  %v16736_v42 = vrot.slane %v11641_v49, 5  ;;  %v11659_v6 = vmul.f32 %v11504_v55, %v10885_v28  ;;  %v16983_v22 = vrot.slane %v11491_v13, 5  ;;  %v9504_v5 = vpop.f32.mrb[77].mxu0 }
 0x1d4   : > { %v3394_v3 = vadd.f32 %v3283_v62, %v3132_v41  ;;  %v3800_v35 = vrot.slane %v3702_v56, 6  ;;  %v1149_v19 = vadd.f32 %v11210_v4, %v11150_v46  ;;  %v1152_v61 = vadd.f32 %v11210_v4, %v11171_v14  ;;  %v11674_v12 = vpop.f32.mrb[78].mxu0 }
 0x1d5   : > { %v3542_v43 = vsel %vm3513_vm11, %v16983_v22, %v3541_v44  ;;  %v3395_v41 = vadd.f32 %v3285_v24, %v3133_v48  ;;  %v3544_v7 = vsel %vm3513_vm11, %v3541_v44, %v16736_v42  ;;  %v16735_v33 = vrot.slane %v11659_v6, 6  ;;  %v9505_v5 = vpop.f32.mrb[79].mxu0 }
 0x1d6   : > { %v3653_v62 = vadd.f32 %v3542_v43, %v3394_v3  ;;  %v16984_v13 = vrot.slane %v11510_v52, 6  ;;  %v1230_v22 = vmax.f32 %v1149_v19, 0.0  ;;  %v1231_v46 = vmax.f32 %v1152_v61, 0.0 }
 0x1d7   : > { %v1800_v14 = vmul.f32 %v11066_v58, %v10786_v36  ;;  %v3654_v24 = vadd.f32 %v3544_v7, %v3395_v41  ;;  %v3803_v44 = vsel %vm3772_vm6, %v3800_v35, %v16735_v33  ;;  %v1801_v3 = vmul.f32 %v11066_v58, %v10827_v0 }
 0x1d8   : > { %v3801_v56 = vsel %vm3772_vm6, %v16984_v13, %v3800_v35  ;;  %v1476_v52 = vsel %vm16740_vm3, %v1230_v22, 0.0  ;;  %v1477_v43 = vsel %vm16739_vm9, %v1231_v46, 0.0  ;;  %v1892_v19 = vmul.f32 %v11073_v11, %v10827_v0 }
 0x1d9   : > { %v3912_v48 = vadd.f32 %v3801_v56, %v3653_v62  ;;  %v11694_v36 = vmul.f32 %v11073_v11, %v10829_v21  ;;  %v3913_v61 = vadd.f32 %v3803_v44, %v3654_v24  ;;  %v8910_v41 = vpack.c.bf16 %v1477_v43, %v1476_v52 }
 0x1da   : > { %v2151_v7 = vmul.f32 %v11086_v27, %v10827_v0  ;;  %v1993_v62 = vrot.slane %v1892_v19, 1  ;;  %v11702_v56 = vmul.f32 %v11086_v27, %v10829_v21  ;;  %v2414_v22 = vmul.f32 %v11259_v54, %v10883_v38 }
 0x1db   : > { %v3961_v35 = vadd.f32 %v11559_v29, %v3912_v48  ;;  %v16738_v13 = vrot.slane %v11694_v36, 1  ;;  %v3962_v46 = vadd.f32 %v11559_v29, %v3913_v61  ;;  %v11707_v24 = vunpack.c.l.bf16 %v8910_v41 }
 0x1dc   : > { %v11709_v44 = vunpack.c.h.bf16 %v8910_v41  ;;  %v1994_v0 = vsel %vm1959_vm12, %v1991_v2, %v1993_v62  ;;  %v2252_v52 = vrot.slane %v2151_v7, 2  ;;  %v16737_v43 = vrot.slane %v11702_v56, 2 }
 0x1dd   : > { %v4003_v5 = vmax.f32 %v3961_v35, 0.0  ;;  %v1996_v48 = vsel %vm1959_vm12, %v1993_v62, %v16738_v13  ;;  %v4004_v19 = vmax.f32 %v3962_v46, 0.0  ;;  %v2101_v33 = vadd.f32 %v1994_v0, %v1800_v14  ;;  %v11751_v13 = vpop.permute.xlu0 %1375 }
 0x1de   : > { %v2102_v42 = vadd.f32 %v1996_v48, %v1801_v3  ;;  %v11720_v61 = vmul.f32 %v11259_v54, %v10885_v28  ;;  %v2253_v59 = vsel %vm2218_vm13, %v2250_v63, %v2252_v52  ;;  %v2255_v2 = vsel %vm2218_vm13, %v2252_v52, %v16737_v43  ;;  %16987 = vst [vmem:[#allocation41_spill] sm:$0xff] %v11751_v13 }
 0x1df   : > { %v2514_v35 = vrot.slane %v2414_v22, 2  ;;  %v2669_v41 = vmul.f32 %v11282_v32, %v10883_v38  ;;  %v4038_v7 = vpack.c.bf16 %v4004_v19, %v4003_v5  ;;  %v2360_v62 = vadd.f32 %v2253_v59, %v2101_v33 }
 0x1e0   : > { %v2361_v14 = vadd.f32 %v2255_v2, %v2102_v42  ;;  %v16744_v3 = vrot.slane %v11720_v61, 2  ;;  %v16985_v46 = vrot.slane %v11574_v57, 2  ;;  %v11736_v26 = vmul.f32 %v11282_v32, %v10885_v28 }
 0x1e1   : > { %v2767_v63 = vrot.slane %v2669_v41, 3  ;;  %v2924_v22 = vmul.f32 %v11294_v47, %v10883_v38  ;;  %v4139_v48 = vshrl.u32 %v4038_v7, 16  ;;  %v4142_v52 = vshll.u32 %v4038_v7, 16 }
 0x1e2   : > { %v2515_v0 = vsel %vm2218_vm13, %v16985_v46, %v2514_v35  ;;  %v2517_v33 = vsel %vm2218_vm13, %v2514_v35, %v16744_v3  ;;  %v16986_v57 = vrot.slane %v11594_v25, 3  ;;  %v16741_v59 = vrot.slane %v11736_v26, 3 }
 0x1e3   : > { %v2622_v42 = vadd.f32 %v2515_v0, %v2360_v62  ;;  %v2623_v5 = vadd.f32 %v2517_v33, %v2361_v14  ;;  %v11749_v2 = vmul.f32 %v11294_v47, %v10885_v28  ;;  %v4141_v41 = vrot.slane %v4139_v48, 2  ;;  %v11764_v0 = vpop.permute.xlu1 %1378 }
 0x1e4   : > { %v2768_v19 = vsel %vm2735_vm5, %v16986_v57, %v2767_v63  ;;  %v4144_v46 = vrot.slane %v4142_v52, 3  ;;  %v3024_v7 = vrot.slane %v2924_v22, 4  ;;  %v2770_v35 = vsel %vm2735_vm5, %v2767_v63, %v16741_v59  ;;  %16988 = vst [vmem:[#allocation42_spill] sm:$0xff] %v11764_v0 }
 0x1e5   : > { %v2875_v43 = vadd.f32 %v2768_v19, %v2622_v42  ;;  %v16743_v25 = vrot.slane %v11749_v2, 4  ;;  %v3187_v62 = vmul.f32 %v11329_v37, %v10942_v16  ;;  %v11761_v14 = vmul.f32 %v11329_v37, %v10944_v53 }
 0x1e6   : > { %vm16748_vm9 = vcmp.eq.s32.totalorder %v11751_v13, 1  ;;  %v11766_v22 = vor.u32 %v4144_v46, %v4141_v41  ;;  %v2876_v48 = vadd.f32 %v2770_v35, %v2623_v5  ;;  %v16989_v52 = vrot.slane %v11607_v51, 4 }
 0x1e7   : > { %v3445_v33 = vmul.f32 %v11346_v30, %v10942_v16  ;;  %vm16746_vm3 = vcmp.eq.s32.totalorder %v11764_v0, 1  ;;  %v3027_v42 = vsel %vm2992_vm7, %v3024_v7, %v16743_v25  ;;  %v3286_v19 = vrot.slane %v3187_v62, 4 }
 0x1e8   : > { %v3025_v63 = vsel %vm2992_vm7, %v16989_v52, %v3024_v7  ;;  %v16742_v59 = vrot.slane %v11761_v14, 4  ;;  %v4146_v5 = vsel %vm4075_vm8, %v11627_v18, %v11766_v22  ;;  %v3135_v51 = vadd.f32 %v3027_v42, %v2876_v48  ;;  %v11803_v42 = vpop.f32.mrb[80].mxu0 }
 0x1e9   : > { %v3134_v57 = vadd.f32 %v3025_v63, %v2875_v43  ;;  %v11783_v41 = vmul.f32 %v11346_v30, %v10944_v53  ;;  %v3545_v46 = vrot.slane %v3445_v33, 5  ;;  %9551 = vmatmul.mubr.bf16.gmra.mrb[24].mxu1 %v4146_v5  ;;  %v16990_v35 = vrot.slane %v11623_v40, 4  ;;  %v9508_v25 = vpop.f32.mrb[81].mxu0 }
 0x1ea   : > { %v3289_v43 = vsel %vm2992_vm7, %v3286_v19, %v16742_v59  ;;  %v3704_v7 = vmul.f32 %v11504_v55, %v10942_v16  ;;  %v11795_v18 = vmul.f32 %v11504_v55, %v10944_v53  ;;  %9554 = vmatprep.mubr.msk.bf16.mxu1 %vm9989_vm0, %v16923_v23  ;;  %v16991_v40 = vrot.slane %v11641_v49, 5 }
 0x1eb   : > { %v3287_v52 = vsel %vm2992_vm7, %v16990_v35, %v3286_v19  ;;  %v3397_v48 = vadd.f32 %v3289_v43, %v3135_v51  ;;  %v3547_v33 = vrot.slane %v11783_v41, 5  ;;  %v1157_v35 = vadd.f32 %v11210_v4, %v11221_v15  ;;  %v1199_v43 = vpop.f32.mrb[82].mxu0 }
 0x1ec   : > { %v3396_v62 = vadd.f32 %v3287_v52, %v3134_v57  ;;  %v3546_v63 = vsel %vm3513_vm11, %v16991_v40, %v3545_v46  ;;  %v3804_v19 = vrot.slane %v3704_v7, 6  ;;  %v16752_v5 = vrot.slane %v11795_v18, 6  ;;  %v9509_v3 = vpop.f32.mrb[83].mxu0 }
 0x1ed   : > { %v1160_v59 = vadd.f32 %v11210_v4, %v11234_v34  ;;  %v3548_v49 = vsel %vm3513_vm11, %v3545_v46, %v3547_v33  ;;  %v1802_v51 = vmul.f32 %v11066_v58, %v10829_v21  ;;  %v1803_v52 = vmul.f32 %v11066_v58, %v10883_v38 }
 0x1ee   : > { %v3655_v57 = vadd.f32 %v3546_v63, %v3396_v62  ;;  %v3656_v7 = vadd.f32 %v3548_v49, %v3397_v48  ;;  %v16992_v40 = vrot.slane %v11659_v6, 6  ;;  %v3807_v34 = vsel %vm3772_vm6, %v3804_v19, %v16752_v5 }
 0x1ef   : > { %v1232_v25 = vmax.f32 %v1157_v35, 0.0  ;;  %v1233_v62 = vmax.f32 %v1160_v59, 0.0  ;;  %v1894_v21 = vmul.f32 %v11073_v11, %v10883_v38  ;;  %v11827_v58 = vmul.f32 %v11073_v11, %v10885_v28 }
 0x1f0   : > { %v3805_v15 = vsel %vm3772_vm6, %v16992_v40, %v3804_v19  ;;  %v3915_v48 = vadd.f32 %v3807_v34, %v3656_v7  ;;  %v2153_v63 = vmul.f32 %v11086_v27, %v10883_v38  ;;  %v11835_v19 = vmul.f32 %v11086_v27, %v10885_v28 }
 0x1f1   : > { %v3914_v46 = vadd.f32 %v3805_v15, %v3655_v57  ;;  %v1478_v6 = vsel %vm16748_vm9, %v1232_v25, 0.0  ;;  %v1479_v59 = vsel %vm16746_vm3, %v1233_v62, 0.0  ;;  %v1997_v35 = vrot.slane %v1894_v21, 1 }
 0x1f2   : > { %v16749_v11 = vrot.slane %v11827_v58, 1  ;;  %v3964_v49 = vadd.f32 %v11559_v29, %v3915_v48  ;;  %v8915_v57 = vpack.c.bf16 %v1479_v59, %v1478_v6  ;;  %v2256_v43 = vrot.slane %v2153_v63, 2 }
 0x1f3   : > { %v3963_v3 = vadd.f32 %v11559_v29, %v3914_v46  ;;  %v16745_v7 = vrot.slane %v11835_v19, 2  ;;  %v16993_v38 = vrot.slane %v11694_v36, 1  ;;  %v2416_v34 = vmul.f32 %v11259_v54, %v10942_v16 }
 0x1f4   : > { %v2000_v15 = vsel %vm1959_vm12, %v1997_v35, %v16749_v11  ;;  %v4006_v25 = vmax.f32 %v3964_v49, 0.0  ;;  %v11851_v46 = vunpack.c.l.bf16 %v8915_v57  ;;  %v11853_v62 = vunpack.c.h.bf16 %v8915_v57 }
 0x1f5   : > { %v4005_v40 = vmax.f32 %v3963_v3, 0.0  ;;  %v1998_v27 = vsel %vm1959_vm12, %v16993_v38, %v1997_v35  ;;  %v2104_v48 = vadd.f32 %v2000_v15, %v1803_v52  ;;  %v16994_v6 = vrot.slane %v11702_v56, 2 }
 0x1f6   : > { %v2103_v21 = vadd.f32 %v1998_v27, %v1802_v51  ;;  %v2259_v63 = vsel %vm2218_vm13, %v2256_v43, %v16745_v7  ;;  %v11863_v3 = vmul.f32 %v11259_v54, %v10944_v53  ;;  %v2518_v49 = vrot.slane %v2416_v34, 2 }
 0x1f7   : > { %v2257_v36 = vsel %vm2218_vm13, %v16994_v6, %v2256_v43  ;;  %v4039_v59 = vpack.c.bf16 %v4006_v25, %v4005_v40  ;;  %v2671_v57 = vmul.f32 %v11282_v32, %v10942_v16  ;;  %v2363_v51 = vadd.f32 %v2259_v63, %v2104_v48 }
 0x1f8   : > { %v2362_v35 = vadd.f32 %v2257_v36, %v2103_v21  ;;  %v16747_v52 = vrot.slane %v11863_v3, 2  ;;  %v11870_v56 = vmul.f32 %v11282_v32, %v10944_v53  ;;  %v2926_v43 = vmul.f32 %v11294_v47, %v10942_v16  ;;  %v11885_v36 = vpop.permute.xlu0 %1381 }
 0x1f9   : > { %v4148_v38 = vshrl.u32 %v4039_v59, 16  ;;  %v4151_v27 = vshll.u32 %v4039_v59, 16  ;;  %v16995_v15 = vrot.slane %v11720_v61, 2  ;;  %v2771_v34 = vrot.slane %v2671_v57, 3  ;;  %16996 = vst [vmem:[#allocation43_spill] sm:$0xff] %v11885_v36 }
 0x1fa   : > { %v2521_v25 = vsel %vm2218_vm13, %v2518_v49, %v16747_v52  ;;  %v16751_v48 = vrot.slane %v11870_v56, 3  ;;  %v11883_v6 = vmul.f32 %v11294_v47, %v10944_v53  ;;  %v16997_v61 = vrot.slane %v11736_v26, 3  ;;  %v16999_v26 = vld [vmem:[#allocation27_spill] sm:$0xff] }
 0x1fb   : > { %v2519_v40 = vsel %vm2218_vm13, %v16995_v15, %v2518_v49  ;;  %v4150_v63 = vrot.slane %v4148_v38, 2  ;;  %v4153_v59 = vrot.slane %v4151_v27, 3  ;;  %v2625_v7 = vadd.f32 %v2521_v25, %v2363_v51  ;;  %v11891_v15 = vpop.permute.xlu1 %1384  ;;  %v17000_v25 = vld [vmem:[#allocation28_spill] sm:$0xff] }
 0x1fc   : > { %v2624_v21 = vadd.f32 %v2519_v40, %v2362_v35  ;;  %v2772_v57 = vsel %vm2735_vm5, %v16997_v61, %v2771_v34  ;;  %vm16761_vm3 = vcmp.eq.s32.totalorder %v11885_v36, 1  ;;  %16998 = vst [vmem:[#allocation44_spill] sm:$0xff] %v11891_v15  ;;  %v2774_v35 = vsel %vm2735_vm5, %v2771_v34, %v16751_v48 }
 0x1fd   : > { %v3028_v40 = vrot.slane %v2926_v43, 4  ;;  %v16750_v52 = vrot.slane %v11883_v6, 4  ;;  %vm16760_vm9 = vcmp.eq.s32.totalorder %v11891_v15, 1  ;;  %v11898_v38 = vor.u32 %v4153_v59, %v4150_v63 }
 0x1fe   : > { %v2877_v49 = vadd.f32 %v2772_v57, %v2624_v21  ;;  %v2878_v51 = vadd.f32 %v2774_v35, %v2625_v7  ;;  %v3189_v27 = vmul.f32 %v11329_v37, %v16999_v26  ;;  %v11904_v61 = vmul.f32 %v11329_v37, %v17000_v25 }
 0x1ff   : > { %v17001_v11 = vrot.slane %v11749_v2, 4  ;;  %v3031_v43 = vsel %vm2992_vm7, %v3028_v40, %v16750_v52  ;;  %v3447_v21 = vmul.f32 %v11346_v30, %v16999_v26  ;;  %v11916_v7 = vmul.f32 %v11346_v30, %v17000_v25 }
 0x200   : > { %v4155_v63 = vsel %vm4075_vm8, %v11766_v22, %v11898_v38  ;;  %v3137_v57 = vadd.f32 %v3031_v43, %v2878_v51  ;;  %v3290_v2 = vrot.slane %v3189_v27, 4  ;;  %v3706_v52 = vmul.f32 %v11504_v55, %v16999_v26  ;;  %v17004_v27 = vld [vmem:[#allocation34_spill] sm:$0xff] }
 0x201   : > { %v3029_v34 = vsel %vm2992_vm7, %v17001_v11, %v3028_v40  ;;  %9555 = vmatmul.mubr.bf16.gmra.mrb[28].mxu1 %v4155_v63  ;;  %v16758_v11 = vrot.slane %v11904_v61, 4  ;;  %v3549_v35 = vrot.slane %v3447_v21, 5  ;;  %v16757_v40 = vrot.slane %v11916_v7, 5 }
 0x202   : > { %v3136_v59 = vadd.f32 %v3029_v34, %v2877_v49  ;;  %9558 = vmatprep.mubr.msk.bf16.mxu1 %vm9989_vm0, %v16923_v23  ;;  %v17002_v48 = vrot.slane %v11761_v14, 4  ;;  %v11932_v22 = vmul.f32 %v11504_v55, %v17000_v25  ;;  %v17003_v49 = vld [vmem:[#allocation33_spill] sm:$0xff]  ;;  %v1168_v34 = vadd.f32 %v11210_v4, %v17004_v27 }
 0x203   : > { %v1165_v51 = vadd.f32 %v11210_v4, %v17003_v49  ;;  %v3293_v43 = vsel %vm2992_vm7, %v3290_v2, %v16758_v11  ;;  %v3550_v14 = vsel %vm3513_vm11, %v3547_v33, %v3549_v35  ;;  %v3808_v0 = vrot.slane %v3706_v52, 6 }
 0x204   : > { %v3291_v5 = vsel %vm2992_vm7, %v17002_v48, %v3290_v2  ;;  %v3552_v48 = vsel %vm3513_vm11, %v3549_v35, %v16757_v40  ;;  %v3399_v63 = vadd.f32 %v3293_v43, %v3137_v57  ;;  %v16756_v49 = vrot.slane %v11932_v22, 6  ;;  %v11951_v2 = vld [vmem:[%s16610_s5] ss:$0 sm:$0xff] }
 0x205   : > { %v3398_v21 = vadd.f32 %v3291_v5, %v3136_v59  ;;  %v1234_v13 = vmax.f32 %v1165_v51, 0.0  ;;  %v1235_v4 = vmax.f32 %v1168_v34, 0.0  ;;  %v1804_v41 = vmul.f32 %v11951_v2, %v10885_v28  ;;  %v11970_v28 = vld [vmem:[%s16610_s5 + $0x1] ss:$0 sm:$0xff] }
 0x206   : > { %v1805_v33 = vmul.f32 %v11951_v2, %v10942_v16  ;;  %v3658_v5 = vadd.f32 %v3552_v48, %v3399_v63  ;;  %v17005_v59 = vrot.slane %v11795_v18, 6  ;;  %v3811_v57 = vsel %vm3772_vm6, %v3808_v0, %v16756_v49 }
 0x207   : > { %v3657_v45 = vadd.f32 %v3550_v14, %v3398_v21  ;;  %v1480_v35 = vsel %vm16761_vm3, %v1234_v13, 0.0  ;;  %v1481_v27 = vsel %vm16760_vm9, %v1235_v4, 0.0  ;;  %v1896_v18 = vmul.f32 %v11970_v28, %v10942_v16 }
 0x208   : > { %v3809_v52 = vsel %vm3772_vm6, %v17005_v59, %v3808_v0  ;;  %v11976_v34 = vmul.f32 %v11970_v28, %v10944_v53  ;;  %v3917_v0 = vadd.f32 %v3811_v57, %v3658_v5  ;;  %v8920_v43 = vpack.c.bf16 %v1481_v27, %v1480_v35 }
 0x209   : > { %v3916_v51 = vadd.f32 %v3809_v52, %v3657_v45  ;;  %v11981_v45 = vld [vmem:[%s16610_s5 + $0x2] ss:$0 sm:$0xff]  ;;  %v2001_v48 = vrot.slane %v1896_v18, 1  ;;  %v2418_v4 = vmul.f32 %v11259_v54, %v16999_v26  ;;  %v17006_v35 = vrot.slane %v11827_v58, 1 }
 0x20a   : > { %v2155_v13 = vmul.f32 %v11981_v45, %v10942_v16  ;;  %v11987_v21 = vmul.f32 %v11981_v45, %v10944_v53  ;;  %v2003_v63 = vrot.slane %v11976_v34, 1  ;;  %v3966_v5 = vadd.f32 %v11559_v29, %v3917_v0 }
 0x20b   : > { %v3965_v14 = vadd.f32 %v11559_v29, %v3916_v51  ;;  %v11994_v59 = vunpack.c.l.bf16 %v8920_v43  ;;  %v11996_v52 = vunpack.c.h.bf16 %v8920_v43  ;;  %v2002_v27 = vsel %vm1959_vm12, %v17006_v35, %v2001_v48 }
 0x20c   : > { %v2260_v57 = vrot.slane %v2155_v13, 2  ;;  %v2004_v51 = vsel %vm1959_vm12, %v2001_v48, %v2003_v63  ;;  %v16759_v18 = vrot.slane %v11987_v21, 2  ;;  %v4008_v49 = vmax.f32 %v3966_v5, 0.0 }
 0x20d   : > { %v4007_v16 = vmax.f32 %v3965_v14, 0.0  ;;  %v2105_v40 = vadd.f32 %v2002_v27, %v1804_v41  ;;  %v2106_v11 = vadd.f32 %v2004_v51, %v1805_v33  ;;  %v17007_v0 = vrot.slane %v11835_v19, 2 }
 0x20e   : > { %v2263_v13 = vsel %vm2218_vm13, %v2260_v57, %v16759_v18  ;;  %v12013_v58 = vmul.f32 %v11259_v54, %v17000_v25  ;;  %v2522_v14 = vrot.slane %v2418_v4, 2  ;;  %v2673_v48 = vmul.f32 %v11282_v32, %v16999_v26 }
 0x20f   : > { %v2261_v43 = vsel %vm2218_vm13, %v17007_v0, %v2260_v57  ;;  %v4040_v35 = vpack.c.bf16 %v4008_v49, %v4007_v16  ;;  %v2365_v41 = vadd.f32 %v2263_v13, %v2106_v11  ;;  %v12019_v19 = vmul.f32 %v11282_v32, %v17000_v25 }
 0x210   : > { %v2364_v5 = vadd.f32 %v2261_v43, %v2105_v40  ;;  %v17008_v33 = vrot.slane %v11863_v3, 2  ;;  %v16765_v57 = vrot.slane %v12013_v58, 2  ;;  %v2775_v51 = vrot.slane %v2673_v48, 3  ;;  %v12038_v43 = vpop.permute.xlu0 %1387 }
 0x211   : > { %v2928_v54 = vmul.f32 %v11294_v47, %v16999_v26  ;;  %v4157_v4 = vshrl.u32 %v4040_v35, 16  ;;  %v4160_v0 = vshll.u32 %v4040_v35, 16  ;;  %v16762_v40 = vrot.slane %v12019_v19, 3  ;;  %17010 = vst [vmem:[#allocation27_spill] sm:$0xff] %v12038_v43 }
 0x212   : > { %v2523_v27 = vsel %vm2218_vm13, %v17008_v33, %v2522_v14  ;;  %v2525_v32 = vsel %vm2218_vm13, %v2522_v14, %v16765_v57  ;;  %v17009_v11 = vrot.slane %v11870_v56, 3  ;;  %v12036_v49 = vmul.f32 %v11294_v47, %v17000_v25 }
 0x213   : > { %v2626_v18 = vadd.f32 %v2523_v27, %v2364_v5  ;;  %v3032_v16 = vrot.slane %v2928_v54, 4  ;;  %v4159_v13 = vrot.slane %v4157_v4, 2  ;;  %v4162_v48 = vrot.slane %v4160_v0, 3  ;;  %v17012_v27 = vld [vmem:[#allocation31_spill] sm:$0xff]  ;;  %v17014_v0 = vld [vmem:[#allocation32_spill] sm:$0xff] }
 0x214   : > { %v2776_v3 = vsel %vm2735_vm5, %v17009_v11, %v2775_v51  ;;  %v2627_v35 = vadd.f32 %v2525_v32, %v2365_v41  ;;  %v2778_v5 = vsel %vm2735_vm5, %v2775_v51, %v16762_v40  ;;  %vm16774_vm9 = vcmp.eq.s32.totalorder %v12038_v43, 1  ;;  %v12050_v11 = vpop.permute.xlu1 %1390  ;;  %v12190_v15 = vpop.permute.xlu0 %1393 }
 0x215   : > { %v2879_v14 = vadd.f32 %v2776_v3, %v2626_v18  ;;  %v17011_v56 = vrot.slane %v11883_v6, 4  ;;  %v16763_v47 = vrot.slane %v12036_v49, 4  ;;  %v3191_v54 = vmul.f32 %v11329_v37, %v17012_v27  ;;  %17013 = vst [vmem:[#allocation28_spill] sm:$0xff] %v12050_v11  ;;  %17021 = vst [vmem:[#allocation33_spill] sm:$0xff] %v12190_v15 }
 0x216   : > { %v12052_v4 = vor.u32 %v4162_v48, %v4159_v13  ;;  %v2880_v41 = vadd.f32 %v2778_v5, %v2627_v35  ;;  %v12056_v51 = vmul.f32 %v11329_v37, %v17014_v0  ;;  %v3449_v18 = vmul.f32 %v11346_v30, %v17012_v27 }
 0x217   : > { %v3033_v33 = vsel %vm2992_vm7, %v17011_v56, %v3032_v16  ;;  %vm16773_vm3 = vcmp.eq.s32.totalorder %v12050_v11, 1  ;;  %v3035_v6 = vsel %vm2992_vm7, %v3032_v16, %v16763_v47  ;;  %v3294_v3 = vrot.slane %v3191_v54, 4 }
 0x218   : > { %v3138_v32 = vadd.f32 %v3033_v33, %v2879_v14  ;;  %v12066_v13 = vmul.f32 %v11346_v30, %v17014_v0  ;;  %v4164_v37 = vsel %vm4075_vm8, %v11898_v38, %v12052_v4  ;;  %v3139_v48 = vadd.f32 %v3035_v6, %v2880_v41  ;;  %v12093_v41 = vld [vmem:[%s16903_s3] ss:$0 sm:$0xff] }
 0x219   : > { %v16764_v35 = vrot.slane %v12056_v51, 4  ;;  %v3553_v5 = vrot.slane %v3449_v18, 5  ;;  %9559 = vmatmul.mubr.bf16.gmra.mrb[32].mxu1 %v4164_v37  ;;  %v17015_v56 = vrot.slane %v11904_v61, 4  ;;  %v3708_v14 = vmul.f32 %v11504_v55, %v17012_v27  ;;  %v17017_v18 = vld [vmem:[#allocation36_spill] sm:$0xff] }
 0x21a   : > { %v16767_v16 = vrot.slane %v12066_v13, 5  ;;  %v12080_v30 = vmul.f32 %v11504_v55, %v17014_v0  ;;  %9562 = vmatprep.mubr.msk.bf16.mxu1 %vm9989_vm0, %v16923_v23  ;;  %v17016_v61 = vrot.slane %v11916_v7, 5  ;;  %v1173_v6 = vadd.f32 %v12093_v41, %v17017_v18 }
 0x21b   : > { %v3295_v40 = vsel %vm2992_vm7, %v17015_v56, %v3294_v3  ;;  %v3297_v38 = vsel %vm2992_vm7, %v3294_v3, %v16764_v35  ;;  %v3812_v47 = vrot.slane %v3708_v14, 6  ;;  %v1176_v3 = vadd.f32 %v12093_v41, %v11386_v17 }
 0x21c   : > { %v3400_v33 = vadd.f32 %v3295_v40, %v3138_v32  ;;  %v3554_v54 = vsel %vm3513_vm11, %v17016_v61, %v3553_v5  ;;  %v3401_v37 = vadd.f32 %v3297_v38, %v3139_v48  ;;  %v3556_v56 = vsel %vm3513_vm11, %v3553_v5, %v16767_v16 }
 0x21d   : > { %v16766_v40 = vrot.slane %v12080_v30, 6  ;;  %v1236_v7 = vmax.f32 %v1173_v6, 0.0  ;;  %v1806_v61 = vmul.f32 %v11951_v2, %v10944_v53  ;;  %v17018_v57 = vrot.slane %v11932_v22, 6 }
 0x21e   : > { %v3659_v32 = vadd.f32 %v3554_v54, %v3400_v33  ;;  %v3660_v35 = vadd.f32 %v3556_v56, %v3401_v37  ;;  %v1807_v14 = vmul.f32 %v11951_v2, %v16999_v26  ;;  %v1237_v17 = vmax.f32 %v1176_v3, 0.0 }
 0x21f   : > { %v3813_v48 = vsel %vm3772_vm6, %v17018_v57, %v3812_v47  ;;  %v3815_v5 = vsel %vm3772_vm6, %v3812_v47, %v16766_v40  ;;  %v1482_v33 = vsel %vm16774_vm9, %v1236_v7, 0.0  ;;  %v1898_v53 = vmul.f32 %v11970_v28, %v16999_v26 }
 0x220   : > { %v3918_v38 = vadd.f32 %v3813_v48, %v3659_v32  ;;  %v3919_v54 = vadd.f32 %v3815_v5, %v3660_v35  ;;  %v12119_v22 = vmul.f32 %v11970_v28, %v17000_v25  ;;  %v2157_v57 = vmul.f32 %v11981_v45, %v16999_v26  ;;  %v12133_v35 = vld [vmem:[%s16610_s5 + $0x3] ss:$0 sm:$0xff] }
 0x221   : > { %v12125_v47 = vmul.f32 %v11981_v45, %v17000_v25  ;;  %v1483_v6 = vsel %vm16773_vm3, %v1237_v17, 0.0  ;;  %v2005_v37 = vrot.slane %v1898_v53, 1  ;;  %v2420_v56 = vmul.f32 %v12133_v35, %v17012_v27 }
 0x222   : > { %v3967_v18 = vadd.f32 %v11559_v29, %v3918_v38  ;;  %v3968_v26 = vadd.f32 %v11559_v29, %v3919_v54  ;;  %v8925_v32 = vpack.c.bf16 %v1483_v6, %v1482_v33  ;;  %v16770_v7 = vrot.slane %v12119_v22, 1 }
 0x223   : > { %v2264_v3 = vrot.slane %v2157_v57, 2  ;;  %v2006_v5 = vsel %vm1959_vm12, %v2003_v63, %v2005_v37  ;;  %v16769_v38 = vrot.slane %v12125_v47, 2  ;;  %v12145_v17 = vmul.f32 %v12133_v35, %v17014_v0 }
 0x224   : > { %v4009_v48 = vmax.f32 %v3967_v18, 0.0  ;;  %v4010_v53 = vmax.f32 %v3968_v26, 0.0  ;;  %v12147_v40 = vunpack.c.l.bf16 %v8925_v32  ;;  %v12149_v16 = vunpack.c.h.bf16 %v8925_v32  ;;  %v12164_v32 = vld [vmem:[%s16610_s5 + $0x4] ss:$0 sm:$0xff] }
 0x225   : > { %v2008_v33 = vsel %vm1959_vm12, %v2005_v37, %v16770_v7  ;;  %v2107_v54 = vadd.f32 %v2006_v5, %v1806_v61  ;;  %v17019_v34 = vrot.slane %v11987_v21, 2  ;;  %v2267_v18 = vsel %vm2218_vm13, %v2264_v3, %v16769_v38 }
 0x226   : > { %v2108_v57 = vadd.f32 %v2008_v33, %v1807_v14  ;;  %v4041_v6 = vpack.c.bf16 %v4010_v53, %v4009_v48  ;;  %v2526_v26 = vrot.slane %v2420_v56, 2  ;;  %v16776_v11 = vrot.slane %v12145_v17, 2  ;;  %v12175_v56 = vld [vmem:[%s16610_s5 + $0x5] ss:$0 sm:$0xff] }
 0x227   : > { %v2265_v63 = vsel %vm2218_vm13, %v17019_v34, %v2264_v3  ;;  %v2675_v61 = vmul.f32 %v12164_v32, %v17012_v27  ;;  %v12170_v37 = vmul.f32 %v12164_v32, %v17014_v0  ;;  %v2930_v3 = vmul.f32 %v12175_v56, %v17012_v27 }
 0x228   : > { %v2366_v14 = vadd.f32 %v2265_v63, %v2107_v54  ;;  %v2367_v21 = vadd.f32 %v2267_v18, %v2108_v57  ;;  %v4166_v48 = vshrl.u32 %v4041_v6, 16  ;;  %v4169_v5 = vshll.u32 %v4041_v6, 16 }
 0x229   : > { %v17020_v53 = vrot.slane %v12013_v58, 2  ;;  %v2529_v54 = vsel %vm2218_vm13, %v2526_v26, %v16776_v11  ;;  %v2779_v63 = vrot.slane %v2675_v61, 3  ;;  %v16775_v18 = vrot.slane %v12170_v37, 3  ;;  %v12192_v58 = vpop.permute.xlu1 %1396  ;;  %v12223_v11 = vld [vmem:[%s16610_s5 + $0x7] ss:$0 sm:$0xff] }
 0x22a   : > { %v2629_v34 = vadd.f32 %v2529_v54, %v2367_v21  ;;  %v4168_v38 = vrot.slane %v4166_v48, 2  ;;  %v4171_v7 = vrot.slane %v4169_v5, 3  ;;  %v12188_v43 = vmul.f32 %v12175_v56, %v17014_v0  ;;  %17022 = vst [vmem:[#allocation34_spill] sm:$0xff] %v12192_v58 }
 0x22b   : > { %v2527_v33 = vsel %vm2218_vm13, %v17020_v53, %v2526_v26  ;;  %v3036_v6 = vrot.slane %v2930_v3, 4  ;;  %v17023_v53 = vrot.slane %v12019_v19, 3  ;;  %v2782_v61 = vsel %vm2735_vm5, %v2779_v63, %v16775_v18 }
 0x22c   : > { %v2628_v57 = vadd.f32 %v2527_v33, %v2366_v14  ;;  %v12203_v14 = vld [vmem:[%s16610_s5 + $0x6] ss:$0 sm:$0xff]  ;;  %vm16785_vm3 = vcmp.eq.s32.totalorder %v12190_v15, 1  ;;  %vm16784_vm9 = vcmp.eq.s32.totalorder %v12192_v58, 1  ;;  %v12213_v19 = vor.u32 %v4171_v7, %v4168_v38 }
 0x22d   : > { %v2780_v26 = vsel %vm2735_vm5, %v17023_v53, %v2779_v63  ;;  %v3193_v21 = vmul.f32 %v12203_v14, %v11419_v50  ;;  %v12209_v3 = vmul.f32 %v12203_v14, %v11421_v31  ;;  %v2882_v5 = vadd.f32 %v2782_v61, %v2629_v34 }
 0x22e   : > { %v2881_v48 = vadd.f32 %v2780_v26, %v2628_v57  ;;  %v17024_v33 = vrot.slane %v12036_v49, 4  ;;  %v16783_v63 = vrot.slane %v12188_v43, 4  ;;  %v3451_v7 = vmul.f32 %v12223_v11, %v11419_v50 }
 0x22f   : > { %v3298_v53 = vrot.slane %v3193_v21, 4  ;;  %v16778_v18 = vrot.slane %v12209_v3, 4  ;;  %v4173_v38 = vsel %vm4075_vm8, %v12052_v4, %v12213_v19  ;;  %v12232_v57 = vmul.f32 %v12223_v11, %v11421_v31 }
 0x230   : > { %v3037_v54 = vsel %vm2992_vm7, %v17024_v33, %v3036_v6  ;;  %v3710_v34 = vmul.f32 %v11504_v55, %v11419_v50  ;;  %9563 = vmatmul.mubr.bf16.gmra.mrb[36].mxu1 %v4173_v38  ;;  %v3039_v26 = vsel %vm2992_vm7, %v3036_v6, %v16783_v63  ;;  %v17025_v61 = vrot.slane %v12056_v51, 4  ;;  %v12340_v63 = vpop.permute.xlu0 %1399 }
 0x231   : > { %v3140_v49 = vadd.f32 %v3037_v54, %v2881_v48  ;;  %v3301_v4 = vsel %vm2992_vm7, %v3298_v53, %v16778_v18  ;;  %v3557_v48 = vrot.slane %v3451_v7, 5  ;;  %9566 = vmatprep.mubr.msk.bf16.mxu1 %vm9989_vm0, %v16923_v23  ;;  %v3141_v33 = vadd.f32 %v3039_v26, %v2882_v5  ;;  %17033 = vst [vmem:[#allocation32_spill] sm:$0xff] %v12340_v63 }
 0x232   : > { %v3299_v21 = vsel %vm2992_vm7, %v17025_v61, %v3298_v53  ;;  %v16780_v38 = vrot.slane %v12232_v57, 5  ;;  %v12250_v36 = vmul.f32 %v11504_v55, %v11421_v31  ;;  %v17026_v51 = vrot.slane %v12066_v13, 5 }
 0x233   : > { %v3402_v54 = vadd.f32 %v3299_v21, %v3140_v49  ;;  %v3816_v61 = vrot.slane %v3710_v34, 6  ;;  %v1181_v53 = vadd.f32 %v12093_v41, %v11522_v39  ;;  %v1184_v7 = vadd.f32 %v12093_v41, %v11532_v10 }
 0x234   : > { %v3558_v6 = vsel %vm3513_vm11, %v17026_v51, %v3557_v48  ;;  %v3403_v18 = vadd.f32 %v3301_v4, %v3141_v33  ;;  %v3560_v5 = vsel %vm3513_vm11, %v3557_v48, %v16780_v38  ;;  %v16779_v55 = vrot.slane %v12250_v36, 6 }
 0x235   : > { %v3661_v49 = vadd.f32 %v3558_v6, %v3402_v54  ;;  %v17027_v26 = vrot.slane %v12080_v30, 6  ;;  %v1238_v21 = vmax.f32 %v1181_v53, 0.0  ;;  %v1239_v34 = vmax.f32 %v1184_v7, 0.0 }
 0x236   : > { %v1808_v39 = vmul.f32 %v11951_v2, %v17000_v25  ;;  %v3662_v51 = vadd.f32 %v3560_v5, %v3403_v18  ;;  %v3819_v10 = vsel %vm3772_vm6, %v3816_v61, %v16779_v55  ;;  %v1809_v48 = vmul.f32 %v11951_v2, %v17012_v27 }
 0x237   : > { %v3817_v13 = vsel %vm3772_vm6, %v17027_v26, %v3816_v61  ;;  %v1484_v33 = vsel %vm16785_vm3, %v1238_v21, 0.0  ;;  %v1485_v30 = vsel %vm16784_vm9, %v1239_v34, 0.0  ;;  %v1900_v54 = vmul.f32 %v11970_v28, %v17012_v27 }
 0x238   : > { %v3920_v4 = vadd.f32 %v3817_v13, %v3661_v49  ;;  %v12281_v25 = vmul.f32 %v11970_v28, %v17014_v0  ;;  %v3921_v18 = vadd.f32 %v3819_v10, %v3662_v51  ;;  %v8930_v61 = vpack.c.bf16 %v1485_v30, %v1484_v33 }
 0x239   : > { %v2159_v53 = vmul.f32 %v11981_v45, %v17012_v27  ;;  %v2009_v7 = vrot.slane %v1900_v54, 1  ;;  %v12289_v49 = vmul.f32 %v11981_v45, %v17014_v0  ;;  %v2422_v26 = vmul.f32 %v12133_v35, %v11419_v50 }
 0x23a   : > { %v3969_v6 = vadd.f32 %v11559_v29, %v3920_v4  ;;  %v16782_v5 = vrot.slane %v12281_v25, 1  ;;  %v3970_v13 = vadd.f32 %v11559_v29, %v3921_v18  ;;  %v12294_v34 = vunpack.c.l.bf16 %v8930_v61 }
 0x23b   : > { %v12296_v51 = vunpack.c.h.bf16 %v8930_v61  ;;  %v17028_v10 = vrot.slane %v12119_v22, 1  ;;  %v2268_v33 = vrot.slane %v2159_v53, 2  ;;  %v16781_v30 = vrot.slane %v12289_v49, 2 }
 0x23c   : > { %v4011_v21 = vmax.f32 %v3969_v6, 0.0  ;;  %v2012_v4 = vsel %vm1959_vm12, %v2009_v7, %v16782_v5  ;;  %v4012_v54 = vmax.f32 %v3970_v13, 0.0  ;;  %v12307_v29 = vmul.f32 %v12133_v35, %v11421_v31 }
 0x23d   : > { %v2010_v27 = vsel %vm1959_vm12, %v17028_v10, %v2009_v7  ;;  %v2110_v38 = vadd.f32 %v2012_v4, %v1809_v48  ;;  %v17029_v18 = vrot.slane %v12125_v47, 2  ;;  %v2271_v6 = vsel %vm2218_vm13, %v2268_v33, %v16781_v30 }
 0x23e   : > { %v2109_v55 = vadd.f32 %v2010_v27, %v1808_v39  ;;  %v2530_v61 = vrot.slane %v2422_v26, 2  ;;  %v2677_v53 = vmul.f32 %v12164_v32, %v11419_v50  ;;  %v4042_v7 = vpack.c.bf16 %v4012_v54, %v4011_v21 }
 0x23f   : > { %v2269_v22 = vsel %vm2218_vm13, %v17029_v18, %v2268_v33  ;;  %v2369_v39 = vadd.f32 %v2271_v6, %v2110_v38  ;;  %v2532_v48 = vrot.slane %v12307_v29, 2  ;;  %v17030_v10 = vrot.slane %v12145_v17, 2 }
 0x240   : > { %v2368_v13 = vadd.f32 %v2269_v22, %v2109_v55  ;;  %v12323_v47 = vmul.f32 %v12164_v32, %v11421_v31  ;;  %v2783_v4 = vrot.slane %v2677_v53, 3  ;;  %v2932_v26 = vmul.f32 %v12175_v56, %v11419_v50  ;;  %v12338_v53 = vpop.permute.xlu1 %1402 }
 0x241   : > { %v2531_v27 = vsel %vm2218_vm13, %v17030_v10, %v2530_v61  ;;  %v4175_v33 = vshrl.u32 %v4042_v7, 16  ;;  %v4178_v18 = vshll.u32 %v4042_v7, 16  ;;  %v2533_v38 = vsel %vm2218_vm13, %v2530_v61, %v2532_v48  ;;  %17032 = vst [vmem:[#allocation31_spill] sm:$0xff] %v12338_v53 }
 0x242   : > { %v2630_v55 = vadd.f32 %v2531_v27, %v2368_v13  ;;  %v2631_v21 = vadd.f32 %v2533_v38, %v2369_v39  ;;  %v17031_v17 = vrot.slane %v12170_v37, 3  ;;  %v16788_v22 = vrot.slane %v12323_v47, 3 }
 0x243   : > { %v12336_v6 = vmul.f32 %v12175_v56, %v11421_v31  ;;  %v4177_v10 = vrot.slane %v4175_v33, 2  ;;  %v4180_v7 = vrot.slane %v4178_v18, 3  ;;  %v3040_v5 = vrot.slane %v2932_v26, 4 }
 0x244   : > { %v2784_v54 = vsel %vm2735_vm5, %v17031_v17, %v2783_v4  ;;  %v2786_v37 = vsel %vm2735_vm5, %v2783_v4, %v16788_v22  ;;  %v3195_v13 = vmul.f32 %v12203_v14, %v11576_v8  ;;  %v12350_v39 = vmul.f32 %v12203_v14, %v11578_v9 }
 0x245   : > { %v2883_v30 = vadd.f32 %v2784_v54, %v2630_v55  ;;  %v16787_v61 = vrot.slane %v12336_v6, 4  ;;  %vm1445_vm9 = vcmp.eq.s32.totalorder %v12340_v63, 1  ;;  %v12353_v27 = vor.u32 %v4180_v7, %v4177_v10 }
 0x246   : > { %v2884_v26 = vadd.f32 %v2786_v37, %v2631_v21  ;;  %v17034_v33 = vrot.slane %v12188_v43, 4  ;;  %v3453_v4 = vmul.f32 %v12223_v11, %v11576_v8  ;;  %vm16792_vm3 = vcmp.eq.s32.totalorder %v12338_v53, 1 }
 0x247   : > { %v3043_v38 = vsel %vm2992_vm7, %v3040_v5, %v16787_v61  ;;  %v3302_v17 = vrot.slane %v3195_v13, 4  ;;  %v16786_v54 = vrot.slane %v12350_v39, 4  ;;  %v4182_v21 = vsel %vm4075_vm8, %v12213_v19, %v12353_v27 }
 0x248   : > { %v3041_v18 = vsel %vm2992_vm7, %v17034_v33, %v3040_v5  ;;  %v3143_v43 = vadd.f32 %v3043_v38, %v2884_v26  ;;  %v12370_v10 = vmul.f32 %v12223_v11, %v11578_v9  ;;  %v3561_v7 = vrot.slane %v3453_v4, 5  ;;  %9567 = vmatmul.mubr.bf16.gmra.mrb[40].mxu1 %v4182_v21 }
 0x249   : > { %v3142_v55 = vadd.f32 %v3041_v18, %v2883_v30  ;;  %v17035_v37 = vrot.slane %v12209_v3, 4  ;;  %v3305_v5 = vsel %vm2992_vm7, %v3302_v17, %v16786_v54  ;;  %v12381_v30 = vld [vmem:[%s16610_s5 + $0x8] ss:$0 sm:$0xff]  ;;  %9570 = vmatprep.mubr.msk.bf16.mxu1 %vm9989_vm0, %v16923_v23  ;;  %v17036_v18 = vrot.slane %v12232_v57, 5 }
 0x24a   : > { %v3712_v19 = vmul.f32 %v12381_v30, %v11576_v8  ;;  %v12387_v13 = vmul.f32 %v12381_v30, %v11578_v9  ;;  %v3405_v26 = vadd.f32 %v3305_v5, %v3143_v43  ;;  %v16790_v38 = vrot.slane %v12370_v10, 5 }
 0x24b   : > { %v3303_v33 = vsel %vm2992_vm7, %v17035_v37, %v3302_v17  ;;  %v3562_v4 = vsel %vm3513_vm11, %v17036_v18, %v3561_v7  ;;  %v1189_v37 = vadd.f32 %v12093_v41, %v11661_v1  ;;  %v1192_v54 = vadd.f32 %v12093_v41, %v11674_v12 }
 0x24c   : > { %v3404_v3 = vadd.f32 %v3303_v33, %v3142_v55  ;;  %v3820_v17 = vrot.slane %v3712_v19, 6  ;;  %v16789_v21 = vrot.slane %v12387_v13, 6  ;;  %v3564_v55 = vsel %vm3513_vm11, %v3561_v7, %v16790_v38 }
 0x24d   : > { %v1810_v57 = vmul.f32 %v11951_v2, %v17014_v0  ;;  %v1811_v33 = vmul.f32 %v11951_v2, %v11419_v50  ;;  %v3664_v5 = vadd.f32 %v3564_v55, %v3405_v26  ;;  %v17037_v19 = vrot.slane %v12250_v36, 6 }
 0x24e   : > { %v3663_v43 = vadd.f32 %v3562_v4, %v3404_v3  ;;  %v3823_v12 = vsel %vm3772_vm6, %v3820_v17, %v16789_v21  ;;  %v1240_v1 = vmax.f32 %v1189_v37, 0.0  ;;  %v1241_v22 = vmax.f32 %v1192_v54, 0.0  ;;  %v12430_v54 = vld [vmem:[%s16611_s6] ss:$0 sm:$0xff] }
 0x24f   : > { %v3821_v18 = vsel %vm3772_vm6, %v17037_v19, %v3820_v17  ;;  %v1902_v7 = vmul.f32 %v11970_v28, %v11419_v50  ;;  %v12417_v0 = vmul.f32 %v11970_v28, %v11421_v31  ;;  %v3923_v3 = vadd.f32 %v3823_v12, %v3664_v5 }
 0x250   : > { %v3922_v61 = vadd.f32 %v3821_v18, %v3663_v43  ;;  %v1486_v36 = vsel %vm1445_vm9, %v1240_v1, 0.0  ;;  %v2161_v26 = vmul.f32 %v11981_v45, %v11419_v50  ;;  %v12425_v4 = vmul.f32 %v11981_v45, %v11421_v31 }
 0x251   : > { %v1487_v37 = vsel %vm16792_vm3, %v1241_v22, 0.0  ;;  %v2013_v55 = vrot.slane %v1902_v7, 1  ;;  %v2015_v43 = vrot.slane %v12417_v0, 1  ;;  %v3972_v5 = vadd.f32 %v12430_v54, %v3923_v3 }
 0x252   : > { %v3971_v17 = vadd.f32 %v12430_v54, %v3922_v61  ;;  %v8935_v50 = vpack.c.bf16 %v1487_v37, %v1486_v36  ;;  %v2272_v19 = vrot.slane %v2161_v26, 2  ;;  %v16791_v18 = vrot.slane %v12425_v4, 2 }
 0x253   : > { %v17038_v1 = vrot.slane %v12281_v25, 1  ;;  %v2016_v61 = vsel %vm1959_vm12, %v2013_v55, %v2015_v43  ;;  %v2424_v22 = vmul.f32 %v12133_v35, %v11576_v8  ;;  %v4014_v7 = vmax.f32 %v3972_v5, 0.0 }
 0x254   : > { %v4013_v12 = vmax.f32 %v3971_v17, 0.0  ;;  %9216 = vst [vmem:[#allocation2 + $0xa8] sm:$0xff] %v8935_v50   ;;  %v2112_v3 = vadd.f32 %v2016_v61, %v1811_v33  ;;  %v17039_v36 = vrot.slane %v12289_v49, 2  ;;  %v2275_v25 = vsel %vm2218_vm13, %v2272_v19, %v16791_v18  ;;  %v12468_v61 = vpop.permute.xlu0 %1405 }
 0x255   : > { %v2014_v21 = vsel %vm1959_vm12, %v17038_v1, %v2013_v55  ;;  %v12454_v17 = vmul.f32 %v12133_v35, %v11578_v9  ;;  %v2534_v37 = vrot.slane %v2424_v22, 2  ;;  %v2679_v55 = vmul.f32 %v12164_v32, %v11576_v8  ;;  %17040 = vst [vmem:[#allocation36_spill] sm:$0xff] %v12468_v61 }
 0x256   : > { %v2111_v38 = vadd.f32 %v2014_v21, %v1810_v57  ;;  %v2273_v26 = vsel %vm2218_vm13, %v17039_v36, %v2272_v19  ;;  %v4043_v5 = vpack.c.bf16 %v4014_v7, %v4013_v12  ;;  %v2371_v21 = vadd.f32 %v2275_v25, %v2112_v3 }
 0x257   : > { %v12460_v49 = vmul.f32 %v12164_v32, %v11578_v9  ;;  %v2535_v57 = vsel %vm2218_vm13, %v2532_v48, %v2534_v37  ;;  %v16795_v33 = vrot.slane %v12454_v17, 2  ;;  %v2787_v19 = vrot.slane %v2679_v55, 3 }
 0x258   : > { %v2370_v50 = vadd.f32 %v2273_v26, %v2111_v38  ;;  %v2934_v1 = vmul.f32 %v12175_v56, %v11576_v8  ;;  %v4184_v22 = vshrl.u32 %v4043_v5, 16  ;;  %v4187_v12 = vshll.u32 %v4043_v5, 16 }
 0x259   : > { %v16794_v7 = vrot.slane %v12460_v49, 3  ;;  %v2537_v3 = vsel %vm2218_vm13, %v2534_v37, %v16795_v33  ;;  %v17041_v29 = vrot.slane %v12323_v47, 3  ;;  %v12479_v36 = vmul.f32 %v12175_v56, %v11578_v9 }
 0x25a   : > { %v2632_v38 = vadd.f32 %v2535_v57, %v2370_v50  ;;  %v3044_v26 = vrot.slane %v2934_v1, 4  ;;  %v4186_v25 = vrot.slane %v4184_v22, 2  ;;  %v4189_v55 = vrot.slane %v4187_v12, 3 }
 0x25b   : > { %v2788_v48 = vsel %vm2735_vm5, %v17041_v29, %v2787_v19  ;;  %v2633_v18 = vadd.f32 %v2537_v3, %v2371_v21  ;;  %v2790_v5 = vsel %vm2735_vm5, %v2787_v19, %v16794_v7  ;;  %vm1447_vm3 = vcmp.eq.s32.totalorder %v12468_v61, 1  ;;  %v2127_v50 = vld [vmem:[#allocation2 + $0xa8] sm:$0xff]  }
 0x25c   : > { %v2885_v37 = vadd.f32 %v2788_v48, %v2632_v38  ;;  %v17042_v47 = vrot.slane %v12336_v6, 4  ;;  %v16793_v29 = vrot.slane %v12479_v36, 4  ;;  %v3197_v1 = vmul.f32 %v12203_v14, %v11707_v24 }
 0x25d   : > { %v12491_v22 = vor.u32 %v4189_v55, %v4186_v25  ;;  %v12493_v21 = vunpack.c.l.bf16 %v2127_v50  ;;  %v12495_v12 = vunpack.c.h.bf16 %v2127_v50  ;;  %v2886_v19 = vadd.f32 %v2790_v5, %v2633_v18 }
 0x25e   : > { %v3045_v57 = vsel %vm2992_vm7, %v17042_v47, %v3044_v26  ;;  %v3047_v38 = vsel %vm2992_vm7, %v3044_v26, %v16793_v29  ;;  %v12502_v6 = vmul.f32 %v12203_v14, %v11709_v44  ;;  %v3306_v48 = vrot.slane %v3197_v1, 4 }
 0x25f   : > { %v3144_v3 = vadd.f32 %v3045_v57, %v2885_v37  ;;  %v4191_v25 = vsel %vm4075_vm8, %v12353_v27, %v12491_v22  ;;  %v3145_v55 = vadd.f32 %v3047_v38, %v2886_v19  ;;  %v3455_v50 = vmul.f32 %v12223_v11, %v11707_v24 }
 0x260   : > { %v12511_v18 = vmul.f32 %v12223_v11, %v11709_v44  ;;  %9571 = vmatmul.mubr.bf16.gmra.mrb[44].mxu1 %v4191_v25  ;;  %v17043_v26 = vrot.slane %v12350_v39, 4  ;;  %v16798_v37 = vrot.slane %v12502_v6, 4  ;;  %v3714_v47 = vmul.f32 %v12381_v30, %v11707_v24 }
 0x261   : > { %v12521_v27 = vmul.f32 %v12381_v30, %v11709_v44  ;;  %9574 = vmatprep.mubr.msk.bf16.mxu1 %vm9989_vm0, %v16923_v23  ;;  %v3565_v1 = vrot.slane %v3455_v50, 5  ;;  %v1197_v39 = vadd.f32 %v12093_v41, %v11803_v42  ;;  %v1812_v29 = vmul.f32 %v11951_v2, %v11421_v31 }
 0x262   : > { %v3307_v5 = vsel %vm2992_vm7, %v17043_v26, %v3306_v48  ;;  %v16797_v19 = vrot.slane %v12511_v18, 5  ;;  %v3309_v38 = vsel %vm2992_vm7, %v3306_v48, %v16798_v37  ;;  %v3824_v25 = vrot.slane %v3714_v47, 6 }
 0x263   : > { %v3406_v57 = vadd.f32 %v3307_v5, %v3144_v3  ;;  %v16796_v26 = vrot.slane %v12521_v27, 6  ;;  %v3407_v7 = vadd.f32 %v3309_v38, %v3145_v55  ;;  %v17044_v33 = vrot.slane %v12370_v10, 5 }
 0x264   : > { %v3568_v50 = vsel %vm3513_vm11, %v3565_v1, %v16797_v19  ;;  %v1242_v42 = vmax.f32 %v1197_v39, 0.0  ;;  %v17045_v5 = vrot.slane %v12387_v13, 6  ;;  %v1813_v31 = vmul.f32 %v11951_v2, %v11576_v8 }
 0x265   : > { %v3566_v3 = vsel %vm3513_vm11, %v17044_v33, %v3565_v1  ;;  %v3827_v47 = vsel %vm3772_vm6, %v3824_v25, %v16796_v26  ;;  %v3666_v10 = vadd.f32 %v3568_v50, %v3407_v7  ;;  %v1904_v55 = vmul.f32 %v11970_v28, %v11576_v8 }
 0x266   : > { %v3665_v41 = vadd.f32 %v3566_v3, %v3406_v57  ;;  %v3825_v48 = vsel %vm3772_vm6, %v17045_v5, %v3824_v25  ;;  %v1488_v33 = vsel %vm1447_vm3, %v1242_v42, 0.0  ;;  %v12554_v57 = vmul.f32 %v11970_v28, %v11578_v9 }
 0x267   : > { %v8795_v1 = vpack.c.bf16 %v1488_v33, %v1488_v33  ;;  %v2163_v39 = vmul.f32 %v11981_v45, %v11576_v8  ;;  %v12560_v38 = vmul.f32 %v11981_v45, %v11578_v9  ;;  %v3925_v7 = vadd.f32 %v3827_v47, %v3666_v10 }
 0x268   : > { %v3924_v13 = vadd.f32 %v3825_v48, %v3665_v41  ;;  %v2017_v25 = vrot.slane %v1904_v55, 1  ;;  %v2019_v3 = vrot.slane %v12554_v57, 1  ;;  %v2426_v50 = vmul.f32 %v12133_v35, %v11707_v24 }
 0x269   : > { %1694 = vst [vmem:[#allocation2 + $0xb0] sm:$0xf] %v8795_v1  ;;  %v2276_v5 = vrot.slane %v2163_v39, 2  ;;  %v2278_v41 = vrot.slane %v12560_v38, 2  ;;  %v12569_v8 = vmul.f32 %v12133_v35, %v11709_v44  ;;  %v3974_v48 = vadd.f32 %v12430_v54, %v3925_v7 }
 0x26a   : > { %v3973_v42 = vadd.f32 %v12430_v54, %v3924_v13  ;;  %v2018_v47 = vsel %vm1959_vm12, %v2015_v43, %v2017_v25  ;;  %v2020_v10 = vsel %vm1959_vm12, %v2017_v25, %v2019_v3  ;;  %v2538_v33 = vrot.slane %v2426_v50, 2 }
 0x26b   : > { %v2113_v13 = vadd.f32 %v2018_v47, %v1812_v29  ;;  %v2114_v1 = vadd.f32 %v2020_v10, %v1813_v31  ;;  %v17046_v39 = vrot.slane %v12425_v4, 2  ;;  %v4016_v19 = vmax.f32 %v3974_v48, 0.0 }
 0x26c   : > { %v4015_v55 = vmax.f32 %v3973_v42, 0.0  ;;  %v2279_v7 = vsel %vm2218_vm13, %v2276_v5, %v2278_v41  ;;  %v17047_v0 = vrot.slane %v12454_v17, 2  ;;  %v16800_v37 = vrot.slane %v12569_v8, 2 }
 0x26d   : > { %v2277_v26 = vsel %vm2218_vm13, %v17046_v39, %v2276_v5  ;;  %v2373_v50 = vadd.f32 %v2279_v7, %v2114_v1  ;;  %v2681_v29 = vmul.f32 %v12164_v32, %v11707_v24  ;;  %v12592_v4 = vmul.f32 %v12164_v32, %v11709_v44 }
 0x26e   : > { %v2539_v43 = vsel %vm2218_vm13, %v17047_v0, %v2538_v33  ;;  %v2372_v25 = vadd.f32 %v2277_v26, %v2113_v13  ;;  %v4044_v31 = vpack.c.bf16 %v4016_v19, %v4015_v55  ;;  %v2541_v42 = vsel %vm2218_vm13, %v2538_v33, %v16800_v37 }
 0x26f   : > { %v2936_v17 = vmul.f32 %v12175_v56, %v11707_v24  ;;  %v12601_v5 = vmul.f32 %v12175_v56, %v11709_v44  ;;  %v2635_v48 = vadd.f32 %v2541_v42, %v2373_v50  ;;  %v2791_v47 = vrot.slane %v2681_v29, 3 }
 0x270   : > { %v2634_v26 = vadd.f32 %v2539_v43, %v2372_v25  ;;  %v16799_v10 = vrot.slane %v12592_v4, 3  ;;  %v4193_v13 = vshrl.u32 %v4044_v31, 16  ;;  %v4196_v1 = vshll.u32 %v4044_v31, 16  ;;  %v2388_v39 = vld [vmem:[#allocation2 + $0xb0] sm:$0xf] }
 0x271   : > { %v3048_v19 = vrot.slane %v2936_v17, 4  ;;  %v3050_v55 = vrot.slane %v12601_v5, 4  ;;  %v12605_v7 = vunpack.c.l.bf16 %v2388_v39  ;;  %v17048_v33 = vrot.slane %v12460_v49, 3 }
 0x272   : > { %v2794_v43 = vsel %vm2735_vm5, %v2791_v47, %v16799_v10  ;;  %v3199_v25 = vmul.f32 %v12203_v14, %v11851_v46  ;;  %v4195_v50 = vrot.slane %v4193_v13, 2  ;;  %v4198_v29 = vrot.slane %v4196_v1, 3 }
 0x273   : > { %v2792_v0 = vsel %vm2735_vm5, %v17048_v33, %v2791_v47  ;;  %v2888_v42 = vadd.f32 %v2794_v43, %v2635_v48  ;;  %v17049_v17 = vrot.slane %v12479_v36, 4  ;;  %v3051_v49 = vsel %vm2992_vm7, %v3048_v19, %v3050_v55 }
 0x274   : > { %v2887_v31 = vadd.f32 %v2792_v0, %v2634_v26  ;;  %v12623_v33 = vmul.f32 %v12203_v14, %v11853_v62  ;;  %v3310_v47 = vrot.slane %v3199_v25, 4  ;;  %v12625_v10 = vor.u32 %v4198_v29, %v4195_v50 }
 0x275   : > { %v3049_v39 = vsel %vm2992_vm7, %v17049_v17, %v3048_v19  ;;  %v3147_v13 = vadd.f32 %v3051_v49, %v2888_v42  ;;  %v3457_v26 = vmul.f32 %v12223_v11, %v11851_v46  ;;  %v17050_v36 = vrot.slane %v12502_v6, 4 }
 0x276   : > { %v3146_v37 = vadd.f32 %v3049_v39, %v2887_v31  ;;  %v3312_v1 = vrot.slane %v12623_v33, 4  ;;  %v12635_v19 = vmul.f32 %v12223_v11, %v11853_v62  ;;  %v3716_v0 = vmul.f32 %v12381_v30, %v11851_v46 }
 0x277   : > { %v3311_v48 = vsel %vm2992_vm7, %v17050_v36, %v3310_v47  ;;  %v4200_v43 = vsel %vm4075_vm8, %v12491_v22, %v12625_v10  ;;  %v3569_v50 = vrot.slane %v3457_v26, 5  ;;  %v12644_v6 = vmul.f32 %v12381_v30, %v11853_v62 }
 0x278   : > { %v3408_v25 = vadd.f32 %v3311_v48, %v3146_v37  ;;  %9575 = vmatmul.mubr.bf16.gmra.mrb[48].mxu1 %v4200_v43  ;;  %v3313_v29 = vsel %vm2992_vm7, %v3310_v47, %v3312_v1  ;;  %v3571_v31 = vrot.slane %v12635_v19, 5  ;;  %v3828_v42 = vrot.slane %v3716_v0, 6 }
 0x279   : > { %v1814_v17 = vmul.f32 %v11951_v2, %v11578_v9  ;;  %9578 = vmatprep.mubr.msk.bf16.mxu1 %vm9989_vm0, %v16923_v23  ;;  %v3409_v22 = vadd.f32 %v3313_v29, %v3147_v13  ;;  %v17051_v37 = vrot.slane %v12511_v18, 5  ;;  %v3830_v49 = vrot.slane %v12644_v6, 6  ;;  %v12812_v6 = vld [vmem:[%s16610_s5 + $0x1] ss:$0 sm:$0xff] }
 0x27a   : > { %v1815_v26 = vmul.f32 %v11951_v2, %v11707_v24  ;;  %v3572_v47 = vsel %vm3513_vm11, %v3569_v50, %v3571_v31  ;;  %v17052_v9 = vrot.slane %v12521_v27, 6  ;;  %v1906_v13 = vmul.f32 %v11970_v28, %v11707_v24 }
 0x27b   : > { %v3570_v39 = vsel %vm3513_vm11, %v17051_v37, %v3569_v50  ;;  %v3668_v18 = vadd.f32 %v3572_v47, %v3409_v22  ;;  %v3831_v0 = vsel %vm3772_vm6, %v3828_v42, %v3830_v49  ;;  %v12673_v2 = vmul.f32 %v11970_v28, %v11709_v44 }
 0x27c   : > { %v3667_v36 = vadd.f32 %v3570_v39, %v3408_v25  ;;  %v3829_v48 = vsel %vm3772_vm6, %v17052_v9, %v3828_v42  ;;  %v2165_v43 = vmul.f32 %v11981_v45, %v11707_v24  ;;  %v2021_v50 = vrot.slane %v1906_v13, 1 }
 0x27d   : > { %v12679_v27 = vmul.f32 %v11981_v45, %v11709_v44  ;;  %v2428_v29 = vmul.f32 %v12133_v35, %v11851_v46  ;;  %v3927_v22 = vadd.f32 %v3831_v0, %v3668_v18  ;;  %v2023_v37 = vrot.slane %v12673_v2, 1 }
 0x27e   : > { %v3926_v25 = vadd.f32 %v3829_v48, %v3667_v36  ;;  %v2280_v42 = vrot.slane %v2165_v43, 2  ;;  %v12686_v28 = vmul.f32 %v12133_v35, %v11853_v62  ;;  %v2022_v24 = vsel %vm1959_vm12, %v2019_v3, %v2021_v50 }
 0x27f   : > { %v16801_v45 = vrot.slane %v12679_v27, 2  ;;  %v2542_v47 = vrot.slane %v2428_v29, 2  ;;  %v3976_v36 = vadd.f32 %v12430_v54, %v3927_v22  ;;  %v2024_v9 = vsel %vm1959_vm12, %v2021_v50, %v2023_v37 }
 0x280   : > { %v3975_v39 = vadd.f32 %v12430_v54, %v3926_v25  ;;  %v2115_v48 = vadd.f32 %v2022_v24, %v1814_v17  ;;  %v2281_v13 = vsel %vm2218_vm13, %v2278_v41, %v2280_v42  ;;  %v2116_v0 = vadd.f32 %v2024_v9, %v1815_v26 }
 0x281   : > { %v2283_v57 = vsel %vm2218_vm13, %v2280_v42, %v16801_v45  ;;  %v17053_v3 = vrot.slane %v12569_v8, 2  ;;  %v4018_v25 = vmax.f32 %v3976_v36, 0.0  ;;  %v16807_v22 = vrot.slane %v12686_v28, 2 }
 0x282   : > { %v4017_v18 = vmax.f32 %v3975_v39, 0.0  ;;  %v2374_v29 = vadd.f32 %v2281_v13, %v2115_v48  ;;  %v2683_v17 = vmul.f32 %v12164_v32, %v11851_v46  ;;  %v2375_v38 = vadd.f32 %v2283_v57, %v2116_v0 }
 0x283   : > { %v2543_v43 = vsel %vm2218_vm13, %v17053_v3, %v2542_v47  ;;  %v12711_v41 = vmul.f32 %v12164_v32, %v11853_v62  ;;  %v2938_v26 = vmul.f32 %v12175_v56, %v11851_v46  ;;  %v12717_v8 = vmul.f32 %v12175_v56, %v11853_v62 }
 0x284   : > { %v4045_v50 = vpack.c.bf16 %v4018_v25, %v4017_v18  ;;  %v2545_v42 = vsel %vm2218_vm13, %v2542_v47, %v16807_v22  ;;  %v2636_v39 = vadd.f32 %v2543_v43, %v2374_v29  ;;  %v2795_v24 = vrot.slane %v2683_v17, 3  ;;  %v12741_v17 = vpop.f32.mrb[0].mxu1 }
 0x285   : > { %v2637_v36 = vadd.f32 %v2545_v42, %v2375_v38  ;;  %v16803_v9 = vrot.slane %v12711_v41, 3  ;;  %v3052_v48 = vrot.slane %v2938_v26, 4  ;;  %v16802_v13 = vrot.slane %v12717_v8, 4  ;;  %v9528_v5 = vpop.f32.mrb[1].mxu1 }
 0x286   : > { %v4202_v0 = vshrl.u32 %v4045_v50, 16  ;;  %v4205_v57 = vshll.u32 %v4045_v50, 16  ;;  %v17054_v3 = vrot.slane %v12592_v4, 3  ;;  %v3201_v18 = vmul.f32 %v12203_v14, %v11994_v59  ;;  %v9857_v4 = vld [vmem:[%s16616_s11] sm:$0xff]  }
 0x287   : > { %v2798_v47 = vsel %vm2735_vm5, %v2795_v24, %v16803_v9  ;;  %v3053_v25 = vsel %vm2992_vm7, %v3050_v55, %v3052_v48  ;;  %v3055_v29 = vsel %vm2992_vm7, %v3052_v48, %v16802_v13  ;;  %9611 = vmatpush3.bf16.msra.mxu0 %v9857_v4  ;;  %v12753_v48 = vpop.f32.mrb[2].mxu1  ;;  %v17057_v63 = vrot.slane %v12686_v28, 2 }
 0x288   : > { %v2796_v45 = vsel %vm2735_vm5, %v17054_v3, %v2795_v24  ;;  %v4204_v38 = vrot.slane %v4202_v0, 2  ;;  %v4207_v26 = vrot.slane %v4205_v57, 3  ;;  %v2890_v50 = vadd.f32 %v2798_v47, %v2637_v36  ;;  %v9858_v36 = vld [vmem:[%s16616_s11 + $0x8] sm:$0xff]   ;;  %9612 = vmatprep.subr.bf16.mxu0 %v16923_v23  ;;  %v9529_v47 = vpop.f32.mrb[3].mxu1 }
 0x289   : > { %v2889_v43 = vadd.f32 %v2796_v45, %v2636_v39  ;;  %v12745_v45 = vmul.f32 %v12203_v14, %v11996_v52  ;;  %v3314_v55 = vrot.slane %v3201_v18, 4  ;;  %v3459_v39 = vmul.f32 %v12223_v11, %v11994_v59 }
 0x28a   : > { %v12751_v24 = vmul.f32 %v12223_v11, %v11996_v52  ;;  %v12758_v0 = vor.u32 %v4207_v26, %v4204_v38  ;;  %v3149_v57 = vadd.f32 %v3055_v29, %v2890_v50  ;;  %v3718_v18 = vmul.f32 %v12381_v30, %v11994_v59  ;;  %v12772_v29 = vpop.f32.mrb[4].mxu1 }
 0x28b   : > { %v3148_v42 = vadd.f32 %v3053_v25, %v2889_v43  ;;  %v16806_v3 = vrot.slane %v12745_v45, 4  ;;  %v3315_v43 = vsel %vm2992_vm7, %v3312_v1, %v3314_v55  ;;  %v3573_v25 = vrot.slane %v3459_v39, 5  ;;  %v9532_v1 = vpop.f32.mrb[5].mxu1  ;;  %9613 = vmatpush3.bf16.msra.mxu0 %v9858_v36 }
 0x28c   : > { %v16805_v4 = vrot.slane %v12751_v24, 5  ;;  %v12770_v38 = vmul.f32 %v12381_v30, %v11996_v52  ;;  %v4209_v26 = vsel %vm4075_vm8, %v12625_v10, %v12758_v0  ;;  %v3832_v5 = vrot.slane %v3718_v18, 6  ;;  %v12787_v10 = vpop.f32.mrb[6].mxu1  ;;  %9614 = vmatprep.subr.bf16.mxu0 %v16923_v23 }
 0x28d   : > { %v3317_v50 = vsel %vm2992_vm7, %v3314_v55, %v16806_v3  ;;  %v3410_v33 = vadd.f32 %v3315_v43, %v3148_v42  ;;  %9579 = vmatmul.mubr.bf16.gmra.mrb[52].mxu1 %v4209_v26  ;;  %v3574_v47 = vsel %vm3513_vm11, %v3571_v31, %v3573_v25  ;;  %v9859_v42 = vld [vmem:[%s16616_s11 + $0x10] sm:$0xff]   ;;  %v12800_v31 = vld [vmem:[%s16610_s5] ss:$0 sm:$0xff]  ;;  %v9533_v18 = vpop.f32.mrb[7].mxu1  ;;  %v2430_v1 = vmul.f32 %v12133_v35, %v11994_v59 }
 0x28e   : > { %v3411_v39 = vadd.f32 %v3317_v50, %v3149_v57  ;;  %v3576_v13 = vsel %vm3513_vm11, %v3573_v25, %v16805_v4  ;;  %v16804_v9 = vrot.slane %v12770_v38, 6  ;;  %9582 = vmatprep.mubr.msk.bf16.mxu1 %vm9989_vm0, %v16923_v23  ;;  %v3833_v19 = vsel %vm3772_vm6, %v3830_v49, %v3832_v5  ;;  %v12820_v26 = vpop.f32.mrb[8].mxu1  ;;  %v12826_v50 = vld [vmem:[%s16610_s5 + $0x2] ss:$0 sm:$0xff] }
 0x28f   : > { %v3669_v55 = vadd.f32 %v3574_v47, %v3410_v33  ;;  %v1816_v36 = vmul.f32 %v12800_v31, %v11709_v44  ;;  %v1817_v57 = vmul.f32 %v12800_v31, %v11851_v46  ;;  %v1908_v49 = vmul.f32 %v12812_v6, %v11851_v46  ;;  %9615 = vmatpush3.bf16.msra.mxu0 %v9859_v42 }
 0x290   : > { %v3670_v43 = vadd.f32 %v3576_v13, %v3411_v39  ;;  %v3835_v25 = vsel %vm3772_vm6, %v3832_v5, %v16804_v9  ;;  %v12818_v44 = vmul.f32 %v12812_v6, %v11853_v62  ;;  %v2167_v33 = vmul.f32 %v12826_v50, %v11851_v46  ;;  %v9536_v39 = vpop.f32.mrb[9].mxu1  ;;  %v9860_v46 = vld [vmem:[%s16616_s11 + $0x18] sm:$0xff]   ;;  %9616 = vmatprep.subr.bf16.mxu0 %v16923_v23 }
 0x291   : > { %v3928_v13 = vadd.f32 %v3833_v19, %v3669_v55  ;;  %v12832_v5 = vmul.f32 %v12826_v50, %v11853_v62  ;;  %v2025_v18 = vrot.slane %v1908_v49, 1  ;;  %v12839_v19 = vmul.f32 %v12133_v35, %v11996_v52  ;;  %v12841_v9 = vpop.f32.mrb[10].mxu1 }
 0x292   : > { %v3929_v47 = vadd.f32 %v3835_v25, %v3670_v43  ;;  %v2027_v55 = vrot.slane %v12818_v44, 1  ;;  %v2284_v3 = vrot.slane %v2167_v33, 2  ;;  %v2546_v43 = vrot.slane %v2430_v1, 2  ;;  %v9537_v25 = vpop.f32.mrb[11].mxu1 }
 0x293   : > { %v3977_v4 = vadd.f32 %v12430_v54, %v3928_v13  ;;  %v2026_v35 = vsel %vm1959_vm12, %v2023_v37, %v2025_v18  ;;  %v2548_v22 = vrot.slane %v12839_v19, 2  ;;  %v12857_v13 = vpop.f32.mrb[12].mxu1  ;;  %v17055_v25 = vrot.slane %v12679_v27, 2  ;;  %9617 = vmatpush3.bf16.msra.mxu0 %v9860_v46  ;;  %v9861_v27 = vld [vmem:[%s16616_s11 + $0x20] sm:$0xff]  }
 0x294   : > { %v3978_v49 = vadd.f32 %v12430_v54, %v3929_v47  ;;  %v2028_v42 = vsel %vm1959_vm12, %v2025_v18, %v2027_v55  ;;  %v2117_v39 = vadd.f32 %v2026_v35, %v1816_v36  ;;  %v9540_v47 = vpop.f32.mrb[13].mxu1  ;;  %v17056_v2 = vrot.slane %v12832_v5, 2  ;;  %9618 = vmatprep.subr.bf16.mxu0 %v16923_v23 }
 0x295   : > { %v4019_v33 = vmax.f32 %v3977_v4, 0.0  ;;  %v2118_v1 = vadd.f32 %v2028_v42, %v1817_v57  ;;  %v2285_v61 = vsel %vm2218_vm13, %v17055_v25, %v2284_v3  ;;  %v2547_v18 = vsel %vm2218_vm13, %v17057_v63, %v2546_v43  ;;  %v12871_v36 = vpop.f32.mrb[14].mxu1 }
 0x296   : > { %v4020_v53 = vmax.f32 %v3978_v49, 0.0  ;;  %v2287_v37 = vsel %vm2218_vm13, %v2284_v3, %v17056_v2  ;;  %v2549_v4 = vsel %vm2218_vm13, %v2546_v43, %v2548_v22  ;;  %v2376_v57 = vadd.f32 %v2285_v61, %v2117_v39  ;;  %v9541_v63 = vpop.f32.mrb[15].mxu1 }
 0x297   : > { %v2377_v49 = vadd.f32 %v2287_v37, %v2118_v1  ;;  %v2685_v3 = vmul.f32 %v12164_v32, %v11994_v59  ;;  %v12880_v28 = vmul.f32 %v12164_v32, %v11996_v52  ;;  %v2940_v46 = vmul.f32 %v12175_v56, %v11994_v59  ;;  %9619 = vmatpush3.bf16.msra.mxu0 %v9861_v27 }
 0x298   : > { %v4046_v43 = vpack.c.bf16 %v4020_v53, %v4019_v33  ;;  %v12887_v35 = vmul.f32 %v12175_v56, %v11996_v52  ;;  %v3203_v61 = vmul.f32 %v12203_v14, %v12147_v40  ;;  %v2638_v39 = vadd.f32 %v2547_v18, %v2376_v57  ;;  %v9862_v33 = vld [vmem:[%s16616_s11 + $0x28] sm:$0xff]   ;;  %9620 = vmatprep.subr.bf16.mxu0 %v16923_v23 }
 0x299   : > { %v2639_v42 = vadd.f32 %v2549_v4, %v2377_v49  ;;  %v2799_v1 = vrot.slane %v2685_v3, 3  ;;  %v2801_v32 = vrot.slane %v12880_v28, 3  ;;  %v3056_v2 = vrot.slane %v2940_v46, 4 }
 0x29a   : > { %v4211_v25 = vshrl.u32 %v4046_v43, 16  ;;  %v4214_v47 = vshll.u32 %v4046_v43, 16  ;;  %v16814_v53 = vrot.slane %v12887_v35, 4  ;;  %v17058_v56 = vrot.slane %v12711_v41, 3 }
 0x29b   : > { %v2802_v18 = vsel %vm2735_vm5, %v2799_v1, %v2801_v32  ;;  %v12904_v4 = vmul.f32 %v12203_v14, %v12149_v16  ;;  %v3318_v57 = vrot.slane %v3203_v61, 4  ;;  %v17059_v43 = vrot.slane %v12717_v8, 4  ;;  %9621 = vmatpush3.bf16.msra.mxu0 %v9862_v33  ;;  %v9863_v33 = vld [vmem:[%s16616_s11 + $0x30] sm:$0xff]  }
 0x29c   : > { %v2800_v37 = vsel %vm2735_vm5, %v17058_v56, %v2799_v1  ;;  %v4213_v27 = vrot.slane %v4211_v25, 2  ;;  %v4216_v49 = vrot.slane %v4214_v47, 3  ;;  %v2892_v63 = vadd.f32 %v2802_v18, %v2639_v42  ;;  %9622 = vmatprep.subr.bf16.mxu0 %v16923_v23 }
 0x29d   : > { %v2891_v3 = vadd.f32 %v2800_v37, %v2638_v39  ;;  %v3057_v41 = vsel %vm2992_vm7, %v17059_v43, %v3056_v2  ;;  %v3059_v46 = vsel %vm2992_vm7, %v3056_v2, %v16814_v53  ;;  %v17060_v1 = vrot.slane %v12745_v45, 4  ;;  %v12945_v43 = vpop.f32.mrb[16].mxu1 }
 0x29e   : > { %v16813_v61 = vrot.slane %v12904_v4, 4  ;;  %v12917_v56 = vor.u32 %v4216_v49, %v4213_v27  ;;  %v3151_v47 = vadd.f32 %v3059_v46, %v2892_v63  ;;  %v3461_v39 = vmul.f32 %v12223_v11, %v12147_v40 }
 0x29f   : > { %v3319_v14 = vsel %vm2992_vm7, %v17060_v1, %v3318_v57  ;;  %v3150_v25 = vadd.f32 %v3057_v41, %v2891_v3  ;;  %v12926_v42 = vmul.f32 %v12223_v11, %v12149_v16  ;;  %v3720_v45 = vmul.f32 %v12381_v30, %v12147_v40  ;;  %9623 = vmatpush3.bf16.msra.mxu0 %v9863_v33  ;;  %v12985_v33 = vld [vmem:[%s16610_s5 + $0x3] ss:$0 sm:$0xff] }
 0x2a0   : > { %v3321_v8 = vsel %vm2992_vm7, %v3318_v57, %v16813_v61  ;;  %v12932_v2 = vmul.f32 %v12381_v30, %v12149_v16  ;;  %v4218_v37 = vsel %vm4075_vm8, %v12758_v0, %v12917_v56  ;;  %v3577_v57 = vrot.slane %v3461_v39, 5  ;;  %9624 = vmatprep.subr.bf16.mxu0 %v16923_v23 }
 0x2a1   : > { %v3412_v18 = vadd.f32 %v3319_v14, %v3150_v25  ;;  %v3413_v11 = vadd.f32 %v3321_v8, %v3151_v47  ;;  %9583 = vmatmul.mubr.bf16.gmra.mrb[56].mxu1 %v4218_v37  ;;  %v16812_v27 = vrot.slane %v12926_v42, 5  ;;  %v3836_v49 = vrot.slane %v3720_v45, 6  ;;  %v9864_v37 = vld [vmem:[%s16616_s11 + $0x38] sm:$0xff]  }
 0x2a2   : > { %v16811_v3 = vrot.slane %v12932_v2, 6  ;;  %v1818_v63 = vmul.f32 %v12800_v31, %v11853_v62  ;;  %9586 = vmatprep.mubr.msk.bf16.mxu1 %vm9989_vm0, %v16923_v23  ;;  %v17061_v41 = vrot.slane %v12751_v24, 5  ;;  %v1819_v46 = vmul.f32 %v12800_v31, %v11994_v59  ;;  %v9544_v62 = vpop.f32.mrb[17].mxu1 }
 0x2a3   : > { %v1910_v1 = vmul.f32 %v12812_v6, %v11994_v59  ;;  %v12958_v14 = vmul.f32 %v12812_v6, %v11996_v52  ;;  %v3580_v25 = vsel %vm3513_vm11, %v3577_v57, %v16812_v27  ;;  %v17062_v24 = vrot.slane %v12770_v38, 6  ;;  %v12969_v45 = vpop.f32.mrb[18].mxu1  ;;  %9625 = vmatpush3.bf16.msra.mxu0 %v9864_v37 }
 0x2a4   : > { %v3578_v0 = vsel %vm3513_vm11, %v17061_v41, %v3577_v57  ;;  %v3839_v8 = vsel %vm3772_vm6, %v3836_v49, %v16811_v3  ;;  %v3672_v41 = vadd.f32 %v3580_v25, %v3413_v11  ;;  %v2169_v38 = vmul.f32 %v12826_v50, %v11994_v59 }
 0x2a5   : > { %v3671_v47 = vadd.f32 %v3578_v0, %v3412_v18  ;;  %v3837_v39 = vsel %vm3772_vm6, %v17062_v24, %v3836_v49  ;;  %v2029_v62 = vrot.slane %v1910_v1, 1  ;;  %v16817_v57 = vrot.slane %v12958_v14, 1  ;;  %v9545_v18 = vpop.f32.mrb[19].mxu1 }
 0x2a6   : > { %v12980_v49 = vmul.f32 %v12826_v50, %v11996_v52  ;;  %v2432_v11 = vmul.f32 %v12985_v33, %v12147_v40  ;;  %v12991_v1 = vmul.f32 %v12985_v33, %v12149_v16  ;;  %v3931_v59 = vadd.f32 %v3839_v8, %v3672_v41 }
 0x2a7   : > { %v3930_v0 = vadd.f32 %v3837_v39, %v3671_v47  ;;  %v2030_v25 = vsel %vm1959_vm12, %v2027_v55, %v2029_v62  ;;  %v2032_v47 = vsel %vm1959_vm12, %v2029_v62, %v16817_v57  ;;  %v2288_v24 = vrot.slane %v2169_v38, 2 }
 0x2a8   : > { %v2119_v18 = vadd.f32 %v2030_v25, %v1818_v63  ;;  %v2120_v3 = vadd.f32 %v2032_v47, %v1819_v46  ;;  %v16816_v27 = vrot.slane %v12980_v49, 2  ;;  %v3980_v61 = vadd.f32 %v12430_v54, %v3931_v59  ;;  %v13012_v63 = vld [vmem:[%s16610_s5 + $0x4] ss:$0 sm:$0xff] }
 0x2a9   : > { %v3979_v39 = vadd.f32 %v12430_v54, %v3930_v0  ;;  %v17063_v8 = vrot.slane %v12832_v5, 2  ;;  %v2550_v41 = vrot.slane %v2432_v11, 2  ;;  %v16815_v55 = vrot.slane %v12991_v1, 2 }
 0x2aa   : > { %v2291_v62 = vsel %vm2218_vm13, %v2288_v24, %v16816_v27  ;;  %v2687_v46 = vmul.f32 %v13012_v63, %v12147_v40  ;;  %v4022_v5 = vmax.f32 %v3980_v61, 0.0  ;;  %v13024_v25 = vmul.f32 %v13012_v63, %v12149_v16 }
 0x2ab   : > { %v2289_v44 = vsel %vm2218_vm13, %v17063_v8, %v2288_v24  ;;  %v4021_v53 = vmax.f32 %v3979_v39, 0.0  ;;  %v2379_v37 = vadd.f32 %v2291_v62, %v2120_v3  ;;  %v2551_v0 = vsel %vm2218_vm13, %v2548_v22, %v2550_v41  ;;  %v13029_v24 = vld [vmem:[%s16610_s5 + $0x5] ss:$0 sm:$0xff]  ;;  %v13040_v39 = vld [vmem:[%s16610_s5 + $0x6] ss:$0 sm:$0xff] }
 0x2ac   : > { %v2378_v38 = vadd.f32 %v2289_v44, %v2119_v18  ;;  %v2553_v11 = vsel %vm2218_vm13, %v2550_v41, %v16815_v55  ;;  %v2803_v47 = vrot.slane %v2687_v46, 3  ;;  %v2942_v19 = vmul.f32 %v13029_v24, %v12147_v40 }
 0x2ad   : > { %v4047_v61 = vpack.c.bf16 %v4022_v5, %v4021_v53  ;;  %v2641_v22 = vadd.f32 %v2553_v11, %v2379_v37  ;;  %v13035_v3 = vmul.f32 %v13029_v24, %v12149_v16  ;;  %v3205_v18 = vmul.f32 %v13040_v39, %v12294_v34 }
 0x2ae   : > { %v2640_v59 = vadd.f32 %v2551_v0, %v2378_v38  ;;  %v2804_v8 = vsel %vm2735_vm5, %v2801_v32, %v2803_v47  ;;  %v16822_v44 = vrot.slane %v13024_v25, 3  ;;  %v3060_v53 = vrot.slane %v2942_v19, 4 }
 0x2af   : > { %v13050_v41 = vmul.f32 %v13040_v39, %v12296_v51  ;;  %v4220_v62 = vshrl.u32 %v4047_v61, 16  ;;  %v4223_v38 = vshll.u32 %v4047_v61, 16  ;;  %v16821_v5 = vrot.slane %v13035_v3, 4 }
 0x2b0   : > { %v2893_v46 = vadd.f32 %v2804_v8, %v2640_v59  ;;  %v2806_v37 = vsel %vm2735_vm5, %v2803_v47, %v16822_v44  ;;  %v17064_v28 = vrot.slane %v12887_v35, 4  ;;  %v3322_v0 = vrot.slane %v3205_v18, 4  ;;  %v13072_v47 = vld [vmem:[%s16610_s5 + $0x7] ss:$0 sm:$0xff] }
 0x2b1   : > { %v16820_v11 = vrot.slane %v13050_v41, 4  ;;  %v4222_v19 = vrot.slane %v4220_v62, 2  ;;  %v4225_v55 = vrot.slane %v4223_v38, 3  ;;  %v2894_v27 = vadd.f32 %v2806_v37, %v2641_v22 }
 0x2b2   : > { %v3061_v32 = vsel %vm2992_vm7, %v17064_v28, %v3060_v53  ;;  %v3063_v59 = vsel %vm2992_vm7, %v3060_v53, %v16821_v5  ;;  %v17065_v8 = vrot.slane %v12904_v4, 4  ;;  %v3463_v22 = vmul.f32 %v13072_v47, %v12294_v34 }
 0x2b3   : > { %v3152_v61 = vadd.f32 %v3061_v32, %v2893_v46  ;;  %v3325_v35 = vsel %vm2992_vm7, %v3322_v0, %v16820_v11  ;;  %v13076_v18 = vor.u32 %v4225_v55, %v4222_v19  ;;  %v3153_v53 = vadd.f32 %v3063_v59, %v2894_v27 }
 0x2b4   : > { %v3323_v57 = vsel %vm2992_vm7, %v17065_v8, %v3322_v0  ;;  %v13080_v4 = vmul.f32 %v13072_v47, %v12296_v51  ;;  %v3722_v62 = vmul.f32 %v12381_v30, %v12294_v34  ;;  %v3581_v46 = vrot.slane %v3463_v22, 5  ;;  %v13114_v22 = vpop.f32.mrb[20].mxu1 }
 0x2b5   : > { %v3414_v38 = vadd.f32 %v3323_v57, %v3152_v61  ;;  %v13086_v37 = vmul.f32 %v12381_v30, %v12296_v51  ;;  %v1820_v28 = vmul.f32 %v12800_v31, %v11996_v52  ;;  %v4227_v27 = vsel %vm4075_vm8, %v12917_v56, %v13076_v18 }
 0x2b6   : > { %v3415_v55 = vadd.f32 %v3325_v35, %v3153_v53  ;;  %v16819_v32 = vrot.slane %v13080_v4, 5  ;;  %v3840_v0 = vrot.slane %v3722_v62, 6  ;;  %9587 = vmatmul.mubr.bf16.gmra.mrb[60].mxu1 %v4227_v27  ;;  %v17066_v19 = vrot.slane %v12926_v42, 5 }
 0x2b7   : > { %v16818_v59 = vrot.slane %v13086_v37, 6  ;;  %v1821_v30 = vmul.f32 %v12800_v31, %v12147_v40  ;;  %v1912_v52 = vmul.f32 %v12812_v6, %v12147_v40  ;;  %9590 = vmatprep.mubr.msk.bf16.mxu1 %vm9989_vm0, %v16923_v23  ;;  %v17067_v42 = vrot.slane %v12932_v2, 6 }
 0x2b8   : > { %v3582_v57 = vsel %vm3513_vm11, %v17066_v19, %v3581_v46  ;;  %v3584_v56 = vsel %vm3513_vm11, %v3581_v46, %v16819_v32  ;;  %v13112_v35 = vmul.f32 %v12812_v6, %v12149_v16  ;;  %v2171_v46 = vmul.f32 %v12826_v50, %v12147_v40 }
 0x2b9   : > { %v3673_v61 = vadd.f32 %v3582_v57, %v3414_v38  ;;  %v3841_v8 = vsel %vm3772_vm6, %v17067_v42, %v3840_v0  ;;  %v3674_v53 = vadd.f32 %v3584_v56, %v3415_v55  ;;  %v3843_v62 = vsel %vm3772_vm6, %v3840_v0, %v16818_v59  ;;  %v9548_v38 = vpop.f32.mrb[21].mxu1 }
 0x2ba   : > { %v2033_v27 = vrot.slane %v1912_v52, 1  ;;  %v16825_v2 = vrot.slane %v13112_v35, 1  ;;  %v13124_v57 = vmul.f32 %v12826_v50, %v12149_v16  ;;  %v2434_v42 = vmul.f32 %v12985_v33, %v12294_v34  ;;  %v13128_v55 = vpop.f32.mrb[22].mxu1 }
 0x2bb   : > { %v3932_v19 = vadd.f32 %v3841_v8, %v3673_v61  ;;  %v3933_v56 = vadd.f32 %v3843_v62, %v3674_v53  ;;  %v17068_v0 = vrot.slane %v12958_v14, 1  ;;  %v2292_v59 = vrot.slane %v2171_v46, 2  ;;  %v9549_v61 = vpop.f32.mrb[23].mxu1 }
 0x2bc   : > { %v13135_v40 = vmul.f32 %v12985_v33, %v12296_v51  ;;  %v2036_v38 = vsel %vm1959_vm12, %v2033_v27, %v16825_v2  ;;  %v16824_v11 = vrot.slane %v13124_v57, 2  ;;  %v17069_v62 = vrot.slane %v12980_v49, 2 }
 0x2bd   : > { %v2034_v52 = vsel %vm1959_vm12, %v17068_v0, %v2033_v27  ;;  %v3981_v8 = vadd.f32 %v12430_v54, %v3932_v19  ;;  %v3982_v53 = vadd.f32 %v12430_v54, %v3933_v56  ;;  %v2122_v14 = vadd.f32 %v2036_v38, %v1821_v30 }
 0x2be   : > { %v2121_v32 = vadd.f32 %v2034_v52, %v1820_v28  ;;  %v2293_v46 = vsel %vm2218_vm13, %v17069_v62, %v2292_v59  ;;  %v2554_v0 = vrot.slane %v2434_v42, 2  ;;  %v2295_v19 = vsel %vm2218_vm13, %v2292_v59, %v16824_v11 }
 0x2bf   : > { %v4023_v5 = vmax.f32 %v3981_v8, 0.0  ;;  %v16823_v44 = vrot.slane %v13135_v40, 2  ;;  %v4024_v27 = vmax.f32 %v3982_v53, 0.0  ;;  %v2381_v28 = vadd.f32 %v2295_v19, %v2122_v14 }
 0x2c0   : > { %v2380_v61 = vadd.f32 %v2293_v46, %v2121_v32  ;;  %v17070_v52 = vrot.slane %v12991_v1, 2  ;;  %v2689_v49 = vmul.f32 %v13012_v63, %v12294_v34  ;;  %v13160_v59 = vmul.f32 %v13012_v63, %v12296_v51 }
 0x2c1   : > { %v2557_v30 = vsel %vm2218_vm13, %v2554_v0, %v16823_v44  ;;  %v2944_v32 = vmul.f32 %v13029_v24, %v12294_v34  ;;  %v4048_v56 = vpack.c.bf16 %v4024_v27, %v4023_v5  ;;  %v13166_v38 = vmul.f32 %v13029_v24, %v12296_v51 }
 0x2c2   : > { %v2555_v54 = vsel %vm2218_vm13, %v17070_v52, %v2554_v0  ;;  %v2643_v8 = vadd.f32 %v2557_v30, %v2381_v28  ;;  %v2807_v1 = vrot.slane %v2689_v49, 3  ;;  %v16830_v53 = vrot.slane %v13160_v59, 3 }
 0x2c3   : > { %v2642_v42 = vadd.f32 %v2555_v54, %v2380_v61  ;;  %v3064_v14 = vrot.slane %v2944_v32, 4  ;;  %v3207_v62 = vmul.f32 %v13040_v39, %v12493_v21  ;;  %v13173_v46 = vmul.f32 %v13040_v39, %v12495_v12 }
 0x2c4   : > { %v4229_v0 = vshrl.u32 %v4048_v56, 16  ;;  %v4232_v19 = vshll.u32 %v4048_v56, 16  ;;  %v17071_v5 = vrot.slane %v13024_v25, 3  ;;  %v16829_v27 = vrot.slane %v13166_v38, 4 }
 0x2c5   : > { %v2810_v28 = vsel %vm2735_vm5, %v2807_v1, %v16830_v53  ;;  %v17072_v54 = vrot.slane %v13035_v3, 4  ;;  %v3326_v30 = vrot.slane %v3207_v62, 4  ;;  %v3465_v3 = vmul.f32 %v13072_v47, %v12493_v21 }
 0x2c6   : > { %v2808_v61 = vsel %vm2735_vm5, %v17071_v5, %v2807_v1  ;;  %v4231_v32 = vrot.slane %v4229_v0, 2  ;;  %v4234_v44 = vrot.slane %v4232_v19, 3  ;;  %v2896_v11 = vadd.f32 %v2810_v28, %v2643_v8 }
 0x2c7   : > { %v2895_v52 = vadd.f32 %v2808_v61, %v2642_v42  ;;  %v3065_v49 = vsel %vm2992_vm7, %v17072_v54, %v3064_v14  ;;  %v3067_v25 = vsel %vm2992_vm7, %v3064_v14, %v16829_v27  ;;  %v17073_v5 = vrot.slane %v13050_v41, 4  ;;  %v13203_v14 = vld [vmem:[%s16610_s5 + $0x8] ss:$0 sm:$0xff] }
 0x2c8   : > { %v16828_v1 = vrot.slane %v13173_v46, 4  ;;  %v13194_v42 = vor.u32 %v4234_v44, %v4231_v32  ;;  %v3155_v62 = vadd.f32 %v3067_v25, %v2896_v11  ;;  %v13198_v8 = vmul.f32 %v13072_v47, %v12495_v12 }
 0x2c9   : > { %v3154_v56 = vadd.f32 %v3065_v49, %v2895_v52  ;;  %v3327_v2 = vsel %vm2992_vm7, %v17073_v5, %v3326_v30  ;;  %v3724_v41 = vmul.f32 %v13203_v14, %v12493_v21  ;;  %v3585_v44 = vrot.slane %v3465_v3, 5 }
 0x2ca   : > { %v3329_v0 = vsel %vm2992_vm7, %v3326_v30, %v16828_v1  ;;  %v13212_v11 = vmul.f32 %v13203_v14, %v12495_v12  ;;  %v4236_v61 = vsel %vm4075_vm8, %v13076_v18, %v13194_v42  ;;  %v16827_v52 = vrot.slane %v13198_v8, 5 }
 0x2cb   : > { %v3416_v19 = vadd.f32 %v3327_v2, %v3154_v56  ;;  %v3417_v28 = vadd.f32 %v3329_v0, %v3155_v62  ;;  %v3844_v54 = vrot.slane %v3724_v41, 6  ;;  %9591 = vmatmul.mubr.bf16.gmra.mrb[64].mxu1 %v4236_v61  ;;  %v17074_v49 = vrot.slane %v13080_v4, 5 }
 0x2cc   : > { %v16826_v2 = vrot.slane %v13212_v11, 6  ;;  %v1822_v30 = vmul.f32 %v12800_v31, %v12149_v16  ;;  %v1823_v25 = vmul.f32 %v12800_v31, %v12294_v34  ;;  %9594 = vmatprep.mubr.msk.bf16.mxu1 %vm9989_vm0, %v16923_v23  ;;  %v3588_v18 = vsel %vm3513_vm11, %v3585_v44, %v16827_v52 }
 0x2cd   : > { %v3586_v32 = vsel %vm3513_vm11, %v17074_v49, %v3585_v44  ;;  %v17075_v4 = vrot.slane %v13086_v37, 6  ;;  %v1914_v3 = vmul.f32 %v12812_v6, %v12294_v34  ;;  %v3676_v62 = vadd.f32 %v3588_v18, %v3417_v28  ;;  %v13256_v18 = vpop.f32.mrb[24].mxu1 }
 0x2ce   : > { %v3675_v56 = vadd.f32 %v3586_v32, %v3416_v19  ;;  %v3847_v16 = vsel %vm3772_vm6, %v3844_v54, %v16826_v2  ;;  %v13241_v41 = vmul.f32 %v12812_v6, %v12296_v51  ;;  %v2173_v0 = vmul.f32 %v12826_v50, %v12294_v34  ;;  %v13261_v34 = vld [vmem:[%s16611_s6] ss:$0 sm:$0xff] }
 0x2cf   : > { %v3845_v5 = vsel %vm3772_vm6, %v17075_v4, %v3844_v54  ;;  %v2037_v44 = vrot.slane %v1914_v3, 1  ;;  %v13247_v37 = vmul.f32 %v12826_v50, %v12296_v51  ;;  %v2436_v61 = vmul.f32 %v12985_v33, %v12493_v21 }
 0x2d0   : > { %v3934_v19 = vadd.f32 %v3845_v5, %v3675_v56  ;;  %v3935_v28 = vadd.f32 %v3847_v16, %v3676_v62  ;;  %v16833_v49 = vrot.slane %v13241_v41, 1  ;;  %v2296_v54 = vrot.slane %v2173_v0, 2  ;;  %v9552_v16 = vpop.f32.mrb[25].mxu1 }
 0x2d1   : > { %v13254_v32 = vmul.f32 %v12985_v33, %v12495_v12  ;;  %v17076_v4 = vrot.slane %v13112_v35, 1  ;;  %v16832_v3 = vrot.slane %v13247_v37, 2  ;;  %v2558_v62 = vrot.slane %v2436_v61, 2 }
 0x2d2   : > { %v3983_v56 = vadd.f32 %v13261_v34, %v3934_v19  ;;  %v3984_v0 = vadd.f32 %v13261_v34, %v3935_v28  ;;  %v2040_v2 = vsel %vm1959_vm12, %v2037_v44, %v16833_v49  ;;  %v17077_v1 = vrot.slane %v13124_v57, 2  ;;  %v13275_v19 = vpop.f32.mrb[26].mxu1 }
 0x2d3   : > { %v2038_v5 = vsel %vm1959_vm12, %v17076_v4, %v2037_v44  ;;  %v2124_v53 = vadd.f32 %v2040_v2, %v1823_v25  ;;  %v2299_v61 = vsel %vm2218_vm13, %v2296_v54, %v16832_v3  ;;  %v17078_v4 = vrot.slane %v13135_v40, 2  ;;  %v9553_v16 = vpop.f32.mrb[27].mxu1 }
 0x2d4   : > { %v2123_v52 = vadd.f32 %v2038_v5, %v1822_v30  ;;  %v2297_v27 = vsel %vm2218_vm13, %v17077_v1, %v2296_v54  ;;  %v4025_v35 = vmax.f32 %v3983_v56, 0.0  ;;  %v4026_v58 = vmax.f32 %v3984_v0, 0.0  ;;  %v13296_v54 = vld [vmem:[#allocation2 + $0xb4] sm:$0xff]  }
 0x2d5   : > { %v2559_v28 = vsel %vm2218_vm13, %v17078_v4, %v2558_v62  ;;  %v2560_v30 = vrot.slane %v13254_v32, 2  ;;  %v2691_v57 = vmul.f32 %v13012_v63, %v12493_v21  ;;  %v2383_v1 = vadd.f32 %v2299_v61, %v2124_v53 }
 0x2d6   : > { %v2382_v44 = vadd.f32 %v2297_v27, %v2123_v52  ;;  %v13288_v2 = vmul.f32 %v13012_v63, %v12495_v12  ;;  %v2946_v25 = vmul.f32 %v13029_v24, %v12493_v21  ;;  %v13294_v40 = vmul.f32 %v13029_v24, %v12495_v12 }
 0x2d7   : > { %v4049_v27 = vpack.c.bf16 %v4026_v58, %v4025_v35  ;;  %v2561_v52 = vsel %vm2218_vm13, %v2558_v62, %v2560_v30  ;;  %v2811_v53 = vrot.slane %v2691_v57, 3  ;;  %v17079_v12 = vrot.slane %v13160_v59, 3 }
 0x2d8   : > { %v2644_v56 = vadd.f32 %v2559_v28, %v2382_v44  ;;  %v2645_v5 = vadd.f32 %v2561_v52, %v2383_v1  ;;  %v2813_v0 = vrot.slane %v13288_v2, 3  ;;  %v3068_v61 = vrot.slane %v2946_v25, 4 }
 0x2d9   : > { %v16834_v4 = vrot.slane %v13294_v40, 4  ;;  %v4238_v16 = vshrl.u32 %v4049_v27, 16  ;;  %v4241_v3 = vshll.u32 %v4049_v27, 16  ;;  %v2812_v49 = vsel %vm2735_vm5, %v17079_v12, %v2811_v53 }
 0x2da   : > { %v3164_v58 = vunpack.c.l.bf16 %v13296_v54  ;;  %v2814_v62 = vsel %vm2735_vm5, %v2811_v53, %v2813_v0  ;;  %v2897_v35 = vadd.f32 %v2812_v49, %v2644_v56  ;;  %v17080_v28 = vrot.slane %v13166_v38, 4  ;;  %v1736_v56 = vld [vmem:[#allocation2 + $0xa8] sm:$0x7] }
 0x2db   : > { %v3071_v57 = vsel %vm2992_vm7, %v3068_v61, %v16834_v4  ;;  %v4240_v1 = vrot.slane %v4238_v16, 2  ;;  %v4243_v25 = vrot.slane %v4241_v3, 3  ;;  %v2898_v59 = vadd.f32 %v2814_v62, %v2645_v5 }
 0x2dc   : > { %v3069_v44 = vsel %vm2992_vm7, %v17080_v28, %v3068_v61  ;;  %v3209_v27 = vmul.f32 %v13040_v39, %v12605_v7  ;;  %v13319_v12 = vmul.f32 %v13040_v39, %v3164_v58  ;;  %v3467_v49 = vmul.f32 %v13072_v47, %v12605_v7 }
 0x2dd   : > { %v3156_v52 = vadd.f32 %v3069_v44, %v2897_v35  ;;  %v13324_v38 = vmul.f32 %v13072_v47, %v3164_v58  ;;  %v13326_v53 = vor.u32 %v4243_v25, %v4240_v1  ;;  %v3157_v61 = vadd.f32 %v3071_v57, %v2898_v59 }
 0x2de   : > { %v3330_v16 = vrot.slane %v3209_v27, 4  ;;  %v3726_v3 = vmul.f32 %v13203_v14, %v12605_v7  ;;  %v3332_v5 = vrot.slane %v13319_v12, 4  ;;  %v3589_v62 = vrot.slane %v3467_v49, 5 }
 0x2df   : > { %v3591_v35 = vrot.slane %v13324_v38, 5  ;;  %v13333_v28 = vmul.f32 %v13203_v14, %v3164_v58  ;;  %v4245_v44 = vsel %vm4075_vm8, %v13194_v42, %v13326_v53  ;;  %v17081_v1 = vrot.slane %v13173_v46, 4 }
 0x2e0   : > { %v3848_v25 = vrot.slane %v3726_v3, 6  ;;  %v1779_v59 = vunpack.c.l.bf16 %v1736_v56  ;;  %9595 = vmatmul.mubr.bf16.gmra.mrb[68].mxu1 %v4245_v44  ;;  %v3333_v27 = vsel %vm2992_vm7, %v3330_v16, %v3332_v5  ;;  %v17082_v4 = vrot.slane %v13198_v8, 5  ;;  %v2901_v8 = vld [vmem:[#allocation2 + $0xb4] sm:$0x1] }
 0x2e1   : > { %v3331_v57 = vsel %vm2992_vm7, %v17081_v1, %v3330_v16  ;;  %v3592_v42 = vsel %vm3513_vm11, %v3589_v62, %v3591_v35  ;;  %9598 = vmatprep.mubr.msk.bf16.mxu1 %vm9989_vm0, %v16923_v23  ;;  %v3419_v46 = vadd.f32 %v3333_v27, %v3157_v61  ;;  %v17083_v56 = vrot.slane %v13212_v11, 6 }
 0x2e2   : > { %v3418_v49 = vadd.f32 %v3331_v57, %v3156_v52  ;;  %v3590_v58 = vsel %vm3513_vm11, %v17082_v4, %v3589_v62  ;;  %v3850_v44 = vrot.slane %v13333_v28, 6  ;;  %v1824_v52 = vmul.f32 %v12800_v31, %v12296_v51 }
 0x2e3   : > { %v3849_v3 = vsel %vm3772_vm6, %v17083_v56, %v3848_v25  ;;  %v1825_v4 = vmul.f32 %v12800_v31, %v1779_v59  ;;  %v1916_v1 = vmul.f32 %v12812_v6, %v1779_v59  ;;  %v2175_v62 = vmul.f32 %v12826_v50, %v12493_v21 }
 0x2e4   : > { %v3677_v16 = vadd.f32 %v3590_v58, %v3418_v49  ;;  %v3678_v57 = vadd.f32 %v3592_v42, %v3419_v46  ;;  %v3851_v11 = vsel %vm3772_vm6, %v3848_v25, %v3850_v44  ;;  %v2438_v61 = vmul.f32 %v12985_v33, %v12605_v7 }
 0x2e5   : > { %v2693_v51 = vmul.f32 %v13012_v63, %v12605_v7  ;;  %v2041_v49 = vrot.slane %v1916_v1, 1  ;;  %v2300_v58 = vrot.slane %v2175_v62, 2  ;;  %v2903_v31 = vunpack.c.l.bf16 %v2901_v8  ;;  %v3681_v62 = vld [vmem:[#allocation2 + $0xbc] sm:$0x3] }
 0x2e6   : > { %v3936_v27 = vadd.f32 %v3849_v3, %v3677_v16  ;;  %v3937_v56 = vadd.f32 %v3851_v11, %v3678_v57  ;;  %v2562_v6 = vrot.slane %v2438_v61, 2  ;;  %v2948_v21 = vmul.f32 %v13029_v24, %v12605_v7  ;;  %v3162_v3 = vld [vmem:[#allocation2 + $0xbc] sm:$0x1]  ;;  %v13378_v16 = vpop.f32.mrb[28].mxu1 }
 0x2e7   : > { %v2815_v59 = vrot.slane %v2693_v51, 3  ;;  %v17084_v25 = vrot.slane %v13241_v41, 1  ;;  %v2126_v33 = vadd.f32 %v2041_v49, %v1825_v4  ;;  %v17085_v46 = vrot.slane %v13247_v37, 2  ;;  %v9556_v4 = vpop.f32.mrb[29].mxu1 }
 0x2e8   : > { %v3985_v50 = vadd.f32 %v13261_v34, %v3936_v27  ;;  %v3986_v8 = vadd.f32 %v13261_v34, %v3937_v56  ;;  %v2563_v7 = vsel %vm2218_vm13, %v2560_v30, %v2562_v6  ;;  %v2949_v11 = vmul.f32 %v13029_v24, %v2903_v31  ;;  %v13388_v51 = vpop.f32.mrb[30].mxu1 }
 0x2e9   : > { %v2042_v42 = vsel %vm1959_vm12, %v17084_v25, %v2041_v49  ;;  %v2301_v63 = vsel %vm2218_vm13, %v17085_v46, %v2300_v58  ;;  %v2816_v41 = vsel %vm2735_vm5, %v2813_v0, %v2815_v59  ;;  %v2385_v37 = vadd.f32 %v2300_v58, %v2126_v33  ;;  %v9557_v56 = vpop.f32.mrb[31].mxu1 }
 0x2ea   : > { %v2125_v1 = vadd.f32 %v2042_v42, %v1824_v52  ;;  %v4027_v57 = vmax.f32 %v3985_v50, 0.0  ;;  %v3072_v61 = vrot.slane %v2948_v21, 4  ;;  %v4028_v27 = vmax.f32 %v3986_v8, 0.0 }
 0x2eb   : > { %v3165_v52 = vunpack.c.h.bf16 %v13296_v54  ;;  %v3166_v32 = vunpack.c.l.bf16 %v3162_v3  ;;  %v2647_v30 = vadd.f32 %v2562_v6, %v2385_v37  ;;  %v17086_v2 = vrot.slane %v13294_v40, 4 }
 0x2ec   : > { %v2384_v49 = vadd.f32 %v2301_v63, %v2125_v1  ;;  %v3074_v25 = vrot.slane %v2949_v11, 4  ;;  %v3683_v42 = vunpack.c.l.bf16 %v3681_v62  ;;  %v4050_v50 = vpack.c.bf16 %v4028_v27, %v4027_v57 }
 0x2ed   : > { %v3073_v0 = vsel %vm2992_vm7, %v17086_v2, %v3072_v61  ;;  %v3211_v24 = vmul.f32 %v13040_v39, %v3165_v52  ;;  %v3212_v31 = vmul.f32 %v13040_v39, %v3166_v32  ;;  %v2900_v21 = vadd.f32 %v2815_v59, %v2647_v30  ;;  %v13405_v59 = vld [vmem:[%s16613_s8] ss:$0 sm:$0xff] }
 0x2ee   : > { %v2646_v58 = vadd.f32 %v2563_v7, %v2384_v49  ;;  %v3075_v33 = vsel %vm2992_vm7, %v3072_v61, %v3074_v25  ;;  %v3469_v54 = vmul.f32 %v13072_v47, %v3165_v52  ;;  %v3470_v46 = vmul.f32 %v13072_v47, %v3166_v32 }
 0x2ef   : > { %v4247_v6 = vshrl.u32 %v4050_v50, 16  ;;  %v4250_v63 = vshll.u32 %v4050_v50, 16  ;;  %v3334_v3 = vrot.slane %v3211_v24, 4  ;;  %v3159_v8 = vadd.f32 %v3075_v33, %v2900_v21  ;;  %v17101_v21 = vld [vmem:[#allocation14_spill] sm:$0xff] }
 0x2f0   : > { %v2899_v40 = vadd.f32 %v2816_v41, %v2646_v58  ;;  %v3336_v1 = vrot.slane %v3212_v31, 4  ;;  %v3593_v62 = vrot.slane %v3469_v54, 5  ;;  %v3595_v4 = vrot.slane %v3470_v46, 5 }
 0x2f1   : > { %v4249_v7 = vrot.slane %v4247_v6, 2  ;;  %v4252_v57 = vrot.slane %v4250_v63, 3  ;;  %v3335_v39 = vsel %vm2992_vm7, %v3332_v5, %v3334_v3  ;;  %v3728_v61 = vmul.f32 %v13203_v14, %v3165_v52 }
 0x2f2   : > { %v3158_v37 = vadd.f32 %v3073_v0, %v2899_v40  ;;  %v3337_v47 = vsel %vm2992_vm7, %v3334_v3, %v3336_v1  ;;  %v3594_v41 = vsel %vm3513_vm11, %v3591_v35, %v3593_v62  ;;  %v3596_v11 = vsel %vm3513_vm11, %v3593_v62, %v3595_v4 }
 0x2f3   : > { %v13413_v27 = vor.u32 %v4252_v57, %v4249_v7  ;;  %v3421_v49 = vadd.f32 %v3337_v47, %v3159_v8  ;;  %v3729_v5 = vmul.f32 %v13203_v14, %v3683_v42  ;;  %v3852_v32 = vrot.slane %v3728_v61, 6 }
 0x2f4   : > { %v3420_v12 = vadd.f32 %v3335_v39, %v3158_v37  ;;  %v4368_v56 = vadd.f32 %v13405_v59, %v12741_v17  ;;  %v4371_v30 = vadd.f32 %v13405_v59, %v12753_v48  ;;  %v4376_v38 = vadd.f32 %v13405_v59, %v12772_v29 }
 0x2f5   : > { %v4254_v35 = vsel %vm4075_vm8, %v13326_v53, %v13413_v27  ;;  %v3680_v2 = vadd.f32 %v3596_v11, %v3421_v49  ;;  %v3854_v0 = vrot.slane %v3729_v5, 6  ;;  %v3853_v14 = vsel %vm3772_vm6, %v3850_v44, %v3852_v32  ;;  %v17093_v49 = vld [vmem:[#allocation10_spill] sm:$0xff] }
 0x2f6   : > { %v3679_v52 = vadd.f32 %v3594_v41, %v3420_v12  ;;  %9599 = vmatmul.mubr.bf16.gmra.mrb[72].mxu1 %v4254_v35  ;;  %v4533_v25 = vmax.f32 %v4368_v56, 0.0  ;;  %v4534_v17 = vmax.f32 %v4371_v30, 0.0  ;;  %v4535_v42 = vmax.f32 %v4376_v38, 0.0  ;;  %v17095_v30 = vld [vmem:[#allocation11_spill] sm:$0xff]  ;;  %v17097_v35 = vld [vmem:[#allocation12_spill] sm:$0xff] }
 0x2f7   : > { %9602 = vmatprep.mubr.msk.bf16.mxu1 %vm9989_vm0, %v16923_v23  ;;  %v3855_v48 = vsel %vm3772_vm6, %v3852_v32, %v3854_v0  ;;  %v4379_v53 = vadd.f32 %v13405_v59, %v12787_v10  ;;  %v4384_v50 = vadd.f32 %v13405_v59, %v12820_v26  ;;  %v4387_v26 = vadd.f32 %v13405_v59, %v12841_v9  ;;  %v13467_v32 = vpop.f32.mrb[32].mxu1 }
 0x2f8   : > { %v3938_v29 = vadd.f32 %v3853_v14, %v3679_v52  ;;  %v3939_v58 = vadd.f32 %v3855_v48, %v3680_v2  ;;  %v4574_v28 = vsel %vm1407_vm14, %v4533_v25, 0.0  ;;  %v4575_v31 = vsel %vm1408_vm15, %v4534_v17, 0.0 }
 0x2f9   : > { %v4576_v33 = vsel %vm1409_vm1, %v4535_v42, 0.0  ;;  %v9020_v46 = vpack.c.bf16 %v4575_v31, %v4574_v28  ;;  %v4536_v6 = vmax.f32 %v4379_v53, 0.0  ;;  %v4537_v63 = vmax.f32 %v4384_v50, 0.0 }
 0x2fa   : > { %v3987_v54 = vadd.f32 %v13261_v34, %v3938_v29  ;;  %v3988_v10 = vadd.f32 %v13261_v34, %v3939_v58  ;;  %v4392_v40 = vadd.f32 %v13405_v59, %v12857_v13  ;;  %v4395_v3 = vadd.f32 %v13405_v59, %v12871_v36  ;;  %v17091_v34 = vld [vmem:[#allocation9_spill] sm:$0xff] }
 0x2fb   : > { %v13449_v1 = vunpack.c.l.bf16 %v9020_v46  ;;  %v13451_v62 = vunpack.c.h.bf16 %v9020_v46  ;;  %v4577_v7 = vsel %vm1410_vm2, %v4536_v6, 0.0  ;;  %vm17092_vm14 = vcmp.eq.s32.totalorder %v17091_v34, 1  ;;  %v17099_v29 = vld [vmem:[#allocation13_spill] sm:$0xff] }
 0x2fc   : > { %v4029_v8 = vmax.f32 %v3987_v54, 0.0  ;;  %v4030_v57 = vmax.f32 %v3988_v10, 0.0  ;;  %v9025_v37 = vpack.c.bf16 %v4577_v7, %v4576_v33  ;;  %v4578_v39 = vsel %vm17092_vm14, %v4537_v63, 0.0  ;;  %v4821_v34 = vld [vmem:[#allocation3 + $0x4] sm:$0xc] }
 0x2fd   : > { %v4538_v9 = vmax.f32 %v4387_v26, 0.0  ;;  %v4539_v47 = vmax.f32 %v4392_v40, 0.0  ;;  %v4540_v41 = vmax.f32 %v4395_v3, 0.0  ;;  %v4400_v13 = vadd.f32 %v13405_v59, %v12945_v43  ;;  %v17103_v40 = vld [vmem:[#allocation15_spill] sm:$0xff] }
 0x2fe   : > { %v4403_v36 = vadd.f32 %v13405_v59, %v12969_v45  ;;  %v4051_v11 = vpack.c.bf16 %v4030_v57, %v4029_v8  ;;  %9238 = vst [vmem:[#allocation3 + $0x18] sm:$0xff] %v9025_v37   ;;  %v13461_v61 = vunpack.c.l.bf16 %v9025_v37  ;;  %v13463_v12 = vunpack.c.h.bf16 %v9025_v37  ;;  %v9560_v45 = vpop.f32.mrb[33].mxu1 }
 0x2ff   : > { %vm17094_vm15 = vcmp.eq.s32.totalorder %v17093_v49, 1  ;;  %vm17096_vm1 = vcmp.eq.s32.totalorder %v17095_v30, 1  ;;  %vm17098_vm2 = vcmp.eq.s32.totalorder %v17097_v35, 1  ;;  %v4541_v52 = vmax.f32 %v4400_v13, 0.0  ;;  %v13473_v17 = vpop.f32.mrb[34].mxu1  ;;  %v17112_v35 = vld [vmem:[#allocation20_spill] sm:$0xff] }
 0x300   : > { %v4579_v5 = vsel %vm17094_vm15, %v4538_v9, 0.0  ;;  %v4580_v38 = vsel %vm17096_vm1, %v4539_v47, 0.0  ;;  %v4581_v43 = vsel %vm17098_vm2, %v4540_v41, 0.0  ;;  %v4256_v2 = vshrl.u32 %v4051_v11, 16  ;;  %v9561_v58 = vpop.f32.mrb[35].mxu1  ;;  %v17107_v9 = vld [vmem:[#allocation17_spill] sm:$0xff] }
 0x301   : > { %v9030_v56 = vpack.c.bf16 %v4579_v5, %v4578_v39  ;;  %v4259_v0 = vshll.u32 %v4051_v11, 16  ;;  %v9035_v14 = vpack.c.bf16 %v4581_v43, %v4580_v38  ;;  %v4542_v25 = vmax.f32 %v4403_v36, 0.0  ;;  %v17109_v36 = vld [vmem:[#allocation18_spill] sm:$0xff]  ;;  %v4994_v45 = vld [vmem:[#allocation3 + $0x4] sm:$0x8] }
 0x302   : > { %vm17100_vm14 = vcmp.eq.s32.totalorder %v17099_v29, 1  ;;  %v4408_v50 = vadd.f32 %v13405_v59, %v13114_v22  ;;  %v4258_v24 = vrot.slane %v4256_v2, 2  ;;  %vm17102_vm15 = vcmp.eq.s32.totalorder %v17101_v21, 1  ;;  %v13532_v29 = vld [vmem:[%s16614_s9 + $0x1] ss:$0 sm:$0xff] }
 0x303   : > { %v13475_v42 = vunpack.c.l.bf16 %v9030_v56  ;;  %v13477_v48 = vunpack.c.h.bf16 %v9030_v56  ;;  %v4582_v53 = vsel %vm17100_vm14, %v4541_v52, 0.0  ;;  %v4261_v28 = vrot.slane %v4259_v0, 3 }
 0x304   : > { %v13483_v44 = vunpack.c.l.bf16 %v9035_v14  ;;  %v13485_v31 = vunpack.c.h.bf16 %v9035_v14  ;;  %v4583_v33 = vsel %vm17102_vm15, %v4542_v25, 0.0  ;;  %v4543_v54 = vmax.f32 %v4408_v50, 0.0 }
 0x305   : > { %v4411_v46 = vadd.f32 %v13405_v59, %v13128_v55  ;;  %v4416_v6 = vadd.f32 %v13405_v59, %v13256_v18  ;;  %v4262_v63 = vor.u32 %v4261_v28, %v4258_v24  ;;  %v9040_v10 = vpack.c.bf16 %v4583_v33, %v4582_v53  ;;  %v9257_v55 = vld [vmem:[#allocation3 + $0x8] sm:$0xff]   ;;  %v13543_v28 = vld [vmem:[%s16614_s9 + $0x2] ss:$0 sm:$0xff] }
 0x306   : > { %v4419_v22 = vadd.f32 %v13405_v59, %v13275_v19  ;;  %v4424_v26 = vadd.f32 %v13405_v59, %v13378_v16  ;;  %vm17104_vm1 = vcmp.eq.s32.totalorder %v17103_v40, 1  ;;  %v4427_v7 = vadd.f32 %v13405_v59, %v13388_v51  ;;  %v17105_v16 = vld [vmem:[#allocation16_spill] sm:$0xff] }
 0x307   : > { %v4584_v3 = vsel %vm17104_vm1, %v4543_v54, 0.0  ;;  %v4544_v8 = vmax.f32 %v4411_v46, 0.0  ;;  %v4545_v4 = vmax.f32 %v4416_v6, 0.0  ;;  %v4263_v18 = vsel %vm4075_vm8, %v13413_v27, %v4262_v63  ;;  %v13514_v51 = vld [vmem:[%s16614_s9] ss:$0 sm:$0xff] }
 0x308   : > { %v13503_v57 = vunpack.c.l.bf16 %v9040_v10  ;;  %v13505_v37 = vunpack.c.h.bf16 %v9040_v10  ;;  %v4546_v19 = vmax.f32 %v4419_v22, 0.0  ;;  %9603 = vmatmul.mubr.bf16.gmra.mrb[76].mxu1 %v4263_v18  ;;  %vm17106_vm2 = vcmp.eq.s32.totalorder %v17105_v16, 1 }
 0x309   : > { %v4585_v39 = vsel %vm17106_vm2, %v4544_v8, 0.0  ;;  %vm17108_vm14 = vcmp.eq.s32.totalorder %v17107_v9, 1  ;;  %v4547_v41 = vmax.f32 %v4424_v26, 0.0  ;;  %v4548_v13 = vmax.f32 %v4427_v7, 0.0  ;;  %9606 = vmatprep.mubr.msk.bf16.mxu1 %vm9989_vm0, %v16923_v23 }
 0x30a   : > { %v4586_v47 = vsel %vm17108_vm14, %v4545_v4, 0.0  ;;  %v9045_v27 = vpack.c.bf16 %v4585_v39, %v4584_v3  ;;  %vm17110_vm15 = vcmp.eq.s32.totalorder %v17109_v36, 1  ;;  %v9119_v49 = vunpack.c.l.bf16 %v9257_v55  ;;  %v13578_v36 = vld [vmem:[%s16614_s9 + $0x3] ss:$0 sm:$0xff] }
 0x30b   : > { %v4587_v11 = vsel %vm17110_vm15, %v4546_v19, 0.0  ;;  %v9120_v5 = vunpack.c.h.bf16 %v9257_v55  ;;  %v4588_v38 = vsel %vm1421_vm4, %v4547_v41, 0.0  ;;  %vm17113_vm1 = vcmp.eq.s32.totalorder %v17112_v35, 1 }
 0x30c   : > { %v9050_v56 = vpack.c.bf16 %v4587_v11, %v4586_v47  ;;  %v4589_v43 = vsel %vm17113_vm1, %v4548_v13, 0.0  ;;  %v4864_v52 = vunpack.c.l.bf16 %v4821_v34  ;;  %v13524_v2 = vunpack.c.l.bf16 %v9045_v27 }
 0x30d   : > { %v13526_v0 = vunpack.c.h.bf16 %v9045_v27  ;;  %v9055_v14 = vpack.c.bf16 %v4589_v43, %v4588_v38  ;;  %v4911_v25 = vmul.f32 %v9119_v49, %v13514_v51  ;;  %v4912_v24 = vmul.f32 %v9120_v5, %v13514_v51  ;;  %v5510_v27 = vld [vmem:[#allocation3 + $0xc] sm:$0x8] }
 0x30e   : > { %v13534_v53 = vunpack.c.l.bf16 %v9050_v56  ;;  %v13536_v50 = vunpack.c.h.bf16 %v9050_v56  ;;  %v4910_v58 = vmul.f32 %v13514_v51, %v4864_v52  ;;  %v4913_v54 = vmul.f32 %v13449_v1, %v13514_v51  ;;  %v13582_v52 = vpop.f32.mrb[36].mxu1 }
 0x30f   : > { %v13545_v21 = vunpack.c.l.bf16 %v9055_v14  ;;  %v13547_v33 = vunpack.c.h.bf16 %v9055_v14  ;;  %v4996_v46 = vunpack.c.l.bf16 %v4994_v45  ;;  %v5002_v6 = vmul.f32 %v9119_v49, %v13532_v29 }
 0x310   : > { %v5003_v10 = vmul.f32 %v9120_v5, %v13532_v29  ;;  %v5004_v22 = vmul.f32 %v13449_v1, %v13532_v29  ;;  %v13557_v26 = vmul.f32 %v13451_v62, %v13532_v29  ;;  %v5260_v8 = vmul.f32 %v9119_v49, %v13543_v28  ;;  %9607 = vmatmul.mubr.bf16.gmra.mrb[80].mxu1 %v4262_v63 }
 0x311   : > { %v5001_v40 = vmul.f32 %v13532_v29, %v4996_v46  ;;  %v5259_v3 = vmul.f32 %v13543_v28, %v4996_v46  ;;  %v5261_v4 = vmul.f32 %v9120_v5, %v13543_v28  ;;  %v5086_v7 = vrot.slane %v5002_v6, 1 }
 0x312   : > { %v5088_v55 = vrot.slane %v5003_v10, 1  ;;  %v5090_v18 = vrot.slane %v5004_v22, 1  ;;  %v16840_v19 = vrot.slane %v13557_v26, 1  ;;  %v5262_v16 = vmul.f32 %v13449_v1, %v13543_v28  ;;  %v9564_v10 = vpop.f32.mrb[37].mxu1  ;;  %v13596_v22 = vld [vmem:[%s16614_s9 + $0x4] ss:$0 sm:$0xff] }
 0x313   : > { %v5085_v34 = vrot.slane %v5001_v40, 1  ;;  %v13568_v39 = vmul.f32 %v13451_v62, %v13543_v28  ;;  %v5343_v9 = vrot.slane %v5259_v3, 2  ;;  %v5344_v13 = vrot.slane %v5260_v8, 2  ;;  %v13598_v40 = vpop.f32.mrb[38].mxu1 }
 0x314   : > { %v5089_v47 = vsel %vm1959_vm12, %v5086_v7, %v5088_v55  ;;  %v5091_v41 = vsel %vm1959_vm12, %v5088_v55, %v5090_v18  ;;  %v5093_v63 = vsel %vm1959_vm12, %v5090_v18, %v16840_v19  ;;  %v5346_v35 = vrot.slane %v5261_v4, 2  ;;  %v9565_v55 = vpop.f32.mrb[39].mxu1 }
 0x315   : > { %v5087_v11 = vsel %vm1959_vm12, %v5085_v34, %v5086_v7  ;;  %v5211_v49 = vadd.f32 %v5089_v47, %v4911_v25  ;;  %v5212_v5 = vadd.f32 %v5091_v41, %v4912_v24  ;;  %v5213_v56 = vadd.f32 %v5093_v63, %v4913_v54 }
 0x316   : > { %v5210_v30 = vadd.f32 %v5087_v11, %v4910_v58  ;;  %v5345_v38 = vsel %vm2218_vm13, %v5343_v9, %v5344_v13  ;;  %v5348_v43 = vrot.slane %v5262_v16, 2  ;;  %v16837_v45 = vrot.slane %v13568_v39, 2 }
 0x317   : > { %v5514_v14 = vunpack.c.l.bf16 %v5510_v27  ;;  %v5522_v46 = vmul.f32 %v13449_v1, %v13578_v36  ;;  %v5523_v6 = vmul.f32 %v13451_v62, %v13578_v36  ;;  %v5347_v25 = vsel %vm2218_vm13, %v5344_v13, %v5346_v35 }
 0x318   : > { %v5349_v58 = vsel %vm2218_vm13, %v5346_v35, %v5348_v43  ;;  %v5468_v24 = vadd.f32 %v5345_v38, %v5210_v30  ;;  %v5524_v54 = vmul.f32 %v13461_v61, %v13578_v36  ;;  %v5351_v3 = vsel %vm2218_vm13, %v5348_v43, %v16837_v45 }
 0x319   : > { %v5469_v8 = vadd.f32 %v5347_v25, %v5211_v49  ;;  %v5470_v4 = vadd.f32 %v5349_v58, %v5212_v5  ;;  %v5521_v7 = vmul.f32 %v13578_v36, %v5514_v14  ;;  %v5471_v18 = vadd.f32 %v5351_v3, %v5213_v56  ;;  %v13623_v56 = vld [vmem:[%s16614_s9 + $0x5] ss:$0 sm:$0xff] }
 0x31a   : > { %v13606_v34 = vmul.f32 %v13463_v12, %v13578_v36  ;;  %v5606_v16 = vrot.slane %v5522_v46, 2  ;;  %v5608_v9 = vrot.slane %v5523_v6, 2  ;;  %v5610_v41 = vrot.slane %v5524_v54, 2 }
 0x31b   : > { %v5605_v47 = vrot.slane %v5521_v7, 2  ;;  %v5777_v63 = vmul.f32 %v13449_v1, %v13596_v22  ;;  %v5778_v13 = vmul.f32 %v13451_v62, %v13596_v22  ;;  %v5779_v49 = vmul.f32 %v13461_v61, %v13596_v22 }
 0x31c   : > { %v5609_v27 = vsel %vm2218_vm13, %v5606_v16, %v5608_v9  ;;  %v16836_v11 = vrot.slane %v13606_v34, 2  ;;  %v13618_v5 = vmul.f32 %v13463_v12, %v13596_v22  ;;  %v5611_v38 = vsel %vm2218_vm13, %v5608_v9, %v5610_v41 }
 0x31d   : > { %v5607_v30 = vsel %vm2218_vm13, %v5605_v47, %v5606_v16  ;;  %v5731_v35 = vadd.f32 %v5609_v27, %v5469_v8  ;;  %v5859_v43 = vrot.slane %v5777_v63, 3  ;;  %v5732_v6 = vadd.f32 %v5611_v38, %v5470_v4 }
 0x31e   : > { %v5613_v14 = vsel %vm2218_vm13, %v5610_v41, %v16836_v11  ;;  %v5730_v46 = vadd.f32 %v5607_v30, %v5468_v24  ;;  %v5860_v10 = vrot.slane %v5778_v13, 3  ;;  %v5862_v58 = vrot.slane %v5779_v49, 3  ;;  %v13641_v24 = vld [vmem:[%s16614_s9 + $0x6] ss:$0 sm:$0xff] }
 0x31f   : > { %v5733_v25 = vadd.f32 %v5613_v14, %v5471_v18  ;;  %v16835_v54 = vrot.slane %v13618_v5, 3  ;;  %v6031_v3 = vmul.f32 %v13449_v1, %v13623_v56  ;;  %v6032_v8 = vmul.f32 %v13451_v62, %v13623_v56 }
 0x320   : > { %v5861_v7 = vsel %vm2735_vm5, %v5859_v43, %v5860_v10  ;;  %v5982_v55 = vadd.f32 %v5859_v43, %v5730_v46  ;;  %v6033_v16 = vmul.f32 %v13461_v61, %v13623_v56  ;;  %v5863_v4 = vsel %vm2735_vm5, %v5860_v10, %v5862_v58  ;;  %v13666_v10 = vld [vmem:[%s16614_s9 + $0x7] ss:$0 sm:$0xff] }
 0x321   : > { %v5865_v1 = vsel %vm2735_vm5, %v5862_v58, %v16835_v54  ;;  %v5983_v18 = vadd.f32 %v5861_v7, %v5731_v35  ;;  %v13649_v9 = vmul.f32 %v13463_v12, %v13623_v56  ;;  %v5984_v47 = vadd.f32 %v5863_v4, %v5732_v6  ;;  %v6544_v6 = vld [vmem:[#allocation3 + $0x18] sm:$0xe] }
 0x322   : > { %v5985_v41 = vadd.f32 %v5865_v1, %v5733_v25  ;;  %v6115_v63 = vrot.slane %v6031_v3, 4  ;;  %v6116_v13 = vrot.slane %v6032_v8, 4  ;;  %v6118_v27 = vrot.slane %v6033_v16, 4 }
 0x323   : > { %v16838_v49 = vrot.slane %v13649_v9, 4  ;;  %v6293_v30 = vmul.f32 %v13461_v61, %v13641_v24  ;;  %v6294_v38 = vmul.f32 %v13463_v12, %v13641_v24  ;;  %v6295_v14 = vmul.f32 %v13475_v42, %v13641_v24 }
 0x324   : > { %v6117_v43 = vsel %vm2992_vm7, %v6115_v63, %v6116_v13  ;;  %v6240_v35 = vadd.f32 %v6115_v63, %v5982_v55  ;;  %v13661_v46 = vmul.f32 %v13477_v48, %v13641_v24  ;;  %v6119_v25 = vsel %vm2992_vm7, %v6116_v13, %v6118_v27 }
 0x325   : > { %v6121_v58 = vsel %vm2992_vm7, %v6118_v27, %v16838_v49  ;;  %v6241_v3 = vadd.f32 %v6117_v43, %v5983_v18  ;;  %v6377_v7 = vrot.slane %v6293_v30, 4  ;;  %v6242_v55 = vadd.f32 %v6119_v25, %v5984_v47  ;;  %v13686_v47 = vld [vmem:[%s16614_s9 + $0x8] ss:$0 sm:$0xff] }
 0x326   : > { %v6243_v8 = vadd.f32 %v6121_v58, %v5985_v41  ;;  %v6378_v16 = vrot.slane %v6294_v38, 4  ;;  %v6380_v4 = vrot.slane %v6295_v14, 4  ;;  %v16839_v1 = vrot.slane %v13661_v46, 4 }
 0x327   : > { %v6502_v63 = vadd.f32 %v6377_v7, %v6240_v35  ;;  %v6546_v54 = vunpack.c.l.bf16 %v6544_v6  ;;  %v6552_v11 = vmul.f32 %v13463_v12, %v13666_v10  ;;  %v6553_v27 = vmul.f32 %v13475_v42, %v13666_v10 }
 0x328   : > { %v6379_v45 = vsel %vm2992_vm7, %v6377_v7, %v6378_v16  ;;  %v6381_v13 = vsel %vm2992_vm7, %v6378_v16, %v6380_v4  ;;  %v13681_v18 = vmul.f32 %v13477_v48, %v13666_v10  ;;  %v6383_v41 = vsel %vm2992_vm7, %v6380_v4, %v16839_v1 }
 0x329   : > { %v6503_v30 = vadd.f32 %v6379_v45, %v6241_v3  ;;  %v6504_v38 = vadd.f32 %v6381_v13, %v6242_v55  ;;  %v6551_v43 = vmul.f32 %v13666_v10, %v6546_v54  ;;  %v6505_v35 = vadd.f32 %v6383_v41, %v6243_v8 }
 0x32a   : > { %v6636_v14 = vrot.slane %v6552_v11, 5  ;;  %v6638_v6 = vrot.slane %v6553_v27, 5  ;;  %v16842_v25 = vrot.slane %v13681_v18, 5  ;;  %v6809_v7 = vmul.f32 %v13686_v47, %v6546_v54  ;;  %v13708_v54 = vpop.f32.mrb[40].mxu1 }
 0x32b   : > { %v6635_v58 = vrot.slane %v6551_v43, 5  ;;  %v6810_v16 = vmul.f32 %v13463_v12, %v13686_v47  ;;  %v6811_v49 = vmul.f32 %v13475_v42, %v13686_v47  ;;  %v13704_v11 = vmul.f32 %v13477_v48, %v13686_v47  ;;  %v9568_v41 = vpop.f32.mrb[41].mxu1 }
 0x32c   : > { %v6639_v4 = vsel %vm3513_vm11, %v6636_v14, %v6638_v6  ;;  %v6641_v45 = vsel %vm3513_vm11, %v6638_v6, %v16842_v25  ;;  %v4432_v3 = vadd.f32 %v13405_v59, %v13467_v32  ;;  %v6893_v1 = vrot.slane %v6809_v7, 6  ;;  %v13711_v6 = vpop.f32.mrb[42].mxu1  ;;  %v13717_v32 = vld [vmem:[%s16615_s10] ss:$0 sm:$0xff] }
 0x32d   : > { %v6637_v55 = vsel %vm3513_vm11, %v6635_v58, %v6636_v14  ;;  %v6760_v8 = vadd.f32 %v6635_v58, %v6502_v63  ;;  %v6762_v13 = vadd.f32 %v6639_v4, %v6504_v38  ;;  %v6763_v27 = vadd.f32 %v6641_v45, %v6505_v35  ;;  %v17114_v45 = vld [vmem:[#allocation21_spill] sm:$0xff] }
 0x32e   : > { %v6761_v43 = vadd.f32 %v6637_v55, %v6503_v30  ;;  %v6894_v19 = vrot.slane %v6810_v16, 6  ;;  %v6896_v15 = vrot.slane %v6811_v49, 6  ;;  %v6898_v25 = vrot.slane %v13704_v11, 6  ;;  %v9569_v30 = vpop.f32.mrb[43].mxu1  ;;  %v17126_v11 = vld [vmem:[#allocation24_spill] sm:$0xff] }
 0x32f   : > { %v4549_v20 = vmax.f32 %v4432_v3, 0.0  ;;  %v4435_v63 = vadd.f32 %v13405_v59, %v13473_v17  ;;  %v4914_v38 = vmul.f32 %v13451_v62, %v13514_v51  ;;  %v7018_v14 = vadd.f32 %v6893_v1, %v6760_v8 }
 0x330   : > { %v6895_v35 = vsel %vm3772_vm6, %v6893_v1, %v6894_v19  ;;  %v6897_v49 = vsel %vm3772_vm6, %v6894_v19, %v6896_v15  ;;  %v4915_v58 = vmul.f32 %v13461_v61, %v13514_v51  ;;  %v6899_v7 = vsel %vm3772_vm6, %v6896_v15, %v6898_v25 }
 0x331   : > { %v7019_v16 = vadd.f32 %v6895_v35, %v6761_v43  ;;  %v7020_v4 = vadd.f32 %v6897_v49, %v6762_v13  ;;  %vm17115_vm4 = vcmp.eq.s32.totalorder %v17114_v45, 1  ;;  %v7021_v3 = vadd.f32 %v6899_v7, %v6763_v27 }
 0x332   : > { %v4590_v17 = vsel %vm17115_vm4, %v4549_v20, 0.0  ;;  %v7067_v62 = vadd.f32 %v13717_v32, %v7018_v14  ;;  %v4550_v55 = vmax.f32 %v4435_v63, 0.0  ;;  %v5006_v19 = vmul.f32 %v13461_v61, %v13532_v29 }
 0x333   : > { %v7068_v1 = vadd.f32 %v13717_v32, %v7019_v16  ;;  %v7069_v8 = vadd.f32 %v13717_v32, %v7020_v4  ;;  %v13739_v41 = vmul.f32 %v13463_v12, %v13532_v29  ;;  %v5264_v15 = vmul.f32 %v13461_v61, %v13543_v28 }
 0x334   : > { %v7070_v20 = vadd.f32 %v13717_v32, %v7021_v3  ;;  %v7109_v13 = vmax.f32 %v7067_v62, 0.0  ;;  %v4591_v43 = vsel %vm1424_vm10, %v4550_v55, 0.0  ;;  %v5094_v63 = vrot.slane %v5006_v19, 1 }
 0x335   : > { %v7110_v30 = vmax.f32 %v7068_v1, 0.0  ;;  %v7111_v35 = vmax.f32 %v7069_v8, 0.0  ;;  %v9060_v49 = vpack.c.bf16 %v4591_v43, %v4590_v17  ;;  %v16847_v14 = vrot.slane %v13739_v41, 1 }
 0x336   : > { %v7112_v7 = vmax.f32 %v7070_v20, 0.0  ;;  %v17117_v16 = vrot.slane %v13557_v26, 1  ;;  %v13752_v61 = vmul.f32 %v13463_v12, %v13543_v28  ;;  %v5352_v45 = vrot.slane %v5264_v15, 2 }
 0x337   : > { %v7151_v3 = vpack.c.bf16 %v7110_v30, %v7109_v13  ;;  %v13754_v62 = vunpack.c.l.bf16 %v9060_v49  ;;  %v13756_v55 = vunpack.c.h.bf16 %v9060_v49  ;;  %v5097_v17 = vsel %vm1959_vm12, %v5094_v63, %v16847_v14 }
 0x338   : > { %v5095_v4 = vsel %vm1959_vm12, %v17117_v16, %v5094_v63  ;;  %v7152_v19 = vpack.c.bf16 %v7112_v7, %v7111_v35  ;;  %v5215_v8 = vadd.f32 %v5097_v17, %v4915_v58  ;;  %v17118_v26 = vrot.slane %v13568_v39, 2 }
 0x339   : > { %v5214_v1 = vadd.f32 %v5095_v4, %v4914_v38  ;;  %v7196_v27 = vshrl.u32 %v7151_v3, 16  ;;  %v7199_v43 = vshll.u32 %v7151_v3, 16  ;;  %v16846_v15 = vrot.slane %v13752_v61, 2 }
 0x33a   : > { %v5353_v20 = vsel %vm2218_vm13, %v17118_v26, %v5352_v45  ;;  %v5526_v13 = vmul.f32 %v13475_v42, %v13578_v36  ;;  %v7204_v30 = vshrl.u32 %v7152_v19, 16  ;;  %v7207_v49 = vshll.u32 %v7152_v19, 16 }
 0x33b   : > { %v5472_v16 = vadd.f32 %v5353_v20, %v5214_v1  ;;  %v13769_v63 = vmul.f32 %v13477_v48, %v13578_v36  ;;  %v7198_v38 = vrot.slane %v7196_v27, 2  ;;  %v7201_v58 = vrot.slane %v7199_v43, 3 }
 0x33c   : > { %v5355_v39 = vsel %vm2218_vm13, %v5352_v45, %v16846_v15  ;;  %v5614_v35 = vrot.slane %v5526_v13, 2  ;;  %v7206_v7 = vrot.slane %v7204_v30, 2  ;;  %v7209_v4 = vrot.slane %v7207_v49, 3 }
 0x33d   : > { %v5473_v3 = vadd.f32 %v5355_v39, %v5215_v8  ;;  %v16845_v17 = vrot.slane %v13769_v63, 2  ;;  %v7202_v26 = vor.u32 %v7201_v58, %v7198_v38  ;;  %v17119_v19 = vrot.slane %v13606_v34, 2 }
 0x33e   : > { %v5781_v20 = vmul.f32 %v13475_v42, %v13596_v22  ;;  %v13782_v27 = vmul.f32 %v13477_v48, %v13596_v22  ;;  %v13784_v43 = vor.u32 %v7209_v4, %v7206_v7  ;;  %v6035_v13 = vmul.f32 %v13475_v42, %v13623_v56 }
 0x33f   : > { %v5615_v1 = vsel %vm2218_vm13, %v17119_v19, %v5614_v35  ;;  %v5617_v45 = vsel %vm2218_vm13, %v5614_v35, %v16845_v17  ;;  %v13794_v38 = vmul.f32 %v13477_v48, %v13623_v56  ;;  %v6297_v7 = vmul.f32 %v13483_v44, %v13641_v24 }
 0x340   : > { %v5734_v8 = vadd.f32 %v5615_v1, %v5472_v16  ;;  %v5735_v34 = vadd.f32 %v5617_v45, %v5473_v3  ;;  %v5866_v30 = vrot.slane %v5781_v20, 3  ;;  %v16844_v49 = vrot.slane %v13782_v27, 3  ;;  %v13813_v1 = vpop.f32.mrb[44].mxu1 }
 0x341   : > { %v7211_v58 = vsel %vm4075_vm8, %v7202_v26, %v13784_v43  ;;  %v6122_v39 = vrot.slane %v6035_v13, 4  ;;  %v13802_v16 = vmul.f32 %v13485_v31, %v13641_v24  ;;  %v17120_v35 = vrot.slane %v13618_v5, 3 }
 0x342   : > { %9627 = vmatmul.mubr.bf16.vlgmr.msra.gmra.mrb[84].mxu0 %v7211_v58  ;;  %v5869_v3 = vsel %vm2735_vm5, %v5866_v30, %v16844_v49  ;;  %v6124_v19 = vrot.slane %v13794_v38, 4  ;;  %v6555_v26 = vmul.f32 %v13483_v44, %v13666_v10  ;;  %v17121_v5 = vrot.slane %v13649_v9, 4 }
 0x343   : > { %v5867_v4 = vsel %vm2735_vm5, %v17120_v35, %v5866_v30  ;;  %9630 = vmatprep.mubr.msk.bf16.mxu0 %vm9989_vm0, %v16923_v23  ;;  %v5987_v45 = vadd.f32 %v5869_v3, %v5735_v34  ;;  %v6384_v58 = vrot.slane %v6297_v7, 4  ;;  %v9572_v35 = vpop.f32.mrb[45].mxu1  ;;  %v16848_v49 = vrot.slane %v13802_v16, 4 }
 0x344   : > { %v5986_v20 = vadd.f32 %v5867_v4, %v5734_v8  ;;  %v6123_v13 = vsel %vm2992_vm7, %v17121_v5, %v6122_v39  ;;  %v6125_v30 = vsel %vm2992_vm7, %v6122_v39, %v6124_v19  ;;  %v13826_v17 = vmul.f32 %v13485_v31, %v13666_v10  ;;  %v13828_v14 = vpop.f32.mrb[46].mxu1 }
 0x345   : > { %v6642_v15 = vrot.slane %v6555_v26, 5  ;;  %v6245_v34 = vadd.f32 %v6125_v30, %v5987_v45  ;;  %v17122_v9 = vrot.slane %v13661_v46, 4  ;;  %v6813_v4 = vmul.f32 %v13483_v44, %v13686_v47  ;;  %v9573_v3 = vpop.f32.mrb[47].mxu1 }
 0x346   : > { %v6244_v8 = vadd.f32 %v6123_v13, %v5986_v20  ;;  %v6387_v39 = vsel %vm2992_vm7, %v6384_v58, %v16848_v49  ;;  %v17123_v5 = vrot.slane %v13681_v18, 5  ;;  %v16852_v35 = vrot.slane %v13826_v17, 5 }
 0x347   : > { %v6385_v7 = vsel %vm2992_vm7, %v17122_v9, %v6384_v58  ;;  %v13844_v20 = vmul.f32 %v13485_v31, %v13686_v47  ;;  %v6507_v45 = vadd.f32 %v6387_v39, %v6245_v34  ;;  %v6900_v13 = vrot.slane %v6813_v4, 6  ;;  %v17124_v39 = vld [vmem:[#allocation23_spill] sm:$0xff] }
 0x348   : > { %v6643_v26 = vsel %vm3513_vm11, %v17123_v5, %v6642_v15  ;;  %v6506_v46 = vadd.f32 %v6385_v7, %v6244_v8  ;;  %v4440_v30 = vadd.f32 %v13405_v59, %v13582_v52  ;;  %v6645_v58 = vsel %vm3513_vm11, %v6642_v15, %v16852_v35 }
 0x349   : > { %v16849_v18 = vrot.slane %v13844_v20, 6  ;;  %v4443_v9 = vadd.f32 %v13405_v59, %v13598_v40  ;;  %v4916_v3 = vmul.f32 %v13463_v12, %v13514_v51  ;;  %v6765_v49 = vadd.f32 %v6645_v58, %v6507_v45 }
 0x34a   : > { %v6764_v5 = vadd.f32 %v6643_v26, %v6506_v46  ;;  %v6901_v8 = vsel %vm3772_vm6, %v6898_v25, %v6900_v13  ;;  %v4551_v34 = vmax.f32 %v4440_v30, 0.0  ;;  %v4917_v7 = vmul.f32 %v13475_v42, %v13514_v51 }
 0x34b   : > { %v6903_v52 = vsel %vm3772_vm6, %v6900_v13, %v16849_v18  ;;  %v4552_v15 = vmax.f32 %v4443_v9, 0.0  ;;  %v5008_v40 = vmul.f32 %v13475_v42, %v13532_v29  ;;  %vm17125_vm10 = vcmp.eq.s32.totalorder %v17124_v39, 1 }
 0x34c   : > { %v7022_v4 = vadd.f32 %v6901_v8, %v6764_v5  ;;  %v7023_v12 = vadd.f32 %v6903_v52, %v6765_v49  ;;  %v4592_v26 = vsel %vm17125_vm10, %v4551_v34, 0.0  ;;  %v13870_v25 = vmul.f32 %v13477_v48, %v13532_v29 }
 0x34d   : > { %vm17127_vm2 = vcmp.eq.s32.totalorder %v17126_v11, 1  ;;  %v5098_v45 = vrot.slane %v5008_v40, 1  ;;  %v5266_v13 = vmul.f32 %v13475_v42, %v13543_v28  ;;  %v13878_v30 = vmul.f32 %v13477_v48, %v13543_v28 }
 0x34e   : > { %v4593_v46 = vsel %vm17127_vm2, %v4552_v15, 0.0  ;;  %v7071_v49 = vadd.f32 %v13717_v32, %v7022_v4  ;;  %v7072_v58 = vadd.f32 %v13717_v32, %v7023_v12  ;;  %v16851_v5 = vrot.slane %v13870_v25, 1 }
 0x34f   : > { %v9065_v9 = vpack.c.bf16 %v4593_v46, %v4592_v26  ;;  %v17128_v8 = vrot.slane %v13739_v41, 1  ;;  %v5356_v52 = vrot.slane %v5266_v13, 2  ;;  %v16850_v15 = vrot.slane %v13878_v30, 2 }
 0x350   : > { %v5528_v42 = vmul.f32 %v13483_v44, %v13578_v36  ;;  %v7113_v40 = vmax.f32 %v7071_v49, 0.0  ;;  %v7114_v39 = vmax.f32 %v7072_v58, 0.0  ;;  %v5101_v12 = vsel %vm1959_vm12, %v5098_v45, %v16851_v5 }
 0x351   : > { %v5099_v34 = vsel %vm1959_vm12, %v17128_v8, %v5098_v45  ;;  %v13889_v11 = vunpack.c.l.bf16 %v9065_v9  ;;  %v13891_v4 = vunpack.c.h.bf16 %v9065_v9  ;;  %v17129_v41 = vrot.slane %v13752_v61, 2 }
 0x352   : > { %v5216_v26 = vadd.f32 %v5099_v34, %v4916_v3  ;;  %v5359_v13 = vsel %vm2218_vm13, %v5356_v52, %v16850_v15  ;;  %v7153_v8 = vpack.c.bf16 %v7114_v39, %v7113_v40  ;;  %v5217_v49 = vadd.f32 %v5101_v12, %v4917_v7 }
 0x353   : > { %v5357_v46 = vsel %vm2218_vm13, %v17129_v41, %v5356_v52  ;;  %v13904_v58 = vmul.f32 %v13485_v31, %v13578_v36  ;;  %v5618_v9 = vrot.slane %v5528_v42, 2  ;;  %v5783_v45 = vmul.f32 %v13483_v44, %v13596_v22 }
 0x354   : > { %v5474_v18 = vadd.f32 %v5357_v46, %v5216_v26  ;;  %v13910_v61 = vmul.f32 %v13485_v31, %v13596_v22  ;;  %v6037_v3 = vmul.f32 %v13483_v44, %v13623_v56  ;;  %v7213_v34 = vshrl.u32 %v7153_v8, 16 }
 0x355   : > { %v7216_v52 = vshll.u32 %v7153_v8, 16  ;;  %v5475_v40 = vadd.f32 %v5359_v13, %v5217_v49  ;;  %v17130_v7 = vrot.slane %v13769_v63, 2  ;;  %v5620_v42 = vrot.slane %v13904_v58, 2 }
 0x356   : > { %v5870_v26 = vrot.slane %v5783_v45, 3  ;;  %v5872_v41 = vrot.slane %v13910_v61, 3  ;;  %v7215_v46 = vrot.slane %v7213_v34, 2  ;;  %v13921_v5 = vmul.f32 %v13485_v31, %v13623_v56 }
 0x357   : > { %v5619_v39 = vsel %vm2218_vm13, %v17130_v7, %v5618_v9  ;;  %v7218_v15 = vrot.slane %v7216_v52, 3  ;;  %v6126_v35 = vrot.slane %v6037_v3, 4  ;;  %v5621_v13 = vsel %vm2218_vm13, %v5618_v9, %v5620_v42 }
 0x358   : > { %v5736_v12 = vadd.f32 %v5619_v39, %v5474_v18  ;;  %v17131_v63 = vrot.slane %v13782_v27, 3  ;;  %v5873_v18 = vsel %vm2735_vm5, %v5870_v26, %v5872_v41  ;;  %v6299_v49 = vmul.f32 %v13503_v57, %v13641_v24 }
 0x359   : > { %v13934_v45 = vor.u32 %v7218_v15, %v7215_v46  ;;  %v5737_v34 = vadd.f32 %v5621_v13, %v5475_v40  ;;  %v6127_v3 = vsel %vm2992_vm7, %v6124_v19, %v6126_v35  ;;  %v16854_v9 = vrot.slane %v13921_v5, 4 }
 0x35a   : > { %v5871_v8 = vsel %vm2735_vm5, %v17131_v63, %v5870_v26  ;;  %v13942_v27 = vmul.f32 %v13505_v37, %v13641_v24  ;;  %v6388_v7 = vrot.slane %v6299_v49, 4  ;;  %v6557_v39 = vmul.f32 %v13503_v57, %v13666_v10  ;;  %v13946_v26 = vpop.f32.mrb[48].mxu1 }
 0x35b   : > { %v5988_v52 = vadd.f32 %v5871_v8, %v5736_v12  ;;  %v7220_v15 = vsel %vm4075_vm8, %v13784_v43, %v13934_v45  ;;  %v5989_v40 = vadd.f32 %v5873_v18, %v5737_v34  ;;  %v13953_v19 = vmul.f32 %v13505_v37, %v13666_v10  ;;  %v9576_v12 = vpop.f32.mrb[49].mxu1 }
 0x35c   : > { %9631 = vmatmul.mubr.bf16.gmra.mrb[88].mxu0 %v7220_v15  ;;  %v6129_v46 = vsel %vm2992_vm7, %v6126_v35, %v16854_v9  ;;  %v17132_v13 = vrot.slane %v13802_v16, 4  ;;  %v16853_v8 = vrot.slane %v13942_v27, 4  ;;  %v6646_v49 = vrot.slane %v6557_v39, 5  ;;  %v13962_v43 = vpop.f32.mrb[50].mxu1 }
 0x35d   : > { %v6246_v38 = vadd.f32 %v6127_v3, %v5988_v52  ;;  %9634 = vmatprep.mubr.msk.bf16.mxu0 %vm9989_vm0, %v16923_v23  ;;  %v6247_v18 = vadd.f32 %v6129_v46, %v5989_v40  ;;  %v6648_v52 = vrot.slane %v13953_v19, 5  ;;  %v6815_v3 = vmul.f32 %v13503_v57, %v13686_v47  ;;  %v9577_v35 = vpop.f32.mrb[51].mxu1 }
 0x35e   : > { %v6389_v63 = vsel %vm2992_vm7, %v17132_v13, %v6388_v7  ;;  %v6391_v16 = vsel %vm2992_vm7, %v6388_v7, %v16853_v8  ;;  %v17133_v15 = vrot.slane %v13826_v17, 5  ;;  %v13977_v12 = vmul.f32 %v13505_v37, %v13686_v47 }
 0x35f   : > { %v6508_v34 = vadd.f32 %v6389_v63, %v6246_v38  ;;  %v4448_v40 = vadd.f32 %v13405_v59, %v13708_v54  ;;  %v6509_v38 = vadd.f32 %v6391_v16, %v6247_v18  ;;  %v6649_v46 = vsel %vm3513_vm11, %v6646_v49, %v6648_v52 }
 0x360   : > { %v6647_v39 = vsel %vm3513_vm11, %v17133_v15, %v6646_v49  ;;  %v6904_v63 = vrot.slane %v6815_v3, 6  ;;  %v16855_v7 = vrot.slane %v13977_v12, 6  ;;  %v4451_v17 = vadd.f32 %v13405_v59, %v13711_v6  ;;  %v17135_v59 = vld [vmem:[#allocation25_spill] sm:$0xff] }
 0x361   : > { %v6766_v13 = vadd.f32 %v6647_v39, %v6508_v34  ;;  %v4553_v35 = vmax.f32 %v4448_v40, 0.0  ;;  %v4918_v15 = vmul.f32 %v13477_v48, %v13514_v51  ;;  %v6767_v8 = vadd.f32 %v6649_v46, %v6509_v38  ;;  %v17137_v38 = vld [vmem:[#allocation26_spill] sm:$0xff] }
 0x362   : > { %v17134_v9 = vrot.slane %v13844_v20, 6  ;;  %v4919_v18 = vmul.f32 %v13483_v44, %v13514_v51  ;;  %v5010_v49 = vmul.f32 %v13483_v44, %v13532_v29  ;;  %v6907_v34 = vsel %vm3772_vm6, %v6904_v63, %v16855_v7 }
 0x363   : > { %vm17136_vm14 = vcmp.eq.s32.totalorder %v17135_v59, 1  ;;  %v4554_v48 = vmax.f32 %v4451_v17, 0.0  ;;  %v7025_v16 = vadd.f32 %v6907_v34, %v6767_v8  ;;  %v14003_v20 = vmul.f32 %v13485_v31, %v13532_v29 }
 0x364   : > { %v6905_v54 = vsel %vm3772_vm6, %v17134_v9, %v6904_v63  ;;  %v4594_v6 = vsel %vm17136_vm14, %v4553_v35, 0.0  ;;  %v5102_v9 = vrot.slane %v5010_v49, 1  ;;  %v5268_v39 = vmul.f32 %v13483_v44, %v13543_v28 }
 0x365   : > { %v7024_v3 = vadd.f32 %v6905_v54, %v6766_v13  ;;  %vm17138_vm15 = vcmp.eq.s32.totalorder %v17137_v38, 1  ;;  %v14012_v13 = vmul.f32 %v13485_v31, %v13543_v28  ;;  %v5530_v8 = vmul.f32 %v13503_v57, %v13578_v36 }
 0x366   : > { %v4595_v46 = vsel %vm17138_vm15, %v4554_v48, 0.0  ;;  %v7074_v63 = vadd.f32 %v13717_v32, %v7025_v16  ;;  %v17139_v17 = vrot.slane %v13870_v25, 1  ;;  %v16860_v44 = vrot.slane %v14003_v20, 1 }
 0x367   : > { %v7073_v40 = vadd.f32 %v13717_v32, %v7024_v3  ;;  %v9070_v35 = vpack.c.bf16 %v4595_v46, %v4594_v6  ;;  %v5360_v3 = vrot.slane %v5268_v39, 2  ;;  %v16856_v59 = vrot.slane %v14012_v13, 2 }
 0x368   : > { %v5103_v54 = vsel %vm1959_vm12, %v17139_v17, %v5102_v9  ;;  %v7116_v48 = vmax.f32 %v7074_v63, 0.0  ;;  %v5105_v6 = vsel %vm1959_vm12, %v5102_v9, %v16860_v44  ;;  %v17141_v25 = vrot.slane %v13878_v30, 2 }
 0x369   : > { %v7115_v49 = vmax.f32 %v7073_v40, 0.0  ;;  %v5218_v34 = vadd.f32 %v5103_v54, %v4918_v15  ;;  %v14022_v38 = vunpack.c.l.bf16 %v9070_v35  ;;  %v14024_v7 = vunpack.c.h.bf16 %v9070_v35 }
 0x36a   : > { %v5219_v16 = vadd.f32 %v5105_v6, %v4919_v18  ;;  %v5361_v46 = vsel %vm2218_vm13, %v17141_v25, %v5360_v3  ;;  %v5363_v15 = vsel %vm2218_vm13, %v5360_v3, %v16856_v59  ;;  %v14037_v39 = vmul.f32 %v13505_v37, %v13578_v36 }
 0x36b   : > { %17140 = vst [vmem:[#allocation5_spill] sm:$0xff] %v14024_v7  ;;  %v7154_v40 = vpack.c.bf16 %v7116_v48, %v7115_v49  ;;  %v5476_v63 = vadd.f32 %v5361_v46, %v5218_v34  ;;  %v5622_v35 = vrot.slane %v5530_v8, 2  ;;  %v5785_v17 = vmul.f32 %v13503_v57, %v13596_v22 }
 0x36c   : > { %v5477_v9 = vadd.f32 %v5363_v15, %v5219_v16  ;;  %v16857_v18 = vrot.slane %v14037_v39, 2  ;;  %v14044_v30 = vmul.f32 %v13505_v37, %v13596_v22  ;;  %v6039_v54 = vmul.f32 %v13503_v57, %v13623_v56 }
 0x36d   : > { %v7222_v3 = vshrl.u32 %v7154_v40, 16  ;;  %v7225_v6 = vshll.u32 %v7154_v40, 16  ;;  %v5623_v49 = vsel %vm2218_vm13, %v5620_v42, %v5622_v35  ;;  %v5874_v8 = vrot.slane %v5785_v17, 3  ;;  %v14066_v17 = vpop.f32.mrb[52].mxu1 }
 0x36e   : > { %v5625_v34 = vsel %vm2218_vm13, %v5622_v35, %v16857_v18  ;;  %v5738_v48 = vadd.f32 %v5623_v49, %v5476_v63  ;;  %v16859_v16 = vrot.slane %v14044_v30, 3  ;;  %v14057_v25 = vmul.f32 %v13505_v37, %v13623_v56 }
 0x36f   : > { %v7224_v46 = vrot.slane %v7222_v3, 2  ;;  %v7227_v15 = vrot.slane %v7225_v6, 3  ;;  %v5739_v59 = vadd.f32 %v5625_v34, %v5477_v9  ;;  %v5875_v58 = vsel %vm2735_vm5, %v5872_v41, %v5874_v8  ;;  %v9580_v41 = vpop.f32.mrb[53].mxu1 }
 0x370   : > { %v5877_v42 = vsel %vm2735_vm5, %v5874_v8, %v16859_v16  ;;  %v5990_v40 = vadd.f32 %v5875_v58, %v5738_v48  ;;  %v6130_v35 = vrot.slane %v6039_v54, 4  ;;  %v16858_v63 = vrot.slane %v14057_v25, 4  ;;  %v14088_v34 = vpop.f32.mrb[54].mxu1 }
 0x371   : > { %v14068_v49 = vor.u32 %v7227_v15, %v7224_v46  ;;  %v5991_v18 = vadd.f32 %v5877_v42, %v5739_v59  ;;  %v6301_v9 = vmul.f32 %v13524_v2, %v13641_v24  ;;  %v14074_v61 = vmul.f32 %v13526_v0, %v13641_v24  ;;  %v9581_v58 = vpop.f32.mrb[55].mxu1 }
 0x372   : > { %v17142_v3 = vrot.slane %v13921_v5, 4  ;;  %v6133_v54 = vsel %vm2992_vm7, %v6130_v35, %v16858_v63  ;;  %v6559_v8 = vmul.f32 %v13524_v2, %v13666_v10  ;;  %v14086_v59 = vmul.f32 %v13526_v0, %v13666_v10 }
 0x373   : > { %v7229_v48 = vsel %vm4075_vm8, %v13934_v45, %v14068_v49  ;;  %v6249_v46 = vadd.f32 %v6133_v54, %v5991_v18  ;;  %v6392_v15 = vrot.slane %v6301_v9, 4  ;;  %v6394_v42 = vrot.slane %v14074_v61, 4 }
 0x374   : > { %v6131_v6 = vsel %vm2992_vm7, %v17142_v3, %v6130_v35  ;;  %9635 = vmatmul.mubr.bf16.gmra.mrb[92].mxu0 %v7229_v48  ;;  %v6650_v35 = vrot.slane %v6559_v8, 5  ;;  %v6652_v41 = vrot.slane %v14086_v59, 5  ;;  %v6817_v3 = vmul.f32 %v13524_v2, %v13686_v47  ;;  %v14261_v59 = vld [vmem:[%s16614_s9] ss:$0 sm:$0xff] }
 0x375   : > { %v6248_v5 = vadd.f32 %v6131_v6, %v5990_v40  ;;  %9638 = vmatprep.mubr.msk.bf16.mxu0 %vm9989_vm0, %v16923_v23  ;;  %v17143_v63 = vrot.slane %v13942_v27, 4  ;;  %v14104_v18 = vmul.f32 %v13526_v0, %v13686_v47  ;;  %v14109_v40 = vld [vmem:[%s16613_s8] ss:$0 sm:$0xff]  ;;  %v6395_v27 = vsel %vm2992_vm7, %v6392_v15, %v6394_v42 }
 0x376   : > { %v4456_v9 = vadd.f32 %v14109_v40, %v13813_v1  ;;  %v4459_v6 = vadd.f32 %v14109_v40, %v13828_v14  ;;  %v6651_v54 = vsel %vm3513_vm11, %v6648_v52, %v6650_v35  ;;  %v6653_v8 = vsel %vm3513_vm11, %v6650_v35, %v6652_v41  ;;  %v17145_v35 = vld [vmem:[#allocation29_spill] sm:$0xff] }
 0x377   : > { %v6393_v45 = vsel %vm2992_vm7, %v17143_v63, %v6392_v15  ;;  %v6511_v48 = vadd.f32 %v6395_v27, %v6249_v46  ;;  %v6908_v58 = vrot.slane %v6817_v3, 6  ;;  %v6910_v1 = vrot.slane %v14104_v18, 6 }
 0x378   : > { %v6510_v63 = vadd.f32 %v6393_v45, %v6248_v5  ;;  %v4555_v16 = vmax.f32 %v4456_v9, 0.0  ;;  %v4556_v14 = vmax.f32 %v4459_v6, 0.0  ;;  %v4920_v7 = vmul.f32 %v13485_v31, %v13514_v51  ;;  %v17147_v9 = vld [vmem:[#allocation30_spill] sm:$0xff] }
 0x379   : > { %v4921_v5 = vmul.f32 %v13503_v57, %v13514_v51  ;;  %v6769_v19 = vadd.f32 %v6653_v8, %v6511_v48  ;;  %v17144_v52 = vrot.slane %v13977_v12, 6  ;;  %v6911_v46 = vsel %vm3772_vm6, %v6908_v58, %v6910_v1 }
 0x37a   : > { %v6768_v44 = vadd.f32 %v6651_v54, %v6510_v63  ;;  %vm17146_vm1 = vcmp.eq.s32.totalorder %v17145_v35, 1  ;;  %vm17148_vm4 = vcmp.eq.s32.totalorder %v17147_v9, 1  ;;  %v5012_v31 = vmul.f32 %v13503_v57, %v13532_v29 }
 0x37b   : > { %v6909_v15 = vsel %vm3772_vm6, %v17144_v52, %v6908_v58  ;;  %v4596_v3 = vsel %vm17146_vm1, %v4555_v16, 0.0  ;;  %v4597_v6 = vsel %vm17148_vm4, %v4556_v14, 0.0  ;;  %v14143_v51 = vmul.f32 %v13505_v37, %v13532_v29 }
 0x37c   : > { %v7026_v45 = vadd.f32 %v6909_v15, %v6768_v44  ;;  %v7027_v12 = vadd.f32 %v6911_v46, %v6769_v19  ;;  %v9075_v27 = vpack.c.bf16 %v4597_v6, %v4596_v3  ;;  %v5270_v63 = vmul.f32 %v13503_v57, %v13543_v28 }
 0x37d   : > { %v14149_v54 = vmul.f32 %v13505_v37, %v13543_v28  ;;  %v5106_v16 = vrot.slane %v5012_v31, 1  ;;  %v5108_v8 = vrot.slane %v14143_v51, 1  ;;  %v5532_v48 = vmul.f32 %v13524_v2, %v13578_v36 }
 0x37e   : > { %v7075_v44 = vadd.f32 %v13717_v32, %v7026_v45  ;;  %v7076_v29 = vadd.f32 %v13717_v32, %v7027_v12  ;;  %v14156_v58 = vunpack.c.l.bf16 %v9075_v27  ;;  %v14158_v14 = vunpack.c.h.bf16 %v9075_v27 }
 0x37f   : > { %v5364_v19 = vrot.slane %v5270_v63, 2  ;;  %v17149_v52 = vrot.slane %v14003_v20, 1  ;;  %v5109_v15 = vsel %vm1959_vm12, %v5106_v16, %v5108_v8  ;;  %v5366_v46 = vrot.slane %v14149_v54, 2 }
 0x380   : > { %v7117_v57 = vmax.f32 %v7075_v44, 0.0  ;;  %v7118_v35 = vmax.f32 %v7076_v29, 0.0  ;;  %v5221_v45 = vadd.f32 %v5109_v15, %v4921_v5  ;;  %v17150_v9 = vrot.slane %v14012_v13, 2  ;;  %v14190_v15 = vpop.f32.mrb[56].mxu1 }
 0x381   : > { %v5107_v28 = vsel %vm1959_vm12, %v17149_v52, %v5106_v16  ;;  %v5367_v31 = vsel %vm2218_vm13, %v5364_v19, %v5366_v46  ;;  %v14175_v20 = vmul.f32 %v13526_v0, %v13578_v36  ;;  %v5626_v12 = vrot.slane %v5532_v48, 2 }
 0x382   : > { %v5220_v3 = vadd.f32 %v5107_v28, %v4920_v7  ;;  %v5365_v6 = vsel %vm2218_vm13, %v17150_v9, %v5364_v19  ;;  %v5787_v27 = vmul.f32 %v13524_v2, %v13596_v22  ;;  %v7155_v63 = vpack.c.bf16 %v7118_v35, %v7117_v57  ;;  %v9584_v9 = vpop.f32.mrb[57].mxu1 }
 0x383   : > { %v5479_v7 = vadd.f32 %v5367_v31, %v5221_v45  ;;  %v14181_v13 = vmul.f32 %v13526_v0, %v13596_v22  ;;  %v17151_v5 = vrot.slane %v14037_v39, 2  ;;  %v5628_v29 = vrot.slane %v14175_v20, 2  ;;  %v14358_v20 = vld [vmem:[%s16614_s9 + $0x5] ss:$0 sm:$0xff] }
 0x384   : > { %v5478_v44 = vadd.f32 %v5365_v6, %v5220_v3  ;;  %v5878_v19 = vrot.slane %v5787_v27, 3  ;;  %v6041_v36 = vmul.f32 %v13524_v2, %v13623_v56  ;;  %v7231_v48 = vshrl.u32 %v7155_v63, 16 }
 0x385   : > { %v5627_v16 = vsel %vm2218_vm13, %v17151_v5, %v5626_v12  ;;  %v7234_v52 = vshll.u32 %v7155_v63, 16  ;;  %v5880_v57 = vrot.slane %v14181_v13, 3  ;;  %v5629_v22 = vsel %vm2218_vm13, %v5626_v12, %v5628_v29 }
 0x386   : > { %v5740_v28 = vadd.f32 %v5627_v16, %v5478_v44  ;;  %v17152_v39 = vrot.slane %v14044_v30, 3  ;;  %v14200_v3 = vmul.f32 %v13526_v0, %v13623_v56  ;;  %v6134_v45 = vrot.slane %v6041_v36, 4  ;;  %v14205_v44 = vpop.f32.mrb[58].mxu1 }
 0x387   : > { %v7233_v6 = vrot.slane %v7231_v48, 2  ;;  %v7236_v31 = vrot.slane %v7234_v52, 3  ;;  %v5741_v27 = vadd.f32 %v5629_v22, %v5479_v7  ;;  %v5881_v63 = vsel %vm2735_vm5, %v5878_v19, %v5880_v57 }
 0x388   : > { %v5879_v35 = vsel %vm2735_vm5, %v17152_v39, %v5878_v19  ;;  %v17153_v30 = vrot.slane %v14057_v25, 4  ;;  %v6136_v16 = vrot.slane %v14200_v3, 4  ;;  %v6303_v36 = vmul.f32 %v13534_v53, %v13641_v24  ;;  %v9585_v39 = vpop.f32.mrb[59].mxu1 }
 0x389   : > { %v5992_v12 = vadd.f32 %v5879_v35, %v5740_v28  ;;  %v14213_v48 = vor.u32 %v7236_v31, %v7233_v6  ;;  %v5993_v7 = vadd.f32 %v5881_v63, %v5741_v27  ;;  %v14217_v52 = vmul.f32 %v13536_v50, %v13641_v24 }
 0x38a   : > { %v6135_v5 = vsel %vm2992_vm7, %v17153_v30, %v6134_v45  ;;  %v6561_v19 = vmul.f32 %v13534_v53, %v13666_v10  ;;  %v6137_v25 = vsel %vm2992_vm7, %v6134_v45, %v6136_v16  ;;  %v6396_v22 = vrot.slane %v6303_v36, 4 }
 0x38b   : > { %v6250_v28 = vadd.f32 %v6135_v5, %v5992_v12  ;;  %v14226_v35 = vmul.f32 %v13536_v50, %v13666_v10  ;;  %v7238_v9 = vsel %vm4075_vm8, %v14068_v49, %v14213_v48  ;;  %v6251_v6 = vadd.f32 %v6137_v25, %v5993_v7 }
 0x38c   : > { %v6398_v24 = vrot.slane %v14217_v52, 4  ;;  %v6654_v31 = vrot.slane %v6561_v19, 5  ;;  %9639 = vmatmul.mubr.bf16.gmra.mrb[96].mxu0 %v7238_v9  ;;  %v6397_v27 = vsel %vm2992_vm7, %v6394_v42, %v6396_v22  ;;  %v6819_v63 = vmul.f32 %v13534_v53, %v13686_v47 }
 0x38d   : > { %v6656_v45 = vrot.slane %v14226_v35, 5  ;;  %v14240_v12 = vmul.f32 %v13536_v50, %v13686_v47  ;;  %9642 = vmatprep.mubr.msk.bf16.mxu0 %vm9989_vm0, %v16923_v23  ;;  %v6512_v30 = vadd.f32 %v6397_v27, %v6250_v28  ;;  %v4464_v42 = vadd.f32 %v14109_v40, %v13946_v26 }
 0x38e   : > { %v6399_v49 = vsel %vm2992_vm7, %v6396_v22, %v6398_v24  ;;  %v6655_v61 = vsel %vm3513_vm11, %v6652_v41, %v6654_v31  ;;  %v6912_v39 = vrot.slane %v6819_v63, 6  ;;  %v4467_v28 = vadd.f32 %v14109_v40, %v13962_v43 }
 0x38f   : > { %v6513_v5 = vadd.f32 %v6399_v49, %v6251_v6  ;;  %v6657_v36 = vsel %vm3513_vm11, %v6654_v31, %v6656_v45  ;;  %v16862_v7 = vrot.slane %v14240_v12, 6  ;;  %v6770_v19 = vadd.f32 %v6655_v61, %v6512_v30  ;;  %v14289_v49 = vld [vmem:[%s16614_s9 + $0x2] ss:$0 sm:$0xff] }
 0x390   : > { %v4557_v25 = vmax.f32 %v4464_v42, 0.0  ;;  %v4922_v26 = vmul.f32 %v14261_v59, %v13505_v37  ;;  %v6913_v22 = vsel %vm3772_vm6, %v6910_v1, %v6912_v39  ;;  %v4923_v43 = vmul.f32 %v14261_v59, %v13524_v2  ;;  %v14278_v37 = vld [vmem:[%s16614_s9 + $0x1] ss:$0 sm:$0xff]  ;;  %v17155_v42 = vld [vmem:[#allocation35_spill] sm:$0xff] }
 0x391   : > { %v6771_v41 = vadd.f32 %v6657_v36, %v6513_v5  ;;  %v6915_v9 = vsel %vm3772_vm6, %v6912_v39, %v16862_v7  ;;  %v7028_v6 = vadd.f32 %v6913_v22, %v6770_v19  ;;  %vm17154_vm10 = vcmp.eq.s32.totalorder %v11311_v60, 1  ;;  %v14303_v39 = vld [vmem:[%s16614_s9 + $0x3] ss:$0 sm:$0xff] }
 0x392   : > { %v4598_v31 = vsel %vm17154_vm10, %v4557_v25, 0.0  ;;  %v4558_v27 = vmax.f32 %v4467_v28, 0.0  ;;  %v5014_v18 = vmul.f32 %v14278_v37, %v13524_v2  ;;  %v14284_v63 = vmul.f32 %v14278_v37, %v13526_v0 }
 0x393   : > { %v7029_v1 = vadd.f32 %v6915_v9, %v6771_v41  ;;  %v5272_v60 = vmul.f32 %v14289_v49, %v13524_v2  ;;  %v14295_v30 = vmul.f32 %v14289_v49, %v13526_v0  ;;  %v7077_v61 = vadd.f32 %v13717_v32, %v7028_v6 }
 0x394   : > { %vm17156_vm2 = vcmp.eq.s32.totalorder %v17155_v42, 1  ;;  %v5110_v36 = vrot.slane %v5014_v18, 1  ;;  %v5534_v19 = vmul.f32 %v14303_v39, %v13534_v53  ;;  %v16864_v28 = vrot.slane %v14284_v63, 1 }
 0x395   : > { %v4599_v5 = vsel %vm17156_vm2, %v4558_v27, 0.0  ;;  %v7078_v2 = vadd.f32 %v13717_v32, %v7029_v1  ;;  %v5368_v41 = vrot.slane %v5272_v60, 2  ;;  %v7119_v22 = vmax.f32 %v7077_v61, 0.0 }
 0x396   : > { %v9080_v25 = vpack.c.bf16 %v4599_v5, %v4598_v31  ;;  %v5111_v9 = vsel %vm1959_vm12, %v5108_v8, %v5110_v36  ;;  %v16863_v6 = vrot.slane %v14295_v30, 2  ;;  %v14315_v27 = vmul.f32 %v14303_v39, %v13536_v50 }
 0x397   : > { %v7120_v18 = vmax.f32 %v7078_v2, 0.0  ;;  %v5113_v31 = vsel %vm1959_vm12, %v5110_v36, %v16864_v28  ;;  %v5222_v1 = vadd.f32 %v5111_v9, %v4922_v26  ;;  %v5369_v51 = vsel %vm2218_vm13, %v5366_v46, %v5368_v41 }
 0x398   : > { %v14317_v42 = vunpack.c.l.bf16 %v9080_v25  ;;  %v14319_v7 = vunpack.c.h.bf16 %v9080_v25  ;;  %v5223_v60 = vadd.f32 %v5113_v31, %v4923_v43  ;;  %v5371_v8 = vsel %vm2218_vm13, %v5368_v41, %v16863_v6  ;;  %v14334_v25 = vld [vmem:[%s16614_s9 + $0x4] ss:$0 sm:$0xff] }
 0x399   : > { %v7156_v61 = vpack.c.bf16 %v7120_v18, %v7119_v22  ;;  %v5630_v5 = vrot.slane %v5534_v19, 2  ;;  %v5632_v2 = vrot.slane %v14315_v27, 2  ;;  %v5789_v26 = vmul.f32 %v14334_v25, %v13534_v53  ;;  %v14344_v19 = vpop.f32.mrb[60].mxu1 }
 0x39a   : > { %v5480_v43 = vadd.f32 %v5369_v51, %v5222_v1  ;;  %v5481_v54 = vadd.f32 %v5371_v8, %v5223_v60  ;;  %v14340_v46 = vmul.f32 %v14334_v25, %v13536_v50  ;;  %v6043_v36 = vmul.f32 %v13534_v53, %v13623_v56  ;;  %v9588_v31 = vpop.f32.mrb[61].mxu1 }
 0x39b   : > { %v7240_v41 = vshrl.u32 %v7156_v61, 16  ;;  %v7243_v22 = vshll.u32 %v7156_v61, 16  ;;  %v5631_v9 = vsel %vm2218_vm13, %v5628_v29, %v5630_v5  ;;  %v5633_v18 = vsel %vm2218_vm13, %v5630_v5, %v5632_v2  ;;  %v14353_v6 = vpop.f32.mrb[62].mxu1 }
 0x39c   : > { %v5742_v1 = vadd.f32 %v5631_v9, %v5480_v43  ;;  %v5743_v60 = vadd.f32 %v5633_v18, %v5481_v54  ;;  %v5882_v51 = vrot.slane %v5789_v26, 3  ;;  %v16865_v8 = vrot.slane %v14340_v46, 3  ;;  %v9589_v5 = vpop.f32.mrb[63].mxu1  ;;  %v14373_v54 = vld [vmem:[%s16614_s9 + $0x6] ss:$0 sm:$0xff] }
 0x39d   : > { %v7242_v56 = vrot.slane %v7240_v41, 2  ;;  %v7245_v28 = vrot.slane %v7243_v22, 3  ;;  %v14362_v29 = vmul.f32 %v14358_v20, %v13536_v50  ;;  %v6138_v61 = vrot.slane %v6043_v36, 4 }
 0x39e   : > { %v5883_v26 = vsel %vm2735_vm5, %v5880_v57, %v5882_v51  ;;  %v5885_v43 = vsel %vm2735_vm5, %v5882_v51, %v16865_v8  ;;  %v6305_v41 = vmul.f32 %v14373_v54, %v13545_v21  ;;  %v14379_v36 = vmul.f32 %v14373_v54, %v13547_v33 }
 0x39f   : > { %v14381_v22 = vor.u32 %v7245_v28, %v7242_v56  ;;  %v5994_v13 = vadd.f32 %v5883_v26, %v5742_v1  ;;  %v5995_v57 = vadd.f32 %v5885_v43, %v5743_v60  ;;  %v6139_v9 = vsel %vm2992_vm7, %v6136_v16, %v6138_v61 }
 0x3a0   : > { %v6140_v18 = vrot.slane %v14362_v29, 4  ;;  %v6400_v31 = vrot.slane %v6305_v41, 4  ;;  %v6402_v51 = vrot.slane %v14379_v36, 4  ;;  %v6563_v5 = vmul.f32 %v13545_v21, %v13666_v10 }
 0x3a1   : > { %v7247_v8 = vsel %vm4075_vm8, %v14213_v48, %v14381_v22  ;;  %v6252_v28 = vadd.f32 %v6139_v9, %v5994_v13  ;;  %v14395_v1 = vmul.f32 %v13547_v33, %v13666_v10  ;;  %v6821_v3 = vmul.f32 %v13545_v21, %v13686_v47 }
 0x3a2   : > { %9643 = vmatmul.mubr.bf16.gmra.mrb[100].mxu0 %v7247_v8  ;;  %v6141_v16 = vsel %vm2992_vm7, %v6138_v61, %v6140_v18  ;;  %v6401_v60 = vsel %vm2992_vm7, %v6398_v24, %v6400_v31  ;;  %v6403_v48 = vsel %vm2992_vm7, %v6400_v31, %v6402_v51  ;;  %v6658_v56 = vrot.slane %v6563_v5, 5 }
 0x3a3   : > { %9646 = vmatprep.mubr.msk.bf16.mxu0 %vm9989_vm0, %v16923_v23  ;;  %v6253_v10 = vadd.f32 %v6141_v16, %v5995_v57  ;;  %v6514_v26 = vadd.f32 %v6401_v60, %v6252_v28  ;;  %v6660_v8 = vrot.slane %v14395_v1, 5  ;;  %v14413_v43 = vmul.f32 %v13547_v33, %v13686_v47  ;;  %v17158_v60 = vld [vmem:[#allocation37_spill] sm:$0xff] }
 0x3a4   : > { %v6659_v52 = vsel %vm3513_vm11, %v6656_v45, %v6658_v56  ;;  %v6916_v24 = vrot.slane %v6821_v3, 6  ;;  %v4472_v61 = vadd.f32 %v14109_v40, %v14066_v17  ;;  %v4475_v41 = vadd.f32 %v14109_v40, %v14088_v34 }
 0x3a5   : > { %v6515_v13 = vadd.f32 %v6403_v48, %v6253_v10  ;;  %v6661_v57 = vsel %vm3513_vm11, %v6658_v56, %v6660_v8  ;;  %v6772_v9 = vadd.f32 %v6659_v52, %v6514_v26  ;;  %v6918_v47 = vrot.slane %v14413_v43, 6 }
 0x3a6   : > { %v17157_v31 = vrot.slane %v14240_v12, 6  ;;  %v4559_v45 = vmax.f32 %v4472_v61, 0.0  ;;  %v4560_v5 = vmax.f32 %v4475_v41, 0.0  ;;  %v4924_v17 = vmul.f32 %v14261_v59, %v13526_v0  ;;  %v17160_v12 = vld [vmem:[#allocation38_spill] sm:$0xff] }
 0x3a7   : > { %v6773_v28 = vadd.f32 %v6661_v57, %v6515_v13  ;;  %v6919_v34 = vsel %vm3772_vm6, %v6916_v24, %v6918_v47  ;;  %v4925_v16 = vmul.f32 %v14261_v59, %v13534_v53  ;;  %vm17159_vm14 = vcmp.eq.s32.totalorder %v17158_v60, 1 }
 0x3a8   : > { %v6917_v35 = vsel %vm3772_vm6, %v17157_v31, %v6916_v24  ;;  %v4600_v48 = vsel %vm17159_vm14, %v4559_v45, 0.0  ;;  %vm17161_vm15 = vcmp.eq.s32.totalorder %v17160_v12, 1  ;;  %v5016_v10 = vmul.f32 %v14278_v37, %v13534_v53 }
 0x3a9   : > { %v7030_v3 = vadd.f32 %v6917_v35, %v6772_v9  ;;  %v4601_v56 = vsel %vm17161_vm15, %v4560_v5, 0.0  ;;  %v14444_v0 = vmul.f32 %v14278_v37, %v13536_v50  ;;  %v7031_v26 = vadd.f32 %v6919_v34, %v6773_v28 }
 0x3aa   : > { %v9085_v24 = vpack.c.bf16 %v4601_v56, %v4600_v48  ;;  %v5274_v61 = vmul.f32 %v14289_v49, %v13534_v53  ;;  %v5114_v41 = vrot.slane %v5016_v10, 1  ;;  %v14452_v57 = vmul.f32 %v14289_v49, %v13536_v50  ;;  %v14472_v10 = vpop.f32.mrb[64].mxu1 }
 0x3ab   : > { %v7079_v52 = vadd.f32 %v13717_v32, %v7030_v3  ;;  %v5116_v13 = vrot.slane %v14444_v0, 1  ;;  %v5536_v9 = vmul.f32 %v14303_v39, %v13545_v21  ;;  %v7080_v31 = vadd.f32 %v13717_v32, %v7031_v26 }
 0x3ac   : > { %v14457_v45 = vunpack.c.l.bf16 %v9085_v24  ;;  %v14459_v5 = vunpack.c.h.bf16 %v9085_v24  ;;  %v17162_v28 = vrot.slane %v14284_v63, 1  ;;  %v5372_v3 = vrot.slane %v5274_v61, 2 }
 0x3ad   : > { %v7121_v35 = vmax.f32 %v7079_v52, 0.0  ;;  %v5117_v34 = vsel %vm1959_vm12, %v5114_v41, %v5116_v13  ;;  %v16866_v60 = vrot.slane %v14452_v57, 2  ;;  %v7122_v48 = vmax.f32 %v7080_v31, 0.0 }
 0x3ae   : > { %v5115_v53 = vsel %vm1959_vm12, %v17162_v28, %v5114_v41  ;;  %v5225_v56 = vadd.f32 %v5117_v34, %v4925_v16  ;;  %v14470_v32 = vmul.f32 %v14303_v39, %v13547_v33  ;;  %v17163_v63 = vrot.slane %v14295_v30, 2 }
 0x3af   : > { %v5224_v12 = vadd.f32 %v5115_v53, %v4924_v17  ;;  %v5375_v52 = vsel %vm2218_vm13, %v5372_v3, %v16866_v60  ;;  %v5634_v24 = vrot.slane %v5536_v9, 2  ;;  %v5791_v61 = vmul.f32 %v14334_v25, %v13545_v21  ;;  %v9592_v17 = vpop.f32.mrb[65].mxu1 }
 0x3b0   : > { %v5373_v26 = vsel %vm2218_vm13, %v17163_v63, %v5372_v3  ;;  %v7157_v16 = vpack.c.bf16 %v7122_v48, %v7121_v35  ;;  %v5483_v31 = vadd.f32 %v5375_v52, %v5225_v56  ;;  %v5636_v28 = vrot.slane %v14470_v32, 2  ;;  %v14483_v53 = vpop.f32.mrb[66].mxu1 }
 0x3b1   : > { %v5482_v41 = vadd.f32 %v5373_v26, %v5224_v12  ;;  %v5635_v30 = vsel %vm2218_vm13, %v5632_v2, %v5634_v24  ;;  %v14490_v34 = vmul.f32 %v14334_v25, %v13547_v33  ;;  %v5886_v9 = vrot.slane %v5791_v61, 3  ;;  %v9593_v63 = vpop.f32.mrb[67].mxu1 }
 0x3b2   : > { %v6045_v3 = vmul.f32 %v14358_v20, %v13545_v21  ;;  %v7249_v35 = vshrl.u32 %v7157_v16, 16  ;;  %v7252_v48 = vshll.u32 %v7157_v16, 16  ;;  %v5637_v12 = vsel %vm2218_vm13, %v5634_v24, %v5636_v28 }
 0x3b3   : > { %v5744_v56 = vadd.f32 %v5635_v30, %v5482_v41  ;;  %v5745_v26 = vadd.f32 %v5637_v12, %v5483_v31  ;;  %v17164_v27 = vrot.slane %v14340_v46, 3  ;;  %v5888_v52 = vrot.slane %v14490_v34, 3 }
 0x3b4   : > { %v14503_v61 = vmul.f32 %v14358_v20, %v13547_v33  ;;  %v7251_v17 = vrot.slane %v7249_v35, 2  ;;  %v7254_v63 = vrot.slane %v7252_v48, 3  ;;  %v6142_v16 = vrot.slane %v6045_v3, 4 }
 0x3b5   : > { %v5887_v2 = vsel %vm2735_vm5, %v17164_v27, %v5886_v9  ;;  %v5889_v24 = vsel %vm2735_vm5, %v5886_v9, %v5888_v52  ;;  %v6307_v46 = vmul.f32 %v14373_v54, %v13754_v62  ;;  %v14513_v31 = vmul.f32 %v14373_v54, %v13756_v55  ;;  %v14523_v9 = vld [vmem:[%s16614_s9 + $0x7] ss:$0 sm:$0xff] }
 0x3b6   : > { %v5996_v60 = vadd.f32 %v5887_v2, %v5744_v56  ;;  %v6144_v41 = vrot.slane %v14503_v61, 4  ;;  %v14515_v30 = vor.u32 %v7254_v63, %v7251_v17  ;;  %v5997_v12 = vadd.f32 %v5889_v24, %v5745_v26 }
 0x3b7   : > { %v6143_v3 = vsel %vm2992_vm7, %v6140_v18, %v6142_v16  ;;  %v6565_v35 = vmul.f32 %v14523_v9, %v13754_v62  ;;  %v6404_v27 = vrot.slane %v6307_v46, 4  ;;  %v16870_v26 = vrot.slane %v14513_v31, 4 }
 0x3b8   : > { %v6145_v48 = vsel %vm2992_vm7, %v6142_v16, %v6144_v41  ;;  %v6254_v56 = vadd.f32 %v6143_v3, %v5996_v60  ;;  %v7256_v29 = vsel %vm4075_vm8, %v14381_v22, %v14515_v30  ;;  %v14536_v2 = vmul.f32 %v14523_v9, %v13756_v55  ;;  %v14547_v16 = vld [vmem:[%s16614_s9 + $0x8] ss:$0 sm:$0xff] }
 0x3b9   : > { %v6255_v18 = vadd.f32 %v6145_v48, %v5997_v12  ;;  %v6662_v17 = vrot.slane %v6565_v35, 5  ;;  %9647 = vmatmul.mubr.bf16.gmra.mrb[104].mxu0 %v7256_v29  ;;  %v6405_v63 = vsel %vm2992_vm7, %v6402_v51, %v6404_v27  ;;  %v6407_v60 = vsel %vm2992_vm7, %v6404_v27, %v16870_v26 }
 0x3ba   : > { %v6823_v22 = vmul.f32 %v14547_v16, %v13754_v62  ;;  %v14553_v24 = vmul.f32 %v14547_v16, %v13756_v55  ;;  %9650 = vmatprep.mubr.msk.bf16.mxu0 %vm9989_vm0, %v16923_v23  ;;  %v6516_v36 = vadd.f32 %v6405_v63, %v6254_v56  ;;  %v16868_v12 = vrot.slane %v14536_v2, 5 }
 0x3bb   : > { %v6517_v51 = vadd.f32 %v6407_v60, %v6255_v18  ;;  %v6663_v46 = vsel %vm3513_vm11, %v6660_v8, %v6662_v17  ;;  %v4480_v48 = vadd.f32 %v14109_v40, %v14190_v15  ;;  %v4483_v27 = vadd.f32 %v14109_v40, %v14205_v44 }
 0x3bc   : > { %v6920_v3 = vrot.slane %v6823_v22, 6  ;;  %v16867_v35 = vrot.slane %v14553_v24, 6  ;;  %v6665_v56 = vsel %vm3513_vm11, %v6662_v17, %v16868_v12  ;;  %v6774_v29 = vadd.f32 %v6663_v46, %v6516_v36 }
 0x3bd   : > { %v4926_v1 = vmul.f32 %v14261_v59, %v13536_v50  ;;  %v4927_v8 = vmul.f32 %v14261_v59, %v13545_v21  ;;  %v6775_v18 = vadd.f32 %v6665_v56, %v6517_v51  ;;  %v4561_v44 = vmax.f32 %v4480_v48, 0.0  ;;  %v17165_v51 = vld [vmem:[#allocation39_spill] sm:$0xff] }
 0x3be   : > { %v6921_v63 = vsel %vm3772_vm6, %v6918_v47, %v6920_v3  ;;  %v6923_v15 = vsel %vm3772_vm6, %v6920_v3, %v16867_v35  ;;  %v4562_v22 = vmax.f32 %v4483_v27, 0.0  ;;  %v5018_v17 = vmul.f32 %v14278_v37, %v13545_v21  ;;  %v14596_v3 = vld [vmem:[%s16615_s10] ss:$0 sm:$0xff] }
 0x3bf   : > { %v7032_v60 = vadd.f32 %v6921_v63, %v6774_v29  ;;  %v14583_v50 = vmul.f32 %v14278_v37, %v13547_v33  ;;  %v7033_v36 = vadd.f32 %v6923_v15, %v6775_v18  ;;  %vm17166_vm1 = vcmp.eq.s32.totalorder %v17165_v51, 1  ;;  %v17167_v27 = vld [vmem:[#allocation40_spill] sm:$0xff]  ;;  %v14604_v51 = vpop.f32.mrb[68].mxu1 }
 0x3c0   : > { %v4602_v43 = vsel %vm17166_vm1, %v4561_v44, 0.0  ;;  %v5276_v47 = vmul.f32 %v14289_v49, %v13545_v21  ;;  %v14591_v46 = vmul.f32 %v14289_v49, %v13547_v33  ;;  %vm17168_vm4 = vcmp.eq.s32.totalorder %v17167_v27, 1 }
 0x3c1   : > { %v7081_v48 = vadd.f32 %v14596_v3, %v7032_v60  ;;  %v4603_v56 = vsel %vm17168_vm4, %v4562_v22, 0.0  ;;  %v5118_v29 = vrot.slane %v5018_v17, 1  ;;  %v16869_v18 = vrot.slane %v14583_v50, 1  ;;  %v9596_v17 = vpop.f32.mrb[69].mxu1 }
 0x3c2   : > { %v7082_v63 = vadd.f32 %v14596_v3, %v7033_v36  ;;  %v9090_v21 = vpack.c.bf16 %v4603_v56, %v4602_v43  ;;  %v5376_v15 = vrot.slane %v5276_v47, 2  ;;  %v16871_v44 = vrot.slane %v14591_v46, 2  ;;  %v14618_v56 = vpop.f32.mrb[70].mxu1 }
 0x3c3   : > { %v7123_v35 = vmax.f32 %v7081_v48, 0.0  ;;  %v5119_v12 = vsel %vm1959_vm12, %v5116_v13, %v5118_v29  ;;  %v5121_v60 = vsel %vm1959_vm12, %v5118_v29, %v16869_v18  ;;  %v5538_v22 = vmul.f32 %v14303_v39, %v13754_v62 }
 0x3c4   : > { %v7124_v36 = vmax.f32 %v7082_v63, 0.0  ;;  %v14614_v43 = vunpack.c.l.bf16 %v9090_v21  ;;  %v14616_v47 = vunpack.c.h.bf16 %v9090_v21  ;;  %v5226_v27 = vadd.f32 %v5119_v12, %v4926_v1  ;;  %v9597_v63 = vpop.f32.mrb[71].mxu1 }
 0x3c5   : > { %v5227_v48 = vadd.f32 %v5121_v60, %v4927_v8  ;;  %v17169_v0 = vrot.slane %v14452_v57, 2  ;;  %v5379_v29 = vsel %vm2218_vm13, %v5376_v15, %v16871_v44  ;;  %v14628_v17 = vmul.f32 %v14303_v39, %v13756_v55 }
 0x3c6   : > { %v7158_v18 = vpack.c.bf16 %v7124_v36, %v7123_v35  ;;  %v5638_v26 = vrot.slane %v5538_v22, 2  ;;  %v5793_v12 = vmul.f32 %v14334_v25, %v13754_v62  ;;  %v14635_v8 = vmul.f32 %v14334_v25, %v13756_v55 }
 0x3c7   : > { %v5377_v13 = vsel %vm2218_vm13, %v17169_v0, %v5376_v15  ;;  %v5485_v1 = vadd.f32 %v5379_v29, %v5227_v48  ;;  %v5640_v57 = vrot.slane %v14628_v17, 2  ;;  %v6047_v15 = vmul.f32 %v14358_v20, %v13754_v62 }
 0x3c8   : > { %v5484_v21 = vadd.f32 %v5377_v13, %v5226_v27  ;;  %v7258_v60 = vshrl.u32 %v7158_v18, 16  ;;  %v7261_v0 = vshll.u32 %v7158_v18, 16  ;;  %v5639_v35 = vsel %vm2218_vm13, %v5636_v28, %v5638_v26 }
 0x3c9   : > { %v5890_v22 = vrot.slane %v5793_v12, 3  ;;  %v5641_v36 = vsel %vm2218_vm13, %v5638_v26, %v5640_v57  ;;  %v16873_v48 = vrot.slane %v14635_v8, 3  ;;  %v14648_v13 = vmul.f32 %v14358_v20, %v13756_v55 }
 0x3ca   : > { %v5746_v27 = vadd.f32 %v5639_v35, %v5484_v21  ;;  %v7260_v29 = vrot.slane %v7258_v60, 2  ;;  %v7263_v63 = vrot.slane %v7261_v0, 3  ;;  %v5747_v44 = vadd.f32 %v5641_v36, %v5485_v1 }
 0x3cb   : > { %v5891_v32 = vsel %vm2735_vm5, %v5888_v52, %v5890_v22  ;;  %v5893_v28 = vsel %vm2735_vm5, %v5890_v22, %v16873_v48  ;;  %v6146_v26 = vrot.slane %v6047_v15, 4  ;;  %v16872_v21 = vrot.slane %v14648_v13, 4 }
 0x3cc   : > { %v5998_v18 = vadd.f32 %v5891_v32, %v5746_v27  ;;  %v14657_v12 = vor.u32 %v7263_v63, %v7260_v29  ;;  %v5999_v35 = vadd.f32 %v5893_v28, %v5747_v44  ;;  %v6309_v60 = vmul.f32 %v14373_v54, %v13889_v11 }
 0x3cd   : > { %v14663_v1 = vmul.f32 %v14373_v54, %v13891_v4  ;;  %v6147_v34 = vsel %vm2992_vm7, %v6144_v41, %v6146_v26  ;;  %v6149_v52 = vsel %vm2992_vm7, %v6146_v26, %v16872_v21  ;;  %v6567_v15 = vmul.f32 %v14523_v9, %v13889_v11 }
 0x3ce   : > { %v14675_v44 = vmul.f32 %v14523_v9, %v13891_v4  ;;  %v7265_v0 = vsel %vm4075_vm8, %v14515_v30, %v14657_v12  ;;  %v6256_v22 = vadd.f32 %v6147_v34, %v5998_v18  ;;  %v6257_v36 = vadd.f32 %v6149_v52, %v5999_v35 }
 0x3cf   : > { %v6408_v61 = vrot.slane %v6309_v60, 4  ;;  %9651 = vmatmul.mubr.bf16.gmra.mrb[108].mxu0 %v7265_v0  ;;  %v6410_v41 = vrot.slane %v14663_v1, 4  ;;  %v6666_v27 = vrot.slane %v6567_v15, 5  ;;  %v6825_v63 = vmul.f32 %v14547_v16, %v13889_v11 }
 0x3d0   : > { %v16875_v29 = vrot.slane %v14675_v44, 5  ;;  %9654 = vmatprep.mubr.msk.bf16.mxu0 %vm9989_vm0, %v16923_v23  ;;  %v17170_v32 = vrot.slane %v14513_v31, 4  ;;  %v14691_v30 = vmul.f32 %v14547_v16, %v13891_v4  ;;  %v4488_v18 = vadd.f32 %v14109_v40, %v14344_v19 }
 0x3d1   : > { %v4491_v26 = vadd.f32 %v14109_v40, %v14353_v6  ;;  %v6411_v35 = vsel %vm2992_vm7, %v6408_v61, %v6410_v41  ;;  %v17171_v34 = vrot.slane %v14536_v2, 5  ;;  %v6924_v0 = vrot.slane %v6825_v63, 6 }
 0x3d2   : > { %v6409_v28 = vsel %vm2992_vm7, %v17170_v32, %v6408_v61  ;;  %v6669_v52 = vsel %vm3513_vm11, %v6666_v27, %v16875_v29  ;;  %v6519_v15 = vadd.f32 %v6411_v35, %v6257_v36  ;;  %v16874_v19 = vrot.slane %v14691_v30, 6 }
 0x3d3   : > { %v6518_v60 = vadd.f32 %v6409_v28, %v6256_v22  ;;  %v6667_v31 = vsel %vm3513_vm11, %v17171_v34, %v6666_v27  ;;  %v4563_v32 = vmax.f32 %v4488_v18, 0.0  ;;  %v4564_v6 = vmax.f32 %v4491_v26, 0.0  ;;  %v17173_v27 = vld [vmem:[#allocation41_spill] sm:$0xff]  ;;  %v17175_v26 = vld [vmem:[#allocation42_spill] sm:$0xff] }
 0x3d4   : > { %v4928_v48 = vmul.f32 %v14261_v59, %v13547_v33  ;;  %v4929_v22 = vmul.f32 %v14261_v59, %v13754_v62  ;;  %v6777_v2 = vadd.f32 %v6669_v52, %v6519_v15  ;;  %v17172_v61 = vrot.slane %v14553_v24, 6 }
 0x3d5   : > { %v6776_v21 = vadd.f32 %v6667_v31, %v6518_v60  ;;  %v6927_v36 = vsel %vm3772_vm6, %v6924_v0, %v16874_v19  ;;  %vm17174_vm10 = vcmp.eq.s32.totalorder %v17173_v27, 1  ;;  %vm17176_vm2 = vcmp.eq.s32.totalorder %v17175_v26, 1 }
 0x3d6   : > { %v6925_v28 = vsel %vm3772_vm6, %v17172_v61, %v6924_v0  ;;  %v4604_v63 = vsel %vm17174_vm10, %v4563_v32, 0.0  ;;  %v4605_v35 = vsel %vm17176_vm2, %v4564_v6, 0.0  ;;  %v5020_v33 = vmul.f32 %v14278_v37, %v13754_v62 }
 0x3d7   : > { %v7034_v18 = vadd.f32 %v6925_v28, %v6776_v21  ;;  %v14725_v60 = vmul.f32 %v14278_v37, %v13756_v55  ;;  %v7035_v24 = vadd.f32 %v6927_v36, %v6777_v2  ;;  %v9095_v34 = vpack.c.bf16 %v4605_v35, %v4604_v63  ;;  %v14733_v21 = vpop.f32.mrb[72].mxu1 }
 0x3d8   : > { %v5278_v31 = vmul.f32 %v14289_v49, %v13754_v62  ;;  %v14731_v52 = vmul.f32 %v14289_v49, %v13756_v55  ;;  %v5122_v0 = vrot.slane %v5020_v33, 1  ;;  %v5540_v6 = vmul.f32 %v14303_v39, %v13889_v11  ;;  %v9600_v61 = vpop.f32.mrb[73].mxu1 }
 0x3d9   : > { %v7083_v15 = vadd.f32 %v14596_v3, %v7034_v18  ;;  %v5124_v32 = vrot.slane %v14725_v60, 1  ;;  %v7084_v2 = vadd.f32 %v14596_v3, %v7035_v24  ;;  %v14740_v28 = vunpack.c.l.bf16 %v9095_v34  ;;  %v14744_v27 = vpop.f32.mrb[74].mxu1 }
 0x3da   : > { %v14742_v62 = vunpack.c.h.bf16 %v9095_v34  ;;  %v5380_v36 = vrot.slane %v5278_v31, 2  ;;  %v17177_v26 = vrot.slane %v14583_v50, 1  ;;  %v16876_v33 = vrot.slane %v14731_v52, 2  ;;  %v9601_v61 = vpop.f32.mrb[75].mxu1 }
 0x3db   : > { %v7125_v63 = vmax.f32 %v7083_v15, 0.0  ;;  %v5125_v35 = vsel %vm1959_vm12, %v5122_v0, %v5124_v32  ;;  %v7126_v24 = vmax.f32 %v7084_v2, 0.0  ;;  %v17178_v34 = vrot.slane %v14591_v46, 2 }
 0x3dc   : > { %v5123_v18 = vsel %vm1959_vm12, %v17177_v26, %v5122_v0  ;;  %v5229_v29 = vadd.f32 %v5125_v35, %v4929_v22  ;;  %v5383_v50 = vsel %vm2218_vm13, %v5380_v36, %v16876_v33  ;;  %v14761_v15 = vmul.f32 %v14303_v39, %v13891_v4 }
 0x3dd   : > { %v5228_v19 = vadd.f32 %v5123_v18, %v4928_v48  ;;  %v5381_v31 = vsel %vm2218_vm13, %v17178_v34, %v5380_v36  ;;  %v5642_v26 = vrot.slane %v5540_v6, 2  ;;  %v5795_v0 = vmul.f32 %v14334_v25, %v13889_v11 }
 0x3de   : > { %v7159_v61 = vpack.c.bf16 %v7126_v24, %v7125_v63  ;;  %v5487_v48 = vadd.f32 %v5383_v50, %v5229_v29  ;;  %v14767_v46 = vmul.f32 %v14334_v25, %v13891_v4  ;;  %v16877_v36 = vrot.slane %v14761_v15, 2 }
 0x3df   : > { %v5486_v2 = vadd.f32 %v5381_v31, %v5228_v19  ;;  %v5643_v22 = vsel %vm2218_vm13, %v5640_v57, %v5642_v26  ;;  %v5894_v18 = vrot.slane %v5795_v0, 3  ;;  %v6049_v6 = vmul.f32 %v14358_v20, %v13889_v11 }
 0x3e0   : > { %v7267_v35 = vshrl.u32 %v7159_v61, 16  ;;  %v7270_v34 = vshll.u32 %v7159_v61, 16  ;;  %v16879_v19 = vrot.slane %v14767_v46, 3  ;;  %v5645_v29 = vsel %vm2218_vm13, %v5642_v26, %v16877_v36 }
 0x3e1   : > { %v5748_v33 = vadd.f32 %v5643_v22, %v5486_v2  ;;  %v17179_v63 = vrot.slane %v14635_v8, 3  ;;  %v14784_v57 = vmul.f32 %v14358_v20, %v13891_v4  ;;  %v6150_v24 = vrot.slane %v6049_v6, 4 }
 0x3e2   : > { %v7269_v31 = vrot.slane %v7267_v35, 2  ;;  %v7272_v50 = vrot.slane %v7270_v34, 3  ;;  %v5749_v0 = vadd.f32 %v5645_v29, %v5487_v48  ;;  %v5897_v61 = vsel %vm2735_vm5, %v5894_v18, %v16879_v19  ;;  %v17181_v35 = vld [vmem:[#allocation5_spill] sm:$0xff] }
 0x3e3   : > { %v5895_v17 = vsel %vm2735_vm5, %v17179_v63, %v5894_v18  ;;  %v17180_v22 = vrot.slane %v14648_v13, 4  ;;  %v16878_v8 = vrot.slane %v14784_v57, 4  ;;  %v6311_v63 = vmul.f32 %v14373_v54, %v14022_v38 }
 0x3e4   : > { %v6000_v2 = vadd.f32 %v5895_v17, %v5748_v33  ;;  %v14795_v36 = vor.u32 %v7272_v50, %v7269_v31  ;;  %v6001_v6 = vadd.f32 %v5897_v61, %v5749_v0  ;;  %v14799_v48 = vmul.f32 %v14373_v54, %v17181_v35 }
 0x3e5   : > { %v6151_v26 = vsel %vm2992_vm7, %v17180_v22, %v6150_v24  ;;  %v6569_v18 = vmul.f32 %v14523_v9, %v14022_v38  ;;  %v6153_v13 = vsel %vm2992_vm7, %v6150_v24, %v16878_v8  ;;  %v6412_v34 = vrot.slane %v6311_v63, 4  ;;  %v14838_v8 = vpop.f32.mrb[76].mxu1 }
 0x3e6   : > { %v6258_v33 = vadd.f32 %v6151_v26, %v6000_v2  ;;  %v14808_v29 = vmul.f32 %v14523_v9, %v17181_v35  ;;  %v7274_v17 = vsel %vm4075_vm8, %v14657_v12, %v14795_v36  ;;  %v6259_v31 = vadd.f32 %v6153_v13, %v6001_v6 }
 0x3e7   : > { %v16882_v50 = vrot.slane %v14799_v48, 4  ;;  %v6670_v0 = vrot.slane %v6569_v18, 5  ;;  %9655 = vmatmul.mubr.bf16.gmra.mrb[112].mxu0 %v7274_v17  ;;  %v6413_v61 = vsel %vm2992_vm7, %v6410_v41, %v6412_v34  ;;  %v6827_v2 = vmul.f32 %v14547_v16, %v14022_v38 }
 0x3e8   : > { %v16881_v24 = vrot.slane %v14808_v29, 5  ;;  %v14822_v22 = vmul.f32 %v14547_v16, %v17181_v35  ;;  %9658 = vmatprep.mubr.msk.bf16.mxu0 %vm9989_vm0, %v16923_v23  ;;  %v6520_v26 = vadd.f32 %v6413_v61, %v6258_v33  ;;  %v17182_v1 = vrot.slane %v14675_v44, 5  ;;  %v9604_v61 = vpop.f32.mrb[77].mxu1 }
 0x3e9   : > { %v6415_v12 = vsel %vm2992_vm7, %v6412_v34, %v16882_v50  ;;  %v4496_v63 = vadd.f32 %v14109_v40, %v14472_v10  ;;  %v6928_v13 = vrot.slane %v6827_v2, 6  ;;  %v4499_v44 = vadd.f32 %v14109_v40, %v14483_v53  ;;  %v17184_v40 = vld [vmem:[#allocation43_spill] sm:$0xff] }
 0x3ea   : > { %v6671_v41 = vsel %vm3513_vm11, %v17182_v1, %v6670_v0  ;;  %v6521_v6 = vadd.f32 %v6415_v12, %v6259_v31  ;;  %v6673_v18 = vsel %vm3513_vm11, %v6670_v0, %v16881_v24  ;;  %v16880_v17 = vrot.slane %v14822_v22, 6 }
 0x3eb   : > { %v6778_v19 = vadd.f32 %v6671_v41, %v6520_v26  ;;  %v4565_v34 = vmax.f32 %v4496_v63, 0.0  ;;  %v4930_v33 = vmul.f32 %v14261_v59, %v13756_v55  ;;  %v17183_v31 = vrot.slane %v14691_v30, 6  ;;  %v14852_v26 = vpop.f32.mrb[78].mxu1 }
 0x3ec   : > { %v6779_v10 = vadd.f32 %v6673_v18, %v6521_v6  ;;  %v6931_v0 = vsel %vm3772_vm6, %v6928_v13, %v16880_v17  ;;  %v4931_v2 = vmul.f32 %v14261_v59, %v13889_v11  ;;  %vm17185_vm14 = vcmp.eq.s32.totalorder %v17184_v40, 1  ;;  %v9605_v30 = vpop.f32.mrb[79].mxu1 }
 0x3ed   : > { %v6929_v12 = vsel %vm3772_vm6, %v17183_v31, %v6928_v13  ;;  %v4606_v53 = vsel %vm17185_vm14, %v4565_v34, 0.0  ;;  %v4566_v55 = vmax.f32 %v4499_v44, 0.0  ;;  %v5022_v41 = vmul.f32 %v14278_v37, %v13889_v11  ;;  %v17186_v34 = vld [vmem:[#allocation44_spill] sm:$0xff] }
 0x3ee   : > { %v7036_v1 = vadd.f32 %v6929_v12, %v6778_v19  ;;  %v7037_v63 = vadd.f32 %v6931_v0, %v6779_v10  ;;  %v14860_v6 = vmul.f32 %v14278_v37, %v13891_v4  ;;  %v5280_v18 = vmul.f32 %v14289_v49, %v13889_v11 }
 0x3ef   : > { %v14866_v13 = vmul.f32 %v14289_v49, %v13891_v4  ;;  %vm17187_vm15 = vcmp.eq.s32.totalorder %v17186_v34, 1  ;;  %v5126_v61 = vrot.slane %v5022_v41, 1  ;;  %v5542_v10 = vmul.f32 %v14303_v39, %v14022_v38 }
 0x3f0   : > { %v7085_v19 = vadd.f32 %v14596_v3, %v7036_v1  ;;  %v4607_v44 = vsel %vm17187_vm15, %v4566_v55, 0.0  ;;  %v7086_v31 = vadd.f32 %v14596_v3, %v7037_v63  ;;  %v16883_v0 = vrot.slane %v14860_v6, 1  ;;  %v14890_v63 = vpop.f32.mrb[80].mxu1 }
 0x3f1   : > { %v9100_v12 = vpack.c.bf16 %v4607_v44, %v4606_v53  ;;  %v5384_v40 = vrot.slane %v5280_v18, 2  ;;  %v5127_v30 = vsel %vm1959_vm12, %v5124_v32, %v5126_v61  ;;  %v5386_v1 = vrot.slane %v14866_v13, 2 }
 0x3f2   : > { %v7127_v11 = vmax.f32 %v7085_v19, 0.0  ;;  %v14881_v55 = vmul.f32 %v14303_v39, %v17181_v35  ;;  %v7128_v41 = vmax.f32 %v7086_v31, 0.0  ;;  %v5129_v53 = vsel %vm1959_vm12, %v5126_v61, %v16883_v0  ;;  %v9608_v31 = vpop.f32.mrb[81].mxu1 }
 0x3f3   : > { %v14883_v34 = vunpack.c.l.bf16 %v9100_v12  ;;  %v14885_v17 = vunpack.c.h.bf16 %v9100_v12  ;;  %v5230_v60 = vadd.f32 %v5127_v30, %v4930_v33  ;;  %v5231_v18 = vadd.f32 %v5129_v53, %v4931_v2  ;;  %v4530_v0 = vpop.f32.mrb[82].mxu1 }
 0x3f4   : > { %v17189_v32 = vrot.slane %v14731_v52, 2  ;;  %v5387_v44 = vsel %vm2218_vm13, %v5384_v40, %v5386_v1  ;;  %v7160_v24 = vpack.c.bf16 %v7128_v41, %v7127_v11  ;;  %v5646_v12 = vrot.slane %v5542_v10, 2  ;;  %v9609_v30 = vpop.f32.mrb[83].mxu1 }
 0x3f5   : > { %17188 = vst [vmem:[#allocation7_spill] sm:$0xff] %v14885_v17  ;;  %v5648_v50 = vrot.slane %v14881_v55, 2  ;;  %v5797_v61 = vmul.f32 %v14334_v25, %v14022_v38  ;;  %v5489_v33 = vadd.f32 %v5387_v44, %v5231_v18  ;;  %v14903_v52 = vmul.f32 %v14334_v25, %v17181_v35 }
 0x3f6   : > { %v5385_v19 = vsel %vm2218_vm13, %v17189_v32, %v5384_v40  ;;  %v6051_v2 = vmul.f32 %v14358_v20, %v14022_v38  ;;  %v7276_v40 = vshrl.u32 %v7160_v24, 16  ;;  %v7279_v53 = vshll.u32 %v7160_v24, 16 }
 0x3f7   : > { %v5488_v17 = vadd.f32 %v5385_v19, %v5230_v60  ;;  %v17190_v10 = vrot.slane %v14761_v15, 2  ;;  %v5649_v0 = vsel %vm2218_vm13, %v5646_v12, %v5648_v50  ;;  %v5898_v18 = vrot.slane %v5797_v61, 3 }
 0x3f8   : > { %v5751_v60 = vadd.f32 %v5649_v0, %v5489_v33  ;;  %v5900_v32 = vrot.slane %v14903_v52, 3  ;;  %v7278_v19 = vrot.slane %v7276_v40, 2  ;;  %v7281_v44 = vrot.slane %v7279_v53, 3 }
 0x3f9   : > { %v5647_v11 = vsel %vm2218_vm13, %v17190_v10, %v5646_v12  ;;  %v14916_v31 = vmul.f32 %v14358_v20, %v17181_v35  ;;  %v6154_v24 = vrot.slane %v6051_v2, 4  ;;  %v17191_v15 = vrot.slane %v14767_v46, 3 }
 0x3fa   : > { %v5750_v41 = vadd.f32 %v5647_v11, %v5488_v17  ;;  %v5901_v12 = vsel %vm2735_vm5, %v5898_v18, %v5900_v32  ;;  %v6313_v17 = vmul.f32 %v14373_v54, %v14156_v58  ;;  %v14928_v61 = vmul.f32 %v14373_v54, %v14158_v14 }
 0x3fb   : > { %v5899_v30 = vsel %vm2735_vm5, %v17191_v15, %v5898_v18  ;;  %v14930_v33 = vor.u32 %v7281_v44, %v7278_v19  ;;  %v6003_v53 = vadd.f32 %v5901_v12, %v5751_v60  ;;  %v17192_v2 = vrot.slane %v14784_v57, 4 }
 0x3fc   : > { %v6002_v40 = vadd.f32 %v5899_v30, %v5750_v41  ;;  %v16886_v10 = vrot.slane %v14916_v31, 4  ;;  %v6416_v11 = vrot.slane %v6313_v17, 4  ;;  %v16885_v0 = vrot.slane %v14928_v61, 4 }
 0x3fd   : > { %v6155_v46 = vsel %vm2992_vm7, %v17192_v2, %v6154_v24  ;;  %v6571_v18 = vmul.f32 %v14523_v9, %v14156_v58  ;;  %v7283_v15 = vsel %vm4075_vm8, %v14795_v36, %v14930_v33  ;;  %v14944_v41 = vmul.f32 %v14523_v9, %v14158_v14 }
 0x3fe   : > { %v6260_v19 = vadd.f32 %v6155_v46, %v6002_v40  ;;  %v6829_v57 = vmul.f32 %v14547_v16, %v14156_v58  ;;  %9659 = vmatmul.mubr.bf16.gmra.mrb[116].mxu0 %v7283_v15  ;;  %v6157_v60 = vsel %vm2992_vm7, %v6154_v24, %v16886_v10  ;;  %v17193_v44 = vrot.slane %v14799_v48, 4 }
 0x3ff   : > { %v6419_v36 = vsel %vm2992_vm7, %v6416_v11, %v16885_v0  ;;  %v6674_v12 = vrot.slane %v6571_v18, 5  ;;  %9662 = vmatprep.mubr.msk.bf16.mxu0 %vm9989_vm0, %v16923_v23  ;;  %v6261_v17 = vadd.f32 %v6157_v60, %v6003_v53  ;;  %v6676_v2 = vrot.slane %v14944_v41, 5  ;;  %v15112_v41 = vld [vmem:[%s16614_s9] ss:$0 sm:$0xff] }
 0x400   : > { %v6417_v30 = vsel %vm2992_vm7, %v17193_v44, %v6416_v11  ;;  %v14962_v46 = vmul.f32 %v14547_v16, %v14158_v14  ;;  %v17194_v48 = vrot.slane %v14808_v29, 5  ;;  %v6932_v15 = vrot.slane %v6829_v57, 6  ;;  %v14970_v11 = vld [vmem:[%s16613_s8] ss:$0 sm:$0xff] }
 0x401   : > { %v6522_v40 = vadd.f32 %v6417_v30, %v6260_v19  ;;  %v4504_v53 = vadd.f32 %v14970_v11, %v14604_v51  ;;  %v4507_v18 = vadd.f32 %v14970_v11, %v14618_v56  ;;  %v6523_v19 = vadd.f32 %v6419_v36, %v6261_v17  ;;  %v17196_v17 = vld [vmem:[#allocation27_spill] sm:$0xff] }
 0x402   : > { %v6675_v24 = vsel %vm3513_vm11, %v17194_v48, %v6674_v12  ;;  %v6677_v60 = vsel %vm3513_vm11, %v6674_v12, %v6676_v2  ;;  %v6934_v44 = vrot.slane %v14962_v46, 6  ;;  %v17195_v57 = vrot.slane %v14822_v22, 6  ;;  %v17198_v22 = vld [vmem:[#allocation28_spill] sm:$0xff] }
 0x403   : > { %v6780_v29 = vadd.f32 %v6675_v24, %v6522_v40  ;;  %v4567_v48 = vmax.f32 %v4504_v53, 0.0  ;;  %v4568_v0 = vmax.f32 %v4507_v18, 0.0  ;;  %v4932_v51 = vmul.f32 %v14261_v59, %v13891_v4 }
 0x404   : > { %v6933_v30 = vsel %vm3772_vm6, %v17195_v57, %v6932_v15  ;;  %v6781_v10 = vadd.f32 %v6677_v60, %v6523_v19  ;;  %v6935_v56 = vsel %vm3772_vm6, %v6932_v15, %v6934_v44  ;;  %v4933_v12 = vmul.f32 %v14261_v59, %v14022_v38 }
 0x405   : > { %v7038_v36 = vadd.f32 %v6933_v30, %v6780_v29  ;;  %vm17197_vm1 = vcmp.eq.s32.totalorder %v17196_v17, 1  ;;  %vm17199_vm4 = vcmp.eq.s32.totalorder %v17198_v22, 1  ;;  %v5024_v53 = vmul.f32 %v14278_v37, %v14022_v38 }
 0x406   : > { %v4608_v40 = vsel %vm17197_vm1, %v4567_v48, 0.0  ;;  %v4609_v24 = vsel %vm17199_vm4, %v4568_v0, 0.0  ;;  %v14998_v4 = vmul.f32 %v14278_v37, %v17181_v35  ;;  %v7039_v18 = vadd.f32 %v6935_v56, %v6781_v10 }
 0x407   : > { %v7087_v15 = vadd.f32 %v14596_v3, %v7038_v36  ;;  %v9105_v19 = vpack.c.bf16 %v4609_v24, %v4608_v40  ;;  %v5282_v59 = vmul.f32 %v14289_v49, %v14022_v38  ;;  %v5130_v60 = vrot.slane %v5024_v53, 1 }
 0x408   : > { %v5132_v29 = vrot.slane %v14998_v4, 1  ;;  %v15006_v0 = vmul.f32 %v14289_v49, %v17181_v35  ;;  %v5544_v57 = vmul.f32 %v14303_v39, %v14156_v58  ;;  %v7088_v37 = vadd.f32 %v14596_v3, %v7039_v18 }
 0x409   : > { %v7129_v30 = vmax.f32 %v7087_v15, 0.0  ;;  %v15011_v10 = vunpack.c.l.bf16 %v9105_v19  ;;  %v15013_v48 = vunpack.c.h.bf16 %v9105_v19  ;;  %v17200_v56 = vrot.slane %v14860_v6, 1 }
 0x40a   : > { %v5133_v36 = vsel %vm1959_vm12, %v5130_v60, %v5132_v29  ;;  %v5388_v49 = vrot.slane %v5282_v59, 2  ;;  %v5390_v17 = vrot.slane %v15006_v0, 2  ;;  %v7130_v40 = vmax.f32 %v7088_v37, 0.0 }
 0x40b   : > { %v5131_v38 = vsel %vm1959_vm12, %v17200_v56, %v5130_v60  ;;  %v5233_v24 = vadd.f32 %v5133_v36, %v4933_v12  ;;  %v15024_v53 = vmul.f32 %v14303_v39, %v14158_v14  ;;  %v5650_v15 = vrot.slane %v5544_v57, 2 }
 0x40c   : > { %v5232_v22 = vadd.f32 %v5131_v38, %v4932_v51  ;;  %v5389_v6 = vsel %vm2218_vm13, %v5386_v1, %v5388_v49  ;;  %v5391_v18 = vsel %vm2218_vm13, %v5388_v49, %v5390_v17  ;;  %v5799_v19 = vmul.f32 %v14334_v25, %v14156_v58 }
 0x40d   : > { %v7161_v59 = vpack.c.bf16 %v7130_v40, %v7129_v30  ;;  %v5491_v51 = vadd.f32 %v5391_v18, %v5233_v24  ;;  %v5652_v12 = vrot.slane %v15024_v53, 2  ;;  %v5651_v39 = vsel %vm2218_vm13, %v5648_v50, %v5650_v15 }
 0x40e   : > { %v5490_v60 = vadd.f32 %v5389_v6, %v5232_v22  ;;  %v15040_v13 = vmul.f32 %v14334_v25, %v14158_v14  ;;  %v5902_v1 = vrot.slane %v5799_v19, 3  ;;  %v6053_v57 = vmul.f32 %v14358_v20, %v14156_v58 }
 0x40f   : > { %v7285_v37 = vshrl.u32 %v7161_v59, 16  ;;  %v7288_v56 = vshll.u32 %v7161_v59, 16  ;;  %v5653_v30 = vsel %vm2218_vm13, %v5650_v15, %v5652_v12  ;;  %v15053_v25 = vmul.f32 %v14358_v20, %v14158_v14 }
 0x410   : > { %v5752_v38 = vadd.f32 %v5651_v39, %v5490_v60  ;;  %v5753_v36 = vadd.f32 %v5653_v30, %v5491_v51  ;;  %v5903_v50 = vsel %vm2735_vm5, %v5900_v32, %v5902_v1  ;;  %v5904_v55 = vrot.slane %v15040_v13, 3 }
 0x411   : > { %v7287_v49 = vrot.slane %v7285_v37, 2  ;;  %v7290_v40 = vrot.slane %v7288_v56, 3  ;;  %v6158_v24 = vrot.slane %v6053_v57, 4  ;;  %v6160_v18 = vrot.slane %v15053_v25, 4 }
 0x412   : > { %v6004_v22 = vadd.f32 %v5903_v50, %v5752_v38  ;;  %v5905_v6 = vsel %vm2735_vm5, %v5902_v1, %v5904_v55  ;;  %v6315_v52 = vmul.f32 %v14373_v54, %v14317_v42  ;;  %v15063_v32 = vmul.f32 %v14373_v54, %v14319_v7 }
 0x413   : > { %v15065_v15 = vor.u32 %v7290_v40, %v7287_v49  ;;  %v6005_v20 = vadd.f32 %v5905_v6, %v5753_v36  ;;  %v17201_v19 = vrot.slane %v14916_v31, 4  ;;  %v6573_v60 = vmul.f32 %v14523_v9, %v14317_v42 }
 0x414   : > { %v6161_v51 = vsel %vm2992_vm7, %v6158_v24, %v6160_v18  ;;  %v6420_v1 = vrot.slane %v6315_v52, 4  ;;  %v6422_v57 = vrot.slane %v15063_v32, 4  ;;  %v15081_v31 = vmul.f32 %v14523_v9, %v14319_v7 }
 0x415   : > { %v6159_v59 = vsel %vm2992_vm7, %v17201_v19, %v6158_v24  ;;  %v7292_v54 = vsel %vm4075_vm8, %v14930_v33, %v15065_v15  ;;  %v6263_v37 = vadd.f32 %v6161_v51, %v6005_v20  ;;  %v6678_v56 = vrot.slane %v6573_v60, 5 }
 0x416   : > { %v6262_v39 = vadd.f32 %v6159_v59, %v6004_v22  ;;  %9663 = vmatmul.mubr.bf16.gmra.mrb[120].mxu0 %v7292_v54  ;;  %v17202_v30 = vrot.slane %v14928_v61, 4  ;;  %v6423_v36 = vsel %vm2992_vm7, %v6420_v1, %v6422_v57  ;;  %v6831_v50 = vmul.f32 %v14547_v16, %v14317_v42 }
 0x417   : > { %v15093_v33 = vmul.f32 %v14547_v16, %v14319_v7  ;;  %9666 = vmatprep.mubr.msk.bf16.mxu0 %vm9989_vm0, %v16923_v23  ;;  %v6525_v40 = vadd.f32 %v6423_v36, %v6263_v37  ;;  %v6679_v61 = vsel %vm3513_vm11, %v6676_v2, %v6678_v56  ;;  %v6680_v22 = vrot.slane %v15081_v31, 5  ;;  %v15127_v37 = vld [vmem:[%s16614_s9 + $0x1] ss:$0 sm:$0xff] }
 0x418   : > { %v6421_v38 = vsel %vm2992_vm7, %v17202_v30, %v6420_v1  ;;  %v6936_v24 = vrot.slane %v6831_v50, 6  ;;  %v4512_v52 = vadd.f32 %v14970_v11, %v14733_v21  ;;  %v4515_v20 = vadd.f32 %v14970_v11, %v14744_v27 }
 0x419   : > { %v6524_v49 = vadd.f32 %v6421_v38, %v6262_v39  ;;  %v6938_v6 = vrot.slane %v15093_v33, 6  ;;  %v6681_v19 = vsel %vm3513_vm11, %v6678_v56, %v6680_v22  ;;  %v4934_v2 = vmul.f32 %v15112_v41, %v17181_v35  ;;  %v17203_v56 = vld [vmem:[#allocation33_spill] sm:$0xff]  ;;  %v15140_v38 = vld [vmem:[%s16614_s9 + $0x2] ss:$0 sm:$0xff] }
 0x41a   : > { %v4935_v60 = vmul.f32 %v15112_v41, %v14156_v58  ;;  %v6783_v21 = vadd.f32 %v6681_v19, %v6525_v40  ;;  %v6937_v27 = vsel %vm3772_vm6, %v6934_v44, %v6936_v24  ;;  %v4569_v39 = vmax.f32 %v4512_v52, 0.0  ;;  %v17205_v40 = vld [vmem:[#allocation34_spill] sm:$0xff] }
 0x41b   : > { %v6782_v59 = vadd.f32 %v6679_v61, %v6524_v49  ;;  %v6939_v51 = vsel %vm3772_vm6, %v6936_v24, %v6938_v6  ;;  %v4570_v54 = vmax.f32 %v4515_v20, 0.0  ;;  %v5026_v35 = vmul.f32 %v15127_v37, %v14156_v58 }
 0x41c   : > { %v15133_v46 = vmul.f32 %v15127_v37, %v14158_v14  ;;  %v7041_v44 = vadd.f32 %v6939_v51, %v6783_v21  ;;  %vm17204_vm10 = vcmp.eq.s32.totalorder %v17203_v56, 1  ;;  %v5284_v36 = vmul.f32 %v15140_v38, %v14156_v58 }
 0x41d   : > { %v7040_v1 = vadd.f32 %v6937_v27, %v6782_v59  ;;  %v4610_v30 = vsel %vm17204_vm10, %v4569_v39, 0.0  ;;  %v15146_v50 = vmul.f32 %v15140_v38, %v14158_v14  ;;  %vm17206_vm2 = vcmp.eq.s32.totalorder %v17205_v40, 1  ;;  %v15163_v39 = vld [vmem:[%s16614_s9 + $0x3] ss:$0 sm:$0xff] }
 0x41e   : > { %v4611_v61 = vsel %vm17206_vm2, %v4570_v54, 0.0  ;;  %v5134_v24 = vrot.slane %v5026_v35, 1  ;;  %v5136_v52 = vrot.slane %v15133_v46, 1  ;;  %v7090_v20 = vadd.f32 %v14596_v3, %v7041_v44 }
 0x41f   : > { %v7089_v49 = vadd.f32 %v14596_v3, %v7040_v1  ;;  %v9110_v19 = vpack.c.bf16 %v4611_v61, %v4610_v30  ;;  %v5392_v59 = vrot.slane %v5284_v36, 2  ;;  %v16887_v21 = vrot.slane %v15146_v50, 2 }
 0x420   : > { %v5135_v58 = vsel %vm1959_vm12, %v5132_v29, %v5134_v24  ;;  %v5137_v51 = vsel %vm1959_vm12, %v5134_v24, %v5136_v52  ;;  %v5546_v1 = vmul.f32 %v15163_v39, %v14317_v42  ;;  %v7132_v54 = vmax.f32 %v7090_v20, 0.0  ;;  %v15196_v20 = vld [vmem:[%s16614_s9 + $0x5] ss:$0 sm:$0xff] }
 0x421   : > { %v7131_v27 = vmax.f32 %v7089_v49, 0.0  ;;  %v15167_v35 = vunpack.c.l.bf16 %v9110_v19  ;;  %v15169_v44 = vunpack.c.h.bf16 %v9110_v19  ;;  %v5234_v4 = vadd.f32 %v5135_v58, %v4934_v2  ;;  %v15184_v2 = vld [vmem:[%s16614_s9 + $0x4] ss:$0 sm:$0xff] }
 0x422   : > { %v5235_v56 = vadd.f32 %v5137_v51, %v4935_v60  ;;  %v5393_v29 = vsel %vm2218_vm13, %v5390_v17, %v5392_v59  ;;  %v5395_v30 = vsel %vm2218_vm13, %v5392_v59, %v16887_v21  ;;  %v15179_v36 = vmul.f32 %v15163_v39, %v14319_v7 }
 0x423   : > { %v7162_v49 = vpack.c.bf16 %v7132_v54, %v7131_v27  ;;  %v5492_v40 = vadd.f32 %v5393_v29, %v5234_v4  ;;  %v5654_v61 = vrot.slane %v5546_v1, 2  ;;  %v5801_v0 = vmul.f32 %v15184_v2, %v14317_v42 }
 0x424   : > { %v5493_v17 = vadd.f32 %v5395_v30, %v5235_v56  ;;  %v5656_v60 = vrot.slane %v15179_v36, 2  ;;  %v15191_v24 = vmul.f32 %v15184_v2, %v14319_v7  ;;  %v6055_v19 = vmul.f32 %v15196_v20, %v14317_v42 }
 0x425   : > { %v7294_v59 = vshrl.u32 %v7162_v49, 16  ;;  %v7297_v27 = vshll.u32 %v7162_v49, 16  ;;  %v5655_v58 = vsel %vm2218_vm13, %v5652_v12, %v5654_v61  ;;  %v5906_v51 = vrot.slane %v5801_v0, 3 }
 0x426   : > { %v5657_v1 = vsel %vm2218_vm13, %v5654_v61, %v5656_v60  ;;  %v5754_v54 = vadd.f32 %v5655_v58, %v5492_v40  ;;  %v5908_v4 = vrot.slane %v15191_v24, 3  ;;  %v15209_v56 = vmul.f32 %v15196_v20, %v14319_v7 }
 0x427   : > { %v7296_v29 = vrot.slane %v7294_v59, 2  ;;  %v7299_v30 = vrot.slane %v7297_v27, 3  ;;  %v5755_v21 = vadd.f32 %v5657_v1, %v5493_v17  ;;  %v5907_v53 = vsel %vm2735_vm5, %v5904_v55, %v5906_v51  ;;  %v15223_v59 = vld [vmem:[%s16614_s9 + $0x6] ss:$0 sm:$0xff] }
 0x428   : > { %v5909_v12 = vsel %vm2735_vm5, %v5906_v51, %v5908_v4  ;;  %v6006_v49 = vadd.f32 %v5907_v53, %v5754_v54  ;;  %v6162_v61 = vrot.slane %v6055_v19, 4  ;;  %v6164_v40 = vrot.slane %v15209_v56, 4  ;;  %v15369_v56 = vld [vmem:[%s16614_s9 + $0x7] ss:$0 sm:$0xff] }
 0x429   : > { %v15218_v0 = vor.u32 %v7299_v30, %v7296_v29  ;;  %v6007_v58 = vadd.f32 %v5909_v12, %v5755_v21  ;;  %v6317_v13 = vmul.f32 %v15223_v59, %v14457_v45  ;;  %v15229_v55 = vmul.f32 %v15223_v59, %v14459_v5 }
 0x42a   : > { %v6163_v17 = vsel %vm2992_vm7, %v6160_v18, %v6162_v61  ;;  %v6165_v21 = vsel %vm2992_vm7, %v6162_v61, %v6164_v40  ;;  %v6575_v19 = vmul.f32 %v14523_v9, %v14457_v45  ;;  %v15241_v27 = vmul.f32 %v14523_v9, %v14459_v5 }
 0x42b   : > { %v7301_v51 = vsel %vm4075_vm8, %v15065_v15, %v15218_v0  ;;  %v6264_v1 = vadd.f32 %v6163_v17, %v6006_v49  ;;  %v6265_v54 = vadd.f32 %v6165_v21, %v6007_v58  ;;  %v6424_v25 = vrot.slane %v6317_v13, 4 }
 0x42c   : > { %9667 = vmatmul.mubr.bf16.gmra.mrb[124].mxu0 %v7301_v51  ;;  %v6426_v18 = vrot.slane %v15229_v55, 4  ;;  %v6682_v29 = vrot.slane %v6575_v19, 5  ;;  %v6684_v30 = vrot.slane %v15241_v27, 5  ;;  %v6833_v53 = vmul.f32 %v14547_v16, %v14457_v45 }
 0x42d   : > { %9670 = vmatprep.mubr.msk.bf16.mxu0 %vm9989_vm0, %v16923_v23  ;;  %v6425_v9 = vsel %vm2992_vm7, %v6422_v57, %v6424_v25  ;;  %v15257_v15 = vmul.f32 %v14547_v16, %v14459_v5  ;;  %v4520_v12 = vadd.f32 %v14970_v11, %v14838_v8  ;;  %v4523_v49 = vadd.f32 %v14970_v11, %v14852_v26 }
 0x42e   : > { %v6427_v61 = vsel %vm2992_vm7, %v6424_v25, %v6426_v18  ;;  %v6526_v58 = vadd.f32 %v6425_v9, %v6264_v1  ;;  %v6683_v32 = vsel %vm3513_vm11, %v6680_v22, %v6682_v29  ;;  %v6685_v16 = vsel %vm3513_vm11, %v6682_v29, %v6684_v30 }
 0x42f   : > { %v6527_v57 = vadd.f32 %v6427_v61, %v6265_v54  ;;  %v6940_v13 = vrot.slane %v6833_v53, 6  ;;  %v6942_v8 = vrot.slane %v15257_v15, 6  ;;  %v4571_v17 = vmax.f32 %v4520_v12, 0.0  ;;  %v17208_v53 = vld [vmem:[#allocation31_spill] sm:$0xff] }
 0x430   : > { %v6784_v21 = vadd.f32 %v6683_v32, %v6526_v58  ;;  %v4572_v26 = vmax.f32 %v4523_v49, 0.0  ;;  %v4936_v19 = vmul.f32 %v15112_v41, %v14158_v14  ;;  %v4937_v51 = vmul.f32 %v15112_v41, %v14317_v42 }
 0x431   : > { %v6785_v31 = vadd.f32 %v6685_v16, %v6527_v57  ;;  %v6941_v22 = vsel %vm3772_vm6, %v6938_v6, %v6940_v13  ;;  %v6943_v1 = vsel %vm3772_vm6, %v6940_v13, %v6942_v8  ;;  %v4612_v25 = vsel %vm1445_vm9, %v4571_v17, 0.0 }
 0x432   : > { %v7042_v29 = vadd.f32 %v6941_v22, %v6784_v21  ;;  %vm17209_vm14 = vcmp.eq.s32.totalorder %v17208_v53, 1  ;;  %v5028_v14 = vmul.f32 %v15127_v37, %v14317_v42  ;;  %v15291_v12 = vmul.f32 %v15127_v37, %v14319_v7 }
 0x433   : > { %v4613_v9 = vsel %vm17209_vm14, %v4572_v26, 0.0  ;;  %v7043_v33 = vadd.f32 %v6943_v1, %v6785_v31  ;;  %v5286_v49 = vmul.f32 %v15140_v38, %v14317_v42  ;;  %v15297_v61 = vmul.f32 %v15140_v38, %v14319_v7 }
 0x434   : > { %v9115_v6 = vpack.c.bf16 %v4613_v9, %v4612_v25  ;;  %v7091_v58 = vadd.f32 %v14596_v3, %v7042_v29  ;;  %v5138_v32 = vrot.slane %v5028_v14, 1  ;;  %v5140_v16 = vrot.slane %v15291_v12, 1 }
 0x435   : > { %v5548_v57 = vmul.f32 %v15163_v39, %v14457_v45  ;;  %v7092_v13 = vadd.f32 %v14596_v3, %v7043_v33  ;;  %v5396_v17 = vrot.slane %v5286_v49, 2  ;;  %v5398_v21 = vrot.slane %v15297_v61, 2 }
 0x436   : > { %9256 = vst [vmem:[#allocation3 + $0xa8] sm:$0xff] %v9115_v6   ;;  %v15307_v42 = vmul.f32 %v15163_v39, %v14459_v5  ;;  %v7133_v26 = vmax.f32 %v7091_v58, 0.0  ;;  %v5139_v31 = vsel %vm1959_vm12, %v5136_v52, %v5138_v32  ;;  %v5141_v22 = vsel %vm1959_vm12, %v5138_v32, %v5140_v16 }
 0x437   : > { %v5658_v1 = vrot.slane %v5548_v57, 2  ;;  %v7134_v54 = vmax.f32 %v7092_v13, 0.0  ;;  %v5236_v3 = vadd.f32 %v5139_v31, %v4936_v19  ;;  %v5237_v25 = vadd.f32 %v5141_v22, %v4937_v51 }
 0x438   : > { %v17210_v29 = vrot.slane %v15146_v50, 2  ;;  %v5399_v9 = vsel %vm2218_vm13, %v5396_v17, %v5398_v21  ;;  %v5660_v52 = vrot.slane %v15307_v42, 2  ;;  %v5803_v14 = vmul.f32 %v15184_v2, %v14457_v45 }
 0x439   : > { %v5659_v46 = vsel %vm2218_vm13, %v5656_v60, %v5658_v1  ;;  %v7163_v33 = vpack.c.bf16 %v7134_v54, %v7133_v26  ;;  %v5495_v51 = vadd.f32 %v5399_v9, %v5237_v25  ;;  %v15329_v50 = vmul.f32 %v15184_v2, %v14459_v5 }
 0x43a   : > { %v5397_v53 = vsel %vm2218_vm13, %v17210_v29, %v5396_v17  ;;  %v5661_v6 = vsel %vm2218_vm13, %v5658_v1, %v5660_v52  ;;  %v5910_v49 = vrot.slane %v5803_v14, 3  ;;  %v6057_v36 = vmul.f32 %v15196_v20, %v14457_v45 }
 0x43b   : > { %v5494_v19 = vadd.f32 %v5397_v53, %v5236_v3  ;;  %v15338_v60 = vmul.f32 %v15196_v20, %v14459_v5  ;;  %v7303_v58 = vshrl.u32 %v7163_v33, 16  ;;  %v7306_v32 = vshll.u32 %v7163_v33, 16 }
 0x43c   : > { %v5757_v13 = vadd.f32 %v5661_v6, %v5495_v51  ;;  %v5911_v26 = vsel %vm2735_vm5, %v5908_v4, %v5910_v49  ;;  %v5912_v31 = vrot.slane %v15329_v50, 3  ;;  %v6166_v22 = vrot.slane %v6057_v36, 4 }
 0x43d   : > { %v5756_v57 = vadd.f32 %v5659_v46, %v5494_v19  ;;  %v5252_v17 = vld [vmem:[#allocation3 + $0xa8] sm:$0xff]   ;;  %v6168_v1 = vrot.slane %v15338_v60, 4  ;;  %v7305_v54 = vrot.slane %v7303_v58, 2  ;;  %v7308_v3 = vrot.slane %v7306_v32, 3 }
 0x43e   : > { %v15345_v25 = vunpack.c.l.bf16 %v5252_v17  ;;  %v15347_v29 = vunpack.c.h.bf16 %v5252_v17  ;;  %v5913_v53 = vsel %vm2735_vm5, %v5910_v49, %v5912_v31  ;;  %v6167_v24 = vsel %vm2992_vm7, %v6164_v40, %v6166_v22  ;;  %v15380_v49 = vld [vmem:[%s16614_s9 + $0x8] ss:$0 sm:$0xff] }
 0x43f   : > { %v6008_v9 = vadd.f32 %v5911_v26, %v5756_v57  ;;  %v6169_v4 = vsel %vm2992_vm7, %v6166_v22, %v6168_v1  ;;  %v15358_v46 = vor.u32 %v7308_v3, %v7305_v54  ;;  %v6009_v14 = vadd.f32 %v5913_v53, %v5757_v13 }
 0x440   : > { %v6319_v33 = vmul.f32 %v15223_v59, %v14614_v43  ;;  %v15364_v19 = vmul.f32 %v15223_v59, %v14616_v47  ;;  %v6577_v40 = vmul.f32 %v15369_v56, %v14614_v43  ;;  %v15375_v6 = vmul.f32 %v15369_v56, %v14616_v47 }
 0x441   : > { %v6266_v51 = vadd.f32 %v6167_v24, %v6008_v9  ;;  %v6835_v36 = vmul.f32 %v15380_v49, %v14614_v43  ;;  %v7310_v58 = vsel %vm4075_vm8, %v15218_v0, %v15358_v46  ;;  %v6267_v32 = vadd.f32 %v6169_v4, %v6009_v14 }
 0x442   : > { %v6428_v57 = vrot.slane %v6319_v33, 4  ;;  %v6430_v13 = vrot.slane %v15364_v19, 4  ;;  %9671 = vmatmul.mubr.bf16.gmra.mrb[128].mxu0 %v7310_v58  ;;  %v6686_v17 = vrot.slane %v6577_v40, 5  ;;  %v6688_v26 = vrot.slane %v15375_v6, 5 }
 0x443   : > { %v15391_v22 = vmul.f32 %v15380_v49, %v14616_v47  ;;  %v6944_v54 = vrot.slane %v6835_v36, 6  ;;  %9674 = vmatprep.mubr.msk.bf16.mxu0 %vm9989_vm0, %v16923_v23  ;;  %v4528_v53 = vadd.f32 %v14970_v11, %v14890_v63  ;;  %v4938_v9 = vmul.f32 %v15112_v41, %v14319_v7 }
 0x444   : > { %v6429_v0 = vsel %vm2992_vm7, %v6426_v18, %v6428_v57  ;;  %v6431_v3 = vsel %vm2992_vm7, %v6428_v57, %v6430_v13  ;;  %v6687_v14 = vsel %vm3513_vm11, %v6684_v30, %v6686_v17  ;;  %v6689_v55 = vsel %vm3513_vm11, %v6686_v17, %v6688_v26 }
 0x445   : > { %v6528_v24 = vadd.f32 %v6429_v0, %v6266_v51  ;;  %v6529_v4 = vadd.f32 %v6431_v3, %v6267_v32  ;;  %v6945_v18 = vsel %vm3772_vm6, %v6942_v8, %v6944_v54  ;;  %v6946_v33 = vrot.slane %v15391_v22, 6 }
 0x446   : > { %v4573_v63 = vmax.f32 %v4528_v53, 0.0  ;;  %v4939_v7 = vmul.f32 %v15112_v41, %v14457_v45  ;;  %v5030_v27 = vmul.f32 %v15127_v37, %v14457_v45  ;;  %v15421_v30 = vmul.f32 %v15127_v37, %v14459_v5 }
 0x447   : > { %v6786_v11 = vadd.f32 %v6687_v14, %v6528_v24  ;;  %v6787_v51 = vadd.f32 %v6689_v55, %v6529_v4  ;;  %v6947_v15 = vsel %vm3772_vm6, %v6944_v54, %v6946_v33  ;;  %v5288_v36 = vmul.f32 %v15140_v38, %v14457_v45  ;;  %v15441_v45 = vld [vmem:[%s16615_s10] ss:$0 sm:$0xff] }
 0x448   : > { %v4614_v40 = vsel %vm1447_vm3, %v4573_v63, 0.0  ;;  %v15432_v58 = vmul.f32 %v15140_v38, %v14459_v5  ;;  %v5142_v0 = vrot.slane %v5030_v27, 1  ;;  %v5144_v3 = vrot.slane %v15421_v30, 1 }
 0x449   : > { %v7044_v32 = vadd.f32 %v6945_v18, %v6786_v11  ;;  %v7045_v57 = vadd.f32 %v6947_v15, %v6787_v51  ;;  %v8836_v17 = vpack.c.bf16 %v4614_v40, %v4614_v40  ;;  %v5400_v53 = vrot.slane %v5288_v36, 2 }
 0x44a   : > { %v5402_v24 = vrot.slane %v15432_v58, 2  ;;  %v5550_v54 = vmul.f32 %v15163_v39, %v14614_v43  ;;  %v5143_v55 = vsel %vm1959_vm12, %v5140_v16, %v5142_v0  ;;  %v15450_v18 = vmul.f32 %v15163_v39, %v14616_v47 }
 0x44b   : > { %v7093_v4 = vadd.f32 %v15441_v45, %v7044_v32  ;;  %v7094_v14 = vadd.f32 %v15441_v45, %v7045_v57  ;;  %4820 = vst [vmem:[#allocation3 + $0xb0] sm:$0xf] %v8836_v17  ;;  %v5145_v63 = vsel %vm1959_vm12, %v5142_v0, %v5144_v3  ;;  %v5238_v11 = vadd.f32 %v5143_v55, %v4938_v9 }
 0x44c   : > { %v5401_v51 = vsel %vm2218_vm13, %v5398_v21, %v5400_v53  ;;  %v5403_v27 = vsel %vm2218_vm13, %v5400_v53, %v5402_v24  ;;  %v5239_v16 = vadd.f32 %v5145_v63, %v4939_v7  ;;  %v5662_v8 = vrot.slane %v5550_v54, 2 }
 0x44d   : > { %v7135_v12 = vmax.f32 %v7093_v4, 0.0  ;;  %v7136_v15 = vmax.f32 %v7094_v14, 0.0  ;;  %v5496_v40 = vadd.f32 %v5401_v51, %v5238_v11  ;;  %v5664_v36 = vrot.slane %v15450_v18, 2 }
 0x44e   : > { %v5805_v32 = vmul.f32 %v15184_v2, %v14614_v43  ;;  %v15466_v9 = vmul.f32 %v15184_v2, %v14616_v47  ;;  %v5497_v21 = vadd.f32 %v5403_v27, %v5239_v16  ;;  %v5663_v57 = vsel %vm2218_vm13, %v5660_v52, %v5662_v8 }
 0x44f   : > { %v7164_v61 = vpack.c.bf16 %v7136_v15, %v7135_v12  ;;  %v6059_v7 = vmul.f32 %v15196_v20, %v14614_v43  ;;  %v5665_v17 = vsel %vm2218_vm13, %v5662_v8, %v5664_v36  ;;  %v5758_v0 = vadd.f32 %v5663_v57, %v5496_v40 }
 0x450   : > { %v5914_v53 = vrot.slane %v5805_v32, 3  ;;  %v5916_v54 = vrot.slane %v15466_v9, 3  ;;  %v5759_v55 = vadd.f32 %v5665_v17, %v5497_v21  ;;  %v15479_v63 = vmul.f32 %v15196_v20, %v14616_v47 }
 0x451   : > { %v7312_v4 = vshrl.u32 %v7164_v61, 16  ;;  %v7315_v14 = vshll.u32 %v7164_v61, 16  ;;  %v6170_v51 = vrot.slane %v6059_v7, 4  ;;  %v6321_v27 = vmul.f32 %v15223_v59, %v14740_v28 }
 0x452   : > { %v5512_v42 = vld [vmem:[#allocation3 + $0xb0] sm:$0xf]  ;;  %v5915_v52 = vsel %vm2735_vm5, %v5912_v31, %v5914_v53  ;;  %v5917_v11 = vsel %vm2735_vm5, %v5914_v53, %v5916_v54  ;;  %v6172_v31 = vrot.slane %v15479_v63, 4  ;;  %v15497_v32 = vmul.f32 %v15223_v59, %v14742_v62 }
 0x453   : > { %v7314_v12 = vrot.slane %v7312_v4, 2  ;;  %v7317_v15 = vrot.slane %v7315_v14, 3  ;;  %v15489_v16 = vunpack.c.l.bf16 %v5512_v42  ;;  %v6010_v8 = vadd.f32 %v5915_v52, %v5758_v0 }
 0x454   : > { %v6011_v40 = vadd.f32 %v5917_v11, %v5759_v55  ;;  %v6171_v50 = vsel %vm2992_vm7, %v6168_v1, %v6170_v51  ;;  %v6432_v57 = vrot.slane %v6321_v27, 4  ;;  %v6579_v7 = vmul.f32 %v15369_v56, %v14740_v28 }
 0x455   : > { %v15499_v61 = vor.u32 %v7317_v15, %v7314_v12  ;;  %v6268_v21 = vadd.f32 %v6171_v50, %v6010_v8  ;;  %v6173_v17 = vsel %vm2992_vm7, %v6170_v51, %v6172_v31  ;;  %v6434_v60 = vrot.slane %v15497_v32, 4 }
 0x456   : > { %v15509_v1 = vmul.f32 %v15369_v56, %v14742_v62  ;;  %v6837_v0 = vmul.f32 %v15380_v49, %v14740_v28  ;;  %v6269_v4 = vadd.f32 %v6173_v17, %v6011_v40  ;;  %v6433_v14 = vsel %vm2992_vm7, %v6430_v13, %v6432_v57 }
 0x457   : > { %v7319_v53 = vsel %vm4075_vm8, %v15358_v46, %v15499_v61  ;;  %v6690_v55 = vrot.slane %v6579_v7, 5  ;;  %v6435_v42 = vsel %vm2992_vm7, %v6432_v57, %v6434_v60  ;;  %v6530_v52 = vadd.f32 %v6433_v14, %v6268_v21 }
 0x458   : > { %9675 = vmatmul.mubr.bf16.gmra.mrb[132].mxu0 %v7319_v53  ;;  %v6692_v11 = vrot.slane %v15509_v1, 5  ;;  %v15525_v51 = vmul.f32 %v15380_v49, %v14742_v62  ;;  %v6531_v46 = vadd.f32 %v6435_v42, %v6269_v4  ;;  %v6948_v13 = vrot.slane %v6837_v0, 6 }
 0x459   : > { %9678 = vmatprep.mubr.msk.bf16.mxu0 %vm9989_vm0, %v16923_v23  ;;  %v6691_v19 = vsel %vm3513_vm11, %v6688_v26, %v6690_v55  ;;  %v4940_v27 = vmul.f32 %v15112_v41, %v14459_v5  ;;  %v4941_v40 = vmul.f32 %v15112_v41, %v14614_v43  ;;  %v5032_v26 = vmul.f32 %v15127_v37, %v14614_v43 }
 0x45a   : > { %v6693_v12 = vsel %vm3513_vm11, %v6690_v55, %v6692_v11  ;;  %v6788_v15 = vadd.f32 %v6691_v19, %v6530_v52  ;;  %v6950_v8 = vrot.slane %v15525_v51, 6  ;;  %v6949_v6 = vsel %vm3772_vm6, %v6946_v33, %v6948_v13 }
 0x45b   : > { %v6789_v50 = vadd.f32 %v6693_v12, %v6531_v46  ;;  %v15547_v5 = vmul.f32 %v15127_v37, %v14616_v47  ;;  %v5290_v7 = vmul.f32 %v15140_v38, %v14614_v43  ;;  %v15556_v22 = vmul.f32 %v15140_v38, %v14616_v47 }
 0x45c   : > { %v6951_v21 = vsel %vm3772_vm6, %v6948_v13, %v6950_v8  ;;  %v7046_v57 = vadd.f32 %v6949_v6, %v6788_v15  ;;  %v5146_v17 = vrot.slane %v5032_v26, 1  ;;  %v5552_v53 = vmul.f32 %v15163_v39, %v14740_v28 }
 0x45d   : > { %v7047_v33 = vadd.f32 %v6951_v21, %v6789_v50  ;;  %v5148_v0 = vrot.slane %v15547_v5, 1  ;;  %v5404_v14 = vrot.slane %v5290_v7, 2  ;;  %v5406_v55 = vrot.slane %v15556_v22, 2 }
 0x45e   : > { %v7095_v4 = vadd.f32 %v15441_v45, %v7046_v57  ;;  %v15565_v42 = vmul.f32 %v15163_v39, %v14742_v62  ;;  %v5147_v52 = vsel %vm1959_vm12, %v5144_v3, %v5146_v17  ;;  %v5666_v19 = vrot.slane %v5552_v53, 2 }
 0x45f   : > { %v7096_v43 = vadd.f32 %v15441_v45, %v7047_v33  ;;  %v5149_v46 = vsel %vm1959_vm12, %v5146_v17, %v5148_v0  ;;  %v5240_v12 = vadd.f32 %v5147_v52, %v4940_v27  ;;  %v5405_v50 = vsel %vm2218_vm13, %v5402_v24, %v5404_v14 }
 0x460   : > { %v7137_v13 = vmax.f32 %v7095_v4, 0.0  ;;  %v5241_v15 = vadd.f32 %v5149_v46, %v4941_v40  ;;  %v5407_v26 = vsel %vm2218_vm13, %v5404_v14, %v5406_v55  ;;  %v5667_v30 = vsel %vm2218_vm13, %v5664_v36, %v5666_v19 }
 0x461   : > { %v7138_v6 = vmax.f32 %v7096_v43, 0.0  ;;  %v5668_v3 = vrot.slane %v15565_v42, 2  ;;  %v5498_v21 = vadd.f32 %v5405_v50, %v5240_v12  ;;  %v5807_v27 = vmul.f32 %v15184_v2, %v14740_v28  ;;  %v17212_v12 = vld [vmem:[#allocation7_spill] sm:$0xff] }
 0x462   : > { %v5499_v57 = vadd.f32 %v5407_v26, %v5241_v15  ;;  %v15588_v58 = vmul.f32 %v15184_v2, %v14742_v62  ;;  %v6061_v18 = vmul.f32 %v15196_v20, %v14740_v28  ;;  %v15597_v36 = vmul.f32 %v15196_v20, %v14742_v62 }
 0x463   : > { %v7165_v24 = vpack.c.bf16 %v7138_v6, %v7137_v13  ;;  %v5669_v40 = vsel %vm2218_vm13, %v5666_v19, %v5668_v3  ;;  %v5760_v7 = vadd.f32 %v5667_v30, %v5498_v21  ;;  %v5918_v17 = vrot.slane %v5807_v27, 3  ;;  %v15613_v21 = vpop.f32.mrb[84].mxu0 }
 0x464   : > { %v5761_v33 = vadd.f32 %v5669_v40, %v5499_v57  ;;  %v5920_v53 = vrot.slane %v15588_v58, 3  ;;  %v6174_v43 = vrot.slane %v6061_v18, 4  ;;  %v6176_v52 = vrot.slane %v15597_v36, 4 }
 0x465   : > { %v7321_v4 = vshrl.u32 %v7165_v24, 16  ;;  %v7324_v14 = vshll.u32 %v7165_v24, 16  ;;  %v5919_v46 = vsel %vm2735_vm5, %v5916_v54, %v5918_v17  ;;  %v6323_v13 = vmul.f32 %v15223_v59, %v14883_v34  ;;  %v9628_v24 = vpop.f32.mrb[85].mxu0 }
 0x466   : > { %v5921_v19 = vsel %vm2735_vm5, %v5918_v17, %v5920_v53  ;;  %v15611_v15 = vmul.f32 %v15223_v59, %v17212_v12  ;;  %v6012_v26 = vadd.f32 %v5919_v46, %v5760_v7  ;;  %v6175_v9 = vsel %vm2992_vm7, %v6172_v31, %v6174_v43 }
 0x467   : > { %v7323_v50 = vrot.slane %v7321_v4, 2  ;;  %v7326_v6 = vrot.slane %v7324_v14, 3  ;;  %v6013_v30 = vadd.f32 %v5921_v19, %v5761_v33  ;;  %v6177_v54 = vsel %vm2992_vm7, %v6174_v43, %v6176_v52  ;;  %v15626_v33 = vpop.f32.mrb[86].mxu0 }
 0x468   : > { %v6436_v57 = vrot.slane %v6323_v13, 4  ;;  %v6438_v27 = vrot.slane %v15611_v15, 4  ;;  %v6270_v18 = vadd.f32 %v6175_v9, %v6012_v26  ;;  %v6581_v7 = vmul.f32 %v15369_v56, %v14883_v34  ;;  %v9629_v43 = vpop.f32.mrb[87].mxu0 }
 0x469   : > { %v15622_v40 = vor.u32 %v7326_v6, %v7323_v50  ;;  %v6271_v17 = vadd.f32 %v6177_v54, %v6013_v30  ;;  %v15636_v4 = vmul.f32 %v15369_v56, %v17212_v12  ;;  %v6839_v14 = vmul.f32 %v15380_v49, %v14883_v34 }
 0x46a   : > { %v6437_v63 = vsel %vm2992_vm7, %v6434_v60, %v6436_v57  ;;  %v6439_v31 = vsel %vm2992_vm7, %v6436_v57, %v6438_v27  ;;  %v6694_v13 = vrot.slane %v6581_v7, 5  ;;  %v15643_v60 = vpop.f32.mrb[88].mxu0  ;;  %v15648_v6 = vmul.f32 %v15380_v49, %v17212_v12 }
 0x46b   : > { %v7328_v46 = vsel %vm4075_vm8, %v15499_v61, %v15622_v40  ;;  %v6532_v19 = vadd.f32 %v6437_v63, %v6270_v18  ;;  %v6533_v32 = vadd.f32 %v6439_v31, %v6271_v17  ;;  %v6696_v50 = vrot.slane %v15636_v4, 5  ;;  %v9632_v9 = vpop.f32.mrb[89].mxu0 }
 0x46c   : > { %9679 = vmatmul.mubr.bf16.gmra.mrb[136].mxu0 %v7328_v46  ;;  %v6952_v26 = vrot.slane %v6839_v14, 6  ;;  %v4942_v30 = vmul.f32 %v15112_v41, %v14616_v47  ;;  %v6695_v61 = vsel %vm3513_vm11, %v6692_v11, %v6694_v13  ;;  %v4943_v54 = vmul.f32 %v15112_v41, %v14740_v28  ;;  %v15665_v18 = vpop.f32.mrb[90].mxu0 }
 0x46d   : > { %9682 = vmatprep.mubr.msk.bf16.mxu0 %vm9989_vm0, %v16923_v23  ;;  %v5034_v57 = vmul.f32 %v15127_v37, %v14740_v28  ;;  %v15663_v24 = vmul.f32 %v15127_v37, %v14742_v62  ;;  %v6697_v47 = vsel %vm3513_vm11, %v6694_v13, %v6696_v50  ;;  %v6790_v17 = vadd.f32 %v6695_v61, %v6532_v19  ;;  %v9633_v7 = vpop.f32.mrb[91].mxu0 }
 0x46e   : > { %v6953_v1 = vsel %vm3772_vm6, %v6950_v8, %v6952_v26  ;;  %v16888_v11 = vrot.slane %v15648_v6, 6  ;;  %v6791_v63 = vadd.f32 %v6697_v47, %v6533_v32  ;;  %v5292_v43 = vmul.f32 %v15140_v38, %v14740_v28  ;;  %v15677_v46 = vpop.f32.mrb[92].mxu0 }
 0x46f   : > { %v5150_v31 = vrot.slane %v5034_v57, 1  ;;  %v5152_v14 = vrot.slane %v15663_v24, 1  ;;  %v7048_v13 = vadd.f32 %v6953_v1, %v6790_v17  ;;  %v15684_v51 = vmul.f32 %v15140_v38, %v14742_v62  ;;  %v9636_v32 = vpop.f32.mrb[93].mxu0 }
 0x470   : > { %v6955_v19 = vsel %vm3772_vm6, %v6952_v26, %v16888_v11  ;;  %v5554_v8 = vmul.f32 %v15163_v39, %v14883_v34  ;;  %v5408_v57 = vrot.slane %v5292_v43, 2  ;;  %v15694_v26 = vpop.f32.mrb[94].mxu0  ;;  %v15747_v58 = vmul.f32 %v15223_v59, %v15013_v48 }
 0x471   : > { %v7049_v9 = vadd.f32 %v6955_v19, %v6791_v63  ;;  %v5151_v28 = vsel %vm1959_vm12, %v5148_v0, %v5150_v31  ;;  %v5153_v61 = vsel %vm1959_vm12, %v5150_v31, %v5152_v14  ;;  %v7097_v47 = vadd.f32 %v15441_v45, %v7048_v13  ;;  %v9637_v11 = vpop.f32.mrb[95].mxu0 }
 0x472   : > { %v5242_v17 = vadd.f32 %v5151_v28, %v4942_v30  ;;  %v5243_v1 = vadd.f32 %v5153_v61, %v4943_v54  ;;  %v5410_v7 = vrot.slane %v15684_v51, 2  ;;  %v5409_v5 = vsel %vm2218_vm13, %v5406_v55, %v5408_v57  ;;  %v15706_v43 = vpop.f32.mrb[96].mxu0 }
 0x473   : > { %v7098_v63 = vadd.f32 %v15441_v45, %v7049_v9  ;;  %v15704_v0 = vmul.f32 %v15163_v39, %v17212_v12  ;;  %v5670_v31 = vrot.slane %v5554_v8, 2  ;;  %v7139_v19 = vmax.f32 %v7097_v47, 0.0  ;;  %v9640_v13 = vpop.f32.mrb[97].mxu0 }
 0x474   : > { %v5411_v30 = vsel %vm2218_vm13, %v5408_v57, %v5410_v7  ;;  %v5500_v54 = vadd.f32 %v5409_v5, %v5242_v17  ;;  %v5809_v11 = vmul.f32 %v15184_v2, %v14883_v34  ;;  %v15717_v9 = vpop.f32.mrb[98].mxu0  ;;  %v15721_v61 = vmul.f32 %v15184_v2, %v17212_v12 }
 0x475   : > { %v7140_v22 = vmax.f32 %v7098_v63, 0.0  ;;  %v5501_v32 = vadd.f32 %v5411_v30, %v5243_v1  ;;  %v5671_v55 = vsel %vm2218_vm13, %v5668_v3, %v5670_v31  ;;  %v5672_v8 = vrot.slane %v15704_v0, 2  ;;  %v9641_v17 = vpop.f32.mrb[99].mxu0 }
 0x476   : > { %v5762_v28 = vadd.f32 %v5671_v55, %v5500_v54  ;;  %v5922_v57 = vrot.slane %v5809_v11, 3  ;;  %v6063_v47 = vmul.f32 %v15196_v20, %v14883_v34  ;;  %v15730_v3 = vmul.f32 %v15196_v20, %v17212_v12 }
 0x477   : > { %v7166_v63 = vpack.c.bf16 %v7140_v22, %v7139_v19  ;;  %v5673_v42 = vsel %vm2218_vm13, %v5670_v31, %v5672_v8  ;;  %v6325_v1 = vmul.f32 %v15223_v59, %v15011_v10  ;;  %v5924_v54 = vrot.slane %v15721_v61, 3 }
 0x478   : > { %v5763_v5 = vadd.f32 %v5673_v42, %v5501_v32  ;;  %v5923_v30 = vsel %vm2735_vm5, %v5920_v53, %v5922_v57  ;;  %v6178_v11 = vrot.slane %v6063_v47, 4  ;;  %v6180_v31 = vrot.slane %v15730_v3, 4 }
 0x479   : > { %v7330_v19 = vshrl.u32 %v7166_v63, 16  ;;  %v7333_v13 = vshll.u32 %v7166_v63, 16  ;;  %v6014_v22 = vadd.f32 %v5923_v30, %v5762_v28  ;;  %v5925_v55 = vsel %vm2735_vm5, %v5922_v57, %v5924_v54 }
 0x47a   : > { %v6179_v32 = vsel %vm2992_vm7, %v6176_v52, %v6178_v11  ;;  %v6440_v53 = vrot.slane %v6325_v1, 4  ;;  %v6015_v42 = vadd.f32 %v5925_v55, %v5763_v5  ;;  %v6181_v28 = vsel %vm2992_vm7, %v6178_v11, %v6180_v31 }
 0x47b   : > { %v7332_v17 = vrot.slane %v7330_v19, 2  ;;  %v7335_v47 = vrot.slane %v7333_v13, 3  ;;  %v6272_v63 = vadd.f32 %v6179_v32, %v6014_v22  ;;  %v6442_v36 = vrot.slane %v15747_v58, 4 }
 0x47c   : > { %v6441_v57 = vsel %vm2992_vm7, %v6438_v27, %v6440_v53  ;;  %v6583_v52 = vmul.f32 %v15369_v56, %v15011_v10  ;;  %v6273_v1 = vadd.f32 %v6181_v28, %v6015_v42  ;;  %v15762_v5 = vmul.f32 %v15369_v56, %v15013_v48 }
 0x47d   : > { %v15758_v30 = vor.u32 %v7335_v47, %v7332_v17  ;;  %v6841_v11 = vmul.f32 %v15380_v49, %v15011_v10  ;;  %v6443_v15 = vsel %vm2992_vm7, %v6440_v53, %v6442_v36  ;;  %v6534_v27 = vadd.f32 %v6441_v57, %v6272_v63  ;;  %v15777_v47 = vpop.f32.mrb[100].mxu0 }
 0x47e   : > { %v6698_v19 = vrot.slane %v6583_v52, 5  ;;  %v15771_v13 = vmul.f32 %v15380_v49, %v15013_v48  ;;  %v6535_v55 = vadd.f32 %v6443_v15, %v6273_v1  ;;  %v6700_v32 = vrot.slane %v15762_v5, 5  ;;  %v15913_v5 = vld [vmem:[%s16614_s9] ss:$0 sm:$0xff] }
 0x47f   : > { %v7337_v22 = vsel %vm4075_vm8, %v15622_v40, %v15758_v30  ;;  %v6956_v17 = vrot.slane %v6841_v11, 6  ;;  %v4944_v28 = vmul.f32 %v15112_v41, %v14742_v62  ;;  %v4945_v63 = vmul.f32 %v15112_v41, %v14883_v34  ;;  %v9644_v40 = vpop.f32.mrb[101].mxu0 }
 0x480   : > { %9683 = vmatmul.mubr.bf16.gmra.mrb[140].mxu0 %v7337_v22  ;;  %v6699_v53 = vsel %vm3513_vm11, %v6696_v50, %v6698_v19  ;;  %v6958_v42 = vrot.slane %v15771_v13, 6  ;;  %v6701_v57 = vsel %vm3513_vm11, %v6698_v19, %v6700_v32  ;;  %v17213_v4 = vrot.slane %v15648_v6, 6  ;;  %v15797_v62 = vpop.f32.mrb[102].mxu0  ;;  %v15925_v13 = vld [vmem:[%s16614_s9 + $0x1] ss:$0 sm:$0xff] }
 0x481   : > { %9686 = vmatprep.mubr.msk.bf16.mxu0 %vm9989_vm0, %v16923_v23  ;;  %v6792_v52 = vadd.f32 %v6699_v53, %v6534_v27  ;;  %v5036_v1 = vmul.f32 %v15127_v37, %v14883_v34  ;;  %v6793_v11 = vadd.f32 %v6701_v57, %v6535_v55  ;;  %v15804_v15 = vmul.f32 %v15127_v37, %v17212_v12  ;;  %v9645_v6 = vpop.f32.mrb[103].mxu0 }
 0x482   : > { %v6957_v50 = vsel %vm3772_vm6, %v17213_v4, %v6956_v17  ;;  %v6959_v41 = vsel %vm3772_vm6, %v6956_v17, %v6958_v42  ;;  %v5294_v27 = vmul.f32 %v15140_v38, %v14883_v34  ;;  %v15810_v53 = vmul.f32 %v15140_v38, %v17212_v12 }
 0x483   : > { %v7050_v19 = vadd.f32 %v6957_v50, %v6792_v52  ;;  %v5154_v22 = vrot.slane %v5036_v1, 1  ;;  %v5556_v55 = vmul.f32 %v15163_v39, %v15011_v10  ;;  %v7051_v40 = vadd.f32 %v6959_v41, %v6793_v11 }
 0x484   : > { %v5156_v17 = vrot.slane %v15804_v15, 1  ;;  %v5412_v57 = vrot.slane %v5294_v27, 2  ;;  %v15817_v37 = vmul.f32 %v15163_v39, %v15013_v48  ;;  %v5414_v38 = vrot.slane %v15810_v53, 2  ;;  %v15980_v53 = vld [vmem:[%s16614_s9 + $0x4] ss:$0 sm:$0xff] }
 0x485   : > { %v7099_v34 = vadd.f32 %v15441_v45, %v7050_v19  ;;  %v5155_v52 = vsel %vm1959_vm12, %v5152_v14, %v5154_v22  ;;  %v5674_v4 = vrot.slane %v5556_v55, 2  ;;  %v7100_v50 = vadd.f32 %v15441_v45, %v7051_v40 }
 0x486   : > { %v5157_v1 = vsel %vm1959_vm12, %v5154_v22, %v5156_v17  ;;  %v5244_v11 = vadd.f32 %v5155_v52, %v4944_v28  ;;  %v5413_v41 = vsel %vm2218_vm13, %v5410_v7, %v5412_v57  ;;  %v5415_v24 = vsel %vm2218_vm13, %v5412_v57, %v5414_v38 }
 0x487   : > { %v7141_v27 = vmax.f32 %v7099_v34, 0.0  ;;  %v5245_v6 = vadd.f32 %v5157_v1, %v4945_v63  ;;  %v5675_v14 = vsel %vm2218_vm13, %v5672_v8, %v5674_v4  ;;  %v7142_v19 = vmax.f32 %v7100_v50, 0.0 }
 0x488   : > { %v5502_v55 = vadd.f32 %v5413_v41, %v5244_v11  ;;  %v5676_v40 = vrot.slane %v15817_v37, 2  ;;  %v5811_v28 = vmul.f32 %v15184_v2, %v15011_v10  ;;  %v15842_v7 = vmul.f32 %v15184_v2, %v15013_v48 }
 0x489   : > { %v5503_v51 = vadd.f32 %v5415_v24, %v5245_v6  ;;  %v6065_v63 = vmul.f32 %v15196_v20, %v15011_v10  ;;  %v15848_v0 = vmul.f32 %v15196_v20, %v15013_v48  ;;  %v7167_v8 = vpack.c.bf16 %v7142_v19, %v7141_v27 }
 0x48a   : > { %v5677_v22 = vsel %vm2218_vm13, %v5674_v4, %v5676_v40  ;;  %v5764_v57 = vadd.f32 %v5675_v14, %v5502_v55  ;;  %v5926_v34 = vrot.slane %v5811_v28, 3  ;;  %v5928_v50 = vrot.slane %v15842_v7, 3 }
 0x48b   : > { %v5765_v52 = vadd.f32 %v5677_v22, %v5503_v51  ;;  %v6182_v1 = vrot.slane %v6065_v63, 4  ;;  %v6184_v2 = vrot.slane %v15848_v0, 4  ;;  %v7339_v11 = vshrl.u32 %v7167_v8, 16 }
 0x48c   : > { %v7342_v41 = vshll.u32 %v7167_v8, 16  ;;  %v5927_v20 = vsel %vm2735_vm5, %v5924_v54, %v5926_v34  ;;  %v6327_v27 = vmul.f32 %v15223_v59, %v15167_v35  ;;  %v5929_v4 = vsel %vm2735_vm5, %v5926_v34, %v5928_v50 }
 0x48d   : > { %v6016_v6 = vadd.f32 %v5927_v20, %v5764_v57  ;;  %v6183_v24 = vsel %vm2992_vm7, %v6180_v31, %v6182_v1  ;;  %v6185_v14 = vsel %vm2992_vm7, %v6182_v1, %v6184_v2  ;;  %v7341_v19 = vrot.slane %v7339_v11, 2 }
 0x48e   : > { %v7344_v61 = vrot.slane %v7342_v41, 3  ;;  %v6017_v55 = vadd.f32 %v5929_v4, %v5765_v52  ;;  %v15871_v54 = vmul.f32 %v15223_v59, %v15169_v44  ;;  %v6444_v51 = vrot.slane %v6327_v27, 4 }
 0x48f   : > { %v6274_v28 = vadd.f32 %v6183_v24, %v6016_v6  ;;  %v6585_v63 = vmul.f32 %v15369_v56, %v15167_v35  ;;  %v15877_v3 = vmul.f32 %v15369_v56, %v15169_v44  ;;  %v6843_v57 = vmul.f32 %v15380_v49, %v15167_v35 }
 0x490   : > { %v15879_v31 = vor.u32 %v7344_v61, %v7341_v19  ;;  %v6275_v8 = vadd.f32 %v6185_v14, %v6017_v55  ;;  %v6446_v22 = vrot.slane %v15871_v54, 4  ;;  %v6445_v34 = vsel %vm2992_vm7, %v6442_v36, %v6444_v51 }
 0x491   : > { %v6702_v52 = vrot.slane %v6585_v63, 5  ;;  %v6704_v1 = vrot.slane %v15877_v3, 5  ;;  %v15890_v11 = vmul.f32 %v15380_v49, %v15169_v44  ;;  %v6536_v27 = vadd.f32 %v6445_v34, %v6274_v28  ;;  %v15938_v63 = vld [vmem:[%s16614_s9 + $0x2] ss:$0 sm:$0xff] }
 0x492   : > { %v7346_v41 = vsel %vm4075_vm8, %v15758_v30, %v15879_v31  ;;  %v6447_v20 = vsel %vm2992_vm7, %v6444_v51, %v6446_v22  ;;  %v6960_v4 = vrot.slane %v6843_v57, 6  ;;  %v4947_v19 = vmul.f32 %v15913_v5, %v15011_v10 }
 0x493   : > { %9687 = vmatmul.mubr.bf16.gmra.mrb[144].mxu0 %v7346_v41  ;;  %v6537_v58 = vadd.f32 %v6447_v20, %v6275_v8  ;;  %v6703_v36 = vsel %vm3513_vm11, %v6700_v32, %v6702_v52  ;;  %v6705_v6 = vsel %vm3513_vm11, %v6702_v52, %v6704_v1  ;;  %v16889_v24 = vrot.slane %v15890_v11, 6 }
 0x494   : > { %9690 = vmatprep.mubr.msk.bf16.mxu0 %vm9989_vm0, %v16923_v23  ;;  %v6794_v30 = vadd.f32 %v6703_v36, %v6536_v27  ;;  %v6961_v14 = vsel %vm3772_vm6, %v6958_v42, %v6960_v4  ;;  %v4946_v32 = vmul.f32 %v15913_v5, %v17212_v12  ;;  %v5038_v42 = vmul.f32 %v15925_v13, %v15011_v10  ;;  %v15933_v12 = vpop.f32.mrb[104].mxu0 }
 0x495   : > { %v6795_v61 = vadd.f32 %v6705_v6, %v6537_v58  ;;  %v6963_v55 = vsel %vm3772_vm6, %v6960_v4, %v16889_v24  ;;  %v15931_v28 = vmul.f32 %v15925_v13, %v15013_v48  ;;  %v5296_v8 = vmul.f32 %v15938_v63, %v15011_v10  ;;  %v9648_v52 = vpop.f32.mrb[105].mxu0 }
 0x496   : > { %v7052_v51 = vadd.f32 %v6961_v14, %v6794_v30  ;;  %v15944_v57 = vmul.f32 %v15938_v63, %v15013_v48  ;;  %v5558_v34 = vmul.f32 %v15163_v39, %v15167_v35  ;;  %v5158_v20 = vrot.slane %v5038_v42, 1  ;;  %v15953_v58 = vpop.f32.mrb[106].mxu0 }
 0x497   : > { %v7053_v41 = vadd.f32 %v6963_v55, %v6795_v61  ;;  %v5160_v27 = vrot.slane %v15931_v28, 1  ;;  %v15951_v4 = vmul.f32 %v15163_v39, %v15169_v44  ;;  %v5416_v36 = vrot.slane %v5296_v8, 2  ;;  %v9649_v14 = vpop.f32.mrb[107].mxu0 }
 0x498   : > { %v7101_v10 = vadd.f32 %v15441_v45, %v7052_v51  ;;  %v5418_v6 = vrot.slane %v15944_v57, 2  ;;  %v5678_v30 = vrot.slane %v5558_v34, 2  ;;  %v5159_v61 = vsel %vm1959_vm12, %v5156_v17, %v5158_v20 }
 0x499   : > { %v7102_v24 = vadd.f32 %v15441_v45, %v7053_v41  ;;  %v5161_v39 = vsel %vm1959_vm12, %v5158_v20, %v5160_v27  ;;  %v5680_v55 = vrot.slane %v15951_v4, 2  ;;  %v5246_v52 = vadd.f32 %v5159_v61, %v4946_v32 }
 0x49a   : > { %v7143_v42 = vmax.f32 %v7101_v10, 0.0  ;;  %v5247_v51 = vadd.f32 %v5161_v39, %v4947_v19  ;;  %v5417_v8 = vsel %vm2218_vm13, %v5414_v38, %v5416_v36  ;;  %v5419_v15 = vsel %vm2218_vm13, %v5416_v36, %v5418_v6 }
 0x49b   : > { %v7144_v34 = vmax.f32 %v7102_v24, 0.0  ;;  %v5679_v17 = vsel %vm2218_vm13, %v5676_v40, %v5678_v30  ;;  %v5681_v41 = vsel %vm2218_vm13, %v5678_v30, %v5680_v55  ;;  %v5504_v20 = vadd.f32 %v5417_v8, %v5246_v52  ;;  %v15991_v40 = vld [vmem:[%s16614_s9 + $0x5] ss:$0 sm:$0xff] }
 0x49c   : > { %v5505_v32 = vadd.f32 %v5419_v15, %v5247_v51  ;;  %v5813_v38 = vmul.f32 %v15980_v53, %v15167_v35  ;;  %v15986_v24 = vmul.f32 %v15980_v53, %v15169_v44  ;;  %v6067_v19 = vmul.f32 %v15991_v40, %v15167_v35 }
 0x49d   : > { %v7168_v37 = vpack.c.bf16 %v7144_v34, %v7143_v42  ;;  %v15997_v10 = vmul.f32 %v15991_v40, %v15169_v44  ;;  %v6329_v36 = vmul.f32 %v15223_v59, %v15345_v25  ;;  %v5766_v30 = vadd.f32 %v5679_v17, %v5504_v20  ;;  %v16012_v59 = vld [vmem:[%s16614_s9 + $0x6] ss:$0 sm:$0xff] }
 0x49e   : > { %v5767_v14 = vadd.f32 %v5681_v41, %v5505_v32  ;;  %v5930_v61 = vrot.slane %v5813_v38, 3  ;;  %v16890_v39 = vrot.slane %v15986_v24, 3  ;;  %v6186_v51 = vrot.slane %v6067_v19, 4 }
 0x49f   : > { %v7348_v42 = vshrl.u32 %v7168_v37, 16  ;;  %v7351_v52 = vshll.u32 %v7168_v37, 16  ;;  %v6188_v8 = vrot.slane %v15997_v10, 4  ;;  %v16016_v17 = vmul.f32 %v16012_v59, %v15347_v29 }
 0x4a0   : > { %v5931_v34 = vsel %vm2735_vm5, %v5928_v50, %v5930_v61  ;;  %v5933_v15 = vsel %vm2735_vm5, %v5930_v61, %v16890_v39  ;;  %v6448_v41 = vrot.slane %v6329_v36, 4  ;;  %v6187_v50 = vsel %vm2992_vm7, %v6184_v2, %v6186_v51 }
 0x4a1   : > { %v7350_v20 = vrot.slane %v7348_v42, 2  ;;  %v7353_v32 = vrot.slane %v7351_v52, 3  ;;  %v6018_v38 = vadd.f32 %v5931_v34, %v5766_v30  ;;  %v6019_v7 = vadd.f32 %v5933_v15, %v5767_v14 }
 0x4a2   : > { %v6189_v37 = vsel %vm2992_vm7, %v6186_v51, %v6188_v8  ;;  %v6449_v19 = vsel %vm2992_vm7, %v6446_v22, %v6448_v41  ;;  %v6450_v61 = vrot.slane %v16016_v17, 4  ;;  %v6587_v30 = vmul.f32 %v15369_v56, %v15345_v25  ;;  %v16171_v17 = vld [vmem:[%s16614_s9 + $0x8] ss:$0 sm:$0xff] }
 0x4a3   : > { %v16028_v39 = vor.u32 %v7353_v32, %v7350_v20  ;;  %v6276_v36 = vadd.f32 %v6187_v50, %v6018_v38  ;;  %v6277_v42 = vadd.f32 %v6189_v37, %v6019_v7  ;;  %v16037_v2 = vmul.f32 %v15369_v56, %v15347_v29 }
 0x4a4   : > { %v6451_v0 = vsel %vm2992_vm7, %v6448_v41, %v6450_v61  ;;  %v6845_v54 = vmul.f32 %v15380_v49, %v15345_v25  ;;  %v16043_v22 = vmul.f32 %v15380_v49, %v15347_v29  ;;  %v6706_v34 = vrot.slane %v6587_v30, 5 }
 0x4a5   : > { %v7355_v14 = vsel %vm4075_vm8, %v15879_v31, %v16028_v39  ;;  %v6538_v52 = vadd.f32 %v6449_v19, %v6276_v36  ;;  %v6539_v51 = vadd.f32 %v6451_v0, %v6277_v42  ;;  %v6708_v15 = vrot.slane %v16037_v2, 5 }
 0x4a6   : > { %9691 = vmatmul.mubr.bf16.gmra.mrb[148].mxu0 %v7355_v14  ;;  %v6964_v41 = vrot.slane %v6845_v54, 6  ;;  %v6966_v56 = vrot.slane %v16043_v22, 6  ;;  %v4948_v20 = vmul.f32 %v15913_v5, %v15013_v48  ;;  %v6707_v49 = vsel %vm3513_vm11, %v6704_v1, %v6706_v34 }
 0x4a7   : > { %9694 = vmatprep.mubr.msk.bf16.mxu0 %vm9989_vm0, %v16923_v23  ;;  %v4949_v31 = vmul.f32 %v15913_v5, %v15167_v35  ;;  %v5040_v32 = vmul.f32 %v15925_v13, %v15167_v35  ;;  %v16063_v38 = vmul.f32 %v15925_v13, %v15169_v44  ;;  %v6709_v48 = vsel %vm3513_vm11, %v6706_v34, %v6708_v15 }
 0x4a8   : > { %v6796_v7 = vadd.f32 %v6707_v49, %v6538_v52  ;;  %v17214_v50 = vrot.slane %v15890_v11, 6  ;;  %v6967_v1 = vsel %vm3772_vm6, %v6964_v41, %v6966_v56  ;;  %v6797_v37 = vadd.f32 %v6709_v48, %v6539_v51  ;;  %v16084_v11 = vld [vmem:[%s16614_s9 + $0x3] ss:$0 sm:$0xff]  ;;  %v16092_v52 = vpop.f32.mrb[108].mxu0 }
 0x4a9   : > { %v5162_v19 = vrot.slane %v5040_v32, 1  ;;  %v5164_v36 = vrot.slane %v16063_v38, 1  ;;  %v5298_v42 = vmul.f32 %v15938_v63, %v15167_v35  ;;  %v16079_v0 = vmul.f32 %v15938_v63, %v15169_v44  ;;  %v9652_v49 = vpop.f32.mrb[109].mxu0 }
 0x4aa   : > { %v6965_v3 = vsel %vm3772_vm6, %v17214_v50, %v6964_v41  ;;  %v5560_v54 = vmul.f32 %v16084_v11, %v15345_v25  ;;  %v16090_v14 = vmul.f32 %v16084_v11, %v15347_v29  ;;  %v7055_v35 = vadd.f32 %v6967_v1, %v6797_v37 }
 0x4ab   : > { %v7054_v30 = vadd.f32 %v6965_v3, %v6796_v7  ;;  %v5163_v51 = vsel %vm1959_vm12, %v5160_v27, %v5162_v19  ;;  %v5165_v34 = vsel %vm1959_vm12, %v5162_v19, %v5164_v36  ;;  %v5420_v41 = vrot.slane %v5298_v42, 2  ;;  %v16102_v3 = vpop.f32.mrb[110].mxu0 }
 0x4ac   : > { %v5248_v48 = vadd.f32 %v5163_v51, %v4948_v20  ;;  %v5249_v7 = vadd.f32 %v5165_v34, %v4949_v31  ;;  %v5422_v50 = vrot.slane %v16079_v0, 2  ;;  %v7104_v1 = vadd.f32 %v15441_v45, %v7055_v35  ;;  %v9653_v19 = vpop.f32.mrb[111].mxu0  ;;  %v16114_v51 = vld [vmem:[#allocation3 + $0xb4] sm:$0xff]   ;;  %v6802_v0 = vld [vmem:[#allocation3 + $0xbc] sm:$0x3] }
 0x4ad   : > { %v7103_v32 = vadd.f32 %v15441_v45, %v7054_v30  ;;  %v5421_v28 = vsel %vm2218_vm13, %v5418_v6, %v5420_v41  ;;  %v5682_v27 = vrot.slane %v5560_v54, 2  ;;  %v5684_v37 = vrot.slane %v16090_v14, 2 }
 0x4ae   : > { %v5423_v20 = vsel %vm2218_vm13, %v5420_v41, %v5422_v50  ;;  %v5506_v31 = vadd.f32 %v5421_v28, %v5248_v48  ;;  %v5815_v30 = vmul.f32 %v15980_v53, %v15345_v25  ;;  %v7146_v35 = vmax.f32 %v7104_v1, 0.0 }
 0x4af   : > { %v7145_v42 = vmax.f32 %v7103_v32, 0.0  ;;  %v5507_v34 = vadd.f32 %v5423_v20, %v5249_v7  ;;  %v5683_v57 = vsel %vm2218_vm13, %v5680_v55, %v5682_v27  ;;  %v5685_v6 = vsel %vm2218_vm13, %v5682_v27, %v5684_v37 }
 0x4b0   : > { %v5768_v54 = vadd.f32 %v5683_v57, %v5506_v31  ;;  %v16124_v41 = vmul.f32 %v15980_v53, %v15347_v29  ;;  %v5934_v49 = vrot.slane %v5815_v30, 3  ;;  %v6069_v32 = vmul.f32 %v15991_v40, %v15345_v25 }
 0x4b1   : > { %v7169_v48 = vpack.c.bf16 %v7146_v35, %v7145_v42  ;;  %v5769_v1 = vadd.f32 %v5685_v6, %v5507_v34  ;;  %v16130_v4 = vmul.f32 %v15991_v40, %v15347_v29  ;;  %v6286_v55 = vunpack.c.l.bf16 %v16114_v51 }
 0x4b2   : > { %v17215_v7 = vrot.slane %v15986_v24, 3  ;;  %v5936_v27 = vrot.slane %v16124_v41, 3  ;;  %v6190_v19 = vrot.slane %v6069_v32, 4  ;;  %v6331_v20 = vmul.f32 %v16012_v59, %v15489_v16 }
 0x4b3   : > { %v7357_v31 = vshrl.u32 %v7169_v48, 16  ;;  %v7360_v30 = vshll.u32 %v7169_v48, 16  ;;  %v16891_v35 = vrot.slane %v16130_v4, 4  ;;  %v16147_v34 = vmul.f32 %v16012_v59, %v6286_v55 }
 0x4b4   : > { %v5935_v28 = vsel %vm2735_vm5, %v17215_v7, %v5934_v49  ;;  %v5937_v29 = vsel %vm2735_vm5, %v5934_v49, %v5936_v27  ;;  %v6191_v24 = vsel %vm2992_vm7, %v6188_v8, %v6190_v19  ;;  %v6452_v57 = vrot.slane %v6331_v20, 4  ;;  %v16159_v8 = vld [vmem:[%s16614_s9 + $0x7] ss:$0 sm:$0xff] }
 0x4b5   : > { %v6020_v42 = vadd.f32 %v5935_v28, %v5768_v54  ;;  %v7359_v6 = vrot.slane %v7357_v31, 2  ;;  %v7362_v32 = vrot.slane %v7360_v30, 3  ;;  %v6021_v7 = vadd.f32 %v5937_v29, %v5769_v1  ;;  %v4862_v31 = vld [vmem:[#allocation3 + $0xa8] sm:$0x7] }
 0x4b6   : > { %v6193_v54 = vsel %vm2992_vm7, %v6190_v19, %v16891_v35  ;;  %v6453_v49 = vsel %vm2992_vm7, %v6450_v61, %v6452_v57  ;;  %v6454_v10 = vrot.slane %v16147_v34, 4  ;;  %v6589_v28 = vmul.f32 %v16159_v8, %v15489_v16 }
 0x4b7   : > { %v6278_v48 = vadd.f32 %v6191_v24, %v6020_v42  ;;  %v16163_v1 = vor.u32 %v7362_v32, %v7359_v6  ;;  %v6279_v20 = vadd.f32 %v6193_v54, %v6021_v7  ;;  %v16166_v19 = vmul.f32 %v16159_v8, %v6286_v55 }
 0x4b8   : > { %v6847_v61 = vmul.f32 %v16171_v17, %v15489_v16  ;;  %v6455_v30 = vsel %vm2992_vm7, %v6452_v57, %v6454_v10  ;;  %v6710_v29 = vrot.slane %v6589_v28, 5  ;;  %v16179_v24 = vmul.f32 %v16171_v17, %v6286_v55  ;;  %v6024_v28 = vld [vmem:[#allocation3 + $0xb4] sm:$0x1] }
 0x4b9   : > { %v6540_v42 = vadd.f32 %v6453_v49, %v6278_v48  ;;  %v7364_v6 = vsel %vm4075_vm8, %v16028_v39, %v16163_v1  ;;  %v6541_v32 = vadd.f32 %v6455_v30, %v6279_v20  ;;  %v6712_v7 = vrot.slane %v16166_v19, 5 }
 0x4ba   : > { %v6968_v54 = vrot.slane %v6847_v61, 6  ;;  %9695 = vmatmul.mubr.bf16.gmra.mrb[152].mxu0 %v7364_v6  ;;  %v6711_v35 = vsel %vm3513_vm11, %v6708_v15, %v6710_v29  ;;  %v6970_v57 = vrot.slane %v16179_v24, 6  ;;  %v4905_v48 = vunpack.c.l.bf16 %v4862_v31 }
 0x4bb   : > { %v4950_v55 = vmul.f32 %v15913_v5, %v15169_v44  ;;  %9698 = vmatprep.mubr.msk.bf16.mxu0 %vm9989_vm0, %v16923_v23  ;;  %v6713_v39 = vsel %vm3513_vm11, %v6710_v29, %v6712_v7  ;;  %v6798_v49 = vadd.f32 %v6711_v35, %v6540_v42  ;;  %v5300_v15 = vmul.f32 %v15938_v63, %v15345_v25 }
 0x4bc   : > { %v6969_v2 = vsel %vm3772_vm6, %v6966_v56, %v6968_v54  ;;  %v6799_v20 = vadd.f32 %v6713_v39, %v6541_v32  ;;  %v6971_v44 = vsel %vm3772_vm6, %v6968_v54, %v6970_v57  ;;  %v4951_v61 = vmul.f32 %v15913_v5, %v4905_v48  ;;  %v16226_v39 = vpop.f32.mrb[112].mxu0 }
 0x4bd   : > { %v5042_v31 = vmul.f32 %v15925_v13, %v4905_v48  ;;  %v7056_v30 = vadd.f32 %v6969_v2, %v6798_v49  ;;  %v5424_v29 = vrot.slane %v5300_v15, 2  ;;  %v5562_v22 = vmul.f32 %v16084_v11, %v15489_v16  ;;  %v16219_v11 = vld [vmem:[%s16615_s10] ss:$0 sm:$0xff]  ;;  %v9656_v38 = vpop.f32.mrb[113].mxu0 }
 0x4be   : > { %v5817_v56 = vmul.f32 %v15980_v53, %v15489_v16  ;;  %v7057_v35 = vadd.f32 %v6971_v44, %v6799_v20  ;;  %v6026_v63 = vunpack.c.l.bf16 %v6024_v28  ;;  %v6071_v42 = vmul.f32 %v15991_v40, %v15489_v16  ;;  %v6284_v48 = vld [vmem:[#allocation3 + $0xbc] sm:$0x1] }
 0x4bf   : > { %v5166_v25 = vrot.slane %v5042_v31, 1  ;;  %v7105_v6 = vadd.f32 %v15441_v45, %v7056_v30  ;;  %v5425_v5 = vsel %vm2218_vm13, %v5422_v50, %v5424_v29  ;;  %v5686_v13 = vrot.slane %v5562_v22, 2 }
 0x4c0   : > { %v5938_v32 = vrot.slane %v5817_v56, 3  ;;  %v7106_v53 = vadd.f32 %v16219_v11, %v7057_v35  ;;  %v6072_v45 = vmul.f32 %v15991_v40, %v6026_v63  ;;  %v6194_v20 = vrot.slane %v6071_v42, 4  ;;  %v16234_v40 = vpop.f32.mrb[114].mxu0 }
 0x4c1   : > { %v5167_v54 = vsel %vm1959_vm12, %v5164_v36, %v5166_v25  ;;  %v5251_v16 = vadd.f32 %v5166_v25, %v4951_v61  ;;  %v7147_v50 = vmax.f32 %v7105_v6, 0.0  ;;  %v5687_v2 = vsel %vm2218_vm13, %v5684_v37, %v5686_v13  ;;  %v9657_v22 = vpop.f32.mrb[115].mxu0 }
 0x4c2   : > { %v5250_v49 = vadd.f32 %v5167_v54, %v4950_v55  ;;  %v5939_v15 = vsel %vm2735_vm5, %v5936_v27, %v5938_v32  ;;  %v7148_v28 = vmax.f32 %v7106_v53, 0.0  ;;  %v6196_v44 = vrot.slane %v6072_v45, 4 }
 0x4c3   : > { %v5509_v36 = vadd.f32 %v5424_v29, %v5251_v16  ;;  %v6287_v31 = vunpack.c.h.bf16 %v16114_v51  ;;  %v6288_v30 = vunpack.c.l.bf16 %v6284_v48  ;;  %v6804_v55 = vunpack.c.l.bf16 %v6802_v0 }
 0x4c4   : > { %v5508_v61 = vadd.f32 %v5425_v5, %v5250_v49  ;;  %v7170_v14 = vpack.c.bf16 %v7148_v28, %v7147_v50  ;;  %v17216_v37 = vrot.slane %v16130_v4, 4  ;;  %v6197_v27 = vsel %vm2992_vm7, %v6194_v20, %v6196_v44  ;;  %v16248_v50 = vld [vmem:[%s16617_s12] ss:$0 sm:$0xff] }
 0x4c5   : > { %v5771_v56 = vadd.f32 %v5686_v13, %v5509_v36  ;;  %v6333_v29 = vmul.f32 %v16012_v59, %v6287_v31  ;;  %v6334_v25 = vmul.f32 %v16012_v59, %v6288_v30  ;;  %v6591_v63 = vmul.f32 %v16159_v8, %v6287_v31 }
 0x4c6   : > { %v6195_v41 = vsel %vm2992_vm7, %v17216_v37, %v6194_v20  ;;  %v5770_v35 = vadd.f32 %v5687_v2, %v5508_v61  ;;  %v7366_v42 = vshrl.u32 %v7170_v14, 16  ;;  %v7369_v51 = vshll.u32 %v7170_v14, 16 }
 0x4c7   : > { %v6023_v6 = vadd.f32 %v5938_v32, %v5771_v56  ;;  %v6592_v5 = vmul.f32 %v16159_v8, %v6288_v30  ;;  %v6456_v13 = vrot.slane %v6333_v29, 4  ;;  %v6458_v54 = vrot.slane %v6334_v25, 4 }
 0x4c8   : > { %v6022_v53 = vadd.f32 %v5939_v15, %v5770_v35  ;;  %v6714_v4 = vrot.slane %v6591_v63, 5  ;;  %v7368_v16 = vrot.slane %v7366_v42, 2  ;;  %v7371_v45 = vrot.slane %v7369_v51, 3 }
 0x4c9   : > { %v6281_v48 = vadd.f32 %v6197_v27, %v6023_v6  ;;  %v6716_v0 = vrot.slane %v6592_v5, 5  ;;  %v6457_v32 = vsel %vm2992_vm7, %v6454_v10, %v6456_v13  ;;  %v6459_v8 = vsel %vm2992_vm7, %v6456_v13, %v6458_v54 }
 0x4ca   : > { %v6280_v59 = vadd.f32 %v6195_v41, %v6022_v53  ;;  %v6715_v49 = vsel %vm3513_vm11, %v6712_v7, %v6714_v4  ;;  %v16257_v2 = vor.u32 %v7371_v45, %v7368_v16  ;;  %v6849_v28 = vmul.f32 %v16171_v17, %v6287_v31 }
 0x4cb   : > { %v6543_v15 = vadd.f32 %v6459_v8, %v6281_v48  ;;  %v6717_v38 = vsel %vm3513_vm11, %v6714_v4, %v6716_v0  ;;  %v6850_v20 = vmul.f32 %v16171_v17, %v6804_v55  ;;  %v7487_v34 = vadd.f32 %v16248_v50, %v15613_v21 }
 0x4cc   : > { %v6542_v36 = vadd.f32 %v6457_v32, %v6280_v59  ;;  %v7490_v10 = vadd.f32 %v16248_v50, %v15626_v33  ;;  %v7373_v19 = vsel %vm4075_vm8, %v16163_v1, %v16257_v2  ;;  %v6972_v44 = vrot.slane %v6849_v28, 6 }
 0x4cd   : > { %v6801_v7 = vadd.f32 %v6717_v38, %v6543_v15  ;;  %v7495_v61 = vadd.f32 %v16248_v50, %v15643_v60  ;;  %9699 = vmatmul.mubr.bf16.gmra.mrb[156].mxu0 %v7373_v19  ;;  %v6974_v30 = vrot.slane %v6850_v20, 6  ;;  %v7652_v22 = vmax.f32 %v7487_v34, 0.0 }
 0x4ce   : > { %v6800_v31 = vadd.f32 %v6715_v49, %v6542_v36  ;;  %v7653_v17 = vmax.f32 %v7490_v10, 0.0  ;;  %9702 = vmatprep.mubr.msk.bf16.mxu0 %vm9989_vm0, %v16923_v23  ;;  %v6973_v21 = vsel %vm3772_vm6, %v6970_v57, %v6972_v44  ;;  %v7498_v1 = vadd.f32 %v16248_v50, %v15665_v18 }
 0x4cf   : > { %v7654_v33 = vmax.f32 %v7495_v61, 0.0  ;;  %v7503_v55 = vadd.f32 %v16248_v50, %v15677_v46  ;;  %v6975_v60 = vsel %vm3772_vm6, %v6972_v44, %v6974_v30  ;;  %v7506_v37 = vadd.f32 %v16248_v50, %v15694_v26 }
 0x4d0   : > { %v7058_v14 = vadd.f32 %v6973_v21, %v6800_v31  ;;  %v7695_v56 = vpack.c.bf16 %v7653_v17, %v7652_v22  ;;  %v7059_v41 = vadd.f32 %v6975_v60, %v6801_v7  ;;  %v7655_v27 = vmax.f32 %v7498_v1, 0.0 }
 0x4d1   : > { %v7656_v35 = vmax.f32 %v7503_v55, 0.0  ;;  %v7511_v24 = vadd.f32 %v16248_v50, %v15706_v43  ;;  %v7657_v29 = vmax.f32 %v7506_v37, 0.0  ;;  %v7514_v18 = vadd.f32 %v16248_v50, %v15717_v9  ;;  %v7550_v16 = vpop.f32.mrb[116].mxu0 }
 0x4d2   : > { %v7107_v57 = vadd.f32 %v16219_v11, %v7058_v14  ;;  %v7519_v46 = vadd.f32 %v16248_v50, %v15777_v47  ;;  %v7108_v25 = vadd.f32 %v16219_v11, %v7059_v41  ;;  %v7696_v63 = vpack.c.bf16 %v7655_v27, %v7654_v33  ;;  %v9660_v59 = vpop.f32.mrb[117].mxu0 }
 0x4d3   : > { %v7658_v42 = vmax.f32 %v7511_v24, 0.0  ;;  %v7522_v26 = vadd.f32 %v16248_v50, %v15797_v62  ;;  %v16293_v6 = vpack.c.bf16 %v7657_v29, %v7656_v35  ;;  %v7659_v43 = vmax.f32 %v7514_v18, 0.0  ;;  %v7553_v49 = vpop.f32.mrb[118].mxu0 }
 0x4d4   : > { %v7149_v51 = vmax.f32 %v7107_v57, 0.0  ;;  %v7660_v5 = vmax.f32 %v7519_v46, 0.0  ;;  %v7150_v53 = vmax.f32 %v7108_v25, 0.0  ;;  %v7527_v9 = vadd.f32 %v16248_v50, %v15933_v12  ;;  %v7693_v46 = vld [vmem:[%s17217_s20] sm:$0xff] }
 0x4d5   : > { %v7661_v13 = vmax.f32 %v7522_v26, 0.0  ;;  %v7530_v47 = vadd.f32 %v16248_v50, %v15953_v58  ;;  %v16299_v54 = vpack.c.bf16 %v7659_v43, %v7658_v42  ;;  %v7535_v11 = vadd.f32 %v16248_v50, %v16092_v52 }
 0x4d6   : > { %v7538_v62 = vadd.f32 %v16248_v50, %v16102_v3  ;;  %v7543_v4 = vadd.f32 %v16248_v50, %v16226_v39  ;;  %v7171_v45 = vpack.c.bf16 %v7150_v53, %v7149_v51  ;;  %v7662_v0 = vmax.f32 %v7527_v9, 0.0  ;;  %v9661_v39 = vpop.f32.mrb[119].mxu0 }
 0x4d7   : > { %v16307_v48 = vpack.c.bf16 %v7661_v13, %v7660_v5  ;;  %v7663_v12 = vmax.f32 %v7530_v47, 0.0  ;;  %v7664_v32 = vmax.f32 %v7535_v11, 0.0  ;;  %v7546_v8 = vadd.f32 %v16248_v50, %v16234_v40 }
 0x4d8   : > { %v7665_v58 = vmax.f32 %v7538_v62, 0.0  ;;  %v7375_v52 = vshrl.u32 %v7171_v45, 16  ;;  %v7378_v15 = vshll.u32 %v7171_v45, 16  ;;  %v7551_v3 = vadd.f32 %v16248_v50, %v7550_v16 }
 0x4d9   : > { %v16311_v38 = vpack.c.bf16 %v7663_v12, %v7662_v0  ;;  %v7666_v36 = vmax.f32 %v7543_v4, 0.0  ;;  %v7667_v20 = vmax.f32 %v7546_v8, 0.0  ;;  %v7554_v34 = vadd.f32 %v16248_v50, %v7553_v49 }
 0x4da   : > { %v16314_v28 = vpack.c.bf16 %v7665_v58, %v7664_v32  ;;  %v7377_v10 = vrot.slane %v7375_v52, 2  ;;  %v7380_v19 = vrot.slane %v7378_v15, 3  ;;  %v7668_v44 = vmax.f32 %v7551_v3, 0.0 }
 0x4db   : > { %v16317_v7 = vpack.c.bf16 %v7667_v20, %v7666_v36  ;;  %v7669_v40 = vmax.f32 %v7554_v34, 0.0  ;;  %v8717_v25 = vcombine.high %v7693_v46, %v7693_v46  ;;  %vm7726_vm12 = vcmask 588800  }
 0x4dc   : > { %v7381_v61 = vor.u32 %v7380_v19, %v7377_v10 }
 0x4dd   : > { %v7703_v31 = vpack.c.bf16 %v7669_v40, %v7668_v44  ;;  %7765 = vmatprep.mubr.bf16.mxu1 %v8717_v25 }
 0x4de   : > { %v7382_v30 = vsel %vm4075_vm8, %v16257_v2, %v7381_v61 }
 0x4df   : > { %9703 = vmatmul.mubr.bf16.gmra.mrb[160].mxu0 %v7382_v30  ;;  %9364 = vmatprep.subr.bf16.mxu1 %v7703_v31 }
 0x4e0   : > { %9706 = vmatprep.mubr.msk.bf16.mxu0 %vm9989_vm0, %v16923_v23  ;;  %9365 = vmatpush3.bf16.msra.mxu1 %v7695_v56 }
 0x4e7   : > { %9707 = vmatmul.mubr.bf16.gmra.mrb[164].mxu0 %v7381_v61 }
 0x4e9   : > { %v7558_v22 = vpop.f32.mrb[120].mxu0 }
 0x4ea   : > { %v7559_v17 = vadd.f32 %v16248_v50, %v7558_v22  ;;  %v9664_v21 = vpop.f32.mrb[121].mxu0 }
 0x4eb   : > { %v7561_v33 = vpop.f32.mrb[122].mxu0 }
 0x4ec   : > { %v7562_v1 = vadd.f32 %v16248_v50, %v7561_v33  ;;  %v9665_v55 = vpop.f32.mrb[123].mxu0  ;;  %v7670_v60 = vmax.f32 %v7559_v17, 0.0 }
 0x4ed   : > { %v8716_v55 = vcombine.low %v7693_v46, %v7693_v46 }
 0x4ee   : > { %v7671_v14 = vmax.f32 %v7562_v1, 0.0 }
 0x4f0   : > { %v7704_v37 = vpack.c.bf16 %v7671_v14, %v7670_v60 }
 0x4f2   : > { %9366 = vmatprep.subr.bf16.mxu1 %v7704_v37 }
 0x4f3   : > { %9367 = vmatpush3.bf16.msra.mxu1 %v7696_v63 }
 0x4ff   : > { %v7566_v2 = vpop.f32.mrb[124].mxu0 }
 0x500   : > { %v7567_v41 = vadd.f32 %v16248_v50, %v7566_v2  ;;  %v9668_v27 = vpop.f32.mrb[125].mxu0 }
 0x501   : > { %v7569_v35 = vpop.f32.mrb[126].mxu0 }
 0x502   : > { %v7570_v56 = vadd.f32 %v16248_v50, %v7569_v35  ;;  %v9669_v24 = vpop.f32.mrb[127].mxu0  ;;  %v7672_v57 = vmax.f32 %v7567_v41, 0.0 }
 0x504   : > { %v7673_v29 = vmax.f32 %v7570_v56, 0.0 }
 0x506   : > { %v7705_v18 = vpack.c.bf16 %v7673_v29, %v7672_v57 }
 0x508   : > { %9368 = vmatprep.subr.bf16.mxu1 %v7705_v18 }
 0x509   : > { %9369 = vmatpush3.bf16.msra.mxu1 %v16293_v6 }
 0x515   : > { %v7574_v63 = vpop.f32.mrb[128].mxu0 }
 0x516   : > { %v7575_v42 = vadd.f32 %v16248_v50, %v7574_v63  ;;  %v9672_v26 = vpop.f32.mrb[129].mxu0 }
 0x517   : > { %v7577_v51 = vpop.f32.mrb[130].mxu0 }
 0x518   : > { %v7578_v43 = vadd.f32 %v16248_v50, %v7577_v51  ;;  %v9673_v5 = vpop.f32.mrb[131].mxu0  ;;  %v7674_v53 = vmax.f32 %v7575_v42, 0.0 }
 0x51a   : > { %v7675_v13 = vmax.f32 %v7578_v43, 0.0 }
 0x51c   : > { %v7706_v9 = vpack.c.bf16 %v7675_v13, %v7674_v53 }
 0x51e   : > { %9370 = vmatprep.subr.bf16.mxu1 %v7706_v9 }
 0x51f   : > { %9371 = vmatpush3.bf16.msra.mxu1 %v16299_v54 }
 0x52b   : > { %v7582_v6 = vpop.f32.mrb[132].mxu0 }
 0x52c   : > { %v7583_v47 = vadd.f32 %v16248_v50, %v7582_v6  ;;  %v9676_v11 = vpop.f32.mrb[133].mxu0 }
 0x52d   : > { %v7585_v62 = vpop.f32.mrb[134].mxu0 }
 0x52e   : > { %v7586_v4 = vadd.f32 %v16248_v50, %v7585_v62  ;;  %v9677_v16 = vpop.f32.mrb[135].mxu0  ;;  %v7676_v45 = vmax.f32 %v7583_v47, 0.0 }
 0x530   : > { %v7677_v0 = vmax.f32 %v7586_v4, 0.0 }
 0x532   : > { %v7707_v12 = vpack.c.bf16 %v7677_v0, %v7676_v45 }
 0x534   : > { %9372 = vmatprep.subr.bf16.mxu1 %v7707_v12 }
 0x535   : > { %9373 = vmatpush3.bf16.msra.mxu1 %v16307_v48 }
 0x53f   : > { %v7590_v59 = vpop.f32.mrb[136].mxu0 }
 0x540   : > { %v7591_v32 = vadd.f32 %v16248_v50, %v7590_v59  ;;  %v9680_v58 = vpop.f32.mrb[137].mxu0 }
 0x541   : > { %v7593_v8 = vpop.f32.mrb[138].mxu0 }
 0x542   : > { %v7594_v54 = vadd.f32 %v16248_v50, %v7593_v8  ;;  %v9681_v49 = vpop.f32.mrb[139].mxu0  ;;  %v7678_v52 = vmax.f32 %v7591_v32, 0.0 }
 0x544   : > { %v7679_v15 = vmax.f32 %v7594_v54, 0.0 }
 0x546   : > { %v7708_v3 = vpack.c.bf16 %v7679_v15, %v7678_v52 }
 0x548   : > { %9374 = vmatprep.subr.bf16.mxu1 %v7708_v3 }
 0x549   : > { %9375 = vmatpush3.bf16.msra.mxu1 %v16311_v38 }
 0x553   : > { %v7598_v39 = vpop.f32.mrb[140].mxu0 }
 0x554   : > { %v7599_v36 = vadd.f32 %v16248_v50, %v7598_v39  ;;  %v9684_v20 = vpop.f32.mrb[141].mxu0 }
 0x555   : > { %v7601_v34 = vpop.f32.mrb[142].mxu0  ;;  %v9869_v20 = vld [vmem:[%s16618_s13 + $0x8] sm:$0xff]  }
 0x556   : > { %v7602_v48 = vadd.f32 %v16248_v50, %v7601_v34  ;;  %v9685_v10 = vpop.f32.mrb[143].mxu0  ;;  %v7680_v19 = vmax.f32 %v7599_v36, 0.0  ;;  %v9867_v36 = vld [vmem:[%s17217_s20 + $0x8] ss:$0 sps:$4 sm:$0xff]   ;;  %v9870_v34 = vld [vmem:[%s16618_s13 + $0x10] sm:$0xff]  }
 0x557   : > { %v9872_v10 = vld [vmem:[%s16618_s13 + $0x20] sm:$0xff]  }
 0x558   : > { %v7681_v44 = vmax.f32 %v7602_v48, 0.0  ;;  %v9871_v48 = vld [vmem:[%s16618_s13 + $0x18] sm:$0xff]  }
 0x55a   : > { %v7709_v40 = vpack.c.bf16 %v7681_v44, %v7680_v19  ;;  %v9873_v19 = vld [vmem:[%s16618_s13 + $0x28] sm:$0xff]   ;;  %v9874_v44 = vld [vmem:[%s16618_s13 + $0x30] sm:$0xff]  }
 0x55c   : > { %9376 = vmatprep.subr.bf16.mxu1 %v7709_v40  ;;  %v9875_v40 = vld [vmem:[%s16618_s13 + $0x38] sm:$0xff]  }
 0x55d   : > { %9377 = vmatpush3.bf16.msra.mxu1 %v16314_v28 }
 0x566   : > { %v7606_v61 = vpop.f32.mrb[144].mxu0 }
 0x567   : > { %v7607_v31 = vadd.f32 %v16248_v50, %v7606_v61  ;;  %v9688_v30 = vpop.f32.mrb[145].mxu0 }
 0x568   : > { %v7609_v22 = vpop.f32.mrb[146].mxu0 }
 0x569   : > { %v7610_v38 = vadd.f32 %v16248_v50, %v7609_v22  ;;  %v9689_v17 = vpop.f32.mrb[147].mxu0  ;;  %v7682_v21 = vmax.f32 %v7607_v31, 0.0 }
 0x56b   : > { %v7683_v33 = vmax.f32 %v7610_v38, 0.0 }
 0x56d   : > { %v7710_v1 = vpack.c.bf16 %v7683_v33, %v7682_v21 }
 0x56f   : > { %9378 = vmatprep.subr.bf16.mxu1 %v7710_v1 }
 0x570   : > { %9379 = vmatpush3.bf16.msra.mxu1 %v16317_v7 }
 0x571   : > { %9710 = vmatprep.subr.bf16.mxu1 %v16923_v23 }
 0x573   : > { %7766 = vmatmul.mubr.bf16.vlgmr.msra.gmra.mrb[84].mxu1 %v8716_v55 }
 0x574   : > { %9720 = vmatprep.mubr.msk.bf16.mxu1 %vm9989_vm0, %v16923_v23 }
 0x579   : > { %v7614_v28 = vpop.f32.mrb[148].mxu0 }
 0x57a   : > { %v7615_v60 = vadd.f32 %v16248_v50, %v7614_v28  ;;  %v9692_v14 = vpop.f32.mrb[149].mxu0 }
 0x57b   : > { %v7617_v37 = vpop.f32.mrb[150].mxu0  ;;  %v9878_v14 = vld [vmem:[%s16620_s15 + $0x4] ss:$12 sps:$4 sm:$0xff]  }
 0x57c   : > { %v7618_v2 = vadd.f32 %v16248_v50, %v7617_v37  ;;  %v9693_v41 = vpop.f32.mrb[151].mxu0  ;;  %v7684_v27 = vmax.f32 %v7615_v60, 0.0  ;;  %v17218_v60 = vmov 0   ;;  %v9876_v37 = vld [vmem:[%s16620_s15] ss:$12 sps:$4 sm:$0xff]  }
 0x57d   : > { %v9879_v41 = vld [vmem:[%s16620_s15 + $0x18] ss:$12 sps:$4 sm:$0xff]  }
 0x57e   : > { %v7685_v35 = vmax.f32 %v7618_v2, 0.0  ;;  %v9881_v2 = vld [vmem:[%s16620_s15 + $0x1c] ss:$12 sps:$4 sm:$0xff]  }
 0x580   : > { %v7711_v56 = vpack.c.bf16 %v7685_v35, %v7684_v27  ;;  %v9884_v27 = vld [vmem:[%s16620_s15 + $0x34] ss:$12 sps:$4 sm:$0xff]   ;;  %v9882_v35 = vld [vmem:[%s16620_s15 + $0x30] ss:$12 sps:$4 sm:$0xff]  }
 0x582   : > { %9711 = vmatpush3.bf16.msra.mxu1 %v7711_v56  ;;  %v9887_v56 = vld [vmem:[%s16620_s15 + $0x4c] ss:$12 sps:$4 sm:$0xff]  }
 0x583   : > { %9712 = vmatprep.subr.bf16.mxu1 %v16923_v23 }
 0x58d   : > { %v7622_v7 = vpop.f32.mrb[152].mxu0 }
 0x58e   : > { %v7623_v24 = vadd.f32 %v16248_v50, %v7622_v7  ;;  %v9696_v57 = vpop.f32.mrb[153].mxu0  ;;  %v9885_v7 = vld [vmem:[%s16620_s15 + $0x48] ss:$12 sps:$4 sm:$0xff]  }
 0x58f   : > { %v7625_v29 = vpop.f32.mrb[154].mxu0  ;;  %v9890_v57 = vld [vmem:[%s16620_s15 + $0x64] ss:$12 sps:$4 sm:$0xff]  }
 0x590   : > { %v7626_v18 = vadd.f32 %v16248_v50, %v7625_v29  ;;  %v9697_v46 = vpop.f32.mrb[155].mxu0  ;;  %v7686_v25 = vmax.f32 %v7623_v24, 0.0  ;;  %v9888_v24 = vld [vmem:[%s16620_s15 + $0x60] ss:$12 sps:$4 sm:$0xff]   ;;  %v9893_v29 = vld [vmem:[%s16620_s15 + $0x7c] ss:$12 sps:$4 sm:$0xff]  }
 0x591   : > { %v9896_v46 = vld [vmem:[%s16620_s15 + $0x94] ss:$12 sps:$4 sm:$0xff]  }
 0x592   : > { %v7687_v63 = vmax.f32 %v7626_v18, 0.0  ;;  %v9891_v18 = vld [vmem:[%s16620_s15 + $0x78] ss:$12 sps:$4 sm:$0xff]  }
 0x594   : > { %v7712_v42 = vpack.c.bf16 %v7687_v63, %v7686_v25  ;;  %v9894_v25 = vld [vmem:[%s16620_s15 + $0x90] ss:$12 sps:$4 sm:$0xff]   ;;  %v9899_v63 = vld [vmem:[%s16620_s15 + $0xac] ss:$12 sps:$4 sm:$0xff]  }
 0x596   : > { %9713 = vmatpush3.bf16.msra.mxu1 %v7712_v42  ;;  %v9897_v42 = vld [vmem:[%s16620_s15 + $0xa8] ss:$12 sps:$4 sm:$0xff]  }
 0x597   : > { %9714 = vmatprep.subr.bf16.mxu1 %v16923_v23 }
 0x5a0   : > { %v7630_v26 = vpop.f32.mrb[156].mxu0 }
 0x5a1   : > { %v7631_v51 = vadd.f32 %v16248_v50, %v7630_v26  ;;  %v9700_v43 = vpop.f32.mrb[157].mxu0  ;;  %v8720_v26 = vld [vmem:[%s16619_s14] ss:$0 sm:$0xff] }
 0x5a2   : > { %v7633_v5 = vpop.f32.mrb[158].mxu0 }
 0x5a3   : > { %v7634_v53 = vadd.f32 %v16248_v50, %v7633_v5  ;;  %v9701_v13 = vpop.f32.mrb[159].mxu0  ;;  %v7688_v9 = vmax.f32 %v7631_v51, 0.0 }
 0x5a5   : > { %v7689_v6 = vmax.f32 %v7634_v53, 0.0 }
 0x5a7   : > { %v7713_v47 = vpack.c.bf16 %v7689_v6, %v7688_v9  ;;  %v9900_v6 = vld [vmem:[%s16620_s15 + $0x8] ss:$12 sps:$4 sm:$0xff]  }
 0x5a9   : > { %9715 = vmatpush3.bf16.msra.mxu1 %v7713_v47 }
 0x5aa   : > { %9716 = vmatprep.subr.bf16.mxu1 %v16923_v23 }
 0x5b2   : > { %v7638_v11 = vpop.f32.mrb[160].mxu0 }
 0x5b3   : > { %v7639_v62 = vadd.f32 %v16248_v50, %v7638_v11  ;;  %v9704_v4 = vpop.f32.mrb[161].mxu0  ;;  %v9901_v11 = vld [vmem:[%s16620_s15 + $0x20] ss:$12 sps:$4 sm:$0xff]  }
 0x5b4   : > { %v7641_v16 = vpop.f32.mrb[162].mxu0  ;;  %v9903_v4 = vld [vmem:[%s16620_s15 + $0x50] ss:$12 sps:$4 sm:$0xff]  }
 0x5b5   : > { %v7642_v45 = vadd.f32 %v16248_v50, %v7641_v16  ;;  %v9705_v0 = vpop.f32.mrb[163].mxu0  ;;  %v7690_v12 = vmax.f32 %v7639_v62, 0.0  ;;  %v9902_v62 = vld [vmem:[%s16620_s15 + $0x38] ss:$12 sps:$4 sm:$0xff]   ;;  %v9904_v16 = vld [vmem:[%s16620_s15 + $0x68] ss:$12 sps:$4 sm:$0xff]  }
 0x5b6   : > { %v9906_v0 = vld [vmem:[%s16620_s15 + $0x98] ss:$12 sps:$4 sm:$0xff]  }
 0x5b7   : > { %v7691_v59 = vmax.f32 %v7642_v45, 0.0  ;;  %v9905_v45 = vld [vmem:[%s16620_s15 + $0x80] ss:$12 sps:$4 sm:$0xff]  }
 0x5b9   : > { %v7714_v32 = vpack.c.bf16 %v7691_v59, %v7690_v12  ;;  %v9907_v12 = vld [vmem:[%s16620_s15 + $0xb0] ss:$12 sps:$4 sm:$0xff]  }
 0x5ba   : > { %v7646_v58 = vpop.f32.mrb[164].mxu0 }
 0x5bb   : > { %v7647_v8 = vadd.f32 %v16248_v50, %v7646_v58  ;;  %v9708_v54 = vpop.f32.mrb[165].mxu0  ;;  %9717 = vmatpush3.bf16.msra.mxu1 %v7714_v32  ;;  %v9868_v50 = vld [vmem:[%s16618_s13] sm:$0xff]  }
 0x5bc   : > { %v7649_v49 = vpop.f32.mrb[166].mxu0  ;;  %9718 = vmatprep.subr.bf16.mxu1 %v16923_v23 }
 0x5bd   : > { %v7692_v52 = vmax.f32 %v7647_v8, 0.0  ;;  %v9709_v15 = vpop.f32.mrb[167].mxu0 }
 0x5bf   : > { %v7715_v3 = vpack.c.bf16 %v7692_v52, %v7692_v52 }
 0x5c1   : > { %v7731_v39 = vsel %vm2992_vm7, %v7715_v3, 0 }
 0x5c2   : > { %9719 = vmatpush3.bf16.msra.mxu1 %v7731_v39 }
 0x5c3   : > { %9724 = vmatprep.subr.bf16.mxu1 %v16923_v23 }
 0x5c5   : > { %9721 = vmatmul.mubr.msk.bf16.vlgmr.msra.gmra.mrb[88].mxu1 %vm7726_vm12, %v9867_v36 }
 0x5c6   : > { %9725 = vmatpush3.bf16.msra.mxu1 %v9868_v50  ;;  %9740 = vmatprep.mubr.msk.bf16.mxu1 %vm9989_vm0, %v16923_v23 }
 0x5c7   : > { %9726 = vmatprep.subr.bf16.mxu1 %v16923_v23 }
 0x5ca   : > { %9727 = vmatpush3.bf16.msra.mxu1 %v9869_v20  ;;  %v16506_v20 = vld [vmem:[%s16621_s16] sm:$0x7] }
 0x5cb   : > { %9728 = vmatprep.subr.bf16.mxu1 %v16923_v23 }
 0x5ce   : > { %9729 = vmatpush3.bf16.msra.mxu1 %v9870_v34 }
 0x5cf   : > { %9730 = vmatprep.subr.bf16.mxu1 %v16923_v23 }
 0x5d2   : > { %9731 = vmatpush3.bf16.msra.mxu1 %v9871_v48 }
 0x5d3   : > { %9732 = vmatprep.subr.bf16.mxu1 %v16923_v23 }
 0x5d6   : > { %9733 = vmatpush3.bf16.msra.mxu1 %v9872_v10 }
 0x5d7   : > { %9734 = vmatprep.subr.bf16.mxu1 %v16923_v23 }
 0x5da   : > { %9735 = vmatpush3.bf16.msra.mxu1 %v9873_v19 }
 0x5db   : > { %9736 = vmatprep.subr.bf16.mxu1 %v16923_v23 }
 0x5de   : > { %9737 = vmatpush3.bf16.msra.mxu1 %v9874_v44 }
 0x5df   : > { %9738 = vmatprep.subr.bf16.mxu1 %v16923_v23 }
 0x5e2   : > { %9739 = vmatpush3.bf16.msra.mxu1 %v9875_v40 }
 0x5e3   : > { %8088 = vmatprep.subr.bf16.mxu1 %v9878_v14 }
 0x646   : > { %v9380_v61 = vpop.f32.mrb[84].mxu1 }
 0x647   : > { %v9381_v31 = vpop.f32.mrb[85].mxu1 }
 0x648   : > { %v9382_v30 = vadd.f32 %v9381_v31, %v9380_v61  ;;  %v9383_v22 = vpop.f32.mrb[86].mxu1 }
 0x649   : > { %v9384_v38 = vpop.f32.mrb[87].mxu1 }
 0x698   : > { %v7807_v17 = vpop.f32.mrb[88].mxu1 }
 0x699   : > { %v7808_v21 = vadd.f32 %v9382_v30, %v7807_v17  ;;  %v9722_v33 = vpop.f32.mrb[89].mxu1 }
 0x69a   : > { %v7810_v1 = vpop.f32.mrb[90].mxu1 }
 0x69b   : > { %v7813_v55 = vpack.c.bf16 %v7808_v21, %v7808_v21  ;;  %v9723_v28 = vpop.f32.mrb[91].mxu1 }
 0x69c   : > { %v9995_v28 = vmov 1  }
 0x69d   : > { %9741 = vmatmul.mubr.bf16.vlgmr.msra.gmra.mrb[92].mxu1 %v7813_v55  ;;  %9797 = vset.pattern.permute.xlu0 %v9995_v28 }
 0x69e   : > { %8120 = vmatprep.mubr.bf16.mxu1 %v17218_v60  ;;  %8089 = vmatpush1.bf16.msra.mxu1 %v9876_v37 }
 0x69f   : > { %8090 = vmatprep.subr.bf16.mxu1 %v9881_v2 }
 0x6a2   : > { %8091 = vmatpush1.bf16.msra.mxu1 %v9879_v41 }
 0x6a3   : > { %8092 = vmatprep.subr.bf16.mxu1 %v9884_v27  ;;  %v16530_v27 = vld [vmem:[%s652_s28] sm:$0x1] }
 0x6a6   : > { %8093 = vmatpush1.bf16.msra.mxu1 %v9882_v35 }
 0x6a7   : > { %8094 = vmatprep.subr.bf16.mxu1 %v9887_v56  ;;  %v9999_v56 = vmov 2  }
 0x6aa   : > { %8095 = vmatpush1.bf16.msra.mxu1 %v9885_v7 }
 0x6ab   : > { %8096 = vmatprep.subr.bf16.mxu1 %v9890_v57 }
 0x6ae   : > { %8097 = vmatpush1.bf16.msra.mxu1 %v9888_v24 }
 0x6af   : > { %8098 = vmatprep.subr.bf16.mxu1 %v9893_v29 }
 0x6b2   : > { %8099 = vmatpush1.bf16.msra.mxu1 %v9891_v18 }
 0x6b3   : > { %8100 = vmatprep.subr.bf16.mxu1 %v9896_v46 }
 0x6b6   : > { %8101 = vmatpush1.bf16.msra.mxu1 %v9894_v25  ;;  %v10000_v25 = vmov 3  }
 0x6b7   : > { %8102 = vmatprep.subr.bf16.mxu1 %v9899_v63  ;;  %v10001_v63 = vmov 8  }
 0x6ba   : > { %8103 = vmatpush1.bf16.msra.mxu1 %v9897_v42  ;;  %v10002_v42 = vmov 5  }
 0x6bb   : > { %9744 = vmatprep.subr.bf16.mxu1 %v16923_v23 }
 0x770   : > { %v7919_v51 = vpop.f32.mrb[92].mxu1 }
 0x771   : > { %v16457_v43 = vadd.f32 %v8720_v26, %v7919_v51  ;;  %v9742_v5 = vpop.f32.mrb[93].mxu1 }
 0x772   : > { %v7922_v53 = vpop.f32.mrb[94].mxu1  ;;  %v10003_v5 = vmov 7  }
 0x773   : > { %7925 = vst [vmem:[%s656_s30] sm:$0xff] %v16457_v43  ;;  %v8296_v13 = vmul.f32 %v16457_v43, %v16457_v43  ;;  %v7927_v9 = vpack.c.bf16 %v16457_v43, %v16457_v43  ;;  %v9743_v47 = vpop.f32.mrb[95].mxu1  ;;  %s9994_s30 = smov 1   ;;  %v10004_v53 = vmov 6  }
 0x774   : > { %v10006_v47 = vmov 9  }
 0x775   : > { %8298 = vrot.lane.b32.xlu1 %v8296_v13, %s9991_s23  ;;  %8302 = vrot.lane.b32.xlu0 %v8296_v13, %s9992_s25 }
 0x776   : > { %8121 = vmatmul.mubr.bf16.vlgmr.msra.gmra.mrb[96].mxu1 %v7927_v9 }
 0x777   : > { %9745 = vmatpush3.bf16.msra.mxu1 %v9900_v6  ;;  %9760 = vmatprep.mubr.msk.bf16.mxu1 %vm9989_vm0, %v16923_v23  ;;  %v10005_v6 = vmov 4  }
 0x778   : > { %9746 = vmatprep.subr.bf16.mxu1 %v16923_v23 }
 0x77b   : > { %9747 = vmatpush3.bf16.msra.mxu1 %v9901_v11 }
 0x77c   : > { %9748 = vmatprep.subr.bf16.mxu1 %v16923_v23 }
 0x77f   : > { %9749 = vmatpush3.bf16.msra.mxu1 %v9902_v62 }
 0x780   : > { %9750 = vmatprep.subr.bf16.mxu1 %v16923_v23 }
 0x783   : > { %9751 = vmatpush3.bf16.msra.mxu1 %v9903_v4 }
 0x784   : > { %9752 = vmatprep.subr.bf16.mxu1 %v16923_v23 }
 0x787   : > { %9753 = vmatpush3.bf16.msra.mxu1 %v9904_v16 }
 0x788   : > { %9754 = vmatprep.subr.bf16.mxu1 %v16923_v23 }
 0x78b   : > { %9755 = vmatpush3.bf16.msra.mxu1 %v9905_v45 }
 0x78c   : > { %9756 = vmatprep.subr.bf16.mxu1 %v16923_v23 }
 0x78f   : > { %9757 = vmatpush3.bf16.msra.mxu1 %v9906_v0  ;;  %v10007_v0 = vmov 10  }
 0x790   : > { %9758 = vmatprep.subr.bf16.mxu1 %v16923_v23  ;;  %v8170_v23 = vlaneseq }
 0x792   : > { %v16500_v36 = vshrl.u32 %v8170_v23, 7 }
 0x793   : > { %9759 = vmatpush3.bf16.msra.mxu1 %v9907_v12 }
 0x794   : > { %v8176_v50 = vsub.s32 1, %v16500_v36  ;;  %v8180_v61 = vsub.s32 2, %v16500_v36  ;;  %v8172_v51 = vsub.s32 0, %v16500_v36 }
 0x796   : > { %9761 = vmatmul.mubr.bf16.vlgmr.msra.gmra.mrb[100].mxu1 %v7927_v9  ;;  %v8177_v34 = vrot.slane %v16506_v20, %v8176_v50  ;;  %v8181_v31 = vrot.slane %v16506_v20, %v8180_v61 }
 0x7e7   : > { %v8299_v59 = vpop.permute.xlu1 %8298  ;;  %v8303_v58 = vpop.permute.xlu0 %8302 }
 0x7e8   : > { %v8301_v32 = vadd.f32 %v8299_v59, %v8296_v13  ;;  %v8173_v13 = vrot.slane %v16506_v20, %v8172_v51  ;;  %v10008_v59 = vmov 11  }
 0x7ea   : > { %v8305_v8 = vadd.f32 %v8303_v58, %v8301_v32 }
 0x7ec   : > { %9908 = vrsqrt.f32 %v8305_v8  ;;  %vm8308_vm0 = vcmp.eq.f32.partialorder %v8305_v8, inf  ;;  %v8311_v52 = vand.u32 2147483648, %v8305_v8  ;;  %vm8310_vm13 = vcmp.eq.f32.partialorder %v8305_v8, 0.0 }
 0x7f6   : > { %v9909_v54 = vpop.eup %9908 }
 0x7f7   : > { %v8307_v49 = vmul.f32 %v9909_v54, %v8305_v8 }
 0x7f9   : > { %v8309_v15 = vsel %vm8308_vm0, %v8305_v8, %v8307_v49 }
 0x7fa   : > { %v8312_v3 = vsel %vm8310_vm13, %v8311_v52, %v8309_v15 }
 0x7fb   : > { %v8313_v39 = vadd.f32 1e-08, %v8312_v3 }
 0x7fd   : > { %8322 = vrot.lane.b32.xlu0 %v8313_v39, %s9993_s29  ;;  %8317 = vrot.lane.b32.xlu1 %v8313_v39, %s9994_s30  ;;  %s9998_s30 = smov 123  }
 0x849   : > { %v16509_v48 = vpop.f32.mrb[96].mxu1 }
 0x84a   : > { %v8124_v10 = vpop.f32.mrb[97].mxu1  ;;  %v16562_v62 = vadd.f32 %v8173_v13, %v16509_v48 }
 0x84b   : > { %v16511_v19 = vadd.f32 %v8177_v34, %v8124_v10  ;;  %v8126_v44 = vpop.f32.mrb[98].mxu1 }
 0x84c   : > { %v8127_v40 = vpop.f32.mrb[99].mxu1 }
 0x869   : > { %v8163_v30 = vpop.f32.mrb[100].mxu1 }
 0x86a   : > { %v16515_v22 = vadd.f32 %v8181_v31, %v8163_v30  ;;  %v9762_v38 = vpop.f32.mrb[101].mxu1 }
 0x86b   : > { %v8166_v17 = vpop.f32.mrb[102].mxu1 }
 0x86c   : > { %v9763_v21 = vpop.f32.mrb[103].mxu1 }
 0x86f   : > { %v8323_v33 = vpop.permute.xlu0 %8322  ;;  %v8318_v1 = vpop.permute.xlu1 %8317 }
 0x870   : > { %9910 = vrcp.f32 %v8323_v33 }
 0x871   : > { %9912 = vrcp.f32 %v8318_v1 }
 0x872   : > { %9914 = vrcp.f32 %v8313_v39 }
 0x87a   : > { %v9911_v55 = vpop.eup %9910 }
 0x87b   : > { %v9913_v14 = vpop.eup %9912  ;;  %v16519_v37 = vmul.f32 %v9911_v55, %v16457_v43 }
 0x87c   : > { %v16526_v2 = vmul.f32 %v9913_v14, %v16457_v43  ;;  %v9915_v41 = vpop.eup %9914 }
 0x87d   : > { %8347 = vrot.lane.b32.xlu0 %v16519_v37, %s9996_s4  ;;  %v16533_v35 = vmul.f32 %v9915_v41, %v16457_v43 }
 0x87e   : > { %8333 = vrot.lane.b32.xlu1 %v16526_v2, %s9997_s1 }
 0x881   : > { %8257 = vrot.lane.b32.xlu0 %v16530_v27, %s9993_s29 }
 0x882   : > { %8360 = vrot.lane.b32.xlu1 %v16533_v35, %s9997_s1 }
 0x885   : > { %8343 = vrot.lane.b32.xlu0 %v16533_v35, %s9992_s25 }
 0x886   : > { %8328 = vrot.lane.b32.xlu1 %v16519_v37, %s9998_s30 }
 0x88a   : > { %8356 = vrot.lane.b32.xlu1 %v16526_v2, %s9998_s30 }
 0x88e   : > { %8190 = vperm.xlu1 %9796, %v16457_v43  }
 0x892   : > { %9798 = vset.pattern.permute.xlu1 %v9999_v56 }
 0x8ef   : > { %v8348_v7 = vpop.permute.xlu0 %8347 }
 0x8f0   : > { %v8350_v24 = vmul.f32 %v8348_v7, %v16533_v35  ;;  %v8334_v57 = vpop.permute.xlu1 %8333 }
 0x8f1   : > { %v8336_v29 = vmul.f32 %v8334_v57, %v16519_v37 }
 0x8f2   : > { %8352 = vrot.lane.b32.xlu1 %v8350_v24, %s9993_s29 }
 0x8f3   : > { %8338 = vrot.lane.b32.xlu0 %v8336_v29, %s9991_s23  ;;  %v8258_v11 = vpop.permute.xlu0 %8257 }
 0x8f4   : > { %v8361_v18 = vpop.permute.xlu1 %8360  ;;  %v8260_v4 = vsub.f32 %v16530_v27, %v8258_v11 }
 0x8f5   : > { %v8363_v46 = vmul.f32 %v8361_v18, %v16526_v2 }
 0x8f6   : > { %8201 = vperm.xlu1 %9798, %v16457_v43   ;;  %v8262_v12 = vmul.f32 0.0625, %v8260_v4 }
 0x8f7   : > { %8365 = vrot.lane.b32.xlu0 %v8363_v46, %s9991_s23  ;;  %v8344_v58 = vpop.permute.xlu0 %8343  ;;  %s9765_s23 = smul.u32 24, %s17222_s22 }
 0x8f8   : > { %v8329_v26 = vpop.permute.xlu1 %8328  ;;  %v8267_v32 = vrot.slane %v8262_v12, %v8172_v51  ;;  %v8346_v3 = vmul.f32 %v8344_v58, %v16519_v37 }
 0x8f9   : > { %v8331_v8 = vmul.f32 %v8329_v26, %v16526_v2  ;;  %s661_s0 = scalar_lea.vmem %s16624_s19, %s9765_s23  ;;  %s666_s28 = scalar_lea.vmem %s17219_s27, %s9765_s23 }
 0x8fa   : > { %9799 = vset.pattern.permute.xlu1 %v10000_v25 }
 0x8fb   : > { %8195 = vperm.xlu0 %9797, %v16457_v43   ;;  %8207 = vperm.xlu1 %9799, %v16457_v43  }
 0x8fc   : > { %v8357_v9 = vpop.permute.xlu1 %8356 }
 0x8fd   : > { %v8359_v52 = vmul.f32 %v8357_v9, %v16533_v35 }
 0x8ff   : > { %9802 = vset.pattern.permute.xlu0 %v10001_v63  ;;  %9800 = vset.pattern.permute.xlu1 %v10002_v42 }
 0x900   : > { %8234 = vperm.xlu0 %9802, %v16457_v43   ;;  %8217 = vperm.xlu1 %9800, %v16457_v43  }
 0x904   : > { %9805 = vset.pattern.permute.xlu0 %v10003_v5  ;;  %9801 = vset.pattern.permute.xlu1 %v10004_v53 }
 0x905   : > { %8229 = vperm.xlu0 %9805, %v16457_v43   ;;  %8223 = vperm.xlu1 %9801, %v16457_v43  }
 0x909   : > { %9806 = vset.pattern.permute.xlu0 %v10005_v6  ;;  %9803 = vset.pattern.permute.xlu1 %v10006_v47 }
 0x90a   : > { %8212 = vperm.xlu0 %9806, %v16457_v43   ;;  %8239 = vperm.xlu1 %9803, %v16457_v43  }
 0x90d   : > { %v8191_v16 = vpop.permute.xlu1 %8190 }
 0x90e   : > { %v8193_v45 = vmul.f32 %v8191_v16, %v16562_v62  ;;  %8378 = vperm.xlu0 %9806, %v16533_v35   ;;  %9804 = vset.pattern.permute.xlu1 %v10007_v0 }
 0x90f   : > { %8245 = vperm.xlu1 %9804, %v16457_v43  }
 0x912   : > { %9811 = vset.pattern.permute.xlu0 %v9999_v56 }
 0x913   : > { %8409 = vperm.xlu0 %9811, %v16519_v37   ;;  %9807 = vset.pattern.permute.xlu1 %v10008_v59 }
 0x914   : > { %8251 = vperm.xlu1 %9807, %v16457_v43   ;;  %v8276_v43 = vrot.slane %v16530_v27, %v8172_v51 }
 0x917   : > { %9814 = vset.pattern.permute.xlu0 %v10000_v25 }
 0x918   : > { %8283 = vperm.xlu0 %9814, %v8267_v32   ;;  %9808 = vset.pattern.permute.xlu1 %v17218_v60 }
 0x919   : > { %8373 = vperm.xlu1 %9808, %v16533_v35  }
 0x91c   : > { %9815 = vset.pattern.permute.xlu0 %v17218_v60 }
 0x91d   : > { %9809 = vset.pattern.permute.xlu1 %v9995_v28 }
 0x91e   : > { %8391 = vperm.xlu1 %9809, %v16526_v2  }
 0x922   : > { %9810 = vset.pattern.permute.xlu1 %v10002_v42 }
 0x923   : > { %8396 = vperm.xlu1 %9810, %v16526_v2  }
 0x927   : > { %9812 = vset.pattern.permute.xlu1 %v10004_v53 }
 0x928   : > { %8414 = vperm.xlu1 %9812, %v16519_v37  }
 0x92c   : > { %9813 = vset.pattern.permute.xlu1 %v9999_v56 }
 0x92d   : > { %8269 = vperm.xlu1 %9813, %v8267_v32  }
 0x931   : > { %9816 = vset.pattern.permute.xlu1 %v17218_v60 }
 0x932   : > { %8278 = vperm.xlu1 %9816, %v8276_v43  }
 0x936   : > { %9817 = vset.pattern.permute.xlu1 %v9995_v28 }
 0x964   : > { %v8353_v15 = vpop.permute.xlu1 %8352 }
 0x965   : > { %v8339_v54 = vpop.permute.xlu0 %8338  ;;  %v8355_v36 = vsub.f32 %v8346_v3, %v8353_v15 }
 0x966   : > { %v8341_v49 = vsub.f32 %v8331_v8, %v8339_v54 }
 0x968   : > { %8385 = vperm.xlu1 %9817, %v8341_v49  }
 0x969   : > { %v8366_v39 = vpop.permute.xlu0 %8365 }
 0x96a   : > { %v8368_v23 = vsub.f32 %v8359_v52, %v8366_v39 }
 0x96c   : > { %8421 = vperm.xlu0 %9815, %v8368_v23   ;;  %9818 = vset.pattern.permute.xlu1 %v9999_v56 }
 0x96d   : > { %8403 = vperm.xlu1 %9818, %v8355_v36  }
 0x971   : > { %9819 = vset.pattern.permute.xlu1 %v9995_v28 }
 0x972   : > { %8288 = vperm.xlu1 %9819, %v8276_v43  }
 0x975   : > { %v8202_v60 = vpop.permute.xlu1 %8201 }
 0x976   : > { %v8204_v48 = vmul.f32 %v8202_v60, %v16515_v22 }
 0x97a   : > { %v8196_v50 = vpop.permute.xlu0 %8195  ;;  %v8208_v20 = vpop.permute.xlu1 %8207 }
 0x97b   : > { %v8198_v34 = vmul.f32 %v8196_v50, %v16511_v19 }
 0x97d   : > { %v8199_v10 = vadd.f32 %v8198_v34, %v8193_v45 }
 0x97f   : > { %v8205_v44 = vadd.f32 %v8204_v48, %v8199_v10  ;;  %v8235_v40 = vpop.permute.xlu0 %8234  ;;  %v8218_v61 = vpop.permute.xlu1 %8217 }
 0x980   : > { %v8220_v31 = vmul.f32 %v8218_v61, %v16511_v19  ;;  %v8237_v28 = vmul.f32 %v8235_v40, %v16562_v62 }
 0x981   : > { %v8210_v30 = vadd.f32 %v8208_v20, %v8205_v44 }
 0x983   : > { %v8369_v38 = vsub.f32 %v8210_v30, %v8208_v20 }
 0x984   : > { %v8230_v17 = vpop.permute.xlu0 %8229  ;;  %v8224_v21 = vpop.permute.xlu1 %8223 }
 0x985   : > { %v8226_v33 = vmul.f32 %v8224_v21, %v16515_v22 }
 0x989   : > { %v8213_v1 = vpop.permute.xlu0 %8212  ;;  %v8240_v55 = vpop.permute.xlu1 %8239 }
 0x98a   : > { %v8215_v14 = vmul.f32 %v8213_v1, %v16562_v62  ;;  %v8242_v37 = vmul.f32 %v8240_v55, %v16511_v19 }
 0x98c   : > { %v8221_v2 = vadd.f32 %v8220_v31, %v8215_v14  ;;  %v8243_v41 = vadd.f32 %v8242_v37, %v8237_v28 }
 0x98d   : > { %v8379_v25 = vpop.permute.xlu0 %8378 }
 0x98e   : > { %v8227_v27 = vadd.f32 %v8226_v33, %v8221_v2  ;;  %v8246_v35 = vpop.permute.xlu1 %8245 }
 0x98f   : > { %v8248_v56 = vmul.f32 %v8246_v35, %v16515_v22 }
 0x990   : > { %v8232_v7 = vadd.f32 %v8230_v17, %v8227_v27 }
 0x991   : > { %v8249_v24 = vadd.f32 %v8248_v56, %v8243_v41 }
 0x992   : > { %v8370_v18 = vsub.f32 %v8232_v7, %v8230_v17  ;;  %v8410_v9 = vpop.permute.xlu0 %8409 }
 0x993   : > { %v8252_v57 = vpop.permute.xlu1 %8251  ;;  %v8412_v22 = vmul.f32 %v8410_v9, %v8369_v38 }
 0x994   : > { %v8254_v29 = vadd.f32 %v8252_v57, %v8249_v24  ;;  %v8381_v42 = vmul.f32 %v8379_v25, %v8370_v18 }
 0x996   : > { %v8371_v46 = vsub.f32 %v8254_v29, %v8252_v57 }
 0x997   : > { %v8284_v59 = vpop.permute.xlu0 %8283 }
 0x998   : > { %v8374_v63 = vpop.permute.xlu1 %8373  ;;  %v8286_v39 = vmul.f32 %v8284_v59, %v8232_v7 }
 0x999   : > { %v8376_v26 = vmul.f32 %v8374_v63, %v8369_v38 }
 0x99b   : > { %v8382_v51 = vadd.f32 %v8381_v42, %v8376_v26 }
 0x99d   : > { %v8392_v5 = vpop.permute.xlu1 %8391 }
 0x99e   : > { %v8394_v19 = vmul.f32 %v8392_v5, %v8369_v38 }
 0x9a2   : > { %v8397_v53 = vpop.permute.xlu1 %8396 }
 0x9a3   : > { %v8399_v13 = vmul.f32 %v8397_v53, %v8370_v18 }
 0x9a5   : > { %v8400_v6 = vadd.f32 %v8399_v13, %v8394_v19 }
 0x9a7   : > { %v8415_v47 = vpop.permute.xlu1 %8414 }
 0x9a8   : > { %v8417_v11 = vmul.f32 %v8415_v47, %v8370_v18 }
 0x9aa   : > { %v8418_v62 = vadd.f32 %v8417_v11, %v8412_v22 }
 0x9ac   : > { %v8270_v4 = vpop.permute.xlu1 %8269 }
 0x9ad   : > { %v8292_v16 = vmul.f32 %v8270_v4, %v8254_v29  ;;  %v8272_v45 = vmul.f32 %v8270_v4, %v8210_v30 }
 0x9af   : > { %8295 = vst [vmem:[%s661_s0 + $0x10] sm:$0xff] %v8292_v16 }
 0x9b1   : > { %v8279_v0 = vpop.permute.xlu1 %8278 }
 0x9b2   : > { %v8281_v12 = vadd.f32 %v8279_v0, %v8272_v45 }
 0x9b4   : > { %8293 = vst [vmem:[%s661_s0] sm:$0xff] %v8281_v12 }
 0x9e7   : > { %v8386_v32 = vpop.permute.xlu1 %8385 }
 0x9e8   : > { %v8388_v43 = vmul.f32 %v8386_v32, %v8371_v46 }
 0x9ea   : > { %v8389_v58 = vadd.f32 %v8388_v43, %v8382_v51 }
 0x9eb   : > { %v8422_v8 = vpop.permute.xlu0 %8421 }
 0x9ec   : > { %8426 = vst [vmem:[%s666_s28] sm:$0xff] %v8389_v58  ;;  %v8424_v54 = vmul.f32 %v8422_v8, %v8371_v46  ;;  %v8404_v49 = vpop.permute.xlu1 %8403 }
 0x9ed   : > { %v8406_v52 = vmul.f32 %v8404_v49, %v8371_v46 }
 0x9ee   : > { %v8425_v15 = vadd.f32 %v8424_v54, %v8418_v62 }
 0x9ef   : > { %v8407_v3 = vadd.f32 %v8406_v52, %v8400_v6 }
 0x9f0   : > { %8428 = vst [vmem:[%s666_s28 + $0x10] sm:$0xff] %v8425_v15 }
 0x9f1   : > { %8427 = vst [vmem:[%s666_s28 + $0x8] sm:$0xff] %v8407_v3  ;;  %v8289_v23 = vpop.permute.xlu1 %8288 }
 0x9f2   : > { %v8291_v36 = vadd.f32 %v8289_v23, %v8286_v39 }
 0x9f4   : > { %8294 = vst [vmem:[%s661_s0 + $0x8] sm:$0xff] %v8291_v36 }
 0x9f5 PF: > { %s17220_s22 = sld [smem:[#allocation4_spill]] }
 0x9fb   : > { %s31_s1 = sadd.s32 1, %s17220_s22  }
 0x9fc   : > { %p28_p4 = scmp.ge.s32.totalorder %s31_s1, 4  }
 0x9fe   :  { %30 = sbr.rel (!%p28_p4) target bundleno = 7 (0x7), region = 149 }

</bundles_post_ra>
